<compile_context>
chip_gen: v7x
topology: tpu7x:2x2x1
jax: 0.10.0
libtpu: 0.0.40
codegen_flags: <defaults>
</compile_context>

<pallas_src>
import functools

import jax
import jax.numpy as jnp
from jax.experimental import pallas as pl
from jax.experimental.pallas import tpu as pltpu


# ----------------------------------------------------------------------------
# Fully fused Actor kernel.
# ----------------------------------------------------------------------------
def _actor_kernel(patches_ref, pts_ref,
                  cw_ref, cb_ref, fiw_ref, fib_ref,
                  p1w_ref, p1b_ref, p2w_ref, p2b_ref, fpw_ref, fpb_ref,
                  wv_ref, wvb_ref, wo_ref, wob_ref,
                  g1_ref, bb1_ref, w1_ref, fb1_ref, w2_ref, fb2_ref,
                  g2_ref, bb2_ref, ow_ref, ob_ref,
                  o_ref, acc_ref, *, inv_hw, eps):
    t = pl.program_id(0)

    @pl.when(t == 0)
    def _init():
        acc_ref[...] = jnp.zeros(acc_ref.shape, acc_ref.dtype)

    # ---- image branch tile: 3x3 conv (im2col matmul) + relu + partial GAP ----
    B, tm, K = patches_ref.shape
    patches = patches_ref[...].reshape(B * tm, K)                       # bf16
    conv = jnp.dot(patches, cw_ref[...],
                   preferred_element_type=jnp.float32)                  # [B*tm, 8]
    conv = jnp.maximum(conv + cb_ref[...], 0.0)
    acc_ref[...] += jnp.sum(conv.reshape(B, tm, -1), axis=1)            # [B, 8]

    @pl.when(t == pl.num_programs(0) - 1)
    def _finalize():
        # -- image fc + relu -> [B, 512] --
        pooled_img = (acc_ref[...] * inv_hw).astype(fiw_ref.dtype)
        img_feat = jnp.maximum(
            jnp.dot(pooled_img, fiw_ref[...],
                    preferred_element_type=jnp.float32) + fib_ref[...], 0.0)

        # -- point branch: shared MLP 3->64->128 + relu, max-pool, fc + relu --
        Bp, N, C = pts_ref.shape
        x = pts_ref[...].reshape(Bp * N, C)                             # bf16
        h = jnp.dot(x, p1w_ref[...],
                    preferred_element_type=jnp.float32) + p1b_ref[...]
        h = jnp.maximum(h, 0.0)
        h = jnp.dot(h.astype(p2w_ref.dtype), p2w_ref[...],
                    preferred_element_type=jnp.float32) + p2b_ref[...]
        h = jnp.maximum(h, 0.0)                                         # [B*N,128]
        pooled_pt = jnp.max(h.reshape(Bp, N, -1), axis=1)               # [B, 128]
        pt_feat = jnp.maximum(
            jnp.dot(pooled_pt.astype(fpw_ref.dtype), fpw_ref[...],
                    preferred_element_type=jnp.float32) + fpb_ref[...], 0.0)

        # -- concat in VMEM -> [B, 1024] --
        xcat = jnp.concatenate([img_feat, pt_feat], axis=-1)            # f32
        xb = xcat.astype(wv_ref.dtype)

        # -- attention (seq_len == 1): softmax over one key == 1 => out == O(V) --
        v = jnp.dot(xb, wv_ref[...],
                    preferred_element_type=jnp.float32) + wvb_ref[...]
        attn = jnp.dot(v.astype(wo_ref.dtype), wo_ref[...],
                       preferred_element_type=jnp.float32) + wob_ref[...]

        # -- residual + LayerNorm 1 (f32) --
        h1 = xcat + attn
        mu = jnp.mean(h1, axis=-1, keepdims=True)
        var = jnp.mean((h1 - mu) ** 2, axis=-1, keepdims=True)
        x1 = (h1 - mu) * jax.lax.rsqrt(var + eps) * g1_ref[...] + bb1_ref[...]

        # -- feed-forward 1024 -> 512 -> 1024 --
        ff = jnp.dot(x1.astype(w1_ref.dtype), w1_ref[...],
                     preferred_element_type=jnp.float32) + fb1_ref[...]
        ff = jnp.maximum(ff, 0.0)
        ff = jnp.dot(ff.astype(w2_ref.dtype), w2_ref[...],
                     preferred_element_type=jnp.float32) + fb2_ref[...]

        # -- residual + LayerNorm 2 (f32) --
        h2 = x1 + ff
        mu2 = jnp.mean(h2, axis=-1, keepdims=True)
        var2 = jnp.mean((h2 - mu2) ** 2, axis=-1, keepdims=True)
        x2 = (h2 - mu2) * jax.lax.rsqrt(var2 + eps) * g2_ref[...] + bb2_ref[...]

        # -- output projection + action head: relu, relu, tanh --
        out = jnp.dot(x2.astype(ow_ref.dtype), ow_ref[...],
                      preferred_element_type=jnp.float32) + ob_ref[...]
        col = jax.lax.broadcasted_iota(jnp.int32, out.shape, 1)
        o_ref[...] = jnp.where(col == 2, jnp.tanh(out), jnp.maximum(out, 0.0))


def actor_pallas(patches, pts, p, eps=1e-5):
    B, HW, K = patches.shape
    _, N, C = pts.shape
    c_out = p["conv_w"].shape[-1]
    D = p["wv"].shape[-1]
    FF = p["ff_w1"].shape[-1]
    tm = 128 if HW % 128 == 0 else HW
    grid = (HW // tm,)

    const2 = lambda shape: pl.BlockSpec(shape, lambda t: (0, 0))
    in_specs = [
        pl.BlockSpec((B, tm, K), lambda t: (0, t, 0)),        # image patches (tiled)
        pl.BlockSpec((B, N, C), lambda t: (0, 0, 0)),         # points (resident)
        const2((K, c_out)), const2((1, c_out)),               # conv w/b
        const2((c_out, 512)), const2((1, 512)),               # image fc
        const2((C, 64)), const2((1, 64)),                     # point mlp1
        const2((64, 128)), const2((1, 128)),                  # point mlp2
        const2((128, 512)), const2((1, 512)),                 # point fc
        const2((D, D)), const2((1, D)),                       # wv
        const2((D, D)), const2((1, D)),                       # wo
        const2((1, D)), const2((1, D)),                       # ln1
        const2((D, FF)), const2((1, FF)),                     # ff1
        const2((FF, D)), const2((1, D)),                      # ff2
        const2((1, D)), const2((1, D)),                       # ln2
        const2((D, 3)), const2((1, 3)),                       # out proj
    ]

    return pl.pallas_call(
        functools.partial(_actor_kernel, inv_hw=1.0 / float(HW), eps=eps),
        out_shape=jax.ShapeDtypeStruct((B, 3), jnp.float32),
        grid=grid,
        in_specs=in_specs,
        out_specs=pl.BlockSpec((B, 3), lambda t: (0, 0)),
        scratch_shapes=[pltpu.VMEM((B, c_out), jnp.float32)],
        compiler_params=pltpu.CompilerParams(
            dimension_semantics=("arbitrary",)),
    )(patches, pts,
      p["conv_w"], p["conv_b"], p["fc_img_w"], p["fc_img_b"],
      p["pt_w1"], p["pt_b1"], p["pt_w2"], p["pt_b2"],
      p["fc_pt_w"], p["fc_pt_b"],
      p["wv"], p["wv_b"], p["wo"], p["wo_b"],
      p["ln1_g"], p["ln1_b"],
      p["ff_w1"], p["ff_b1"], p["ff_w2"], p["ff_b2"],
      p["ln2_g"], p["ln2_b"],
      p["out_w"], p["out_b"])


# ----------------------------------------------------------------------------
# Glue: im2col (XLA), parameter init, forward.
# ----------------------------------------------------------------------------
def im2col_3x3(img):
    # img: [B, C, H, W]; 3x3, stride 1, padding 1 -> [B, H*W, C*9]
    B, C, H, W = img.shape
    xp = jnp.pad(img, ((0, 0), (0, 0), (1, 1), (1, 1)))
    cols = []
    for dy in range(3):
        for dx in range(3):
            cols.append(xp[:, :, dy:dy + H, dx:dx + W])
    patches = jnp.stack(cols, axis=2)            # [B, C, 9, H, W]
    patches = patches.transpose(0, 3, 4, 1, 2)   # [B, H, W, C, 9]
    return patches.reshape(B, H * W, C * 9)


def init_params(key):
    ks = jax.random.split(key, 12)
    std = 0.05
    D, FF = 1024, 512
    bf = jnp.bfloat16
    p = {}
    # image branch: conv3x3 (3->8) -> relu -> GAP -> fc(512) -> relu
    conv_w = std * jax.random.normal(ks[0], (8, 3, 3, 3), jnp.float32)
    p["conv_w"] = conv_w.reshape(8, -1).T.astype(bf)        # [27, 8]
    p["conv_b"] = jnp.zeros((1, 8), jnp.float32)
    p["fc_img_w"] = (std * jax.random.normal(ks[1], (8, 512), jnp.float32)).astype(bf)
    p["fc_img_b"] = jnp.zeros((1, 512), jnp.float32)
    # point branch: MLP 3->64->128 -> maxpool -> fc(512) -> relu
    p["pt_w1"] = (std * jax.random.normal(ks[2], (3, 64), jnp.float32)).astype(bf)
    p["pt_b1"] = jnp.zeros((1, 64), jnp.float32)
    p["pt_w2"] = (std * jax.random.normal(ks[3], (64, 128), jnp.float32)).astype(bf)
    p["pt_b2"] = jnp.zeros((1, 128), jnp.float32)
    p["fc_pt_w"] = (std * jax.random.normal(ks[4], (128, 512), jnp.float32)).astype(bf)
    p["fc_pt_b"] = jnp.zeros((1, 512), jnp.float32)
    # transformer block (single-token attention => Q/K projections are a no-op
    # through softmax and are omitted; numerically identical)
    p["wv"] = (std * jax.random.normal(ks[5], (D, D), jnp.float32)).astype(bf)
    p["wv_b"] = jnp.zeros((1, D), jnp.float32)
    p["wo"] = (std * jax.random.normal(ks[6], (D, D), jnp.float32)).astype(bf)
    p["wo_b"] = jnp.zeros((1, D), jnp.float32)
    p["ff_w1"] = (std * jax.random.normal(ks[7], (D, FF), jnp.float32)).astype(bf)
    p["ff_b1"] = jnp.zeros((1, FF), jnp.float32)
    p["ff_w2"] = (std * jax.random.normal(ks[8], (FF, D), jnp.float32)).astype(bf)
    p["ff_b2"] = jnp.zeros((1, D), jnp.float32)
    p["ln1_g"] = jnp.ones((1, D), jnp.float32)
    p["ln1_b"] = jnp.zeros((1, D), jnp.float32)
    p["ln2_g"] = jnp.ones((1, D), jnp.float32)
    p["ln2_b"] = jnp.zeros((1, D), jnp.float32)
    p["out_w"] = (std * jax.random.normal(ks[9], (D, 3), jnp.float32)).astype(bf)
    p["out_b"] = jnp.zeros((1, 3), jnp.float32)
    return p


def actor_forward(params, image, points):
    # image: [B, C, H, W]; points: [B, 3, N]
    patches = im2col_3x3(image).astype(jnp.bfloat16)          # [B, H*W, 27]
    pts = jnp.transpose(points, (0, 2, 1)).astype(jnp.bfloat16)  # [B, N, 3]
    return actor_pallas(patches, pts, params)                 # [B, 3]


if __name__ == "__main__":
    key = jax.random.PRNGKey(0)
    k_img, k_pts = jax.random.split(key)
    image = jax.random.normal(k_img, (2, 3, 16, 16), jnp.float32)   # NCHW
    points = jax.random.normal(k_pts, (2, 3, 64), jnp.float32)      # [B, 3, N]
    params = init_params(jax.random.PRNGKey(42))

    actions = jax.jit(actor_forward)(params, image, points)
    actions = jax.block_until_ready(actions)
    assert actions.shape == (2, 3)
    assert bool(jnp.all(jnp.isfinite(actions)))
    print("KERNEL_OK")
</pallas_src>

<mosaic_0001>
module attributes {stable_mosaic.version = 11 : i64} {
  func.func @_actor_kernel(%arg0: i32, %arg1: memref<2x128x27xbf16, #tpu.memory_space<vmem>>, %arg2: memref<2x64x3xbf16, #tpu.memory_space<vmem>>, %arg3: memref<27x8xbf16, #tpu.memory_space<vmem>>, %arg4: memref<1x8xf32, #tpu.memory_space<vmem>>, %arg5: memref<8x512xbf16, #tpu.memory_space<vmem>>, %arg6: memref<1x512xf32, #tpu.memory_space<vmem>>, %arg7: memref<3x64xbf16, #tpu.memory_space<vmem>>, %arg8: memref<1x64xf32, #tpu.memory_space<vmem>>, %arg9: memref<64x128xbf16, #tpu.memory_space<vmem>>, %arg10: memref<1x128xf32, #tpu.memory_space<vmem>>, %arg11: memref<128x512xbf16, #tpu.memory_space<vmem>>, %arg12: memref<1x512xf32, #tpu.memory_space<vmem>>, %arg13: memref<1024x1024xbf16, #tpu.memory_space<vmem>>, %arg14: memref<1x1024xf32, #tpu.memory_space<vmem>>, %arg15: memref<1024x1024xbf16, #tpu.memory_space<vmem>>, %arg16: memref<1x1024xf32, #tpu.memory_space<vmem>>, %arg17: memref<1x1024xf32, #tpu.memory_space<vmem>>, %arg18: memref<1x1024xf32, #tpu.memory_space<vmem>>, %arg19: memref<1024x512xbf16, #tpu.memory_space<vmem>>, %arg20: memref<1x512xf32, #tpu.memory_space<vmem>>, %arg21: memref<512x1024xbf16, #tpu.memory_space<vmem>>, %arg22: memref<1x1024xf32, #tpu.memory_space<vmem>>, %arg23: memref<1x1024xf32, #tpu.memory_space<vmem>>, %arg24: memref<1x1024xf32, #tpu.memory_space<vmem>>, %arg25: memref<1024x3xbf16, #tpu.memory_space<vmem>>, %arg26: memref<1x3xf32, #tpu.memory_space<vmem>>, %arg27: memref<2x3xf32, #tpu.memory_space<vmem>>, %arg28: memref<2x8xf32, #tpu.memory_space<vmem>>) attributes {dimension_semantics = [#tpu.dimension_semantics<arbitrary>], iteration_bounds = array<i64: 2>, scalar_prefetch = 0 : i64, scratch_operands = 1 : i64, tpu.core_type = #tpu.core_type<tc>, window_params = [{transform_indices = @transform_0, window_bounds = array<i64: 2, 128, 27>}, {pipeline_mode = #tpu.pipeline_mode<synchronous>, transform_indices = @transform_1, window_bounds = array<i64: 2, 64, 3>}, {pipeline_mode = #tpu.pipeline_mode<synchronous>, transform_indices = @transform_2, window_bounds = array<i64: 27, 8>}, {pipeline_mode = #tpu.pipeline_mode<synchronous>, transform_indices = @transform_3, window_bounds = array<i64: 1, 8>}, {pipeline_mode = #tpu.pipeline_mode<synchronous>, transform_indices = @transform_4, window_bounds = array<i64: 8, 512>}, {pipeline_mode = #tpu.pipeline_mode<synchronous>, transform_indices = @transform_5, window_bounds = array<i64: 1, 512>}, {pipeline_mode = #tpu.pipeline_mode<synchronous>, transform_indices = @transform_6, window_bounds = array<i64: 3, 64>}, {pipeline_mode = #tpu.pipeline_mode<synchronous>, transform_indices = @transform_7, window_bounds = array<i64: 1, 64>}, {pipeline_mode = #tpu.pipeline_mode<synchronous>, transform_indices = @transform_8, window_bounds = array<i64: 64, 128>}, {pipeline_mode = #tpu.pipeline_mode<synchronous>, transform_indices = @transform_9, window_bounds = array<i64: 1, 128>}, {pipeline_mode = #tpu.pipeline_mode<synchronous>, transform_indices = @transform_10, window_bounds = array<i64: 128, 512>}, {pipeline_mode = #tpu.pipeline_mode<synchronous>, transform_indices = @transform_11, window_bounds = array<i64: 1, 512>}, {pipeline_mode = #tpu.pipeline_mode<synchronous>, transform_indices = @transform_12, window_bounds = array<i64: 1024, 1024>}, {pipeline_mode = #tpu.pipeline_mode<synchronous>, transform_indices = @transform_13, window_bounds = array<i64: 1, 1024>}, {pipeline_mode = #tpu.pipeline_mode<synchronous>, transform_indices = @transform_14, window_bounds = array<i64: 1024, 1024>}, {pipeline_mode = #tpu.pipeline_mode<synchronous>, transform_indices = @transform_15, window_bounds = array<i64: 1, 1024>}, {pipeline_mode = #tpu.pipeline_mode<synchronous>, transform_indices = @transform_16, window_bounds = array<i64: 1, 1024>}, {pipeline_mode = #tpu.pipeline_mode<synchronous>, transform_indices = @transform_17, window_bounds = array<i64: 1, 1024>}, {pipeline_mode = #tpu.pipeline_mode<synchronous>, transform_indices = @transform_18, window_bounds = array<i64: 1024, 512>}, {pipeline_mode = #tpu.pipeline_mode<synchronous>, transform_indices = @transform_19, window_bounds = array<i64: 1, 512>}, {pipeline_mode = #tpu.pipeline_mode<synchronous>, transform_indices = @transform_20, window_bounds = array<i64: 512, 1024>}, {pipeline_mode = #tpu.pipeline_mode<synchronous>, transform_indices = @transform_21, window_bounds = array<i64: 1, 1024>}, {pipeline_mode = #tpu.pipeline_mode<synchronous>, transform_indices = @transform_22, window_bounds = array<i64: 1, 1024>}, {pipeline_mode = #tpu.pipeline_mode<synchronous>, transform_indices = @transform_23, window_bounds = array<i64: 1, 1024>}, {pipeline_mode = #tpu.pipeline_mode<synchronous>, transform_indices = @transform_24, window_bounds = array<i64: 1024, 3>}, {pipeline_mode = #tpu.pipeline_mode<synchronous>, transform_indices = @transform_25, window_bounds = array<i64: 1, 3>}, {pipeline_mode = #tpu.pipeline_mode<synchronous>, transform_indices = @transform_26, window_bounds = array<i64: 2, 3>}]} {
    %c0_i32 = arith.constant 0 : i32
    %0 = arith.cmpi eq, %arg0, %c0_i32 : i32
    %1 = arith.extui %0 : i1 to i32
    %c0_i32_0 = arith.constant 0 : i32
    %2 = arith.cmpi ne, %1, %c0_i32_0 : i32
    scf.if %2 {
      %cst_14 = arith.constant 0.000000e+00 : f32
      %20 = vector.broadcast %cst_14 : f32 to vector<2x8xf32>
      %c0_15 = arith.constant 0 : index
      %c0_16 = arith.constant 0 : index
      %21 = vector.load %arg28[%c0_15, %c0_16] : memref<2x8xf32, #tpu.memory_space<vmem>>, vector<2x8xf32>
      tpu.vector_store %arg28[%c0_15, %c0_16], %20 {strides = array<i32>} : memref<2x8xf32, #tpu.memory_space<vmem>>, vector<2x8xf32>,
    } else {
    }
    %c0 = arith.constant 0 : index
    %c0_1 = arith.constant 0 : index
    %c0_2 = arith.constant 0 : index
    %3 = vector.load %arg1[%c0, %c0_1, %c0_2] : memref<2x128x27xbf16, #tpu.memory_space<vmem>>, vector<2x128x27xbf16>
    %4 = vector.shape_cast %3 : vector<2x128x27xbf16> to vector<256x27xbf16>
    %c0_3 = arith.constant 0 : index
    %c0_4 = arith.constant 0 : index
    %5 = vector.load %arg3[%c0_3, %c0_4] : memref<27x8xbf16, #tpu.memory_space<vmem>>, vector<27x8xbf16>
    %cst = arith.constant dense<0.000000e+00> : vector<256x8xf32>
    %6 = tpu.matmul %4, %5, %cst {dimension_numbers = #tpu.dot_dimension_numbers<[1], [0], [0], [1], [0, 0, 1, 1], [], []>} : vector<256x27xbf16>, vector<27x8xbf16>, vector<256x8xf32> -> vector<256x8xf32>
    %c0_5 = arith.constant 0 : index
    %c0_6 = arith.constant 0 : index
    %7 = vector.load %arg4[%c0_5, %c0_6] : memref<1x8xf32, #tpu.memory_space<vmem>>, vector<1x8xf32>
    %8 = vector.broadcast %7 : vector<1x8xf32> to vector<256x8xf32>
    %9 = arith.addf %6, %8 : vector<256x8xf32>
    %cst_7 = arith.constant 0.000000e+00 : f32
    %10 = vector.broadcast %cst_7 : f32 to vector<256x8xf32>
    %11 = arith.maximumf %9, %10 : vector<256x8xf32>
    %c0_8 = arith.constant 0 : index
    %c0_9 = arith.constant 0 : index
    %12 = vector.load %arg28[%c0_8, %c0_9] : memref<2x8xf32, #tpu.memory_space<vmem>>, vector<2x8xf32>
    %13 = vector.shape_cast %11 : vector<256x8xf32> to vector<2x128x8xf32>
    %cst_10 = arith.constant dense<0.000000e+00> : vector<2x8xf32>
    %14 = vector.multi_reduction <add>, %13, %cst_10 [1] : vector<2x128x8xf32> to vector<2x8xf32>
    %15 = arith.addf %12, %14 : vector<2x8xf32>
    %c0_11 = arith.constant 0 : index
    %c0_12 = arith.constant 0 : index
    %16 = vector.load %arg28[%c0_11, %c0_12] : memref<2x8xf32, #tpu.memory_space<vmem>>, vector<2x8xf32>
    tpu.vector_store %arg28[%c0_11, %c0_12], %15 {strides = array<i32>} : memref<2x8xf32, #tpu.memory_space<vmem>>, vector<2x8xf32>,
    %c1_i32 = arith.constant 1 : i32
    %17 = arith.cmpi eq, %arg0, %c1_i32 : i32
    %18 = arith.extui %17 : i1 to i32
    %c0_i32_13 = arith.constant 0 : i32
    %19 = arith.cmpi ne, %18, %c0_i32_13 : i32
    scf.if %19 {
      %c0_14 = arith.constant 0 : index
      %c0_15 = arith.constant 0 : index
      %20 = vector.load %arg28[%c0_14, %c0_15] : memref<2x8xf32, #tpu.memory_space<vmem>>, vector<2x8xf32>
      %cst_16 = arith.constant 3.906250e-03 : f32
      %21 = vector.broadcast %cst_16 : f32 to vector<2x8xf32>
      %22 = arith.mulf %20, %21 : vector<2x8xf32>
      %23 = arith.truncf %22 : vector<2x8xf32> to vector<2x8xbf16>
      %c0_17 = arith.constant 0 : index
      %c0_18 = arith.constant 0 : index
      %24 = vector.load %arg5[%c0_17, %c0_18] : memref<8x512xbf16, #tpu.memory_space<vmem>>, vector<8x512xbf16>
      %cst_19 = arith.constant dense<0.000000e+00> : vector<2x512xf32>
      %25 = tpu.matmul %23, %24, %cst_19 {dimension_numbers = #tpu.dot_dimension_numbers<[1], [0], [0], [1], [0, 0, 1, 1], [], []>} : vector<2x8xbf16>, vector<8x512xbf16>, vector<2x512xf32> -> vector<2x512xf32>
      %c0_20 = arith.constant 0 : index
      %c0_21 = arith.constant 0 : index
      %26 = vector.load %arg6[%c0_20, %c0_21] : memref<1x512xf32, #tpu.memory_space<vmem>>, vector<1x512xf32>
      %27 = vector.broadcast %26 : vector<1x512xf32> to vector<2x512xf32>
      %28 = arith.addf %25, %27 : vector<2x512xf32>
      %cst_22 = arith.constant 0.000000e+00 : f32
      %29 = vector.broadcast %cst_22 : f32 to vector<2x512xf32>
      %30 = arith.maximumf %28, %29 : vector<2x512xf32>
      %c0_23 = arith.constant 0 : index
      %c0_24 = arith.constant 0 : index
      %c0_25 = arith.constant 0 : index
      %31 = vector.load %arg2[%c0_23, %c0_24, %c0_25] : memref<2x64x3xbf16, #tpu.memory_space<vmem>>, vector<2x64x3xbf16>
      %32 = vector.shape_cast %31 : vector<2x64x3xbf16> to vector<128x3xbf16>
      %c0_26 = arith.constant 0 : index
      %c0_27 = arith.constant 0 : index
      %33 = vector.load %arg7[%c0_26, %c0_27] : memref<3x64xbf16, #tpu.memory_space<vmem>>, vector<3x64xbf16>
      %cst_28 = arith.constant dense<0.000000e+00> : vector<128x64xf32>
      %34 = tpu.matmul %32, %33, %cst_28 {dimension_numbers = #tpu.dot_dimension_numbers<[1], [0], [0], [1], [0, 0, 1, 1], [], []>} : vector<128x3xbf16>, vector<3x64xbf16>, vector<128x64xf32> -> vector<128x64xf32>
      %c0_29 = arith.constant 0 : index
      %c0_30 = arith.constant 0 : index
      %35 = vector.load %arg8[%c0_29, %c0_30] : memref<1x64xf32, #tpu.memory_space<vmem>>, vector<1x64xf32>
      %36 = vector.broadcast %35 : vector<1x64xf32> to vector<128x64xf32>
      %37 = arith.addf %34, %36 : vector<128x64xf32>
      %cst_31 = arith.constant 0.000000e+00 : f32
      %38 = vector.broadcast %cst_31 : f32 to vector<128x64xf32>
      %39 = arith.maximumf %37, %38 : vector<128x64xf32>
      %40 = arith.truncf %39 : vector<128x64xf32> to vector<128x64xbf16>
      %c0_32 = arith.constant 0 : index
      %c0_33 = arith.constant 0 : index
      %41 = vector.load %arg9[%c0_32, %c0_33] : memref<64x128xbf16, #tpu.memory_space<vmem>>, vector<64x128xbf16>
      %cst_34 = arith.constant dense<0.000000e+00> : vector<128x128xf32>
      %42 = tpu.matmul %40, %41, %cst_34 {dimension_numbers = #tpu.dot_dimension_numbers<[1], [0], [0], [1], [0, 0, 1, 1], [], []>} : vector<128x64xbf16>, vector<64x128xbf16>, vector<128x128xf32> -> vector<128x128xf32>
      %c0_35 = arith.constant 0 : index
      %c0_36 = arith.constant 0 : index
      %43 = vector.load %arg10[%c0_35, %c0_36] : memref<1x128xf32, #tpu.memory_space<vmem>>, vector<1x128xf32>
      %44 = vector.broadcast %43 : vector<1x128xf32> to vector<128x128xf32>
      %45 = arith.addf %42, %44 : vector<128x128xf32>
      %cst_37 = arith.constant 0.000000e+00 : f32
      %46 = vector.broadcast %cst_37 : f32 to vector<128x128xf32>
      %47 = arith.maximumf %45, %46 : vector<128x128xf32>
      %48 = vector.shape_cast %47 : vector<128x128xf32> to vector<2x64x128xf32>
      %cst_38 = arith.constant dense<0xFF800000> : vector<2x128xf32>
      %49 = vector.multi_reduction <maximumf>, %48, %cst_38 [1] : vector<2x64x128xf32> to vector<2x128xf32>
      %50 = arith.truncf %49 : vector<2x128xf32> to vector<2x128xbf16>
      %c0_39 = arith.constant 0 : index
      %c0_40 = arith.constant 0 : index
      %51 = vector.load %arg11[%c0_39, %c0_40] : memref<128x512xbf16, #tpu.memory_space<vmem>>, vector<128x512xbf16>
      %cst_41 = arith.constant dense<0.000000e+00> : vector<2x512xf32>
      %52 = tpu.matmul %50, %51, %cst_41 {dimension_numbers = #tpu.dot_dimension_numbers<[1], [0], [0], [1], [0, 0, 1, 1], [], []>} : vector<2x128xbf16>, vector<128x512xbf16>, vector<2x512xf32> -> vector<2x512xf32>
      %c0_42 = arith.constant 0 : index
      %c0_43 = arith.constant 0 : index
      %53 = vector.load %arg12[%c0_42, %c0_43] : memref<1x512xf32, #tpu.memory_space<vmem>>, vector<1x512xf32>
      %54 = vector.broadcast %53 : vector<1x512xf32> to vector<2x512xf32>
      %55 = arith.addf %52, %54 : vector<2x512xf32>
      %cst_44 = arith.constant 0.000000e+00 : f32
      %56 = vector.broadcast %cst_44 : f32 to vector<2x512xf32>
      %57 = arith.maximumf %55, %56 : vector<2x512xf32>
      %58 = tpu.concatenate %30, %57 in 1 : vector<2x512xf32>, vector<2x512xf32> -> vector<2x1024xf32>
      %59 = arith.truncf %58 : vector<2x1024xf32> to vector<2x1024xbf16>
      %c0_45 = arith.constant 0 : index
      %c0_46 = arith.constant 0 : index
      %60 = vector.load %arg13[%c0_45, %c0_46] : memref<1024x1024xbf16, #tpu.memory_space<vmem>>, vector<1024x1024xbf16>
      %cst_47 = arith.constant dense<0.000000e+00> : vector<2x1024xf32>
      %61 = tpu.matmul %59, %60, %cst_47 {dimension_numbers = #tpu.dot_dimension_numbers<[1], [0], [0], [1], [0, 0, 1, 1], [], []>} : vector<2x1024xbf16>, vector<1024x1024xbf16>, vector<2x1024xf32> -> vector<2x1024xf32>
      %c0_48 = arith.constant 0 : index
      %c0_49 = arith.constant 0 : index
      %62 = vector.load %arg14[%c0_48, %c0_49] : memref<1x1024xf32, #tpu.memory_space<vmem>>, vector<1x1024xf32>
      %63 = vector.broadcast %62 : vector<1x1024xf32> to vector<2x1024xf32>
      %64 = arith.addf %61, %63 : vector<2x1024xf32>
      %65 = arith.truncf %64 : vector<2x1024xf32> to vector<2x1024xbf16>
      %c0_50 = arith.constant 0 : index
      %c0_51 = arith.constant 0 : index
      %66 = vector.load %arg15[%c0_50, %c0_51] : memref<1024x1024xbf16, #tpu.memory_space<vmem>>, vector<1024x1024xbf16>
      %cst_52 = arith.constant dense<0.000000e+00> : vector<2x1024xf32>
      %67 = tpu.matmul %65, %66, %cst_52 {dimension_numbers = #tpu.dot_dimension_numbers<[1], [0], [0], [1], [0, 0, 1, 1], [], []>} : vector<2x1024xbf16>, vector<1024x1024xbf16>, vector<2x1024xf32> -> vector<2x1024xf32>
      %c0_53 = arith.constant 0 : index
      %c0_54 = arith.constant 0 : index
      %68 = vector.load %arg16[%c0_53, %c0_54] : memref<1x1024xf32, #tpu.memory_space<vmem>>, vector<1x1024xf32>
      %69 = vector.broadcast %68 : vector<1x1024xf32> to vector<2x1024xf32>
      %70 = arith.addf %67, %69 : vector<2x1024xf32>
      %71 = arith.addf %58, %70 : vector<2x1024xf32>
      %cst_55 = arith.constant dense<0.000000e+00> : vector<2xf32>
      %72 = vector.multi_reduction <add>, %71, %cst_55 [1] : vector<2x1024xf32> to vector<2xf32>
      %73 = vector.shape_cast %72 : vector<2xf32> to vector<2x1xf32>
      %cst_56 = arith.constant 1.024000e+03 : f32
      %74 = vector.broadcast %cst_56 : f32 to vector<2x1xf32>
      %75 = arith.divf %73, %74 : vector<2x1xf32>
      %76 = vector.broadcast %75 : vector<2x1xf32> to vector<2x1024xf32>
      %77 = arith.subf %71, %76 : vector<2x1024xf32>
      %78 = arith.mulf %77, %77 : vector<2x1024xf32>
      %cst_57 = arith.constant dense<0.000000e+00> : vector<2xf32>
      %79 = vector.multi_reduction <add>, %78, %cst_57 [1] : vector<2x1024xf32> to vector<2xf32>
      %80 = vector.shape_cast %79 : vector<2xf32> to vector<2x1xf32>
      %cst_58 = arith.constant 1.024000e+03 : f32
      %81 = vector.broadcast %cst_58 : f32 to vector<2x1xf32>
      %82 = arith.divf %80, %81 : vector<2x1xf32>
      %83 = vector.broadcast %75 : vector<2x1xf32> to vector<2x1024xf32>
      %84 = arith.subf %71, %83 : vector<2x1024xf32>
      %cst_59 = arith.constant 9.99999974E-6 : f32
      %85 = vector.broadcast %cst_59 : f32 to vector<2x1xf32>
      %86 = arith.addf %82, %85 : vector<2x1xf32>
      %87 = math.rsqrt %86 : vector<2x1xf32>
      %88 = vector.broadcast %87 : vector<2x1xf32> to vector<2x1024xf32>
      %89 = arith.mulf %84, %88 : vector<2x1024xf32>
      %c0_60 = arith.constant 0 : index
      %c0_61 = arith.constant 0 : index
      %90 = vector.load %arg17[%c0_60, %c0_61] : memref<1x1024xf32, #tpu.memory_space<vmem>>, vector<1x1024xf32>
      %91 = vector.broadcast %90 : vector<1x1024xf32> to vector<2x1024xf32>
      %92 = arith.mulf %89, %91 : vector<2x1024xf32>
      %c0_62 = arith.constant 0 : index
      %c0_63 = arith.constant 0 : index
      %93 = vector.load %arg18[%c0_62, %c0_63] : memref<1x1024xf32, #tpu.memory_space<vmem>>, vector<1x1024xf32>
      %94 = vector.broadcast %93 : vector<1x1024xf32> to vector<2x1024xf32>
      %95 = arith.addf %92, %94 : vector<2x1024xf32>
      %96 = arith.truncf %95 : vector<2x1024xf32> to vector<2x1024xbf16>
      %c0_64 = arith.constant 0 : index
      %c0_65 = arith.constant 0 : index
      %97 = vector.load %arg19[%c0_64, %c0_65] : memref<1024x512xbf16, #tpu.memory_space<vmem>>, vector<1024x512xbf16>
      %cst_66 = arith.constant dense<0.000000e+00> : vector<2x512xf32>
      %98 = tpu.matmul %96, %97, %cst_66 {dimension_numbers = #tpu.dot_dimension_numbers<[1], [0], [0], [1], [0, 0, 1, 1], [], []>} : vector<2x1024xbf16>, vector<1024x512xbf16>, vector<2x512xf32> -> vector<2x512xf32>
      %c0_67 = arith.constant 0 : index
      %c0_68 = arith.constant 0 : index
      %99 = vector.load %arg20[%c0_67, %c0_68] : memref<1x512xf32, #tpu.memory_space<vmem>>, vector<1x512xf32>
      %100 = vector.broadcast %99 : vector<1x512xf32> to vector<2x512xf32>
      %101 = arith.addf %98, %100 : vector<2x512xf32>
      %cst_69 = arith.constant 0.000000e+00 : f32
      %102 = vector.broadcast %cst_69 : f32 to vector<2x512xf32>
      %103 = arith.maximumf %101, %102 : vector<2x512xf32>
      %104 = arith.truncf %103 : vector<2x512xf32> to vector<2x512xbf16>
      %c0_70 = arith.constant 0 : index
      %c0_71 = arith.constant 0 : index
      %105 = vector.load %arg21[%c0_70, %c0_71] : memref<512x1024xbf16, #tpu.memory_space<vmem>>, vector<512x1024xbf16>
      %cst_72 = arith.constant dense<0.000000e+00> : vector<2x1024xf32>
      %106 = tpu.matmul %104, %105, %cst_72 {dimension_numbers = #tpu.dot_dimension_numbers<[1], [0], [0], [1], [0, 0, 1, 1], [], []>} : vector<2x512xbf16>, vector<512x1024xbf16>, vector<2x1024xf32> -> vector<2x1024xf32>
      %c0_73 = arith.constant 0 : index
      %c0_74 = arith.constant 0 : index
      %107 = vector.load %arg22[%c0_73, %c0_74] : memref<1x1024xf32, #tpu.memory_space<vmem>>, vector<1x1024xf32>
      %108 = vector.broadcast %107 : vector<1x1024xf32> to vector<2x1024xf32>
      %109 = arith.addf %106, %108 : vector<2x1024xf32>
      %110 = arith.addf %95, %109 : vector<2x1024xf32>
      %cst_75 = arith.constant dense<0.000000e+00> : vector<2xf32>
      %111 = vector.multi_reduction <add>, %110, %cst_75 [1] : vector<2x1024xf32> to vector<2xf32>
      %112 = vector.shape_cast %111 : vector<2xf32> to vector<2x1xf32>
      %cst_76 = arith.constant 1.024000e+03 : f32
      %113 = vector.broadcast %cst_76 : f32 to vector<2x1xf32>
      %114 = arith.divf %112, %113 : vector<2x1xf32>
      %115 = vector.broadcast %114 : vector<2x1xf32> to vector<2x1024xf32>
      %116 = arith.subf %110, %115 : vector<2x1024xf32>
      %117 = arith.mulf %116, %116 : vector<2x1024xf32>
      %cst_77 = arith.constant dense<0.000000e+00> : vector<2xf32>
      %118 = vector.multi_reduction <add>, %117, %cst_77 [1] : vector<2x1024xf32> to vector<2xf32>
      %119 = vector.shape_cast %118 : vector<2xf32> to vector<2x1xf32>
      %cst_78 = arith.constant 1.024000e+03 : f32
      %120 = vector.broadcast %cst_78 : f32 to vector<2x1xf32>
      %121 = arith.divf %119, %120 : vector<2x1xf32>
      %122 = vector.broadcast %114 : vector<2x1xf32> to vector<2x1024xf32>
      %123 = arith.subf %110, %122 : vector<2x1024xf32>
      %cst_79 = arith.constant 9.99999974E-6 : f32
      %124 = vector.broadcast %cst_79 : f32 to vector<2x1xf32>
      %125 = arith.addf %121, %124 : vector<2x1xf32>
      %126 = math.rsqrt %125 : vector<2x1xf32>
      %127 = vector.broadcast %126 : vector<2x1xf32> to vector<2x1024xf32>
      %128 = arith.mulf %123, %127 : vector<2x1024xf32>
      %c0_80 = arith.constant 0 : index
      %c0_81 = arith.constant 0 : index
      %129 = vector.load %arg23[%c0_80, %c0_81] : memref<1x1024xf32, #tpu.memory_space<vmem>>, vector<1x1024xf32>
      %130 = vector.broadcast %129 : vector<1x1024xf32> to vector<2x1024xf32>
      %131 = arith.mulf %128, %130 : vector<2x1024xf32>
      %c0_82 = arith.constant 0 : index
      %c0_83 = arith.constant 0 : index
      %132 = vector.load %arg24[%c0_82, %c0_83] : memref<1x1024xf32, #tpu.memory_space<vmem>>, vector<1x1024xf32>
      %133 = vector.broadcast %132 : vector<1x1024xf32> to vector<2x1024xf32>
      %134 = arith.addf %131, %133 : vector<2x1024xf32>
      %135 = arith.truncf %134 : vector<2x1024xf32> to vector<2x1024xbf16>
      %c0_84 = arith.constant 0 : index
      %c0_85 = arith.constant 0 : index
      %136 = vector.load %arg25[%c0_84, %c0_85] : memref<1024x3xbf16, #tpu.memory_space<vmem>>, vector<1024x3xbf16>
      %cst_86 = arith.constant dense<0.000000e+00> : vector<2x3xf32>
      %137 = tpu.matmul %135, %136, %cst_86 {dimension_numbers = #tpu.dot_dimension_numbers<[1], [0], [0], [1], [0, 0, 1, 1], [], []>} : vector<2x1024xbf16>, vector<1024x3xbf16>, vector<2x3xf32> -> vector<2x3xf32>
      %c0_87 = arith.constant 0 : index
      %c0_88 = arith.constant 0 : index
      %138 = vector.load %arg26[%c0_87, %c0_88] : memref<1x3xf32, #tpu.memory_space<vmem>>, vector<1x3xf32>
      %139 = vector.broadcast %138 : vector<1x3xf32> to vector<2x3xf32>
      %140 = arith.addf %137, %139 : vector<2x3xf32>
      %141 = tpu.iota {dimensions = array<i32: 1>} : vector<2x3xi32>
      %c2_i32 = arith.constant 2 : i32
      %142 = vector.broadcast %c2_i32 : i32 to vector<2x3xi32>
      %143 = arith.cmpi eq, %141, %142 : vector<2x3xi32>
      %144 = math.tanh %140 : vector<2x3xf32>
      %cst_89 = arith.constant 0.000000e+00 : f32
      %145 = vector.broadcast %cst_89 : f32 to vector<2x3xf32>
      %146 = arith.maximumf %140, %145 : vector<2x3xf32>
      %147 = arith.select %143, %144, %146 : vector<2x3xi1>, vector<2x3xf32>
      %c0_90 = arith.constant 0 : index
      %c0_91 = arith.constant 0 : index
      %148 = vector.load %arg27[%c0_90, %c0_91] : memref<2x3xf32, #tpu.memory_space<vmem>>, vector<2x3xf32>
      tpu.vector_store %arg27[%c0_90, %c0_91], %147 {strides = array<i32>} : memref<2x3xf32, #tpu.memory_space<vmem>>, vector<2x3xf32>,
    } else {
    }
    return
  }
  func.func @transform_0(%arg0: i32) -> (i32, i32, i32) {
    %c0_i32 = arith.constant 0 : i32
    %c0_i32_0 = arith.constant 0 : i32
    %c0_i32_1 = arith.constant 0 : i32
    return %c0_i32, %arg0, %c0_i32_0 : i32, i32, i32
  }
  func.func @transform_1(%arg0: i32) -> (i32, i32, i32) {
    %c0_i32 = arith.constant 0 : i32
    %c0_i32_0 = arith.constant 0 : i32
    %c0_i32_1 = arith.constant 0 : i32
    %c0_i32_2 = arith.constant 0 : i32
    return %c0_i32, %c0_i32_0, %c0_i32_1 : i32, i32, i32
  }
  func.func @transform_2(%arg0: i32) -> (i32, i32) {
    %c0_i32 = arith.constant 0 : i32
    %c0_i32_0 = arith.constant 0 : i32
    %c0_i32_1 = arith.constant 0 : i32
    return %c0_i32, %c0_i32_0 : i32, i32
  }
  func.func @transform_3(%arg0: i32) -> (i32, i32) {
    %c0_i32 = arith.constant 0 : i32
    %c0_i32_0 = arith.constant 0 : i32
    %c0_i32_1 = arith.constant 0 : i32
    return %c0_i32, %c0_i32_0 : i32, i32
  }
  func.func @transform_4(%arg0: i32) -> (i32, i32) {
    %c0_i32 = arith.constant 0 : i32
    %c0_i32_0 = arith.constant 0 : i32
    %c0_i32_1 = arith.constant 0 : i32
    return %c0_i32, %c0_i32_0 : i32, i32
  }
  func.func @transform_5(%arg0: i32) -> (i32, i32) {
    %c0_i32 = arith.constant 0 : i32
    %c0_i32_0 = arith.constant 0 : i32
    %c0_i32_1 = arith.constant 0 : i32
    return %c0_i32, %c0_i32_0 : i32, i32
  }
  func.func @transform_6(%arg0: i32) -> (i32, i32) {
    %c0_i32 = arith.constant 0 : i32
    %c0_i32_0 = arith.constant 0 : i32
    %c0_i32_1 = arith.constant 0 : i32
    return %c0_i32, %c0_i32_0 : i32, i32
  }
  func.func @transform_7(%arg0: i32) -> (i32, i32) {
    %c0_i32 = arith.constant 0 : i32
    %c0_i32_0 = arith.constant 0 : i32
    %c0_i32_1 = arith.constant 0 : i32
    return %c0_i32, %c0_i32_0 : i32, i32
  }
  func.func @transform_8(%arg0: i32) -> (i32, i32) {
    %c0_i32 = arith.constant 0 : i32
    %c0_i32_0 = arith.constant 0 : i32
    %c0_i32_1 = arith.constant 0 : i32
    return %c0_i32, %c0_i32_0 : i32, i32
  }
  func.func @transform_9(%arg0: i32) -> (i32, i32) {
    %c0_i32 = arith.constant 0 : i32
    %c0_i32_0 = arith.constant 0 : i32
    %c0_i32_1 = arith.constant 0 : i32
    return %c0_i32, %c0_i32_0 : i32, i32
  }
  func.func @transform_10(%arg0: i32) -> (i32, i32) {
    %c0_i32 = arith.constant 0 : i32
    %c0_i32_0 = arith.constant 0 : i32
    %c0_i32_1 = arith.constant 0 : i32
    return %c0_i32, %c0_i32_0 : i32, i32
  }
  func.func @transform_11(%arg0: i32) -> (i32, i32) {
    %c0_i32 = arith.constant 0 : i32
    %c0_i32_0 = arith.constant 0 : i32
    %c0_i32_1 = arith.constant 0 : i32
    return %c0_i32, %c0_i32_0 : i32, i32
  }
  func.func @transform_12(%arg0: i32) -> (i32, i32) {
    %c0_i32 = arith.constant 0 : i32
    %c0_i32_0 = arith.constant 0 : i32
    %c0_i32_1 = arith.constant 0 : i32
    return %c0_i32, %c0_i32_0 : i32, i32
  }
  func.func @transform_13(%arg0: i32) -> (i32, i32) {
    %c0_i32 = arith.constant 0 : i32
    %c0_i32_0 = arith.constant 0 : i32
    %c0_i32_1 = arith.constant 0 : i32
    return %c0_i32, %c0_i32_0 : i32, i32
  }
  func.func @transform_14(%arg0: i32) -> (i32, i32) {
    %c0_i32 = arith.constant 0 : i32
    %c0_i32_0 = arith.constant 0 : i32
    %c0_i32_1 = arith.constant 0 : i32
    return %c0_i32, %c0_i32_0 : i32, i32
  }
  func.func @transform_15(%arg0: i32) -> (i32, i32) {
    %c0_i32 = arith.constant 0 : i32
    %c0_i32_0 = arith.constant 0 : i32
    %c0_i32_1 = arith.constant 0 : i32
    return %c0_i32, %c0_i32_0 : i32, i32
  }
  func.func @transform_16(%arg0: i32) -> (i32, i32) {
    %c0_i32 = arith.constant 0 : i32
    %c0_i32_0 = arith.constant 0 : i32
    %c0_i32_1 = arith.constant 0 : i32
    return %c0_i32, %c0_i32_0 : i32, i32
  }
  func.func @transform_17(%arg0: i32) -> (i32, i32) {
    %c0_i32 = arith.constant 0 : i32
    %c0_i32_0 = arith.constant 0 : i32
    %c0_i32_1 = arith.constant 0 : i32
    return %c0_i32, %c0_i32_0 : i32, i32
  }
  func.func @transform_18(%arg0: i32) -> (i32, i32) {
    %c0_i32 = arith.constant 0 : i32
    %c0_i32_0 = arith.constant 0 : i32
    %c0_i32_1 = arith.constant 0 : i32
    return %c0_i32, %c0_i32_0 : i32, i32
  }
  func.func @transform_19(%arg0: i32) -> (i32, i32) {
    %c0_i32 = arith.constant 0 : i32
    %c0_i32_0 = arith.constant 0 : i32
    %c0_i32_1 = arith.constant 0 : i32
    return %c0_i32, %c0_i32_0 : i32, i32
  }
  func.func @transform_20(%arg0: i32) -> (i32, i32) {
    %c0_i32 = arith.constant 0 : i32
    %c0_i32_0 = arith.constant 0 : i32
    %c0_i32_1 = arith.constant 0 : i32
    return %c0_i32, %c0_i32_0 : i32, i32
  }
  func.func @transform_21(%arg0: i32) -> (i32, i32) {
    %c0_i32 = arith.constant 0 : i32
    %c0_i32_0 = arith.constant 0 : i32
    %c0_i32_1 = arith.constant 0 : i32
    return %c0_i32, %c0_i32_0 : i32, i32
  }
  func.func @transform_22(%arg0: i32) -> (i32, i32) {
    %c0_i32 = arith.constant 0 : i32
    %c0_i32_0 = arith.constant 0 : i32
    %c0_i32_1 = arith.constant 0 : i32
    return %c0_i32, %c0_i32_0 : i32, i32
  }
  func.func @transform_23(%arg0: i32) -> (i32, i32) {
    %c0_i32 = arith.constant 0 : i32
    %c0_i32_0 = arith.constant 0 : i32
    %c0_i32_1 = arith.constant 0 : i32
    return %c0_i32, %c0_i32_0 : i32, i32
  }
  func.func @transform_24(%arg0: i32) -> (i32, i32) {
    %c0_i32 = arith.constant 0 : i32
    %c0_i32_0 = arith.constant 0 : i32
    %c0_i32_1 = arith.constant 0 : i32
    return %c0_i32, %c0_i32_0 : i32, i32
  }
  func.func @transform_25(%arg0: i32) -> (i32, i32) {
    %c0_i32 = arith.constant 0 : i32
    %c0_i32_0 = arith.constant 0 : i32
    %c0_i32_1 = arith.constant 0 : i32
    return %c0_i32, %c0_i32_0 : i32, i32
  }
  func.func @transform_26(%arg0: i32) -> (i32, i32) {
    %c0_i32 = arith.constant 0 : i32
    %c0_i32_0 = arith.constant 0 : i32
    %c0_i32_1 = arith.constant 0 : i32
    return %c0_i32, %c0_i32_0 : i32, i32
  }
}

</mosaic_0001>

<bundles_post_ra>
// kernel: actor_forward.1
= control target key start
LH: loop header
LB: loop body
LE: loop exit
PB: predicated region body
PF: predicated region fallthrough
CT: control target
= control target key end

     0   :  { %s21200_s0 = inlined_call_operand.vmem [shape: bf16[2,256,27], index: 0, kind: input, shape index: {}]   ;;  %s21201_s1 = inlined_call_operand.vmem [shape: bf16[2,64,3], index: 1, kind: input, shape index: {}]   ;;  %s21202_s2 = inlined_call_operand.vmem [shape: bf16[27,8], index: 2, kind: input, shape index: {}]   ;;  %s21203_s3 = inlined_call_operand.hbm [shape: f32[1,8], index: 3, kind: input, shape index: {}]   ;;  %s21204_s4 = inlined_call_operand.hbm [shape: bf16[8,512], index: 4, kind: input, shape index: {}]   ;;  %s21205_s5 = inlined_call_operand.hbm [shape: f32[1,512], index: 5, kind: input, shape index: {}]   ;;  %s21206_s6 = inlined_call_operand.hbm [shape: bf16[3,64], index: 6, kind: input, shape index: {}]   ;;  %s21207_s7 = inlined_call_operand.hbm [shape: f32[1,64], index: 7, kind: input, shape index: {}]   ;;  %s21208_s8 = inlined_call_operand.hbm [shape: bf16[64,128], index: 8, kind: input, shape index: {}]   ;;  %s21209_s9 = inlined_call_operand.hbm [shape: f32[1,128], index: 9, kind: input, shape index: {}]   ;;  %s21210_s10 = inlined_call_operand.hbm [shape: bf16[128,512], index: 10, kind: input, shape index: {}]   ;;  %s21211_s11 = inlined_call_operand.hbm [shape: f32[1,512], index: 11, kind: input, shape index: {}]   ;;  %s21212_s12 = inlined_call_operand.hbm [shape: bf16[1024,1024], index: 12, kind: input, shape index: {}]   ;;  %s21213_s13 = inlined_call_operand.hbm [shape: f32[1,1024], index: 13, kind: input, shape index: {}]   ;;  %s21214_s14 = inlined_call_operand.hbm [shape: bf16[1024,1024], index: 14, kind: input, shape index: {}]   ;;  %s21215_s15 = inlined_call_operand.hbm [shape: f32[1,1024], index: 15, kind: input, shape index: {}]   ;;  %s21216_s16 = inlined_call_operand.hbm [shape: f32[1,1024], index: 16, kind: input, shape index: {}]   ;;  %s21217_s17 = inlined_call_operand.hbm [shape: f32[1,1024], index: 17, kind: input, shape index: {}]   ;;  %s21218_s18 = inlined_call_operand.vmem [shape: bf16[1024,512], index: 18, kind: input, shape index: {}]   ;;  %s21219_s19 = inlined_call_operand.hbm [shape: f32[1,512], index: 19, kind: input, shape index: {}]   ;;  %s21220_s20 = inlined_call_operand.hbm [shape: bf16[512,1024], index: 20, kind: input, shape index: {}]   ;;  %s21221_s21 = inlined_call_operand.hbm [shape: f32[1,1024], index: 21, kind: input, shape index: {}]   ;;  %s21222_s22 = inlined_call_operand.hbm [shape: f32[1,1024], index: 22, kind: input, shape index: {}]   ;;  %s21223_s23 = inlined_call_operand.hbm [shape: f32[1,1024], index: 23, kind: input, shape index: {}]   ;;  %s21224_s24 = inlined_call_operand.vmem [shape: bf16[1024,3], index: 24, kind: input, shape index: {}]   ;;  %s21225_s25 = inlined_call_operand.hbm [shape: f32[1,3], index: 25, kind: input, shape index: {}]   ;;  %s21226_s26 = inlined_call_operand.hbm [shape: f32[2,3], index: 26, kind: output, shape index: {}]  }
   0x1   :  { %21261 = sst [smem:[#allocation58_spill]] %s21200_s0 }
   0x2   :  { %21262 = sst [smem:[#allocation59_spill]] %s21201_s1 }
   0x3   :  { %21263 = sst [smem:[#allocation60_spill]] %s21202_s2 }
   0x4   :  { %21264 = sst [smem:[#allocation61_spill]] %s21203_s3 }
   0x5   :  { %21265 = sst [smem:[#allocation62_spill]] %s21204_s4 }
   0x6   :  { %21266 = sst [smem:[#allocation63_spill]] %s21205_s5 }
   0x7   :  { %21267 = sst [smem:[#allocation64_spill]] %s21206_s6 }
   0x8   :  { %21268 = sst [smem:[#allocation65_spill]] %s21207_s7 }
   0x9   :  { %21269 = sst [smem:[#allocation66_spill]] %s21208_s8 }
   0xa   :  { %21270 = sst [smem:[#allocation67_spill]] %s21209_s9 }
   0xb   :  { %21271 = sst [smem:[#allocation68_spill]] %s21210_s10 }
   0xc   :  { %21272 = sst [smem:[#allocation69_spill]] %s21218_s18 }
   0xd   :  { %21273 = sst [smem:[#allocation70_spill]] %s21224_s24 }
   0xe   :  { %21274 = sst [smem:[#allocation71_spill]] %s21226_s26 }
   0xf   :  { %31 = vsyncpa [#allocation5], 0 }
  0x10   :  { %32 = vsyncpa [#allocation8], 0 }
  0x11   :  { %33 = vsyncpa [#allocation11], 0 }
  0x12   :  { %34 = vsyncpa [#allocation14], 0 }
  0x13   :  { %35 = vsyncpa [#allocation17], 0 }
  0x14   :  { %36 = vsyncpa [#allocation20], 0 }
  0x15   :  { %37 = vsyncpa [#allocation23], 0 }
  0x16   :  { %38 = vsyncpa [#allocation26], 0 }
  0x17   :  { %39 = vsyncpa [#allocation29], 0 }
  0x18   :  { %40 = vsyncpa [#allocation32], 0 }
  0x19   :  { %41 = vsyncpa [#allocation35], 0 }
  0x1a   :  { %42 = vsyncpa [#allocation6], 0  ;;  %s18916_s27 = smov 0   ;;  %s18918_s3 = smov 0  }
  0x1b   :  { %s18920_s7 = smov 0  }
  0x1c LB: > { %21275 = sst [smem:[#allocation50_spill]] %s18739_s27  ;;  %s18932_s28 = sadd.s32 4294967295, %s18747_s7   ;;  %s18747_s7 = sphi %s18920_s7, %s21338_s7   ;;  %s18743_s3 = sphi %s18918_s3, %s21340_s3   ;;  %s18739_s27 = sphi %s18916_s27, %s21339_s27  }
  0x1d   : > { %21276 = sst [smem:[#allocation51_spill]] %s18743_s3  ;;  %s18935_s8 = sadd.s32 1, %s18747_s7  }
  0x1e   : > { %21277 = sst [smem:[#allocation52_spill]] %s18747_s7  ;;  %s52_s4 = ssub.s32 %s18747_s7, %s18935_s8 }
  0x1f   : > { %21278 = sst [smem:[#allocation53_spill]] %s18932_s28  ;;  %s55_s29 = sadd.s32 1, %s18743_s3 }
  0x20   : > { %21279 = sst [smem:[#allocation54_spill]] %s18935_s8  ;;  %p53_p0 = scmp.eq.s32.totalorder %s52_s4, 0 }
  0x21   : > { %p62_p1 = scmp.ne.s32.totalorder %s18743_s3, %s18739_s27  ;;  %p63_p2 = scmp.eq.s32.totalorder %s18747_s7, 0 }
  0x22   : > { %p15219_p3 = scmp.ge.s32.totalorder %s18747_s7, 1  ;;  %p625_p5 = scmp.lt.s32.totalorder %s18747_s7, 3 }
  0x23   : > { %s18945_s0 = scalar_select %p53_p0, %s18743_s3, %s55_s29  }
  0x24   : > { %p18947_p4 = por %p63_p2, %p62_p1  ;;  %p21245_p7 = scmp.eq.s32.totalorder %s18932_s28, 0 }
  0x25   : > { %21280 = sst [smem:[#allocation55_spill]] %s18945_s0  ;;  %p18954_p8 = pnand %p15219_p3, %p625_p5 }
  0x26   : > { %s21281_s9 = scalar_select %p18947_p4, 1, 0 }
  0x27   : > { %s21283_s30 = scalar_select %p18954_p8, 1, 0 }
  0x28   : > { %21282 = sst [smem:[#allocation56_spill]] %s21281_s9  ;;  %s18749_s2 = smov [#allocation7]  }
  0x29   : > { %21284 = sst [smem:[#allocation57_spill]] %s21283_s30  ;;  %s655_s5 = sshll.u32 %s18749_s2, 4  ;;  %s656_s5 = int_to_ptr.vmem [resolvable:$true] %s655_s5 }
  0x2a   : > { %p17362_p9 = pneg %p18954_p8  ;;  %s18750_s10 = smov [#allocation10]  }
  0x2b   : > { %s677_s6 = sshll.u32 %s18750_s10, 4  ;;  %s18751_s4 = smov [#allocation13]   ;;  %s18966_s6 = int_to_ptr.vmem [resolvable:$true] %s677_s6 }
  0x2c   : > { %p18962_p10 = pnand %p21245_p7, %p17362_p9  ;;  %s698_s29 = sshll.u32 %s18751_s4, 4  ;;  %s18968_s29 = int_to_ptr.vmem [resolvable:$true] %s698_s29 }
  0x2d   : > { %s21286_s2 = sld [smem:[#allocation62_spill]] }
  0x2e   : > { %p18978_p12 = pneg %p18962_p10 }
  0x33   : > { %s18063_s26 = scalar_lea.hbm %s21286_s2, 256 }
  0x34   : > { %p18064_p11 = scmp.ne.s32.totalorder %s21286_s2, %s18063_s26  ;;  %p18070_p1 = scmp.lt.u32.totalorder %s18063_s26, %s21286_s2 }
  0x36   : > { %p18066_p13 = pnand %p18978_p12, %p18064_p11 }
  0x38   : > { %p18067_p0 = pneg %p18066_p13 }
  0x3a   : > { %p18072_p2 = pnand %p18070_p1, %p18067_p0 }
  0x3c   : > { %18075 = shalt.err (!%p18072_p2)
}
  0x3d   : > { %s18076_s8 = scalar_lea.vmem %s656_s5, 256  ;;  %p18084_p6 = scmp.lt.s32.totalorder %s656_s5, %s656_s5 }
  0x3e   : > { %p18077_p3 = scmp.ne.s32.totalorder %s656_s5, %s18076_s8  ;;  %p18085_p7 = scmp.lt.s32.totalorder %s18076_s8, %s18076_s8 }
  0x40   : > { %p18079_p5 = pnand %p18077_p3, %p18978_p12  ;;  %p18086_p8 = por %p18085_p7, %p18084_p6 }
  0x42   : > { %p18080_p9 = pneg %p18079_p5 }
  0x44   : > { %p18087_p4 = pnand %p18086_p8, %p18080_p9 }
  0x46   : > { %18090 = shalt.err (!%p18087_p4)
}
  0x47   : > { %17368 = dma.hbm_to_vmem [thread:$0]  (!%p18962_p10), %s21286_s2, 256, %s656_s5, [#allocation8]  }
  0x48   : > { %s21288_s0 = sld [smem:[#allocation64_spill]] }
  0x4e   : > { %s18091_s4 = scalar_lea.hbm %s21288_s0, 32 }
  0x4f   : > { %p18092_p11 = scmp.ne.s32.totalorder %s21288_s0, %s18091_s4  ;;  %p18098_p4 = scmp.lt.u32.totalorder %s18091_s4, %s21288_s0 }
  0x51   : > { %p18094_p13 = pnand %p18092_p11, %p18978_p12 }
  0x53   : > { %p18095_p6 = pneg %p18094_p13 }
  0x55   : > { %p18100_p7 = pnand %p18098_p4, %p18095_p6 }
  0x57   : > { %18103 = shalt.err (!%p18100_p7)
}
  0x58   : > { %s18104_s5 = scalar_lea.vmem %s18966_s6, 32  ;;  %p18112_p2 = scmp.lt.s32.totalorder %s18966_s6, %s18966_s6 }
  0x59   : > { %p18105_p8 = scmp.ne.s32.totalorder %s18966_s6, %s18104_s5  ;;  %p18113_p3 = scmp.lt.s32.totalorder %s18104_s5, %s18104_s5 }
  0x5b   : > { %p18107_p0 = pnand %p18105_p8, %p18978_p12  ;;  %p18114_p5 = por %p18113_p3, %p18112_p2 }
  0x5d   : > { %p18108_p1 = pneg %p18107_p0 }
  0x5f   : > { %p18115_p9 = pnand %p18114_p5, %p18108_p1 }
  0x61   : > { %18118 = shalt.err (!%p18115_p9)
}
  0x62   : > { %17374 = dma.hbm_to_vmem [thread:$0]  (!%p18962_p10), %s21288_s0, 32, %s18966_s6, [#allocation11]  }
  0x63   : > { %s21289_s24 = sld [smem:[#allocation66_spill]] }
  0x69   : > { %s18119_s26 = scalar_lea.hbm %s21289_s24, 512 }
  0x6a   : > { %p18120_p11 = scmp.ne.s32.totalorder %s21289_s24, %s18119_s26  ;;  %p18126_p4 = scmp.lt.u32.totalorder %s18119_s26, %s21289_s24 }
  0x6c   : > { %p18122_p13 = pnand %p18120_p11, %p18978_p12 }
  0x6e   : > { %p18123_p6 = pneg %p18122_p13 }
  0x70   : > { %p18128_p7 = pnand %p18126_p4, %p18123_p6 }
  0x72   : > { %18131 = shalt.err (!%p18128_p7)
}
  0x73   : > { %s18132_s6 = scalar_lea.vmem %s18968_s29, 512  ;;  %p18140_p2 = scmp.lt.s32.totalorder %s18968_s29, %s18968_s29 }
  0x74   : > { %p18133_p8 = scmp.ne.s32.totalorder %s18968_s29, %s18132_s6  ;;  %p18141_p3 = scmp.lt.s32.totalorder %s18132_s6, %s18132_s6 }
  0x76   : > { %p18135_p0 = pnand %p18133_p8, %p18978_p12  ;;  %p18142_p5 = por %p18141_p3, %p18140_p2 }
  0x78   : > { %p18136_p1 = pneg %p18135_p0 }
  0x7a   : > { %p18143_p9 = pnand %p18142_p5, %p18136_p1 }
  0x7c   : > { %18146 = shalt.err (!%p18143_p9)
}
  0x7d   : > { %s18752_s27 = smov 64   ;;  %s18753_s3 = smov 4  }
  0x7e   : > { %17380 = dma.hbm_to_vmem [thread:$0]  (!%p18962_p10), %s21289_s24, 512, %s18968_s29, [#allocation14], %s18752_s27, %s18752_s27, %s18753_s3  }
  0x7f   : > { %s18754_s26 = smov [#allocation16]   ;;  %s21290_s5 = sld [smem:[#allocation68_spill]] }
  0x80   : > { %s722_s28 = sshll.u32 %s18754_s26, 4  ;;  %s723_s28 = int_to_ptr.vmem [resolvable:$true] %s722_s28 }
  0x85   : > { %s18147_s6 = scalar_lea.hbm %s21290_s5, 4096 }
  0x86   : > { %p18148_p11 = scmp.ne.s32.totalorder %s21290_s5, %s18147_s6  ;;  %p18154_p4 = scmp.lt.u32.totalorder %s18147_s6, %s21290_s5 }
  0x88   : > { %p18150_p13 = pnand %p18148_p11, %p18978_p12 }
  0x8a   : > { %p18151_p6 = pneg %p18150_p13 }
  0x8c   : > { %p18156_p7 = pnand %p18154_p4, %p18151_p6 }
  0x8e   : > { %18159 = shalt.err (!%p18156_p7)
}
  0x8f   : > { %s18160_s29 = scalar_lea.vmem %s723_s28, 4096  ;;  %p18168_p2 = scmp.lt.s32.totalorder %s723_s28, %s723_s28 }
  0x90   : > { %p18161_p8 = scmp.ne.s32.totalorder %s723_s28, %s18160_s29  ;;  %p18169_p3 = scmp.lt.s32.totalorder %s18160_s29, %s18160_s29 }
  0x92   : > { %p18163_p0 = pnand %p18161_p8, %p18978_p12  ;;  %p18170_p5 = por %p18169_p3, %p18168_p2 }
  0x94   : > { %p18164_p1 = pneg %p18163_p0 }
  0x96   : > { %p18171_p9 = pnand %p18170_p5, %p18164_p1 }
  0x98   : > { %18174 = shalt.err (!%p18171_p9)
}
  0x99   : > { %s18755_s2 = smov 256   ;;  %s18756_s0 = smov 16  }
  0x9a   : > { %17386 = dma.hbm_to_vmem [thread:$0]  (!%p18962_p10), %s21290_s5, 4096, %s723_s28, [#allocation17], %s18755_s2, %s18755_s2, %s18756_s0  }
  0x9b   : > { %s18757_s27 = smov [#allocation19]   ;;  %s18175_s26 = scalar_lea.hbm %s21212_s12, 65536 }
  0x9c   : > { %s746_s3 = sshll.u32 %s18757_s27, 4  ;;  %p18176_p11 = scmp.ne.s32.totalorder %s21212_s12, %s18175_s26  ;;  %s747_s3 = int_to_ptr.vmem [resolvable:$true] %s746_s3 }
  0x9d   : > { %p18182_p4 = scmp.lt.u32.totalorder %s18175_s26, %s21212_s12 }
  0x9e   : > { %p18178_p13 = pnand %p18176_p11, %p18978_p12 }
  0xa0   : > { %p18179_p6 = pneg %p18178_p13 }
  0xa2   : > { %p18184_p7 = pnand %p18182_p4, %p18179_p6 }
  0xa4   : > { %18187 = shalt.err (!%p18184_p7)
}
  0xa5   : > { %s18188_s28 = scalar_lea.vmem %s747_s3, 65536  ;;  %p18196_p2 = scmp.lt.s32.totalorder %s747_s3, %s747_s3 }
  0xa6   : > { %p18189_p8 = scmp.ne.s32.totalorder %s747_s3, %s18188_s28  ;;  %p18197_p3 = scmp.lt.s32.totalorder %s18188_s28, %s18188_s28 }
  0xa8   : > { %p18191_p0 = pnand %p18189_p8, %p18978_p12  ;;  %p18198_p5 = por %p18197_p3, %p18196_p2 }
  0xaa   : > { %p18192_p1 = pneg %p18191_p0 }
  0xac   : > { %p18199_p9 = pnand %p18198_p5, %p18192_p1 }
  0xae   : > { %18202 = shalt.err (!%p18199_p9)
}
  0xaf   : > { %s21256_s2 = smov 512   ;;  %s21257_s0 = smov 32  }
  0xb0   : > { %17392 = dma.hbm_to_vmem [thread:$0]  (!%p18962_p10), %s21212_s12, 65536, %s747_s3, [#allocation20], %s21256_s2, %s21256_s2, %s21257_s0  }
  0xb1   : > { %s18760_s27 = smov [#allocation22]   ;;  %s18761_s18 = smov [#allocation25]  }
  0xb2   : > { %s770_s30 = sshll.u32 %s18760_s27, 4  ;;  %s795_s26 = sshll.u32 %s18761_s18, 4  ;;  %s771_s30 = int_to_ptr.vmem [resolvable:$true] %s770_s30  ;;  %s796_s26 = int_to_ptr.vmem [resolvable:$true] %s795_s26 }
  0xb3   : > { %s18203_s6 = scalar_lea.hbm %s21214_s14, 65536 }
  0xb4   : > { %p18204_p11 = scmp.ne.s32.totalorder %s21214_s14, %s18203_s6  ;;  %p18210_p4 = scmp.lt.u32.totalorder %s18203_s6, %s21214_s14 }
  0xb6   : > { %p18206_p13 = pnand %p18204_p11, %p18978_p12 }
  0xb8   : > { %p18207_p6 = pneg %p18206_p13 }
  0xba   : > { %p18212_p7 = pnand %p18210_p4, %p18207_p6 }
  0xbc   : > { %18215 = shalt.err (!%p18212_p7)
}
  0xbd   : > { %s18216_s3 = scalar_lea.vmem %s771_s30, 65536  ;;  %p18224_p2 = scmp.lt.s32.totalorder %s771_s30, %s771_s30 }
  0xbe   : > { %p18217_p8 = scmp.ne.s32.totalorder %s771_s30, %s18216_s3  ;;  %p18225_p3 = scmp.lt.s32.totalorder %s18216_s3, %s18216_s3 }
  0xc0   : > { %p18219_p0 = pnand %p18217_p8, %p18978_p12  ;;  %p18226_p5 = por %p18225_p3, %p18224_p2 }
  0xc2   : > { %p18220_p1 = pneg %p18219_p0 }
  0xc4   : > { %p18227_p9 = pnand %p18226_p5, %p18220_p1 }
  0xc6   : > { %18230 = shalt.err (!%p18227_p9)
}
  0xc7   : > { %17398 = dma.hbm_to_vmem [thread:$0]  (!%p18962_p10), %s21214_s14, 65536, %s771_s30, [#allocation23], %s21256_s2, %s21256_s2, %s21257_s0  }
  0xc8   : > { %s18231_s27 = scalar_lea.hbm %s21216_s16, 128 }
  0xc9   : > { %p18232_p11 = scmp.ne.s32.totalorder %s21216_s16, %s18231_s27  ;;  %p18238_p4 = scmp.lt.u32.totalorder %s18231_s27, %s21216_s16 }
  0xcb   : > { %p18234_p13 = pnand %p18232_p11, %p18978_p12 }
  0xcd   : > { %p18235_p6 = pneg %p18234_p13 }
  0xcf   : > { %p18240_p7 = pnand %p18238_p4, %p18235_p6 }
  0xd1   : > { %18243 = shalt.err (!%p18240_p7)
}
  0xd2   : > { %s18244_s29 = scalar_lea.vmem %s796_s26, 128  ;;  %p18252_p2 = scmp.lt.s32.totalorder %s796_s26, %s796_s26 }
  0xd3   : > { %p18245_p8 = scmp.ne.s32.totalorder %s796_s26, %s18244_s29  ;;  %p18253_p3 = scmp.lt.s32.totalorder %s18244_s29, %s18244_s29 }
  0xd5   : > { %p18247_p0 = pnand %p18245_p8, %p18978_p12  ;;  %p18254_p5 = por %p18253_p3, %p18252_p2 }
  0xd7   : > { %p18248_p1 = pneg %p18247_p0 }
  0xd9   : > { %p18255_p9 = pnand %p18254_p5, %p18248_p1 }
  0xdb   : > { %18258 = shalt.err (!%p18255_p9)
}
  0xdc   : > { %17404 = dma.hbm_to_vmem [thread:$0]  (!%p18962_p10), %s21216_s16, 128, %s796_s26, [#allocation26]  }
  0xdd   : > { %s18762_s3 = smov [#allocation28]   ;;  %s18763_s5 = smov [#allocation31]  }
  0xde   : > { %s820_s24 = sshll.u32 %s18762_s3, 4  ;;  %s844_s7 = sshll.u32 %s18763_s5, 4  ;;  %s821_s24 = int_to_ptr.vmem [resolvable:$true] %s820_s24  ;;  %s845_s7 = int_to_ptr.vmem [resolvable:$true] %s844_s7 }
  0xdf   : > { %s18259_s18 = scalar_lea.hbm %s21219_s19, 64 }
  0xe0   : > { %p18260_p11 = scmp.ne.s32.totalorder %s21219_s19, %s18259_s18  ;;  %p18266_p4 = scmp.lt.u32.totalorder %s18259_s18, %s21219_s19 }
  0xe2   : > { %p18262_p13 = pnand %p18260_p11, %p18978_p12 }
  0xe4   : > { %p18263_p6 = pneg %p18262_p13 }
  0xe6   : > { %p18268_p7 = pnand %p18266_p4, %p18263_p6 }
  0xe8   : > { %18271 = shalt.err (!%p18268_p7)
}
  0xe9   : > { %s18272_s26 = scalar_lea.vmem %s821_s24, 64  ;;  %p18280_p2 = scmp.lt.s32.totalorder %s821_s24, %s821_s24 }
  0xea   : > { %p18273_p8 = scmp.ne.s32.totalorder %s821_s24, %s18272_s26  ;;  %p18281_p3 = scmp.lt.s32.totalorder %s18272_s26, %s18272_s26 }
  0xec   : > { %p18275_p0 = pnand %p18273_p8, %p18978_p12  ;;  %p18282_p5 = por %p18281_p3, %p18280_p2 }
  0xee   : > { %p18276_p1 = pneg %p18275_p0 }
  0xf0   : > { %p18283_p9 = pnand %p18282_p5, %p18276_p1 }
  0xf2   : > { %18286 = shalt.err (!%p18283_p9)
}
  0xf3   : > { %17410 = dma.hbm_to_vmem [thread:$0]  (!%p18962_p10), %s21219_s19, 64, %s821_s24, [#allocation29]  }
  0xf4   : > { %s18287_s9 = scalar_lea.hbm %s21221_s21, 128 }
  0xf5   : > { %p18288_p11 = scmp.ne.s32.totalorder %s21221_s21, %s18287_s9  ;;  %p18294_p4 = scmp.lt.u32.totalorder %s18287_s9, %s21221_s21 }
  0xf7   : > { %p18290_p13 = pnand %p18288_p11, %p18978_p12 }
  0xf9   : > { %p18291_p6 = pneg %p18290_p13 }
  0xfb   : > { %p18296_p7 = pnand %p18294_p4, %p18291_p6 }
  0xfd   : > { %18299 = shalt.err (!%p18296_p7)
}
  0xfe   : > { %s18300_s6 = scalar_lea.vmem %s845_s7, 128  ;;  %p18308_p2 = scmp.lt.s32.totalorder %s845_s7, %s845_s7 }
  0xff   : > { %p18301_p8 = scmp.ne.s32.totalorder %s845_s7, %s18300_s6  ;;  %p18309_p3 = scmp.lt.s32.totalorder %s18300_s6, %s18300_s6 }
 0x101   : > { %p18303_p0 = pnand %p18301_p8, %p18978_p12  ;;  %p18310_p5 = por %p18309_p3, %p18308_p2 }
 0x103   : > { %p18304_p1 = pneg %p18303_p0 }
 0x105   : > { %p18311_p9 = pnand %p18310_p5, %p18304_p1 }
 0x107   : > { %18314 = shalt.err (!%p18311_p9)
}
 0x108   : > { %17416 = dma.hbm_to_vmem [thread:$0]  (!%p18962_p10), %s21221_s21, 128, %s845_s7, [#allocation32]  }
 0x109   : > { %s18764_s26 = smov [#allocation34]   ;;  %s18765_s28 = smov [#allocation4]  }
 0x10a   : > { %s866_s30 = sshll.u32 %s18764_s26, 4  ;;  %s644_s3 = sshll.u32 %s18765_s28, 4  ;;  %s867_s30 = int_to_ptr.vmem [resolvable:$true] %s866_s30  ;;  %s645_s3 = int_to_ptr.vmem [resolvable:$true] %s644_s3 }
 0x10b   : > { %s18315_s27 = scalar_lea.hbm %s21223_s23, 128 }
 0x10c   : > { %p18316_p11 = scmp.ne.s32.totalorder %s21223_s23, %s18315_s27  ;;  %p18322_p4 = scmp.lt.u32.totalorder %s18315_s27, %s21223_s23 }
 0x10e   : > { %p18318_p13 = pnand %p18316_p11, %p18978_p12 }
 0x110   : > { %p18319_p6 = pneg %p18318_p13 }
 0x112   : > { %p18324_p7 = pnand %p18322_p4, %p18319_p6 }
 0x114   : > { %18327 = shalt.err (!%p18324_p7)
}
 0x115   : > { %s18328_s7 = scalar_lea.vmem %s867_s30, 128  ;;  %p18336_p2 = scmp.lt.s32.totalorder %s867_s30, %s867_s30 }
 0x116   : > { %p18329_p8 = scmp.ne.s32.totalorder %s867_s30, %s18328_s7  ;;  %p18337_p3 = scmp.lt.s32.totalorder %s18328_s7, %s18328_s7 }
 0x118   : > { %p18331_p0 = pnand %p18329_p8, %p18978_p12  ;;  %p18338_p5 = por %p18337_p3, %p18336_p2 }
 0x11a   : > { %p18332_p1 = pneg %p18331_p0 }
 0x11c   : > { %p18339_p9 = pnand %p18338_p5, %p18332_p1 }
 0x11e   : > { %18342 = shalt.err (!%p18339_p9)
}
 0x11f   : > { %17422 = dma.hbm_to_vmem [thread:$0]  (!%p18962_p10), %s21223_s23, 128, %s867_s30, [#allocation35]  }
 0x120   : > { %s21291_s5 = sld [smem:[#allocation61_spill]] }
 0x126   : > { %s18343_s9 = scalar_lea.hbm %s21291_s5, 16 }
 0x127   : > { %p18344_p11 = scmp.ne.s32.totalorder %s21291_s5, %s18343_s9  ;;  %p18350_p4 = scmp.lt.u32.totalorder %s18343_s9, %s21291_s5 }
 0x129   : > { %p18346_p13 = pnand %p18344_p11, %p18978_p12 }
 0x12b   : > { %p18347_p6 = pneg %p18346_p13 }
 0x12d   : > { %p18352_p7 = pnand %p18350_p4, %p18347_p6 }
 0x12f   : > { %18355 = shalt.err (!%p18352_p7)
}
 0x130   : > { %s18356_s6 = scalar_lea.vmem %s645_s3, 16  ;;  %s18363_s30 = scalar_lea.vmem %s645_s3, 32 }
 0x131   : > { %p18357_p8 = scmp.ne.s32.totalorder %s645_s3, %s18356_s6  ;;  %p18364_p2 = scmp.lt.s32.totalorder %s645_s3, %s645_s3 }
 0x132   : > { %p18365_p3 = scmp.lt.s32.totalorder %s18363_s30, %s18356_s6 }
 0x133   : > { %p18359_p0 = pnand %p18357_p8, %p18978_p12 }
 0x134   : > { %p18366_p5 = por %p18365_p3, %p18364_p2 }
 0x135   : > { %p18360_p1 = pneg %p18359_p0 }
 0x137   : > { %p18367_p9 = pnand %p18366_p5, %p18360_p1 }
 0x139   : > { %18370 = shalt.err (!%p18367_p9)
}
 0x13a   : > { %17365 = dma.hbm_to_vmem [thread:$0]  (!%p18962_p10), %s21291_s5, 16, %s645_s3, [#allocation5]  }
 0x13b   : > { %s18766_s29 = smov [#allocation9]   ;;  %s18767_s28 = smov [#allocation12]  }
 0x13c   : > { %s666_s26 = sshll.u32 %s18766_s29, 4  ;;  %s688_s9 = sshll.u32 %s18767_s28, 4  ;;  %s667_s26 = int_to_ptr.vmem [resolvable:$true] %s666_s26  ;;  %s689_s9 = int_to_ptr.vmem [resolvable:$true] %s688_s9 }
 0x13d   : > { %s21292_s4 = sld [smem:[#allocation63_spill]] }
 0x143   : > { %s18371_s8 = scalar_lea.hbm %s21292_s4, 64 }
 0x144   : > { %p18372_p11 = scmp.ne.s32.totalorder %s21292_s4, %s18371_s8  ;;  %p18378_p4 = scmp.lt.u32.totalorder %s18371_s8, %s21292_s4 }
 0x146   : > { %p18374_p13 = pnand %p18372_p11, %p18978_p12 }
 0x148   : > { %p18375_p6 = pneg %p18374_p13 }
 0x14a   : > { %p18380_p7 = pnand %p18378_p4, %p18375_p6 }
 0x14c   : > { %18383 = shalt.err (!%p18380_p7)
}
 0x14d   : > { %s18384_s3 = scalar_lea.vmem %s667_s26, 64  ;;  %p18392_p2 = scmp.lt.s32.totalorder %s667_s26, %s667_s26 }
 0x14e   : > { %p18385_p8 = scmp.ne.s32.totalorder %s667_s26, %s18384_s3  ;;  %p18393_p3 = scmp.lt.s32.totalorder %s18384_s3, %s18384_s3 }
 0x150   : > { %p18387_p0 = pnand %p18385_p8, %p18978_p12  ;;  %p18394_p5 = por %p18393_p3, %p18392_p2 }
 0x152   : > { %p18388_p1 = pneg %p18387_p0 }
 0x154   : > { %p18395_p9 = pnand %p18394_p5, %p18388_p1 }
 0x156   : > { %18398 = shalt.err (!%p18395_p9)
}
 0x157   : > { %17371 = dma.hbm_to_vmem [thread:$0]  (!%p18962_p10), %s21292_s4, 64, %s667_s26, [#allocation8]  }
 0x158   : > { %s21293_s27 = sld [smem:[#allocation65_spill]] }
 0x15e   : > { %s21294_s18 = smov %s21293_s27  ;;  %s18399_s8 = scalar_lea.hbm %s21293_s27, 16 }
 0x15f   : > { %p18400_p11 = scmp.ne.s32.totalorder %s21294_s18, %s18399_s8  ;;  %p18406_p4 = scmp.lt.u32.totalorder %s18399_s8, %s21294_s18 }
 0x161   : > { %p18402_p13 = pnand %p18400_p11, %p18978_p12 }
 0x163   : > { %p18403_p6 = pneg %p18402_p13 }
 0x165   : > { %p18408_p7 = pnand %p18406_p4, %p18403_p6 }
 0x167   : > { %18411 = shalt.err (!%p18408_p7)
}
 0x168   : > { %s18412_s24 = scalar_lea.vmem %s689_s9, 16  ;;  %s18419_s26 = scalar_lea.vmem %s689_s9, 32 }
 0x169   : > { %p18413_p8 = scmp.ne.s32.totalorder %s689_s9, %s18412_s24  ;;  %p18420_p2 = scmp.lt.s32.totalorder %s689_s9, %s689_s9 }
 0x16a   : > { %p18421_p3 = scmp.lt.s32.totalorder %s18419_s26, %s18412_s24 }
 0x16b   : > { %p18415_p0 = pnand %p18413_p8, %p18978_p12 }
 0x16c   : > { %p18422_p5 = por %p18421_p3, %p18420_p2 }
 0x16d   : > { %p18416_p1 = pneg %p18415_p0 }
 0x16f   : > { %p18423_p9 = pnand %p18422_p5, %p18416_p1 }
 0x171   : > { %18426 = shalt.err (!%p18423_p9)
}
 0x172   : > { %17377 = dma.hbm_to_vmem [thread:$0]  (!%p18962_p10), %s21294_s18, 16, %s689_s9, [#allocation11]  }
 0x173   : > { %s18768_s28 = smov [#allocation15]   ;;  %s18769_s8 = smov [#allocation18]  }
 0x174   : > { %s712_s27 = sshll.u32 %s18768_s28, 4  ;;  %s736_s6 = sshll.u32 %s18769_s8, 4  ;;  %s713_s27 = int_to_ptr.vmem [resolvable:$true] %s712_s27  ;;  %s737_s6 = int_to_ptr.vmem [resolvable:$true] %s736_s6 }
 0x175   : > { %s21295_s3 = sld [smem:[#allocation67_spill]] }
 0x17b   : > { %s21296_s0 = smov %s21295_s3  ;;  %s18427_s4 = scalar_lea.hbm %s21295_s3, 16 }
 0x17c   : > { %p18428_p11 = scmp.ne.s32.totalorder %s21296_s0, %s18427_s4  ;;  %p18434_p4 = scmp.lt.u32.totalorder %s18427_s4, %s21296_s0 }
 0x17e   : > { %p18430_p13 = pnand %p18428_p11, %p18978_p12 }
 0x180   : > { %p18431_p6 = pneg %p18430_p13 }
 0x182   : > { %p18436_p7 = pnand %p18434_p4, %p18431_p6 }
 0x184   : > { %18439 = shalt.err (!%p18436_p7)
}
 0x185   : > { %s18440_s9 = scalar_lea.vmem %s713_s27, 16  ;;  %s18447_s2 = scalar_lea.vmem %s713_s27, 32 }
 0x186   : > { %p18441_p8 = scmp.ne.s32.totalorder %s713_s27, %s18440_s9  ;;  %p18448_p2 = scmp.lt.s32.totalorder %s713_s27, %s713_s27 }
 0x187   : > { %p18449_p3 = scmp.lt.s32.totalorder %s18447_s2, %s18440_s9 }
 0x188   : > { %p18443_p0 = pnand %p18441_p8, %p18978_p12 }
 0x189   : > { %p18450_p5 = por %p18449_p3, %p18448_p2 }
 0x18a   : > { %p18444_p1 = pneg %p18443_p0 }
 0x18c   : > { %p18451_p9 = pnand %p18450_p5, %p18444_p1 }
 0x18e   : > { %18454 = shalt.err (!%p18451_p9)
}
 0x18f   : > { %17383 = dma.hbm_to_vmem [thread:$0]  (!%p18962_p10), %s21296_s0, 16, %s713_s27, [#allocation14]  }
 0x190   : > { %s18455_s30 = scalar_lea.hbm %s21211_s11, 64 }
 0x191   : > { %p18456_p11 = scmp.ne.s32.totalorder %s21211_s11, %s18455_s30  ;;  %p18462_p4 = scmp.lt.u32.totalorder %s18455_s30, %s21211_s11 }
 0x193   : > { %p18458_p13 = pnand %p18456_p11, %p18978_p12 }
 0x195   : > { %p18459_p6 = pneg %p18458_p13 }
 0x197   : > { %p18464_p7 = pnand %p18462_p4, %p18459_p6 }
 0x199   : > { %18467 = shalt.err (!%p18464_p7)
}
 0x19a   : > { %s18468_s29 = scalar_lea.vmem %s737_s6, 64  ;;  %p18476_p2 = scmp.lt.s32.totalorder %s737_s6, %s737_s6 }
 0x19b   : > { %p18469_p8 = scmp.ne.s32.totalorder %s737_s6, %s18468_s29  ;;  %p18477_p3 = scmp.lt.s32.totalorder %s18468_s29, %s18468_s29 }
 0x19d   : > { %p18471_p0 = pnand %p18469_p8, %p18978_p12  ;;  %p18478_p5 = por %p18477_p3, %p18476_p2 }
 0x19f   : > { %p18472_p1 = pneg %p18471_p0 }
 0x1a1   : > { %p18479_p9 = pnand %p18478_p5, %p18472_p1 }
 0x1a3   : > { %18482 = shalt.err (!%p18479_p9)
}
 0x1a4   : > { %17389 = dma.hbm_to_vmem [thread:$0]  (!%p18962_p10), %s21211_s11, 64, %s737_s6, [#allocation17]  }
 0x1a5   : > { %s18770_s2 = smov [#allocation21]   ;;  %s18771_s8 = smov [#allocation24]  }
 0x1a6   : > { %s760_s28 = sshll.u32 %s18770_s2, 4  ;;  %s784_s5 = sshll.u32 %s18771_s8, 4  ;;  %s761_s28 = int_to_ptr.vmem [resolvable:$true] %s760_s28  ;;  %s785_s5 = int_to_ptr.vmem [resolvable:$true] %s784_s5 }
 0x1a7   : > { %s18483_s7 = scalar_lea.hbm %s21213_s13, 128 }
 0x1a8   : > { %p18484_p11 = scmp.ne.s32.totalorder %s21213_s13, %s18483_s7  ;;  %p18490_p4 = scmp.lt.u32.totalorder %s18483_s7, %s21213_s13 }
 0x1aa   : > { %p18486_p13 = pnand %p18484_p11, %p18978_p12 }
 0x1ac   : > { %p18487_p6 = pneg %p18486_p13 }
 0x1ae   : > { %p18492_p7 = pnand %p18490_p4, %p18487_p6 }
 0x1b0   : > { %18495 = shalt.err (!%p18492_p7)
}
 0x1b1   : > { %s18496_s6 = scalar_lea.vmem %s761_s28, 128  ;;  %p18504_p2 = scmp.lt.s32.totalorder %s761_s28, %s761_s28 }
 0x1b2   : > { %p18497_p8 = scmp.ne.s32.totalorder %s761_s28, %s18496_s6  ;;  %p18505_p3 = scmp.lt.s32.totalorder %s18496_s6, %s18496_s6 }
 0x1b4   : > { %p18499_p0 = pnand %p18497_p8, %p18978_p12  ;;  %p18506_p5 = por %p18505_p3, %p18504_p2 }
 0x1b6   : > { %p18500_p1 = pneg %p18499_p0 }
 0x1b8   : > { %p18507_p9 = pnand %p18506_p5, %p18500_p1 }
 0x1ba   : > { %18510 = shalt.err (!%p18507_p9)
}
 0x1bb   : > { %17395 = dma.hbm_to_vmem [thread:$0]  (!%p18962_p10), %s21213_s13, 128, %s761_s28, [#allocation20]  }
 0x1bc   : > { %s18511_s4 = scalar_lea.hbm %s21215_s15, 128 }
 0x1bd   : > { %p18512_p11 = scmp.ne.s32.totalorder %s21215_s15, %s18511_s4  ;;  %p18518_p4 = scmp.lt.u32.totalorder %s18511_s4, %s21215_s15 }
 0x1bf   : > { %p18514_p13 = pnand %p18512_p11, %p18978_p12 }
 0x1c1   : > { %p18515_p6 = pneg %p18514_p13 }
 0x1c3   : > { %p18520_p7 = pnand %p18518_p4, %p18515_p6 }
 0x1c5   : > { %18523 = shalt.err (!%p18520_p7)
}
 0x1c6   : > { %s18524_s26 = scalar_lea.vmem %s785_s5, 128  ;;  %p18532_p2 = scmp.lt.s32.totalorder %s785_s5, %s785_s5 }
 0x1c7   : > { %p18525_p8 = scmp.ne.s32.totalorder %s785_s5, %s18524_s26  ;;  %p18533_p3 = scmp.lt.s32.totalorder %s18524_s26, %s18524_s26 }
 0x1c9   : > { %p18527_p0 = pnand %p18525_p8, %p18978_p12  ;;  %p18534_p5 = por %p18533_p3, %p18532_p2 }
 0x1cb   : > { %p18528_p1 = pneg %p18527_p0 }
 0x1cd   : > { %p18535_p9 = pnand %p18534_p5, %p18528_p1 }
 0x1cf   : > { %18538 = shalt.err (!%p18535_p9)
}
 0x1d0   : > { %17401 = dma.hbm_to_vmem [thread:$0]  (!%p18962_p10), %s21215_s15, 128, %s785_s5, [#allocation23]  }
 0x1d1   : > { %s18772_s6 = smov [#allocation27]   ;;  %s18773_s9 = smov [#allocation30]  }
 0x1d2   : > { %s806_s27 = sshll.u32 %s18772_s6, 4  ;;  %s830_s2 = sshll.u32 %s18773_s9, 4  ;;  %s807_s27 = int_to_ptr.vmem [resolvable:$true] %s806_s27  ;;  %s831_s2 = int_to_ptr.vmem [resolvable:$true] %s830_s2 }
 0x1d3   : > { %s18539_s30 = scalar_lea.hbm %s21217_s17, 128 }
 0x1d4   : > { %p18540_p11 = scmp.ne.s32.totalorder %s21217_s17, %s18539_s30  ;;  %p18546_p4 = scmp.lt.u32.totalorder %s18539_s30, %s21217_s17 }
 0x1d6   : > { %p18542_p13 = pnand %p18540_p11, %p18978_p12 }
 0x1d8   : > { %p18543_p6 = pneg %p18542_p13 }
 0x1da   : > { %p18548_p7 = pnand %p18546_p4, %p18543_p6 }
 0x1dc   : > { %18551 = shalt.err (!%p18548_p7)
}
 0x1dd   : > { %s18552_s5 = scalar_lea.vmem %s807_s27, 128  ;;  %p18560_p2 = scmp.lt.s32.totalorder %s807_s27, %s807_s27 }
 0x1de   : > { %p18553_p8 = scmp.ne.s32.totalorder %s807_s27, %s18552_s5  ;;  %p18561_p3 = scmp.lt.s32.totalorder %s18552_s5, %s18552_s5 }
 0x1e0   : > { %p18555_p0 = pnand %p18553_p8, %p18978_p12  ;;  %p18562_p5 = por %p18561_p3, %p18560_p2 }
 0x1e2   : > { %p18556_p1 = pneg %p18555_p0 }
 0x1e4   : > { %p18563_p9 = pnand %p18562_p5, %p18556_p1 }
 0x1e6   : > { %18566 = shalt.err (!%p18563_p9)
}
 0x1e7   : > { %17407 = dma.hbm_to_vmem [thread:$0]  (!%p18962_p10), %s21217_s17, 128, %s807_s27, [#allocation26]  }
 0x1e8   : > { %s18567_s8 = scalar_lea.hbm %s21220_s20, 32768 }
 0x1e9   : > { %p18568_p11 = scmp.ne.s32.totalorder %s21220_s20, %s18567_s8  ;;  %p18574_p4 = scmp.lt.u32.totalorder %s18567_s8, %s21220_s20 }
 0x1eb   : > { %p18570_p13 = pnand %p18568_p11, %p18978_p12 }
 0x1ed   : > { %p18571_p6 = pneg %p18570_p13 }
 0x1ef   : > { %p18576_p7 = pnand %p18574_p4, %p18571_p6 }
 0x1f1   : > { %18579 = shalt.err (!%p18576_p7)
}
 0x1f2   : > { %s18580_s24 = scalar_lea.vmem %s831_s2, 32768  ;;  %p18588_p2 = scmp.lt.s32.totalorder %s831_s2, %s831_s2 }
 0x1f3   : > { %p18581_p8 = scmp.ne.s32.totalorder %s831_s2, %s18580_s24  ;;  %p18589_p3 = scmp.lt.s32.totalorder %s18580_s24, %s18580_s24 }
 0x1f5   : > { %p18583_p0 = pnand %p18581_p8, %p18978_p12  ;;  %p18590_p5 = por %p18589_p3, %p18588_p2 }
 0x1f7   : > { %p18584_p1 = pneg %p18583_p0 }
 0x1f9   : > { %p18591_p9 = pnand %p18590_p5, %p18584_p1 }
 0x1fb   : > { %18594 = shalt.err (!%p18591_p9)
}
 0x1fc   : > { %s21297_s27 = smov 32   ;;  %s21298_s26 = smov 512  }
 0x1fd   : > { %17413 = dma.hbm_to_vmem [thread:$0]  (!%p18962_p10), %s21220_s20, 32768, %s831_s2, [#allocation29], %s21298_s26, %s21298_s26, %s21297_s27  }
 0x1fe   : > { %s18774_s29 = smov [#allocation33]   ;;  %s18775_s9 = smov [#allocation36]  }
 0x1ff   : > { %s855_s6 = sshll.u32 %s18774_s29, 4  ;;  %s880_s8 = sshll.u32 %s18775_s9, 4  ;;  %s856_s6 = int_to_ptr.vmem [resolvable:$true] %s855_s6  ;;  %s881_s8 = int_to_ptr.vmem [resolvable:$true] %s880_s8 }
 0x200   : > { %s18595_s7 = scalar_lea.hbm %s21222_s22, 128 }
 0x201   : > { %p18596_p11 = scmp.ne.s32.totalorder %s21222_s22, %s18595_s7  ;;  %p18602_p4 = scmp.lt.u32.totalorder %s18595_s7, %s21222_s22 }
 0x203   : > { %p18598_p13 = pnand %p18596_p11, %p18978_p12 }
 0x205   : > { %p18599_p6 = pneg %p18598_p13 }
 0x207   : > { %p18604_p7 = pnand %p18602_p4, %p18599_p6 }
 0x209   : > { %18607 = shalt.err (!%p18604_p7)
}
 0x20a   : > { %s18608_s2 = scalar_lea.vmem %s856_s6, 128  ;;  %p18616_p2 = scmp.lt.s32.totalorder %s856_s6, %s856_s6 }
 0x20b   : > { %p18609_p8 = scmp.ne.s32.totalorder %s856_s6, %s18608_s2  ;;  %p18617_p3 = scmp.lt.s32.totalorder %s18608_s2, %s18608_s2 }
 0x20d   : > { %p18611_p0 = pnand %p18609_p8, %p18978_p12  ;;  %p18618_p5 = por %p18617_p3, %p18616_p2 }
 0x20f   : > { %p18612_p1 = pneg %p18611_p0 }
 0x211   : > { %p18619_p9 = pnand %p18618_p5, %p18612_p1 }
 0x213   : > { %18622 = shalt.err (!%p18619_p9)
}
 0x214   : > { %17419 = dma.hbm_to_vmem [thread:$0]  (!%p18962_p10), %s21222_s22, 128, %s856_s6, [#allocation32]  }
 0x215   : > { %s18623_s29 = scalar_lea.hbm %s21225_s25, 16 }
 0x216   : > { %p18624_p11 = scmp.ne.s32.totalorder %s21225_s25, %s18623_s29  ;;  %p18630_p4 = scmp.lt.u32.totalorder %s18623_s29, %s21225_s25 }
 0x218   : > { %p18626_p13 = pnand %p18624_p11, %p18978_p12 }
 0x21a   : > { %p18627_p6 = pneg %p18626_p13 }
 0x21c   : > { %p18632_p7 = pnand %p18630_p4, %p18627_p6 }
 0x21e   : > { %18635 = shalt.err (!%p18632_p7)
}
 0x21f   : > { %s18636_s3 = scalar_lea.vmem %s881_s8, 16  ;;  %s18643_s6 = scalar_lea.vmem %s881_s8, 32 }
 0x220   : > { %p18637_p8 = scmp.ne.s32.totalorder %s881_s8, %s18636_s3  ;;  %p18644_p2 = scmp.lt.s32.totalorder %s881_s8, %s881_s8 }
 0x221   : > { %p18645_p3 = scmp.lt.s32.totalorder %s18643_s6, %s18636_s3 }
 0x222   : > { %p18639_p0 = pnand %p18637_p8, %p18978_p12 }
 0x223   : > { %p18646_p5 = por %p18645_p3, %p18644_p2 }
 0x224   : > { %p18640_p1 = pneg %p18639_p0 }
 0x226   : > { %p18647_p9 = pnand %p18646_p5, %p18640_p1 }
 0x228   : > { %18650 = shalt.err (!%p18647_p9)
}
 0x229   : > { %17425 = dma.hbm_to_vmem [thread:$0]  (!%p18962_p10), %s21225_s25, 16, %s881_s8, [#allocation35]  }
 0x22a   : > { %s21299_s2 = sld [smem:[#allocation52_spill]] }
 0x230   : > { %p15241_p11 = scmp.ge.s32.totalorder %s21299_s2, 2 }
 0x231   : > { %s21300_s27 = sld [smem:[#allocation56_spill]] (!%p15241_p11) }
 0x232   : > { %887 = sbr.rel (%p15241_p11) target bundleno = 587 (0x24b), region = 116 }
 0x237   : > { %p21301_p13 = scmp.ne.s32.totalorder (!%p15241_p11), %s21300_s27, 0 }
 0x239   : > { %890 = sbr.rel (!%p21301_p13) target bundleno = 587 (0x24b), region = 120  ;;  %s21302_s10 = sld [smem:[#allocation51_spill]] (%p21301_p13) }
 0x23a   : > { %s21303_s26 = sld [smem:[#allocation52_spill]] (%p21301_p13)  ;;  %s21304_s30 = sld [smem:[#allocation58_spill]] (%p21301_p13) }
 0x23f   : > { %s892_s0 = sand.u32 (%p21301_p13), 1, %s21302_s10  }
 0x240   : > { %s16980_s28 = sshll.u32 %s21303_s26, 6  ;;  %s15242_s29 = sshll.u32 %s892_s0, 7 }
 0x241   : > { %s19381_s7 = scalar_lea.vmem %s21304_s30, %s16980_s28  ;;  %s894_s1 = scalar_lea.vmem [#allocation3], %s15242_s29 }
 0x242   : > { %v913_v0 = vld [vmem:[%s19381_s7] sm:$0xff]   ;;  %v917_v1 = vld [vmem:[%s19381_s7 + $0x8] sm:$0xff]   ;;  %v921_v2 = vld [vmem:[%s19381_s7 + $0x10] sm:$0xff]  }
 0x243   : > { %914 = vst [vmem:[%s894_s1] sm:$0xff] %v913_v0   ;;  %918 = vst [vmem:[%s894_s1 + $0x8] sm:$0xff] %v917_v1   ;;  %v925_v3 = vld [vmem:[%s19381_s7 + $0x18] sm:$0xff]   ;;  %v929_v4 = vld [vmem:[%s19381_s7 + $0x20] sm:$0xff]  }
 0x244   : > { %922 = vst [vmem:[%s894_s1 + $0x10] sm:$0xff] %v921_v2   ;;  %v933_v5 = vld [vmem:[%s19381_s7 + $0x28] sm:$0xff]   ;;  %926 = vst [vmem:[%s894_s1 + $0x18] sm:$0xff] %v925_v3   ;;  %v937_v6 = vld [vmem:[%s19381_s7 + $0x30] sm:$0xff]  }
 0x245   : > { %930 = vst [vmem:[%s894_s1 + $0x20] sm:$0xff] %v929_v4   ;;  %934 = vst [vmem:[%s894_s1 + $0x28] sm:$0xff] %v933_v5   ;;  %v941_v7 = vld [vmem:[%s19381_s7 + $0x38] sm:$0xff]   ;;  %v945_v8 = vld [vmem:[%s19381_s7 + $0x80] sm:$0xff]  }
 0x246   : > { %938 = vst [vmem:[%s894_s1 + $0x30] sm:$0xff] %v937_v6   ;;  %942 = vst [vmem:[%s894_s1 + $0x38] sm:$0xff] %v941_v7   ;;  %v949_v9 = vld [vmem:[%s19381_s7 + $0x88] sm:$0xff]   ;;  %v953_v10 = vld [vmem:[%s19381_s7 + $0x90] sm:$0xff]  }
 0x247   : > { %946 = vst [vmem:[%s894_s1 + $0x40] sm:$0xff] %v945_v8   ;;  %v957_v11 = vld [vmem:[%s19381_s7 + $0x98] sm:$0xff]   ;;  %950 = vst [vmem:[%s894_s1 + $0x48] sm:$0xff] %v949_v9   ;;  %v961_v12 = vld [vmem:[%s19381_s7 + $0xa0] sm:$0xff]  }
 0x248   : > { %954 = vst [vmem:[%s894_s1 + $0x50] sm:$0xff] %v953_v10   ;;  %958 = vst [vmem:[%s894_s1 + $0x58] sm:$0xff] %v957_v11   ;;  %v965_v13 = vld [vmem:[%s19381_s7 + $0xa8] sm:$0xff]   ;;  %v969_v14 = vld [vmem:[%s19381_s7 + $0xb0] sm:$0xff]  }
 0x249   : > { %962 = vst [vmem:[%s894_s1 + $0x60] sm:$0xff] %v961_v12   ;;  %966 = vst [vmem:[%s894_s1 + $0x68] sm:$0xff] %v965_v13   ;;  %v973_v15 = vld [vmem:[%s19381_s7 + $0xb8] sm:$0xff]  }
 0x24a   : > { %970 = vst [vmem:[%s894_s1 + $0x70] sm:$0xff] %v969_v14   ;;  %974 = vst [vmem:[%s894_s1 + $0x78] sm:$0xff] %v973_v15  }
 0x24b PF: > { %s21305_s8 = sld [smem:[#allocation57_spill]] }
 0x251   : > { %p21306_p10 = scmp.ne.s32.totalorder %s21305_s8, 0 }
 0x252   : > { %s21307_s3 = sld [smem:[#allocation50_spill]] (!%p21306_p10)  ;;  %s21308_s6 = sld [smem:[#allocation53_spill]] (!%p21306_p10) }
 0x253   : > { %1066 = sbr.rel (%p21306_p10) target bundleno = 4584 (0x11e8), region = 161 }
 0x258   : > { %s1069_s24 = sand.u32 (!%p21306_p10), 1, %s21307_s3   ;;  %p21309_p12 = scmp.eq.s32.totalorder (!%p21306_p10), %s21308_s6, 0 }
 0x259   : > { %s15246_s5 = sshll.u32 (!%p21306_p10), %s1069_s24, 7 }
 0x25a   : > { %s19402_s2 = scalar_lea.vmem [#allocation3], %s15246_s5 }
 0x25b   : > { %18690 = dma.done.wait (%p21309_p12), [#allocation5], 16   ;;  %p21310_p6 = pmov %p21309_p12 }
 0x25d   : > { %18692 = vsyncadd (%p21310_p6), [#allocation5], 4294967280  ;;  %p21311_p4 = pmov %p21310_p6 }
 0x25f   : > { %18694 = dma.done.wait (%p21311_p4), [#allocation8], 320   ;;  %p21312_p7 = pmov %p21311_p4 }
 0x260   : > { %p21313_p8 = pmov %p21311_p4 }
 0x261   : > { %18696 = vsyncadd (%p21312_p7), [#allocation8], 4294966976 }
 0x262   : > { %18698 = dma.done.wait (%p21313_p8), [#allocation11], 48   ;;  %p21314_p0 = pmov %p21311_p4 }
 0x264   : > { %18700 = vsyncadd (%p21314_p0), [#allocation11], 4294967248  ;;  %p21315_p1 = pmov %p21314_p0 }
 0x265   : > { %p21316_p2 = pmov %p21314_p0 }
 0x266   : > { %18702 = dma.done.wait (%p21315_p1), [#allocation14], 528  }
 0x267   : > { %18704 = vsyncadd (%p21316_p2), [#allocation14], 4294966768  ;;  %p21317_p3 = pmov %p21314_p0 }
 0x268   : > { %p21318_p5 = pmov %p21314_p0 }
 0x269   : > { %18706 = dma.done.wait (%p21317_p3), [#allocation17], 4160  }
 0x26a   : > { %18708 = vsyncadd (%p21318_p5), [#allocation17], 4294963136  ;;  %p21319_p9 = pmov %p21314_p0 }
 0x26b   : > { %p21320_p11 = pmov %p21314_p0 }
 0x26c   : > { %18710 = dma.done.wait (%p21319_p9), [#allocation20], 65664  }
 0x26d   : > { %18712 = vsyncadd (%p21320_p11), [#allocation20], 4294901632  ;;  %p21321_p13 = pmov %p21314_p0 }
 0x26e   : > { %p21322_p10 = pmov %p21314_p0 }
 0x26f   : > { %18714 = dma.done.wait (%p21321_p13), [#allocation23], 65664  }
 0x270   : > { %18716 = vsyncadd (%p21322_p10), [#allocation23], 4294901632  ;;  %p21323_p12 = pmov %p21314_p0 }
 0x271   : > { %p21324_p6 = pmov %p21314_p0 }
 0x272   : > { %18718 = dma.done.wait (%p21323_p12), [#allocation26], 256  }
 0x273   : > { %18720 = vsyncadd (%p21324_p6), [#allocation26], 4294967040  ;;  %p21325_p4 = pmov %p21314_p0 }
 0x274   : > { %p21326_p7 = pmov %p21314_p0 }
 0x275   : > { %18722 = dma.done.wait (%p21325_p4), [#allocation29], 32832  }
 0x276   : > { %18724 = vsyncadd (%p21326_p7), [#allocation29], 4294934464  ;;  %p21327_p8 = pmov %p21314_p0 }
 0x278   : > { %18726 = dma.done.wait (%p21327_p8), [#allocation32], 256  }
 0x279   : > { %18728 = vsyncadd (%p21314_p0), [#allocation32], 4294967040  ;;  %p21328_p1 = pmov %p21314_p0 }
 0x27a   : > { %p21329_p2 = pmov %p21314_p0 }
 0x27b   : > { %18730 = dma.done.wait (%p21328_p1), [#allocation35], 144  }
 0x27c   : > { %18732 = vsyncadd (%p21329_p2), [#allocation35], 4294967152  ;;  %p21330_p3 = scmp.ne.s32.totalorder %s21308_s6, 0 }
 0x27d   : > { %vm1223_vm0 = vcmask (!%p21330_p3), 58368   ;;  %v18776_v16 = vmov (!%p21330_p3), 0.0  }
 0x27e   : > { %1222 = sbr.rel (%p21330_p3) target bundleno = 645 (0x285), region = 253  ;;  %1224 = vst.msk [vmem:[#allocation2] sm:$0x3] (!%p21330_p3), %vm1223_vm0, %v18776_v16 }
 0x285 PF: > { %s21331_s26 = sld [smem:[#allocation60_spill]]  ;;  %vm1408_vm1 = vcmask 1044480   ;;  %vm1409_vm2 = vcmask 1045504   ;;  %v18777_v19 = vmov 65535   ;;  %v17528_v21 = vld [vmem:[%s19402_s2] sm:$0xff]   ;;  %vm1359_vm3 = vcmask 220160  }
 0x286   : > { %v1410_v20 = vsel %vm1408_vm1, 4294967295, %v18777_v19  ;;  %v17529_v22 = vld [vmem:[%s19402_s2 + $0x40] sm:$0xff]   ;;  %17112 = vmatprep.mubr.msk.bf16.mxu0 %vm1359_vm3, %v17528_v21  ;;  %v17530_v25 = vld [vmem:[%s19402_s2 + $0x8] sm:$0xff]   ;;  %v17532_v27 = vld [vmem:[%s19402_s2 + $0x10] sm:$0xff]   ;;  %vm1609_vm4 = vcmask 64512   ;;  %vm1686_vm5 = vcmask 1041409  }
 0x287   : > { %v1411_v23 = vsel %vm1409_vm2, %v1410_v20, 0  ;;  %17128 = vmatprep.mubr.msk.bf16.mxu1 %vm1359_vm3, %v17529_v22  ;;  %v17531_v26 = vld [vmem:[%s19402_s2 + $0x48] sm:$0xff]   ;;  %v17533_v28 = vld [vmem:[%s19402_s2 + $0x50] sm:$0xff]   ;;  %v17534_v29 = vld [vmem:[%s19402_s2 + $0x18] sm:$0xff]   ;;  %vm1690_vm6 = vcmask 58368   ;;  %s21332_s29 = sld [smem:[#allocation53_spill]] }
 0x288   : > { %v17535_v30 = vld [vmem:[%s19402_s2 + $0x58] sm:$0xff]   ;;  %v17536_v31 = vld [vmem:[%s19402_s2 + $0x20] sm:$0xff]   ;;  %v17538_v33 = vld [vmem:[%s19402_s2 + $0x28] sm:$0xff]  }
 0x289   : > { %v17537_v32 = vld [vmem:[%s19402_s2 + $0x60] sm:$0xff]   ;;  %v17539_v34 = vld [vmem:[%s19402_s2 + $0x68] sm:$0xff]   ;;  %v17540_v35 = vld [vmem:[%s19402_s2 + $0x30] sm:$0xff]  }
 0x28a   : > { %v17541_v36 = vld [vmem:[%s19402_s2 + $0x70] sm:$0xff]   ;;  %v17542_v37 = vld [vmem:[%s19402_s2 + $0x38] sm:$0xff]   ;;  %v19488_v39 = vld [vmem:[#allocation4] ss:$0 sm:$0xff] }
 0x28b   : > { %v17526_v17 = vld [vmem:[%s21331_s26] sm:$0xff]   ;;  %v17527_v18 = vld [vmem:[%s21331_s26 + $0x8] sm:$0x3f]  }
 0x28c   : > { %17108 = vmatprep.subr.bf16.mxu0 %v17526_v17  ;;  %17186 = vmatprep.subr.bf16.mxu1 %v17526_v17  ;;  %v1413_v24 = vand.u32 %v17527_v18, %v1411_v23  ;;  %v17543_v38 = vld [vmem:[%s19402_s2 + $0x78] sm:$0xff]  }
 0x28d   : > { %17109 = vmatpush3.bf16.msra.mxu0 %v17526_v17  ;;  %17188 = vmatpush3.bf16.msra.mxu1 %v17526_v17  ;;  %p15304_p5 = scmp.ne.s32.totalorder %s21332_s29, 1 }
 0x28e   : > { %17110 = vmatprep.subr.bf16.mxu0 %v1413_v24  ;;  %17187 = vmatprep.subr.bf16.mxu1 %v1413_v24  ;;  %vm1736_vm7 = vcmask (!%p15304_p5), 1043456   ;;  %vm1924_vm8 = vcmask (!%p15304_p5), 1040384   ;;  %vm1925_vm9 = vcmask (!%p15304_p5), 1041408   ;;  %s21333_s30 = sld [smem:[#allocation59_spill]] (!%p15304_p5)  ;;  %vm1899_vm10 = vcmask (!%p15304_p5), 23552   ;;  %s21334_s1 = sld [smem:[#allocation69_spill]] (!%p15304_p5) }
 0x28f   : > { %vm2091_vm11 = vcmask (!%p15304_p5), 523264   ;;  %s21335_s0 = sld [smem:[#allocation70_spill]] (!%p15304_p5)  ;;  %vm14962_vm13 = vcmask (!%p15304_p5), 17408  }
 0x291   : > { %17111 = vmatpush3.bf16.msra.mxu0 %v1413_v24  ;;  %17189 = vmatpush3.bf16.msra.mxu1 %v1413_v24 }
 0x294   : > { %17113 = vmatmul.mubr.msk.bf16.vlgmr.msra.gmra.mrb[0].mxu0 %vm1359_vm3, %v17530_v25  ;;  %17129 = vmatmul.mubr.msk.bf16.vlgmr.msra.gmra.mrb[0].mxu1 %vm1359_vm3, %v17531_v26 }
 0x295   : > { %17116 = vmatprep.mubr.msk.bf16.mxu0 %vm1359_vm3, %v17532_v27  ;;  %17132 = vmatprep.mubr.msk.bf16.mxu1 %vm1359_vm3, %v17533_v28 }
 0x29c   : > { %17117 = vmatmul.mubr.msk.bf16.gmra.mrb[4].mxu0 %vm1359_vm3, %v17534_v29  ;;  %17133 = vmatmul.mubr.msk.bf16.gmra.mrb[4].mxu1 %vm1359_vm3, %v17535_v30 }
 0x29d   : > { %17120 = vmatprep.mubr.msk.bf16.mxu0 %vm1359_vm3, %v17536_v31  ;;  %17136 = vmatprep.mubr.msk.bf16.mxu1 %vm1359_vm3, %v17537_v32 }
 0x2a4   : > { %17121 = vmatmul.mubr.msk.bf16.gmra.mrb[8].mxu0 %vm1359_vm3, %v17538_v33  ;;  %17137 = vmatmul.mubr.msk.bf16.gmra.mrb[8].mxu1 %vm1359_vm3, %v17539_v34 }
 0x2a5   : > { %17124 = vmatprep.mubr.msk.bf16.mxu0 %vm1359_vm3, %v17540_v35  ;;  %17140 = vmatprep.mubr.msk.bf16.mxu1 %vm1359_vm3, %v17541_v36 }
 0x2ac   : > { %17125 = vmatmul.mubr.msk.bf16.gmra.mrb[12].mxu0 %vm1359_vm3, %v17542_v37  ;;  %17141 = vmatmul.mubr.msk.bf16.gmra.mrb[12].mxu1 %vm1359_vm3, %v17543_v38 }
 0x367   : > { %v17114_v40 = vpop.f32.mrb[0].mxu0  ;;  %v17130_v41 = vpop.f32.mrb[0].mxu1 }
 0x368   : > { %v1449_v42 = vpop.f32.mrb[1].mxu0  ;;  %v1513_v43 = vpop.f32.mrb[1].mxu1  ;;  %v1458_v44 = vadd.f32 %v17114_v40, %v19488_v39  ;;  %v1522_v45 = vadd.f32 %v17130_v41, %v19488_v39 }
 0x369   : > { %v1450_v46 = vadd.f32 %v19488_v39, %v1449_v42  ;;  %v1514_v47 = vadd.f32 %v19488_v39, %v1513_v43  ;;  %v17115_v48 = vpop.f32.mrb[2].mxu0  ;;  %v17131_v49 = vpop.f32.mrb[2].mxu1 }
 0x36a   : > { %v1461_v50 = vadd.f32 %v17115_v48, %v19488_v39  ;;  %v1525_v51 = vadd.f32 %v17131_v49, %v19488_v39  ;;  %v1452_v52 = vpop.f32.mrb[3].mxu0  ;;  %v1516_v53 = vpop.f32.mrb[3].mxu1  ;;  %v1578_v58 = vmax.f32 %v1458_v44, 0.0  ;;  %v1594_v59 = vmax.f32 %v1522_v45, 0.0 }
 0x36b   : > { %v1576_v54 = vmax.f32 %v1450_v46, 0.0  ;;  %v1592_v55 = vmax.f32 %v1514_v47, 0.0  ;;  %v1453_v56 = vadd.f32 %v19488_v39, %v1452_v52  ;;  %v1517_v57 = vadd.f32 %v19488_v39, %v1516_v53 }
 0x36c   : > { %v1579_v62 = vmax.f32 %v1461_v50, 0.0  ;;  %v1595_v63 = vmax.f32 %v1525_v51, 0.0  ;;  %v1613_v10 = vsel %vm1609_vm4, %v1578_v58, 0.0  ;;  %v1650_v11 = vsel %vm1609_vm4, %v1594_v59, 0.0 }
 0x36d   : > { %v1577_v60 = vmax.f32 %v1453_v56, 0.0  ;;  %v1593_v61 = vmax.f32 %v1517_v57, 0.0  ;;  %v1610_v0 = vsel %vm1609_vm4, %v1576_v54, 0.0  ;;  %v1647_v1 = vsel %vm1609_vm4, %v1592_v55, 0.0 }
 0x36e   : > { %v1615_v16 = vsel %vm1609_vm4, %v1579_v62, 0.0  ;;  %v1652_v17 = vsel %vm1609_vm4, %v1595_v63, 0.0 }
 0x36f   : > { %v1611_v2 = vsel %vm1609_vm4, %v1577_v60, 0.0  ;;  %v1648_v3 = vsel %vm1609_vm4, %v1593_v61, 0.0  ;;  %v17118_v4 = vpop.f32.mrb[4].mxu0  ;;  %v17134_v5 = vpop.f32.mrb[4].mxu1 }
 0x370   : > { %v1612_v6 = vadd.f32 %v1611_v2, %v1610_v0  ;;  %v1649_v7 = vadd.f32 %v1648_v3, %v1647_v1  ;;  %v1465_v8 = vpop.f32.mrb[5].mxu0  ;;  %v1529_v9 = vpop.f32.mrb[5].mxu1  ;;  %v1474_v22 = vadd.f32 %v17118_v4, %v19488_v39  ;;  %v1538_v23 = vadd.f32 %v17134_v5, %v19488_v39 }
 0x371   : > { %v1466_v12 = vadd.f32 %v19488_v39, %v1465_v8  ;;  %v1530_v13 = vadd.f32 %v19488_v39, %v1529_v9  ;;  %v17119_v14 = vpop.f32.mrb[6].mxu0  ;;  %v17135_v15 = vpop.f32.mrb[6].mxu1 }
 0x372   : > { %v1614_v18 = vadd.f32 %v1613_v10, %v1612_v6  ;;  %v1651_v19 = vadd.f32 %v1650_v11, %v1649_v7  ;;  %v1468_v20 = vpop.f32.mrb[7].mxu0  ;;  %v1532_v21 = vpop.f32.mrb[7].mxu1  ;;  %v1477_v28 = vadd.f32 %v17119_v14, %v19488_v39  ;;  %v1541_v29 = vadd.f32 %v17135_v15, %v19488_v39 }
 0x373   : > { %v1580_v24 = vmax.f32 %v1466_v12, 0.0  ;;  %v1596_v25 = vmax.f32 %v1530_v13, 0.0  ;;  %v1469_v34 = vadd.f32 %v19488_v39, %v1468_v20  ;;  %v1533_v35 = vadd.f32 %v19488_v39, %v1532_v21 }
 0x374   : > { %v1616_v26 = vadd.f32 %v1615_v16, %v1614_v18  ;;  %v1653_v27 = vadd.f32 %v1652_v17, %v1651_v19  ;;  %v1582_v36 = vmax.f32 %v1474_v22, 0.0  ;;  %v1598_v37 = vmax.f32 %v1538_v23, 0.0 }
 0x375   : > { %v1617_v30 = vsel %vm1609_vm4, %v1580_v24, 0.0  ;;  %v1654_v31 = vsel %vm1609_vm4, %v1596_v25, 0.0  ;;  %v1583_v41 = vmax.f32 %v1477_v28, 0.0  ;;  %v1599_v42 = vmax.f32 %v1541_v29, 0.0 }
 0x376   : > { %v1618_v32 = vadd.f32 %v1617_v30, %v1616_v26  ;;  %v1655_v33 = vadd.f32 %v1654_v31, %v1653_v27  ;;  %v1581_v43 = vmax.f32 %v1469_v34, 0.0  ;;  %v1597_v44 = vmax.f32 %v1533_v35, 0.0 }
 0x377   : > { %v17122_v38 = vpop.f32.mrb[8].mxu0  ;;  %v17138_v40 = vpop.f32.mrb[8].mxu1  ;;  %v1621_v61 = vsel %vm1609_vm4, %v1582_v36, 0.0  ;;  %v1658_v62 = vsel %vm1609_vm4, %v1598_v37, 0.0  ;;  %v1623_v63 = vsel %vm1609_vm4, %v1583_v41, 0.0  ;;  %v1660_v0 = vsel %vm1609_vm4, %v1599_v42, 0.0 }
 0x378   : > { %v1481_v45 = vpop.f32.mrb[9].mxu0  ;;  %v1545_v46 = vpop.f32.mrb[9].mxu1  ;;  %v1619_v51 = vsel %vm1609_vm4, %v1581_v43, 0.0  ;;  %v1656_v52 = vsel %vm1609_vm4, %v1597_v44, 0.0  ;;  %v1490_v53 = vadd.f32 %v17122_v38, %v19488_v39  ;;  %v1554_v54 = vadd.f32 %v17138_v40, %v19488_v39 }
 0x379   : > { %v1482_v47 = vadd.f32 %v19488_v39, %v1481_v45  ;;  %v1546_v48 = vadd.f32 %v19488_v39, %v1545_v46  ;;  %v17123_v49 = vpop.f32.mrb[10].mxu0  ;;  %v17139_v50 = vpop.f32.mrb[10].mxu1  ;;  %v1620_v57 = vadd.f32 %v1619_v51, %v1618_v32  ;;  %v1657_v58 = vadd.f32 %v1656_v52, %v1655_v33 }
 0x37a   : > { %v1484_v55 = vpop.f32.mrb[11].mxu0  ;;  %v1548_v56 = vpop.f32.mrb[11].mxu1  ;;  %v1493_v3 = vadd.f32 %v17123_v49, %v19488_v39  ;;  %v1557_v4 = vadd.f32 %v17139_v50, %v19488_v39  ;;  %v1586_v9 = vmax.f32 %v1490_v53, 0.0  ;;  %v1602_v10 = vmax.f32 %v1554_v54, 0.0 }
 0x37b   : > { %v1584_v59 = vmax.f32 %v1482_v47, 0.0  ;;  %v1600_v60 = vmax.f32 %v1546_v48, 0.0  ;;  %v1622_v1 = vadd.f32 %v1621_v61, %v1620_v57  ;;  %v1659_v2 = vadd.f32 %v1658_v62, %v1657_v58 }
 0x37c   : > { %v1485_v7 = vadd.f32 %v19488_v39, %v1484_v55  ;;  %v1549_v8 = vadd.f32 %v19488_v39, %v1548_v56  ;;  %v1587_v21 = vmax.f32 %v1493_v3, 0.0  ;;  %v1603_v22 = vmax.f32 %v1557_v4, 0.0 }
 0x37d   : > { %v1625_v5 = vsel %vm1609_vm4, %v1584_v59, 0.0  ;;  %v1662_v6 = vsel %vm1609_vm4, %v1600_v60, 0.0  ;;  %v1624_v11 = vadd.f32 %v1623_v63, %v1622_v1  ;;  %v1661_v12 = vadd.f32 %v1660_v0, %v1659_v2 }
 0x37e   : > { %v1585_v15 = vmax.f32 %v1485_v7, 0.0  ;;  %v1601_v16 = vmax.f32 %v1549_v8, 0.0  ;;  %v1629_v31 = vsel %vm1609_vm4, %v1586_v9, 0.0  ;;  %v1666_v32 = vsel %vm1609_vm4, %v1602_v10, 0.0 }
 0x37f   : > { %v17126_v13 = vpop.f32.mrb[12].mxu0  ;;  %v17142_v14 = vpop.f32.mrb[12].mxu1  ;;  %v1626_v19 = vadd.f32 %v1625_v5, %v1624_v11  ;;  %v1663_v20 = vadd.f32 %v1662_v6, %v1661_v12  ;;  %v1631_v40 = vsel %vm1609_vm4, %v1587_v21, 0.0  ;;  %v1668_v41 = vsel %vm1609_vm4, %v1603_v22, 0.0  ;;  %v1699_v22 = vld [vmem:[#allocation7] sm:$0xff] (!%p15304_p5) }
 0x380   : > { %v1497_v17 = vpop.f32.mrb[13].mxu0  ;;  %v1561_v18 = vpop.f32.mrb[13].mxu1  ;;  %v1627_v25 = vsel %vm1609_vm4, %v1585_v15, 0.0  ;;  %v1664_v26 = vsel %vm1609_vm4, %v1601_v16, 0.0  ;;  %v1506_v35 = vadd.f32 %v17126_v13, %v19488_v39  ;;  %v1570_v36 = vadd.f32 %v17142_v14, %v19488_v39 }
 0x381   : > { %v17127_v23 = vpop.f32.mrb[14].mxu0  ;;  %v17143_v24 = vpop.f32.mrb[14].mxu1  ;;  %v1498_v27 = vadd.f32 %v19488_v39, %v1497_v17  ;;  %v1562_v28 = vadd.f32 %v19488_v39, %v1561_v18  ;;  %v1628_v33 = vadd.f32 %v1627_v25, %v1626_v19  ;;  %v1665_v34 = vadd.f32 %v1664_v26, %v1663_v20  ;;  %v1608_v18 = vld [vmem:[#allocation2] sm:$0x3] }
 0x382   : > { %v1500_v29 = vpop.f32.mrb[15].mxu0  ;;  %v1564_v30 = vpop.f32.mrb[15].mxu1  ;;  %v1509_v46 = vadd.f32 %v17127_v23, %v19488_v39  ;;  %v1573_v47 = vadd.f32 %v17143_v24, %v19488_v39  ;;  %v1590_v52 = vmax.f32 %v1506_v35, 0.0  ;;  %v1606_v53 = vmax.f32 %v1570_v36, 0.0  ;;  %v17547_v36 = vld [vmem:[%s21333_s30 + $0x8] sm:$0xff] (!%p15304_p5)  }
 0x383   : > { %v1588_v37 = vmax.f32 %v1498_v27, 0.0  ;;  %v1604_v38 = vmax.f32 %v1562_v28, 0.0  ;;  %v1630_v42 = vadd.f32 %v1629_v31, %v1628_v33  ;;  %v1667_v43 = vadd.f32 %v1666_v32, %v1665_v34  ;;  %v1851_v28 = vld [vmem:[#allocation10] sm:$0x3] (!%p15304_p5)  ;;  %v17546_v34 = vld [vmem:[%s21333_s30] sm:$0xff] (!%p15304_p5)  }
 0x384   : > { %v1501_v50 = vadd.f32 %v19488_v39, %v1500_v29  ;;  %v1565_v51 = vadd.f32 %v19488_v39, %v1564_v30  ;;  %v1591_v58 = vmax.f32 %v1509_v46, 0.0  ;;  %v1607_v59 = vmax.f32 %v1573_v47, 0.0  ;;  %v17552_v46 = vld [vmem:[%s21333_s30 + $0x30] sm:$0xff] (!%p15304_p5)   ;;  %v17553_v47 = vld [vmem:[%s21333_s30 + $0x38] sm:$0xff] (!%p15304_p5)  }
 0x385   : > { %v1633_v44 = vsel %vm1609_vm4, %v1588_v37, 0.0  ;;  %v1670_v45 = vsel %vm1609_vm4, %v1604_v38, 0.0  ;;  %v1632_v48 = vadd.f32 %v1631_v40, %v1630_v42  ;;  %v1669_v49 = vadd.f32 %v1668_v41, %v1667_v43  ;;  %v17548_v37 = vld [vmem:[%s21333_s30 + $0x10] sm:$0xff] (!%p15304_p5)   ;;  %v17549_v43 = vld [vmem:[%s21333_s30 + $0x18] sm:$0xff] (!%p15304_p5)  }
 0x386   : > { %v1589_v56 = vmax.f32 %v1501_v50, 0.0  ;;  %v1605_v57 = vmax.f32 %v1565_v51, 0.0  ;;  %v1637_v0 = vsel %vm1609_vm4, %v1590_v52, 0.0  ;;  %v1674_v1 = vsel %vm1609_vm4, %v1606_v53, 0.0  ;;  %v1700_v38 = vld [vmem:[#allocation7 + $0x8] sm:$0xff] (!%p15304_p5)  ;;  %v17559_v51 = vld [vmem:[#allocation13 + $0x18] sm:$0xff] (!%p15304_p5)  }
 0x387   : > { %v1634_v54 = vadd.f32 %v1633_v44, %v1632_v48  ;;  %v1671_v55 = vadd.f32 %v1670_v45, %v1669_v49  ;;  %v1639_v3 = vsel %vm1609_vm4, %v1591_v58, 0.0  ;;  %v1676_v4 = vsel %vm1609_vm4, %v1607_v59, 0.0  ;;  %v17550_v44 = vld [vmem:[%s21333_s30 + $0x20] sm:$0xff] (!%p15304_p5)   ;;  %v17551_v45 = vld [vmem:[%s21333_s30 + $0x28] sm:$0xff] (!%p15304_p5)  }
 0x388   : > { %v1635_v60 = vsel %vm1609_vm4, %v1589_v56, 0.0  ;;  %v1672_v61 = vsel %vm1609_vm4, %v1605_v57, 0.0  ;;  %v15306_v24 = vcombine.high (!%p15304_p5), %v1699_v22, %v1699_v22  ;;  %v15305_v25 = vcombine.low (!%p15304_p5), %v1699_v22, %v1699_v22  ;;  %v17556_v48 = vld [vmem:[#allocation13] sm:$0xff] (!%p15304_p5)   ;;  %v17557_v49 = vld [vmem:[#allocation13 + $0x8] sm:$0xff] (!%p15304_p5)   ;;  %v17558_v50 = vld [vmem:[#allocation13 + $0x10] sm:$0xff] (!%p15304_p5)  }
 0x389   : > { %v1636_v62 = vadd.f32 %v1635_v60, %v1634_v54  ;;  %v1673_v63 = vadd.f32 %v1672_v61, %v1671_v55  ;;  %v18778_v26 = vmov (!%p15304_p5), 0   ;;  %v18779_v31 = vmov (!%p15304_p5), 65535   ;;  %v15313_v56 = vld [vmem:[#allocation12] ss:$0 sm:$0xff] (!%p15304_p5) }
 0x38a   : > { %1781 = vmatprep.mubr.bf16.mxu0 (!%p15304_p5), %v18778_v26  ;;  %1822 = vmatprep.mubr.bf16.mxu1 (!%p15304_p5), %v18778_v26  ;;  %v1738_v29 = vsel (!%p15304_p5), %vm1736_vm7, %v15305_v25, 0  ;;  %v1926_v32 = vsel (!%p15304_p5), %vm1924_vm8, 4294967295, %v18779_v31  ;;  %v15308_v40 = vcombine.high (!%p15304_p5), %v1700_v38, %v1700_v38  ;;  %v15307_v41 = vcombine.low (!%p15304_p5), %v1700_v38, %v1700_v38 }
 0x38b   : > { %v1638_v2 = vadd.f32 %v1637_v0, %v1636_v62  ;;  %v1675_v39 = vadd.f32 %v1674_v1, %v1673_v63  ;;  %15309 = vmatprep.subr.msk.bf16.mxu0 (!%p15304_p5), %vm1736_vm7, %v15306_v24  ;;  %v1927_v33 = vsel (!%p15304_p5), %vm1925_vm9, %v1926_v32, 0 }
 0x38c   : > { %1750 = vmatpush1.bf16.msra.mxu0 (!%p15304_p5), %v1738_v29  ;;  %v1929_v35 = vand.u32 (!%p15304_p5), %v1927_v33, %v1851_v28  ;;  %15311 = vmatprep.subr.msk.bf16.mxu1 (!%p15304_p5), %vm1736_vm7, %v15308_v40  ;;  %v1744_v42 = vsel (!%p15304_p5), %vm1736_vm7, %v15307_v41, 0 }
 0x38d   : > { %v1640_v5 = vadd.f32 %v1639_v3, %v1638_v2  ;;  %v1677_v6 = vadd.f32 %v1676_v4, %v1675_v39  ;;  %1791 = vmatpush1.bf16.msra.mxu1 (!%p15304_p5), %v1744_v42 }
 0x38e   : > { %17144 = vmatprep.subr.bf16.mxu0 (!%p15304_p5), %v1929_v35  ;;  %17162 = vmatprep.subr.bf16.mxu1 (!%p15304_p5), %v17556_v48 }
 0x38f   : > { %v1641_v7 = vrot.slane %v1640_v5, 4  ;;  %v1678_v8 = vrot.slane %v1677_v6, 4 }
 0x391   : > { %v1642_v9 = vadd.f32 %v1641_v7, %v1640_v5  ;;  %v1679_v10 = vadd.f32 %v1678_v8, %v1677_v6 }
 0x393   : > { %v1643_v11 = vrot.slane %v1642_v9, 2  ;;  %v1680_v12 = vrot.slane %v1679_v10, 2 }
 0x395   : > { %v1644_v13 = vadd.f32 %v1643_v11, %v1642_v9  ;;  %v1681_v14 = vadd.f32 %v1680_v12, %v1679_v10 }
 0x397   : > { %v1645_v15 = vrot.slane %v1644_v13, 1  ;;  %v1682_v16 = vrot.slane %v1681_v14, 1 }
 0x398   : > { %1695 = sbr.rel (%p15304_p5) target bundleno = 4550 (0x11c6), region = 257 }
 0x399   : > { %v1646_v17 = vadd.f32 %v1645_v15, %v1644_v13  ;;  %v1683_v19 = vadd.f32 %v1682_v16, %v1681_v14 }
 0x39b   : > { %v1687_v20 = vsel %vm1686_vm5, %v1683_v19, %v1646_v17 }
 0x39c   : > { %v1689_v21 = vadd.f32 %v1687_v20, %v1608_v18 }
 0x39e   : > { %1691 = vst.msk [vmem:[#allocation2] sm:$0x3] %vm1690_vm6, %v1689_v21 }
 0x3a5   : > { %v1696_v23 = vld [vmem:[#allocation2] sm:$0x3] }
 0x3a6   : > { %v1697_v27 = vmul.f32 0.00390625, %v1696_v23 }
 0x3a8   : > { %v1698_v30 = vpack.c.bf16 %v1697_v27, %v1697_v27 }
 0x3aa   : > { %15310 = vmatmul.mubr.msk.bf16.vlgmr.msra.gmra.mrb[0].mxu0 %vm1609_vm4, %v1698_v30  ;;  %15312 = vmatmul.mubr.msk.bf16.vlgmr.msra.gmra.mrb[0].mxu1 %vm1609_vm4, %v1698_v30 }
 0x3ab   : > { %17145 = vmatpush3.bf16.msra.mxu0 %v1929_v35  ;;  %17146 = vmatprep.mubr.msk.bf16.mxu0 %vm1899_vm10, %v17546_v34 }
 0x3ac   : > { %17163 = vmatpush3.bf16.msra.mxu1 %v17556_v48 }
 0x3ad   : > { %17164 = vmatprep.subr.bf16.mxu1 %v17557_v49 }
 0x3b0   : > { %17165 = vmatpush3.bf16.msra.mxu1 %v17557_v49 }
 0x3b1   : > { %17166 = vmatprep.subr.bf16.mxu1 %v17558_v50 }
 0x3b2   : > { %17147 = vmatmul.mubr.msk.bf16.vlgmr.msra.gmra.mrb[4].mxu0 %vm1899_vm10, %v17547_v36 }
 0x3b3   : > { %17150 = vmatprep.mubr.msk.bf16.mxu0 %vm1899_vm10, %v17548_v37 }
 0x3b4   : > { %17167 = vmatpush3.bf16.msra.mxu1 %v17558_v50 }
 0x3b5   : > { %17168 = vmatprep.subr.bf16.mxu1 %v17559_v51 }
 0x3b8   : > { %17169 = vmatpush3.bf16.msra.mxu1 %v17559_v51 }
 0x3ba   : > { %17151 = vmatmul.mubr.msk.bf16.gmra.mrb[8].mxu0 %vm1899_vm10, %v17549_v43 }
 0x3bb   : > { %17154 = vmatprep.mubr.msk.bf16.mxu0 %vm1899_vm10, %v17550_v44 }
 0x3c2   : > { %17155 = vmatmul.mubr.msk.bf16.gmra.mrb[12].mxu0 %vm1899_vm10, %v17551_v45 }
 0x3c3   : > { %17158 = vmatprep.mubr.msk.bf16.mxu0 %vm1899_vm10, %v17552_v46 }
 0x3ca   : > { %17159 = vmatmul.mubr.msk.bf16.gmra.mrb[16].mxu0 %vm1899_vm10, %v17553_v47 }
 0x3cb   : > { %2510 = vmatprep.mubr.bf16.mxu0 %v18778_v26 }
 0x47d   : > { %v19598_v52 = vpop.f32.mrb[0].mxu0  ;;  %v19602_v62 = vpop.f32.mrb[0].mxu1 }
 0x47e   : > { %v19600_v53 = vpop.f32.mrb[1].mxu0  ;;  %v19604_v1 = vpop.f32.mrb[1].mxu1 }
 0x47f   : > { %v1787_v54 = vpop.f32.mrb[2].mxu0  ;;  %v1828_v39 = vpop.f32.mrb[2].mxu1 }
 0x480   : > { %v1788_v55 = vpop.f32.mrb[3].mxu0  ;;  %v1829_v5 = vpop.f32.mrb[3].mxu1  ;;  %v17577_v39 = vld [vmem:[#allocation16 + $0x4c] ss:$16 sps:$4 sm:$0xff]  }
 0x481   : > { %v17583_v5 = vld [vmem:[#allocation16 + $0x6c] ss:$16 sps:$4 sm:$0xff]  }
 0x485   : > { %v17148_v57 = vpop.f32.mrb[4].mxu0 }
 0x486   : > { %v1974_v58 = vadd.f32 %v17148_v57, %v15313_v56  ;;  %v1965_v59 = vpop.f32.mrb[5].mxu0  ;;  %v17562_v57 = vld [vmem:[#allocation16 + $0x4] ss:$16 sps:$4 sm:$0xff]  }
 0x487   : > { %v1966_v60 = vadd.f32 %v15313_v56, %v1965_v59  ;;  %v17149_v61 = vpop.f32.mrb[6].mxu0  ;;  %v17560_v59 = vld [vmem:[#allocation16] ss:$16 sps:$4 sm:$0xff]   ;;  %2478 = vmatprep.subr.bf16.mxu0 %v17562_v57 }
 0x488   : > { %v1977_v63 = vadd.f32 %v17149_v61, %v15313_v56  ;;  %v1968_v0 = vpop.f32.mrb[7].mxu0  ;;  %v2030_v3 = vmax.f32 %v1974_v58, 0.0  ;;  %v17565_v58 = vld [vmem:[#allocation16 + $0xc] ss:$16 sps:$4 sm:$0xff]   ;;  %2479 = vmatpush1.bf16.msra.mxu0 %v17560_v59 }
 0x489   : > { %v1969_v2 = vadd.f32 %v15313_v56, %v1968_v0  ;;  %v2028_v6 = vmax.f32 %v1966_v60, 0.0  ;;  %v17563_v60 = vld [vmem:[#allocation16 + $0x8] ss:$16 sps:$4 sm:$0xff]   ;;  %2519 = vmatprep.subr.bf16.mxu1 %v17565_v58  ;;  %v17571_v61 = vld [vmem:[#allocation16 + $0x2c] ss:$16 sps:$4 sm:$0xff]  }
 0x48a   : > { %v2031_v4 = vmax.f32 %v1977_v63, 0.0  ;;  %v17566_v63 = vld [vmem:[#allocation16 + $0x20] ss:$16 sps:$4 sm:$0xff]   ;;  %v17569_v0 = vld [vmem:[#allocation16 + $0x28] ss:$16 sps:$4 sm:$0xff]  }
 0x48b   : > { %v2029_v7 = vmax.f32 %v1969_v2, 0.0  ;;  %v17574_v2 = vld [vmem:[#allocation16 + $0x44] ss:$16 sps:$4 sm:$0xff]  }
 0x48c   : > { %v2045_v8 = vpack.c.bf16 %v2031_v4, %v2030_v3  ;;  %v17572_v3 = vld [vmem:[#allocation16 + $0x40] ss:$16 sps:$4 sm:$0xff]   ;;  %v17580_v4 = vld [vmem:[#allocation16 + $0x64] ss:$16 sps:$4 sm:$0xff]  }
 0x48d   : > { %v2044_v9 = vpack.c.bf16 %v2029_v7, %v2028_v6  ;;  %v17152_v10 = vpop.f32.mrb[8].mxu0  ;;  %v17578_v6 = vld [vmem:[#allocation16 + $0x60] ss:$16 sps:$4 sm:$0xff]   ;;  %v17581_v7 = vld [vmem:[#allocation16 + $0x68] ss:$16 sps:$4 sm:$0xff]  }
 0x48e   : > { %v1990_v11 = vadd.f32 %v17152_v10, %v15313_v56  ;;  %v1981_v12 = vpop.f32.mrb[9].mxu0  ;;  %v17584_v10 = vld [vmem:[#allocation16 + $0x80] ss:$16 sps:$4 sm:$0xff]  }
 0x48f   : > { %v1982_v13 = vadd.f32 %v15313_v56, %v1981_v12  ;;  %v17153_v14 = vpop.f32.mrb[10].mxu0  ;;  %17170 = vmatprep.mubr.msk.bf16.mxu1 %vm2091_vm11, %v2044_v9  ;;  %v17589_v9 = vld [vmem:[#allocation16 + $0x8c] ss:$16 sps:$4 sm:$0xff]   ;;  %v17592_v12 = vld [vmem:[#allocation16 + $0xa4] ss:$16 sps:$4 sm:$0xff]  }
 0x490   : > { %v1993_v15 = vadd.f32 %v17153_v14, %v15313_v56  ;;  %v1984_v16 = vpop.f32.mrb[11].mxu0  ;;  %17171 = vmatmul.mubr.msk.bf16.vlgmr.msra.gmra.mrb[4].mxu1 %vm2091_vm11, %v2045_v8  ;;  %v2034_v18 = vmax.f32 %v1990_v11, 0.0  ;;  %v17586_v8 = vld [vmem:[#allocation16 + $0x84] ss:$16 sps:$4 sm:$0xff]   ;;  %v17587_v11 = vld [vmem:[#allocation16 + $0x88] ss:$16 sps:$4 sm:$0xff]  }
 0x491   : > { %v1985_v17 = vadd.f32 %v15313_v56, %v1984_v16  ;;  %v2032_v20 = vmax.f32 %v1982_v13, 0.0  ;;  %2520 = vmatpush1.bf16.msra.mxu1 %v17563_v60  ;;  %v17595_v13 = vld [vmem:[#allocation16 + $0xac] ss:$16 sps:$4 sm:$0xff]   ;;  %v17590_v14 = vld [vmem:[#allocation16 + $0xa0] ss:$16 sps:$4 sm:$0xff]  }
 0x492   : > { %v2035_v19 = vmax.f32 %v1993_v15, 0.0  ;;  %2521 = vmatprep.subr.bf16.mxu1 %v17571_v61  ;;  %v17593_v15 = vld [vmem:[#allocation16 + $0xa8] ss:$16 sps:$4 sm:$0xff]   ;;  %v17598_v16 = vld [vmem:[#allocation16 + $0xc4] ss:$16 sps:$4 sm:$0xff]  }
 0x493   : > { %v2033_v21 = vmax.f32 %v1985_v17, 0.0  ;;  %v17601_v17 = vld [vmem:[#allocation16 + $0xcc] ss:$16 sps:$4 sm:$0xff]  }
 0x494   : > { %v2047_v22 = vpack.c.bf16 %v2035_v19, %v2034_v18  ;;  %v17596_v18 = vld [vmem:[#allocation16 + $0xc0] ss:$16 sps:$4 sm:$0xff]   ;;  %v17599_v19 = vld [vmem:[#allocation16 + $0xc8] ss:$16 sps:$4 sm:$0xff]  }
 0x495   : > { %v2046_v23 = vpack.c.bf16 %v2033_v21, %v2032_v20  ;;  %v17156_v24 = vpop.f32.mrb[12].mxu0  ;;  %2522 = vmatpush1.bf16.msra.mxu1 %v17569_v0  ;;  %v17604_v20 = vld [vmem:[#allocation16 + $0xe4] ss:$16 sps:$4 sm:$0xff]   ;;  %v17607_v21 = vld [vmem:[#allocation16 + $0xec] ss:$16 sps:$4 sm:$0xff]  }
 0x496   : > { %v2006_v25 = vadd.f32 %v17156_v24, %v15313_v56  ;;  %v1997_v27 = vpop.f32.mrb[13].mxu0  ;;  %2523 = vmatprep.subr.bf16.mxu1 %v17577_v39  ;;  %v19615_v24 = vld [vmem:[#allocation19] sm:$0xff] }
 0x497   : > { %v1998_v28 = vadd.f32 %v15313_v56, %v1997_v27  ;;  %v17157_v29 = vpop.f32.mrb[14].mxu0  ;;  %17174 = vmatprep.mubr.msk.bf16.mxu1 %vm2091_vm11, %v2046_v23  ;;  %v17605_v23 = vld [vmem:[#allocation16 + $0xe8] ss:$16 sps:$4 sm:$0xff]   ;;  %v19619_v27 = vld [vmem:[#allocation19 + $0x8] sm:$0xff] }
 0x498   : > { %v2009_v30 = vadd.f32 %v17157_v29, %v15313_v56  ;;  %v2000_v31 = vpop.f32.mrb[15].mxu0  ;;  %17175 = vmatmul.mubr.msk.bf16.gmra.mrb[8].mxu1 %vm2091_vm11, %v2047_v22  ;;  %v2038_v33 = vmax.f32 %v2006_v25, 0.0  ;;  %v17602_v22 = vld [vmem:[#allocation16 + $0xe0] ss:$16 sps:$4 sm:$0xff]   ;;  %v19617_v25 = vld [vmem:[#allocation19 + $0x20] sm:$0xff] }
 0x499   : > { %v2001_v32 = vadd.f32 %v15313_v56, %v2000_v31  ;;  %v2036_v35 = vmax.f32 %v1998_v28, 0.0  ;;  %v15375_v28 = vcombine.low %v19615_v24, %v19617_v25  ;;  %v15376_v29 = vcombine.high %v19615_v24, %v19617_v25 }
 0x49a   : > { %v2039_v34 = vmax.f32 %v2009_v30, 0.0  ;;  %v19625_v30 = vld [vmem:[#allocation19 + $0x28] sm:$0xff] }
 0x49b   : > { %v2037_v36 = vmax.f32 %v2001_v32, 0.0  ;;  %v15377_v31 = vcombine.low %v19619_v27, %v19625_v30  ;;  %v15378_v32 = vcombine.high %v19619_v27, %v19625_v30  ;;  %v2604_v30 = vld [vmem:[#allocation19 + $0x100] sm:$0xff] }
 0x49c   : > { %v2049_v37 = vpack.c.bf16 %v2039_v34, %v2038_v33  ;;  %v15330_v33 = vld [vmem:[#allocation15] ss:$0 sm:$0xff] }
 0x49d   : > { %v2048_v38 = vpack.c.bf16 %v2037_v36, %v2036_v35  ;;  %v17160_v40 = vpop.f32.mrb[16].mxu0 }
 0x49e   : > { %v2022_v41 = vadd.f32 %v17160_v40, %v15313_v56  ;;  %v2013_v42 = vpop.f32.mrb[17].mxu0 }
 0x49f   : > { %v2014_v43 = vadd.f32 %v15313_v56, %v2013_v42  ;;  %v17161_v44 = vpop.f32.mrb[18].mxu0  ;;  %17178 = vmatprep.mubr.msk.bf16.mxu1 %vm2091_vm11, %v2048_v38 }
 0x4a0   : > { %v2025_v45 = vadd.f32 %v17161_v44, %v15313_v56  ;;  %v2016_v46 = vpop.f32.mrb[19].mxu0  ;;  %17179 = vmatmul.mubr.msk.bf16.gmra.mrb[12].mxu1 %vm2091_vm11, %v2049_v37  ;;  %v2042_v48 = vmax.f32 %v2022_v41, 0.0 }
 0x4a1   : > { %v2017_v47 = vadd.f32 %v15313_v56, %v2016_v46  ;;  %v2040_v50 = vmax.f32 %v2014_v43, 0.0  ;;  %v17568_v56 = vld [vmem:[#allocation16 + $0x24] ss:$16 sps:$4 sm:$0xff]  }
 0x4a2   : > { %v2043_v49 = vmax.f32 %v2025_v45, 0.0  ;;  %2480 = vmatprep.subr.bf16.mxu0 %v17568_v56 }
 0x4a3   : > { %v2041_v51 = vmax.f32 %v2017_v47, 0.0  ;;  %2481 = vmatpush1.bf16.msra.mxu0 %v17566_v63 }
 0x4a4   : > { %v2051_v54 = vpack.c.bf16 %v2043_v49, %v2042_v48  ;;  %2482 = vmatprep.subr.bf16.mxu0 %v17574_v2 }
 0x4a5   : > { %v2050_v55 = vpack.c.bf16 %v2041_v51, %v2040_v50 }
 0x4a7   : > { %17182 = vmatprep.mubr.msk.bf16.mxu1 %vm2091_vm11, %v2050_v55  ;;  %2483 = vmatpush1.bf16.msra.mxu0 %v17572_v3 }
 0x4a8   : > { %17183 = vmatmul.mubr.msk.bf16.gmra.mrb[16].mxu1 %vm2091_vm11, %v2051_v54  ;;  %2484 = vmatprep.subr.bf16.mxu0 %v17580_v4 }
 0x4a9   : > { %2551 = vmatprep.mubr.bf16.mxu1 %v18778_v26  ;;  %v17575_v26 = vld [vmem:[#allocation16 + $0x48] ss:$16 sps:$4 sm:$0xff]  }
 0x4aa   : > { %2524 = vmatpush1.bf16.msra.mxu1 %v17575_v26 }
 0x4ab   : > { %2525 = vmatprep.subr.bf16.mxu1 %v17583_v5  ;;  %2485 = vmatpush1.bf16.msra.mxu0 %v17578_v6 }
 0x4ac   : > { %2486 = vmatprep.subr.bf16.mxu0 %v17586_v8 }
 0x4ae   : > { %2526 = vmatpush1.bf16.msra.mxu1 %v17581_v7 }
 0x4af   : > { %2527 = vmatprep.subr.bf16.mxu1 %v17589_v9  ;;  %2487 = vmatpush1.bf16.msra.mxu0 %v17584_v10 }
 0x4b0   : > { %2488 = vmatprep.subr.bf16.mxu0 %v17592_v12 }
 0x4b2   : > { %2528 = vmatpush1.bf16.msra.mxu1 %v17587_v11 }
 0x4b3   : > { %2529 = vmatprep.subr.bf16.mxu1 %v17595_v13  ;;  %2489 = vmatpush1.bf16.msra.mxu0 %v17590_v14 }
 0x4b4   : > { %2490 = vmatprep.subr.bf16.mxu0 %v17598_v16 }
 0x4b6   : > { %2530 = vmatpush1.bf16.msra.mxu1 %v17593_v15 }
 0x4b7   : > { %2531 = vmatprep.subr.bf16.mxu1 %v17601_v17  ;;  %2491 = vmatpush1.bf16.msra.mxu0 %v17596_v18 }
 0x4b8   : > { %2492 = vmatprep.subr.bf16.mxu0 %v17604_v20 }
 0x4ba   : > { %2532 = vmatpush1.bf16.msra.mxu1 %v17599_v19 }
 0x4bb   : > { %2533 = vmatprep.subr.bf16.mxu1 %v17607_v21  ;;  %2493 = vmatpush1.bf16.msra.mxu0 %v17602_v22 }
 0x4bc   : > { %5686 = vmatprep.subr.bf16.mxu0 %v15376_v29 }
 0x4be   : > { %2534 = vmatpush1.bf16.msra.mxu1 %v17605_v23 }
 0x4bf   : > { %5850 = vmatprep.subr.bf16.mxu1 %v15378_v32 }
 0x563   : > { %v17172_v34 = vpop.f32.mrb[4].mxu1 }
 0x564   : > { %v2159_v35 = vadd.f32 %v17172_v34, %v15330_v33  ;;  %v2150_v36 = vpop.f32.mrb[5].mxu1 }
 0x565   : > { %v2151_v37 = vadd.f32 %v15330_v33, %v2150_v36  ;;  %v17173_v38 = vpop.f32.mrb[6].mxu1 }
 0x566   : > { %v2215_v40 = vmax.f32 %v2159_v35, 0.0  ;;  %v2162_v41 = vadd.f32 %v17173_v38, %v15330_v33  ;;  %v2153_v42 = vpop.f32.mrb[7].mxu1 }
 0x567   : > { %v2213_v43 = vmax.f32 %v2151_v37, 0.0  ;;  %v2154_v44 = vadd.f32 %v15330_v33, %v2153_v42 }
 0x568   : > { %v2216_v45 = vmax.f32 %v2162_v41, 0.0 }
 0x569   : > { %v2229_v46 = vmax.f32 %v2213_v43, %v2215_v40  ;;  %v2214_v47 = vmax.f32 %v2154_v44, 0.0 }
 0x56b   : > { %v2230_v48 = vmax.f32 %v2214_v47, %v2216_v45  ;;  %v17176_v49 = vpop.f32.mrb[8].mxu1  ;;  %v1703_v45 = vlaneseq }
 0x56c   : > { %v2166_v50 = vpop.f32.mrb[9].mxu1  ;;  %v2175_v51 = vadd.f32 %v17176_v49, %v15330_v33 }
 0x56d   : > { %v2167_v54 = vadd.f32 %v15330_v33, %v2166_v50  ;;  %v17177_v55 = vpop.f32.mrb[10].mxu1  ;;  %v19632_v49 = vshrl.u32 %v1703_v45, 7 }
 0x56e   : > { %v2169_v57 = vpop.f32.mrb[11].mxu1  ;;  %v2178_v59 = vadd.f32 %v17177_v55, %v15330_v33  ;;  %v2219_v56 = vmax.f32 %v2175_v51, 0.0 }
 0x56f   : > { %v2217_v58 = vmax.f32 %v2167_v54, 0.0  ;;  %v2170_v60 = vadd.f32 %v15330_v33, %v2169_v57  ;;  %v19635_v55 = vsub.s32 1, %v19632_v49 }
 0x570   : > { %v2220_v2 = vmax.f32 %v2178_v59, 0.0 }
 0x571   : > { %v2231_v61 = vmax.f32 %v2229_v46, %v2217_v58  ;;  %v2218_v63 = vmax.f32 %v2170_v60, 0.0 }
 0x573   : > { %v2233_v0 = vmax.f32 %v2231_v61, %v2219_v56  ;;  %v2232_v39 = vmax.f32 %v2230_v48, %v2218_v63  ;;  %v17180_v3 = vpop.f32.mrb[12].mxu1 }
 0x574   : > { %v2191_v26 = vadd.f32 %v17180_v3, %v15330_v33  ;;  %v2182_v4 = vpop.f32.mrb[13].mxu1 }
 0x575   : > { %v2234_v5 = vmax.f32 %v2232_v39, %v2220_v2  ;;  %v2183_v6 = vadd.f32 %v15330_v33, %v2182_v4  ;;  %v17181_v7 = vpop.f32.mrb[14].mxu1 }
 0x576   : > { %v2223_v8 = vmax.f32 %v2191_v26, 0.0  ;;  %v2194_v9 = vadd.f32 %v17181_v7, %v15330_v33  ;;  %v2185_v10 = vpop.f32.mrb[15].mxu1  ;;  %v2580_v26 = vld [vmem:[#allocation19 + $0x40] sm:$0xff]  ;;  %v2585_v7 = vld [vmem:[#allocation19 + $0x68] sm:$0xff] }
 0x577   : > { %v2235_v11 = vmax.f32 %v2233_v0, %v2234_v5  ;;  %v2221_v12 = vmax.f32 %v2183_v6, 0.0  ;;  %v2186_v13 = vadd.f32 %v15330_v33, %v2185_v10  ;;  %v2584_v5 = vld [vmem:[#allocation19 + $0x60] sm:$0xff]  ;;  %v2581_v6 = vld [vmem:[#allocation19 + $0x48] sm:$0xff] }
 0x578   : > { %v2224_v14 = vmax.f32 %v2194_v9, 0.0  ;;  %v2588_v10 = vld [vmem:[#allocation19 + $0x80] sm:$0xff] }
 0x579   : > { %v2242_v15 = vmax.f32 %v2221_v12, %v2223_v8  ;;  %v2222_v16 = vmax.f32 %v2186_v13, 0.0  ;;  %v2236_v17 = vrot.slane %v2235_v11, 4  ;;  %v15386_v12 = vcombine.high %v2581_v6, %v2585_v7  ;;  %v2592_v13 = vld [vmem:[#allocation19 + $0xa0] sm:$0xff] }
 0x57a   : > { %v15391_v24 = vcombine.low %v2588_v10, %v2592_v13 }
 0x57b   : > { %v2243_v18 = vmax.f32 %v2222_v16, %v2224_v14  ;;  %v17184_v19 = vpop.f32.mrb[16].mxu1  ;;  %v2237_v32 = vmax.f32 %v2235_v11, %v2236_v17  ;;  %v15384_v11 = vcombine.high %v2580_v26, %v2584_v5  ;;  %v2589_v14 = vld [vmem:[#allocation19 + $0x88] sm:$0xff]  ;;  %v15383_v16 = vcombine.low %v2580_v26, %v2584_v5  ;;  %v2636_v5 = vld [vmem:[#allocation19 + $0x200] sm:$0xff] }
 0x57c   : > { %v2198_v20 = vpop.f32.mrb[17].mxu1  ;;  %v2207_v21 = vadd.f32 %v17184_v19, %v15330_v33  ;;  %v15385_v17 = vcombine.low %v2581_v6, %v2585_v7  ;;  %v2640_v6 = vld [vmem:[#allocation19 + $0x220] sm:$0xff]  ;;  %v2637_v7 = vld [vmem:[#allocation19 + $0x208] sm:$0xff] }
 0x57d   : > { %v2199_v22 = vadd.f32 %v15330_v33, %v2198_v20  ;;  %v17185_v23 = vpop.f32.mrb[18].mxu1  ;;  %v2238_v41 = vrot.slane %v2237_v32, 2  ;;  %v2596_v20 = vld [vmem:[#allocation19 + $0xc0] sm:$0xff] }
 0x57e   : > { %v2201_v29 = vpop.f32.mrb[19].mxu1  ;;  %v2210_v35 = vadd.f32 %v17185_v23, %v15330_v33  ;;  %v2227_v37 = vmax.f32 %v2207_v21, 0.0  ;;  %v2600_v21 = vld [vmem:[#allocation19 + $0xe0] sm:$0xff]  ;;  %v2601_v23 = vld [vmem:[#allocation19 + $0xe8] sm:$0xff] }
 0x57f   : > { %v2225_v34 = vmax.f32 %v2199_v22, 0.0  ;;  %v2202_v36 = vadd.f32 %v15330_v33, %v2201_v29  ;;  %v2239_v47 = vmax.f32 %v2237_v32, %v2238_v41  ;;  %v19637_v33 = vld [vmem:[#allocation9] sm:$0xf]  ;;  %v2597_v22 = vld [vmem:[#allocation19 + $0xc8] sm:$0xff]  ;;  %v15400_v27 = vcombine.high %v2596_v20, %v2600_v21 }
 0x580   : > { %v2228_v43 = vmax.f32 %v2210_v35, 0.0  ;;  %v1710_v60 = vrot.slane %v19637_v33, %v19635_v55  ;;  %v2605_v29 = vld [vmem:[#allocation19 + $0x108] sm:$0xff]  ;;  %v15401_v35 = vcombine.low %v2597_v22, %v2601_v23 }
 0x581   : > { %v2244_v38 = vmax.f32 %v2242_v15, %v2225_v34  ;;  %v2226_v40 = vmax.f32 %v2202_v36, 0.0  ;;  %v2240_v51 = vrot.slane %v2239_v47, 1  ;;  %v2593_v15 = vld [vmem:[#allocation19 + $0xa8] sm:$0xff]  ;;  %v15399_v34 = vcombine.low %v2596_v20, %v2600_v21  ;;  %v2652_v21 = vld [vmem:[#allocation19 + $0x280] sm:$0xff] }
 0x582   : > { %v1786_v0 = vadd.f32 %v19600_v53, %v1710_v60  ;;  %v15394_v19 = vcombine.high %v2589_v14, %v2593_v15  ;;  %v15393_v25 = vcombine.low %v2589_v14, %v2593_v15  ;;  %v2609_v32 = vld [vmem:[#allocation19 + $0x128] sm:$0xff]  ;;  %v2648_v14 = vld [vmem:[#allocation19 + $0x260] sm:$0xff] }
 0x583   : > { %v2246_v42 = vmax.f32 %v2244_v38, %v2227_v37  ;;  %v2245_v44 = vmax.f32 %v2243_v18, %v2226_v40  ;;  %v2241_v58 = vmax.f32 %v2239_v47, %v2240_v51  ;;  %v15392_v18 = vcombine.high %v2588_v10, %v2592_v13  ;;  %v2612_v38 = vld [vmem:[#allocation19 + $0x140] sm:$0xff]  ;;  %v2613_v41 = vld [vmem:[#allocation19 + $0x148] sm:$0xff] }
 0x584   : > { %v19642_v4 = vmax.f32 %v1786_v0, 0.0  ;;  %v15410_v37 = vcombine.high %v2605_v29, %v2609_v32  ;;  %v2616_v40 = vld [vmem:[#allocation19 + $0x160] sm:$0xff]  ;;  %v2621_v51 = vld [vmem:[#allocation19 + $0x188] sm:$0xff] }
 0x585   : > { %v2247_v46 = vmax.f32 %v2245_v44, %v2228_v43  ;;  %v2255_v61 = vpack.c.bf16 %v2241_v58, %v2241_v58  ;;  %v15409_v44 = vcombine.low %v2605_v29, %v2609_v32  ;;  %v2633_v0 = vld [vmem:[#allocation19 + $0x1e8] sm:$0xff]  ;;  %v2644_v13 = vld [vmem:[#allocation19 + $0x240] sm:$0xff] }
 0x586   : > { %v19647_v53 = vpack.c.bf16 %v19642_v4, %v19642_v4  ;;  %v2645_v15 = vld [vmem:[#allocation19 + $0x248] sm:$0xff]  ;;  %v2664_v29 = vld [vmem:[#allocation19 + $0x2e0] sm:$0xff] }
 0x587   : > { %v2248_v48 = vmax.f32 %v2246_v42, %v2247_v46  ;;  %v2313_v39 = vunpack.c.l.b16 %v2255_v61  ;;  %v2617_v42 = vld [vmem:[#allocation19 + $0x168] sm:$0xff]  ;;  %v15416_v46 = vcombine.high %v2612_v38, %v2616_v40  ;;  %v2632_v61 = vld [vmem:[#allocation19 + $0x1e0] sm:$0xff] }
 0x588   : > { %v15418_v47 = vcombine.high %v2613_v41, %v2617_v42  ;;  %v15417_v58 = vcombine.low %v2613_v41, %v2617_v42  ;;  %v2661_v32 = vld [vmem:[#allocation19 + $0x2c8] sm:$0xff]  ;;  %v2672_v41 = vld [vmem:[#allocation19 + $0x320] sm:$0xff] }
 0x589   : > { %v2249_v50 = vrot.slane %v2248_v48, 4  ;;  %v2669_v42 = vld [vmem:[#allocation19 + $0x308] sm:$0xff] }
 0x58b   : > { %v2250_v54 = vmax.f32 %v2248_v48, %v2249_v50  ;;  %v2620_v48 = vld [vmem:[#allocation19 + $0x180] sm:$0xff] }
 0x58c   : > { %v2624_v50 = vld [vmem:[#allocation19 + $0x1a0] sm:$0xff] }
 0x58d   : > { %v2251_v57 = vrot.slane %v2250_v54, 2 }
 0x58f   : > { %v2252_v59 = vmax.f32 %v2250_v54, %v2251_v57  ;;  %v2625_v54 = vld [vmem:[#allocation19 + $0x1a8] sm:$0xff]  ;;  %v15415_v57 = vcombine.low %v2612_v38, %v2616_v40  ;;  %v2668_v40 = vld [vmem:[#allocation19 + $0x300] sm:$0xff] }
 0x590   : > { %v15426_v60 = vcombine.high %v2621_v51, %v2625_v54 }
 0x591   : > { %v2253_v56 = vrot.slane %v2252_v59, 1 }
 0x593   : > { %v2254_v63 = vmax.f32 %v2252_v59, %v2253_v56  ;;  %v15424_v59 = vcombine.high %v2620_v48, %v2624_v50  ;;  %v2628_v56 = vld [vmem:[#allocation19 + $0x1c0] sm:$0xff] }
 0x595   : > { %v2256_v2 = vpack.c.bf16 %v2254_v63, %v2254_v63  ;;  %v2629_v63 = vld [vmem:[#allocation19 + $0x1c8] sm:$0xff] }
 0x596   : > { %v15434_v26 = vcombine.high %v2629_v63, %v2633_v0  ;;  %v15433_v10 = vcombine.low %v2629_v63, %v2633_v0  ;;  %v2684_v63 = vld [vmem:[#allocation19 + $0x380] sm:$0xff]  ;;  %v19661_v0 = vsub.s32 3, %v19632_v49 }
 0x597   : > { %v2314_v3 = vunpack.c.l.b16 %v2256_v2  ;;  %v15423_v2 = vcombine.low %v2620_v48, %v2624_v50  ;;  %v2676_v50 = vld [vmem:[#allocation19 + $0x340] sm:$0xff] }
 0x599   : > { %v2315_v8 = vsel %vm1686_vm5, %v2314_v3, %v2313_v39  ;;  %v15425_v39 = vcombine.low %v2621_v51, %v2625_v54  ;;  %v15432_v3 = vcombine.high %v2628_v56, %v2632_v61  ;;  %v2680_v51 = vld [vmem:[#allocation19 + $0x360] sm:$0xff]  ;;  %v2677_v54 = vld [vmem:[#allocation19 + $0x348] sm:$0xff] }
 0x59a   : > { %v2316_v9 = vpack.c.b16 %v2315_v8, %v2315_v8  ;;  %v2641_v8 = vld [vmem:[#allocation19 + $0x228] sm:$0xff] }
 0x59c   : > { %2511 = vmatmul.mubr.bf16.vlgmr.msra.gmra.mrb[20].mxu0 %v2316_v9  ;;  %2552 = vmatmul.mubr.bf16.vlgmr.msra.gmra.mrb[20].mxu1 %v2316_v9  ;;  %v15431_v9 = vcombine.low %v2628_v56, %v2632_v61  ;;  %v15480_v56 = vcombine.high %v2676_v50, %v2680_v51 }
 0x59d   : > { %5687 = vmatpush1.bf16.msra.mxu0 %v15375_v28  ;;  %5851 = vmatpush1.bf16.msra.mxu1 %v15377_v31  ;;  %v15402_v28 = vcombine.high %v2597_v22, %v2601_v23  ;;  %v2608_v31 = vld [vmem:[#allocation19 + $0x120] sm:$0xff]  ;;  %v2653_v23 = vld [vmem:[#allocation19 + $0x288] sm:$0xff] }
 0x59e   : > { %5718 = vmatprep.mubr.bf16.mxu0 %v19647_v53  ;;  %5882 = vmatprep.mubr.bf16.mxu1 %v19647_v53  ;;  %v15408_v36 = vcombine.high %v2604_v30, %v2608_v31  ;;  %v15407_v43 = vcombine.low %v2604_v30, %v2608_v31  ;;  %v2656_v22 = vld [vmem:[#allocation19 + $0x2a0] sm:$0xff] }
 0x59f   : > { %5688 = vmatprep.subr.bf16.mxu0 %v15384_v11  ;;  %5852 = vmatprep.subr.bf16.mxu1 %v15386_v12  ;;  %v15440_v11 = vcombine.high %v2636_v5, %v2640_v6  ;;  %v15442_v12 = vcombine.high %v2637_v7, %v2641_v8  ;;  %v2660_v31 = vld [vmem:[#allocation19 + $0x2c0] sm:$0xff] }
 0x5a1   : > { %5689 = vmatpush1.bf16.msra.mxu0 %v15383_v16  ;;  %5853 = vmatpush1.bf16.msra.mxu1 %v15385_v17  ;;  %v2649_v16 = vld [vmem:[#allocation19 + $0x268] sm:$0xff]  ;;  %v15439_v17 = vcombine.low %v2636_v5, %v2640_v6 }
 0x5a2   : > { %5690 = vmatprep.subr.bf16.mxu0 %v15392_v18  ;;  %5854 = vmatprep.subr.bf16.mxu1 %v15394_v19  ;;  %v15441_v18 = vcombine.low %v2637_v7, %v2641_v8  ;;  %v15448_v19 = vcombine.high %v2644_v13, %v2648_v14  ;;  %v15450_v20 = vcombine.high %v2645_v15, %v2649_v16 }
 0x5a5   : > { %5691 = vmatpush1.bf16.msra.mxu0 %v15391_v24  ;;  %5855 = vmatpush1.bf16.msra.mxu1 %v15393_v25  ;;  %v2657_v24 = vld [vmem:[#allocation19 + $0x2a8] sm:$0xff]  ;;  %v15447_v25 = vcombine.low %v2644_v13, %v2648_v14 }
 0x5a6   : > { %5692 = vmatprep.subr.bf16.mxu0 %v15400_v27  ;;  %5856 = vmatprep.subr.bf16.mxu1 %v15402_v28  ;;  %v15449_v27 = vcombine.low %v2645_v15, %v2649_v16  ;;  %v15456_v28 = vcombine.high %v2652_v21, %v2656_v22  ;;  %v15458_v30 = vcombine.high %v2653_v23, %v2657_v24  ;;  %v2697_v13 = vld [vmem:[#allocation19 + $0x3e8] sm:$0xff] }
 0x5a9   : > { %5693 = vmatpush1.bf16.msra.mxu0 %v15399_v34  ;;  %5857 = vmatpush1.bf16.msra.mxu1 %v15401_v35  ;;  %v2665_v34 = vld [vmem:[#allocation19 + $0x2e8] sm:$0xff]  ;;  %v15455_v35 = vcombine.low %v2652_v21, %v2656_v22  ;;  %v2704_v21 = vld [vmem:[#allocation19 + $0x420] sm:$0xff] }
 0x5aa   : > { %5694 = vmatprep.subr.bf16.mxu0 %v15408_v36  ;;  %5858 = vmatprep.subr.bf16.mxu1 %v15410_v37  ;;  %v15457_v36 = vcombine.low %v2653_v23, %v2657_v24  ;;  %v15464_v37 = vcombine.high %v2660_v31, %v2664_v29  ;;  %v15466_v38 = vcombine.high %v2661_v32, %v2665_v34  ;;  %v2701_v22 = vld [vmem:[#allocation19 + $0x408] sm:$0xff] }
 0x5ab   : > { %v2705_v23 = vld [vmem:[#allocation19 + $0x428] sm:$0xff] }
 0x5ad   : > { %5695 = vmatpush1.bf16.msra.mxu0 %v15407_v43  ;;  %5859 = vmatpush1.bf16.msra.mxu1 %v15409_v44  ;;  %v2673_v43 = vld [vmem:[#allocation19 + $0x328] sm:$0xff]  ;;  %v15463_v44 = vcombine.low %v2660_v31, %v2664_v29  ;;  %v2708_v31 = vld [vmem:[#allocation19 + $0x440] sm:$0xff] }
 0x5ae   : > { %5696 = vmatprep.subr.bf16.mxu0 %v15416_v46  ;;  %5860 = vmatprep.subr.bf16.mxu1 %v15418_v47  ;;  %v15465_v46 = vcombine.low %v2661_v32, %v2665_v34  ;;  %v15472_v47 = vcombine.high %v2668_v40, %v2672_v41  ;;  %v15474_v48 = vcombine.high %v2669_v42, %v2673_v43  ;;  %v2712_v29 = vld [vmem:[#allocation19 + $0x460] sm:$0xff]  ;;  %v2709_v32 = vld [vmem:[#allocation19 + $0x448] sm:$0xff] }
 0x5af   : > { %v2713_v34 = vld [vmem:[#allocation19 + $0x468] sm:$0xff] }
 0x5b1   : > { %5697 = vmatpush1.bf16.msra.mxu0 %v15415_v57  ;;  %5861 = vmatpush1.bf16.msra.mxu1 %v15417_v58  ;;  %v2681_v57 = vld [vmem:[#allocation19 + $0x368] sm:$0xff]  ;;  %v15471_v58 = vcombine.low %v2668_v40, %v2672_v41  ;;  %v15514_v40 = vcombine.high %v2709_v32, %v2713_v34  ;;  %v2716_v41 = vld [vmem:[#allocation19 + $0x480] sm:$0xff] }
 0x5b2   : > { %5698 = vmatprep.subr.bf16.mxu0 %v15424_v59  ;;  %5862 = vmatprep.subr.bf16.mxu1 %v15426_v60  ;;  %v15473_v59 = vcombine.low %v2669_v42, %v2673_v43  ;;  %v19658_v60 = vsub.s32 0, %v19632_v49  ;;  %v15482_v61 = vcombine.high %v2677_v54, %v2681_v57  ;;  %v15481_v5 = vcombine.low %v2677_v54, %v2681_v57  ;;  %v2720_v42 = vld [vmem:[#allocation19 + $0x4a0] sm:$0xff]  ;;  %v2717_v43 = vld [vmem:[#allocation19 + $0x488] sm:$0xff] }
 0x5b3   : > { %v2728_v54 = vld [vmem:[#allocation19 + $0x4e0] sm:$0xff]  ;;  %v2725_v57 = vld [vmem:[#allocation19 + $0x4c8] sm:$0xff] }
 0x5b4   : > { %v1706_v6 = vrot.slane %v19637_v33, %v19658_v60 }
 0x5b5   : > { %5699 = vmatpush1.bf16.msra.mxu0 %v15423_v2  ;;  %5863 = vmatpush1.bf16.msra.mxu1 %v15425_v39  ;;  %v2688_v2 = vld [vmem:[#allocation19 + $0x3a0] sm:$0xff]  ;;  %v2685_v39 = vld [vmem:[#allocation19 + $0x388] sm:$0xff] }
 0x5b6   : > { %5700 = vmatprep.subr.bf16.mxu0 %v15432_v3  ;;  %5864 = vmatprep.subr.bf16.mxu1 %v15434_v26  ;;  %v2689_v3 = vld [vmem:[#allocation19 + $0x3a8] sm:$0xff]  ;;  %v15479_v26 = vcombine.low %v2676_v50, %v2680_v51  ;;  %v15488_v7 = vcombine.high %v2684_v63, %v2688_v2  ;;  %v15487_v14 = vcombine.low %v2684_v63, %v2688_v2  ;;  %v2724_v51 = vld [vmem:[#allocation19 + $0x4c0] sm:$0xff] }
 0x5b7   : > { %v15490_v8 = vcombine.high %v2685_v39, %v2689_v3  ;;  %v15489_v15 = vcombine.low %v2685_v39, %v2689_v3  ;;  %v1784_v16 = vadd.f32 %v19598_v52, %v1706_v6  ;;  %v15506_v52 = vcombine.high %v2701_v22, %v2705_v23  ;;  %v2732_v2 = vld [vmem:[#allocation19 + $0x500] sm:$0xff]  ;;  %v2733_v3 = vld [vmem:[#allocation19 + $0x508] sm:$0xff] }
 0x5b8   : > { %v2736_v39 = vld [vmem:[#allocation19 + $0x520] sm:$0xff] }
 0x5b9   : > { %5701 = vmatpush1.bf16.msra.mxu0 %v15431_v9  ;;  %5865 = vmatpush1.bf16.msra.mxu1 %v15433_v10  ;;  %v2692_v9 = vld [vmem:[#allocation19 + $0x3c0] sm:$0xff]  ;;  %v1718_v10 = vrot.slane %v19637_v33, %v19661_v0 }
 0x5ba   : > { %5702 = vmatprep.subr.bf16.mxu0 %v15440_v11  ;;  %5866 = vmatprep.subr.bf16.mxu1 %v15442_v12  ;;  %v2696_v11 = vld [vmem:[#allocation19 + $0x3e0] sm:$0xff]  ;;  %v2693_v12 = vld [vmem:[#allocation19 + $0x3c8] sm:$0xff] }
 0x5bb   : > { %v15495_v24 = vcombine.low %v2692_v9, %v2696_v11 }
 0x5bd   : > { %5703 = vmatpush1.bf16.msra.mxu0 %v15439_v17  ;;  %5867 = vmatpush1.bf16.msra.mxu1 %v15441_v18  ;;  %v15496_v17 = vcombine.high %v2692_v9, %v2696_v11  ;;  %v15498_v18 = vcombine.high %v2693_v12, %v2697_v13  ;;  %v2740_v9 = vld [vmem:[#allocation19 + $0x540] sm:$0xff]  ;;  %v2741_v11 = vld [vmem:[#allocation19 + $0x548] sm:$0xff] }
 0x5be   : > { %5704 = vmatprep.subr.bf16.mxu0 %v15448_v19  ;;  %5868 = vmatprep.subr.bf16.mxu1 %v15450_v20  ;;  %v2700_v19 = vld [vmem:[#allocation19 + $0x400] sm:$0xff]  ;;  %v1827_v20 = vadd.f32 %v19604_v1, %v1718_v10 }
 0x5bf   : > { %v15503_v1 = vcombine.low %v2700_v19, %v2704_v21  ;;  %v2744_v10 = vld [vmem:[#allocation19 + $0x560] sm:$0xff] }
 0x5c1   : > { %5705 = vmatpush1.bf16.msra.mxu0 %v15447_v25  ;;  %5869 = vmatpush1.bf16.msra.mxu1 %v15449_v27  ;;  %v15497_v25 = vcombine.low %v2693_v12, %v2697_v13  ;;  %v19669_v27 = vmax.f32 %v1784_v16, 0.0  ;;  %v2745_v12 = vld [vmem:[#allocation19 + $0x568] sm:$0xff]  ;;  %v15535_v13 = vcombine.low %v2732_v2, %v2736_v39 }
 0x5c2   : > { %5706 = vmatprep.subr.bf16.mxu0 %v15456_v28  ;;  %5870 = vmatprep.subr.bf16.mxu1 %v15458_v30  ;;  %v15504_v28 = vcombine.high %v2700_v19, %v2704_v21  ;;  %v19671_v30 = vmax.f32 %v1827_v20, 0.0  ;;  %v15546_v16 = vcombine.high %v2741_v11, %v2745_v12  ;;  %v2749_v19 = vld [vmem:[#allocation19 + $0x588] sm:$0xff]  ;;  %v15543_v21 = vcombine.low %v2740_v9, %v2744_v10 }
 0x5c3   : > { %v2753_v20 = vld [vmem:[#allocation19 + $0x5a8] sm:$0xff] }
 0x5c5   : > { %5707 = vmatpush1.bf16.msra.mxu0 %v15455_v35  ;;  %5871 = vmatpush1.bf16.msra.mxu1 %v15457_v36  ;;  %v19675_v35 = vpack.c.bf16 %v19669_v27, %v19669_v27  ;;  %v15505_v36 = vcombine.low %v2701_v22, %v2705_v23  ;;  %v15545_v22 = vcombine.low %v2741_v11, %v2745_v12 }
 0x5c6   : > { %5708 = vmatprep.subr.bf16.mxu0 %v15464_v37  ;;  %5872 = vmatprep.subr.bf16.mxu1 %v15466_v38  ;;  %v19679_v37 = vpack.c.bf16 %v19671_v30, %v19671_v30  ;;  %v15512_v38 = vcombine.high %v2708_v31, %v2712_v29 }
 0x5c9   : > { %5709 = vmatpush1.bf16.msra.mxu0 %v15463_v44  ;;  %5873 = vmatpush1.bf16.msra.mxu1 %v15465_v46  ;;  %v2721_v44 = vld [vmem:[#allocation19 + $0x4a8] sm:$0xff]  ;;  %v15511_v46 = vcombine.low %v2708_v31, %v2712_v29 }
 0x5ca   : > { %5710 = vmatprep.subr.bf16.mxu0 %v15472_v47  ;;  %5874 = vmatprep.subr.bf16.mxu1 %v15474_v48  ;;  %v15513_v47 = vcombine.low %v2709_v32, %v2713_v34  ;;  %v15520_v48 = vcombine.high %v2716_v41, %v2720_v42  ;;  %v15522_v50 = vcombine.high %v2717_v43, %v2721_v44  ;;  %v2761_v31 = vld [vmem:[#allocation19 + $0x5e8] sm:$0xff] }
 0x5cb   : > { %v15553_v32 = vcombine.low %v2749_v19, %v2753_v20 }
 0x5cd   : > { %5711 = vmatpush1.bf16.msra.mxu0 %v15471_v58  ;;  %5875 = vmatpush1.bf16.msra.mxu1 %v15473_v59  ;;  %v2729_v58 = vld [vmem:[#allocation19 + $0x4e8] sm:$0xff]  ;;  %v15519_v59 = vcombine.low %v2716_v41, %v2720_v42 }
 0x5ce   : > { %5712 = vmatprep.subr.bf16.mxu0 %v15480_v56  ;;  %5876 = vmatprep.subr.bf16.mxu1 %v15482_v61  ;;  %v15521_v56 = vcombine.low %v2717_v43, %v2721_v44  ;;  %v15528_v61 = vcombine.high %v2724_v51, %v2728_v54  ;;  %v15530_v63 = vcombine.high %v2725_v57, %v2729_v58  ;;  %v2769_v41 = vld [vmem:[#allocation19 + $0x628] sm:$0xff] }
 0x5cf   : > { %v15529_v6 = vcombine.low %v2725_v57, %v2729_v58 }
 0x5d1   : > { %5713 = vmatpush1.bf16.msra.mxu0 %v15479_v26  ;;  %5877 = vmatpush1.bf16.msra.mxu1 %v15481_v5  ;;  %v2737_v26 = vld [vmem:[#allocation19 + $0x528] sm:$0xff]  ;;  %v15527_v5 = vcombine.low %v2724_v51, %v2728_v54 }
 0x5d2   : > { %5714 = vmatprep.subr.bf16.mxu0 %v15488_v7  ;;  %5878 = vmatprep.subr.bf16.mxu1 %v15490_v8  ;;  %v15536_v7 = vcombine.high %v2732_v2, %v2736_v39  ;;  %v15538_v8 = vcombine.high %v2733_v3, %v2737_v26  ;;  %v2777_v51 = vld [vmem:[#allocation19 + $0x668] sm:$0xff] }
 0x5d3   : > { %v2785_v2 = vld [vmem:[#allocation19 + $0x6a8] sm:$0xff] }
 0x5d5   : > { %5715 = vmatpush1.bf16.msra.mxu0 %v15487_v14  ;;  %5879 = vmatpush1.bf16.msra.mxu1 %v15489_v15  ;;  %v15537_v14 = vcombine.low %v2733_v3, %v2737_v26  ;;  %v15544_v15 = vcombine.high %v2740_v9, %v2744_v10  ;;  %v2793_v9 = vld [vmem:[#allocation19 + $0x6e8] sm:$0xff] }
 0x5d6   : > { %5716 = vmatprep.subr.bf16.mxu0 %v15496_v17  ;;  %5880 = vmatprep.subr.bf16.mxu1 %v15498_v18  ;;  %v2748_v17 = vld [vmem:[#allocation19 + $0x580] sm:$0xff] }
 0x5d7   : > { %v2752_v18 = vld [vmem:[#allocation19 + $0x5a0] sm:$0xff] }
 0x5d8   : > { %v15552_v23 = vcombine.high %v2748_v17, %v2752_v18  ;;  %v15551_v29 = vcombine.low %v2748_v17, %v2752_v18  ;;  %v2801_v17 = vld [vmem:[#allocation19 + $0x728] sm:$0xff] }
 0x5d9   : > { %5717 = vmatpush1.bf16.msra.mxu0 %v15495_v24  ;;  %5881 = vmatpush1.bf16.msra.mxu1 %v15497_v25  ;;  %v15554_v24 = vcombine.high %v2749_v19, %v2753_v20  ;;  %v2756_v25 = vld [vmem:[#allocation19 + $0x5c0] sm:$0xff] }
 0x5da   : > { %5727 = vmatprep.subr.bf16.mxu0 %v15504_v28  ;;  %5891 = vmatprep.subr.bf16.mxu1 %v15506_v52  ;;  %v2760_v28 = vld [vmem:[#allocation19 + $0x5e0] sm:$0xff]  ;;  %v2757_v52 = vld [vmem:[#allocation19 + $0x5c8] sm:$0xff] }
 0x5db   : > { %v15560_v34 = vcombine.high %v2756_v25, %v2760_v28  ;;  %v15559_v42 = vcombine.low %v2756_v25, %v2760_v28  ;;  %v15561_v43 = vcombine.low %v2757_v52, %v2761_v31  ;;  %v2809_v25 = vld [vmem:[#allocation19 + $0x768] sm:$0xff] }
 0x5dc   : > { %5719 = vmatmul.mubr.bf16.vlgmr.msra.gmra.mrb[24].mxu0 %v19675_v35  ;;  %5883 = vmatmul.mubr.bf16.vlgmr.msra.gmra.mrb[24].mxu1 %v19675_v35 }
 0x5dd   : > { %5728 = vmatpush1.bf16.msra.mxu0 %v15503_v1  ;;  %5759 = vmatprep.mubr.bf16.mxu0 %v19679_v37  ;;  %v15562_v1 = vcombine.high %v2757_v52, %v2761_v31  ;;  %v19686_v52 = vsub.s32 2, %v19632_v49 }
 0x5de   : > { %5892 = vmatpush1.bf16.msra.mxu1 %v15505_v36  ;;  %5923 = vmatprep.mubr.bf16.mxu1 %v19679_v37  ;;  %v2764_v36 = vld [vmem:[#allocation19 + $0x600] sm:$0xff] }
 0x5df   : > { %5729 = vmatprep.subr.bf16.mxu0 %v15512_v38  ;;  %5893 = vmatprep.subr.bf16.mxu1 %v15514_v40  ;;  %v2768_v38 = vld [vmem:[#allocation19 + $0x620] sm:$0xff]  ;;  %v2765_v40 = vld [vmem:[#allocation19 + $0x608] sm:$0xff] }
 0x5e0   : > { %v15568_v44 = vcombine.high %v2764_v36, %v2768_v38  ;;  %v15567_v54 = vcombine.low %v2764_v36, %v2768_v38  ;;  %v15569_v57 = vcombine.low %v2765_v40, %v2769_v41  ;;  %v2813_v36 = vld [vmem:[#allocation19 + $0x788] sm:$0xff] }
 0x5e1   : > { %5730 = vmatpush1.bf16.msra.mxu0 %v15511_v46  ;;  %v15570_v46 = vcombine.high %v2765_v40, %v2769_v41  ;;  %v2817_v38 = vld [vmem:[#allocation19 + $0x7a8] sm:$0xff]  ;;  %v1714_v41 = vrot.slane %v19637_v33, %v19686_v52 }
 0x5e2   : > { %5894 = vmatpush1.bf16.msra.mxu1 %v15513_v47  ;;  %5731 = vmatprep.subr.bf16.mxu0 %v15520_v48  ;;  %v2772_v47 = vld [vmem:[#allocation19 + $0x640] sm:$0xff] }
 0x5e3   : > { %5895 = vmatprep.subr.bf16.mxu1 %v15522_v50  ;;  %v2776_v48 = vld [vmem:[#allocation19 + $0x660] sm:$0xff]  ;;  %v2773_v50 = vld [vmem:[#allocation19 + $0x648] sm:$0xff] }
 0x5e4   : > { %v15576_v58 = vcombine.high %v2772_v47, %v2776_v48  ;;  %v15575_v39 = vcombine.low %v2772_v47, %v2776_v48  ;;  %v15577_v3 = vcombine.low %v2773_v50, %v2777_v51  ;;  %v2824_v47 = vld [vmem:[#allocation19 + $0x7e0] sm:$0xff]  ;;  %v2821_v48 = vld [vmem:[#allocation19 + $0x7c8] sm:$0xff] }
 0x5e5   : > { %5732 = vmatpush1.bf16.msra.mxu0 %v15519_v59  ;;  %v15578_v59 = vcombine.high %v2773_v50, %v2777_v51  ;;  %v2825_v50 = vld [vmem:[#allocation19 + $0x7e8] sm:$0xff] }
 0x5e6   : > { %5896 = vmatpush1.bf16.msra.mxu1 %v15521_v56  ;;  %5733 = vmatprep.subr.bf16.mxu0 %v15528_v61  ;;  %v2780_v56 = vld [vmem:[#allocation19 + $0x680] sm:$0xff]  ;;  %v15626_v33 = vcombine.high %v2821_v48, %v2825_v50 }
 0x5e7   : > { %5897 = vmatprep.subr.bf16.mxu1 %v15530_v63  ;;  %v2784_v61 = vld [vmem:[#allocation19 + $0x6a0] sm:$0xff]  ;;  %v2781_v63 = vld [vmem:[#allocation19 + $0x688] sm:$0xff] }
 0x5e8   : > { %v15584_v26 = vcombine.high %v2780_v56, %v2784_v61  ;;  %v15583_v10 = vcombine.low %v2780_v56, %v2784_v61  ;;  %v15585_v11 = vcombine.low %v2781_v63, %v2785_v2  ;;  %v2832_v56 = vld [vmem:[#allocation19 + $0x820] sm:$0xff]  ;;  %v2829_v61 = vld [vmem:[#allocation19 + $0x808] sm:$0xff] }
 0x5e9   : > { %5734 = vmatpush1.bf16.msra.mxu0 %v15527_v5  ;;  %v15586_v5 = vcombine.high %v2781_v63, %v2785_v2  ;;  %v2833_v63 = vld [vmem:[#allocation19 + $0x828] sm:$0xff] }
 0x5ea   : > { %5898 = vmatpush1.bf16.msra.mxu1 %v15529_v6  ;;  %5735 = vmatprep.subr.bf16.mxu0 %v15536_v7  ;;  %v2788_v6 = vld [vmem:[#allocation19 + $0x6c0] sm:$0xff] }
 0x5eb   : > { %5899 = vmatprep.subr.bf16.mxu1 %v15538_v8  ;;  %v2792_v7 = vld [vmem:[#allocation19 + $0x6e0] sm:$0xff]  ;;  %v2789_v8 = vld [vmem:[#allocation19 + $0x6c8] sm:$0xff] }
 0x5ec   : > { %v15592_v12 = vcombine.high %v2788_v6, %v2792_v7  ;;  %v15591_v18 = vcombine.low %v2788_v6, %v2792_v7  ;;  %v15593_v19 = vcombine.low %v2789_v8, %v2793_v9  ;;  %v2840_v6 = vld [vmem:[#allocation19 + $0x860] sm:$0xff]  ;;  %v2837_v7 = vld [vmem:[#allocation19 + $0x848] sm:$0xff] }
 0x5ed   : > { %5736 = vmatpush1.bf16.msra.mxu0 %v15535_v13  ;;  %v15594_v13 = vcombine.high %v2789_v8, %v2793_v9  ;;  %v2841_v8 = vld [vmem:[#allocation19 + $0x868] sm:$0xff] }
 0x5ee   : > { %5900 = vmatpush1.bf16.msra.mxu1 %v15537_v14  ;;  %5737 = vmatprep.subr.bf16.mxu0 %v15544_v15  ;;  %v2796_v14 = vld [vmem:[#allocation19 + $0x700] sm:$0xff] }
 0x5ef   : > { %5901 = vmatprep.subr.bf16.mxu1 %v15546_v16  ;;  %v2800_v15 = vld [vmem:[#allocation19 + $0x720] sm:$0xff]  ;;  %v2797_v16 = vld [vmem:[#allocation19 + $0x708] sm:$0xff] }
 0x5f0   : > { %v15600_v20 = vcombine.high %v2796_v14, %v2800_v15  ;;  %v15599_v28 = vcombine.low %v2796_v14, %v2800_v15  ;;  %v15601_v31 = vcombine.low %v2797_v16, %v2801_v17  ;;  %v2844_v14 = vld [vmem:[#allocation19 + $0x880] sm:$0xff] }
 0x5f1   : > { %5738 = vmatpush1.bf16.msra.mxu0 %v15543_v21  ;;  %v15602_v21 = vcombine.high %v2797_v16, %v2801_v17  ;;  %v2848_v15 = vld [vmem:[#allocation19 + $0x8a0] sm:$0xff]  ;;  %v2845_v16 = vld [vmem:[#allocation19 + $0x888] sm:$0xff] }
 0x5f2   : > { %5902 = vmatpush1.bf16.msra.mxu1 %v15545_v22  ;;  %5739 = vmatprep.subr.bf16.mxu0 %v15552_v23  ;;  %v2804_v22 = vld [vmem:[#allocation19 + $0x740] sm:$0xff]  ;;  %v2849_v17 = vld [vmem:[#allocation19 + $0x8a8] sm:$0xff] }
 0x5f3   : > { %5903 = vmatprep.subr.bf16.mxu1 %v15554_v24  ;;  %v2808_v23 = vld [vmem:[#allocation19 + $0x760] sm:$0xff]  ;;  %v2805_v24 = vld [vmem:[#allocation19 + $0x748] sm:$0xff] }
 0x5f4   : > { %v15607_v40 = vcombine.low %v2804_v22, %v2808_v23 }
 0x5f5   : > { %5740 = vmatpush1.bf16.msra.mxu0 %v15551_v29  ;;  %v15608_v29 = vcombine.high %v2804_v22, %v2808_v23  ;;  %v2852_v22 = vld [vmem:[#allocation19 + $0x8c0] sm:$0xff] }
 0x5f6   : > { %5904 = vmatpush1.bf16.msra.mxu1 %v15553_v32  ;;  %5741 = vmatprep.subr.bf16.mxu0 %v15560_v34  ;;  %v15610_v32 = vcombine.high %v2805_v24, %v2809_v25  ;;  %v2812_v34 = vld [vmem:[#allocation19 + $0x780] sm:$0xff] }
 0x5f7   : > { %5905 = vmatprep.subr.bf16.mxu1 %v15562_v1  ;;  %v2816_v1 = vld [vmem:[#allocation19 + $0x7a0] sm:$0xff] }
 0x5f8   : > { %v15615_v51 = vcombine.low %v2812_v34, %v2816_v1  ;;  %v2856_v23 = vld [vmem:[#allocation19 + $0x8e0] sm:$0xff] }
 0x5f9   : > { %5742 = vmatpush1.bf16.msra.mxu0 %v15559_v42  ;;  %v15609_v42 = vcombine.low %v2805_v24, %v2809_v25  ;;  %v2853_v24 = vld [vmem:[#allocation19 + $0x8c8] sm:$0xff] }
 0x5fa   : > { %5906 = vmatpush1.bf16.msra.mxu1 %v15561_v43  ;;  %5743 = vmatprep.subr.bf16.mxu0 %v15568_v44  ;;  %v15616_v43 = vcombine.high %v2812_v34, %v2816_v1  ;;  %v15618_v44 = vcombine.high %v2813_v36, %v2817_v38  ;;  %v2857_v25 = vld [vmem:[#allocation19 + $0x8e8] sm:$0xff]  ;;  %v2860_v34 = vld [vmem:[#allocation19 + $0x900] sm:$0xff] }
 0x5fb   : > { %5907 = vmatprep.subr.bf16.mxu1 %v15570_v46  ;;  %v2820_v46 = vld [vmem:[#allocation19 + $0x7c0] sm:$0xff] }
 0x5fc   : > { %v15623_v2 = vcombine.low %v2820_v46, %v2824_v47  ;;  %v2864_v1 = vld [vmem:[#allocation19 + $0x920] sm:$0xff] }
 0x5fd   : > { %5744 = vmatpush1.bf16.msra.mxu0 %v15567_v54  ;;  %v1825_v54 = vadd.f32 %v19602_v62, %v1714_v41  ;;  %v15634_v62 = vcombine.high %v2829_v61, %v2833_v63  ;;  %v15657_v41 = vcombine.low %v2853_v24, %v2857_v25 }
 0x5fe   : > { %5908 = vmatpush1.bf16.msra.mxu1 %v15569_v57  ;;  %5745 = vmatprep.subr.bf16.mxu0 %v15576_v58  ;;  %v15617_v57 = vcombine.low %v2813_v36, %v2817_v38  ;;  %v15624_v58 = vcombine.high %v2820_v46, %v2824_v47  ;;  %v2861_v36 = vld [vmem:[#allocation19 + $0x908] sm:$0xff]  ;;  %v2872_v46 = vld [vmem:[#allocation19 + $0x960] sm:$0xff] }
 0x5ff   : > { %5909 = vmatprep.subr.bf16.mxu1 %v15578_v59  ;;  %v2828_v59 = vld [vmem:[#allocation19 + $0x800] sm:$0xff]  ;;  %v2865_v38 = vld [vmem:[#allocation19 + $0x928] sm:$0xff] }
 0x600   : > { %v15631_v9 = vcombine.low %v2828_v59, %v2832_v56  ;;  %v2869_v47 = vld [vmem:[#allocation19 + $0x948] sm:$0xff] }
 0x601   : > { %5746 = vmatpush1.bf16.msra.mxu0 %v15575_v39  ;;  %v19691_v39 = vmax.f32 %v1825_v54, 0.0 }
 0x602   : > { %5910 = vmatpush1.bf16.msra.mxu1 %v15577_v3  ;;  %5747 = vmatprep.subr.bf16.mxu0 %v15584_v26  ;;  %v15625_v3 = vcombine.low %v2821_v48, %v2825_v50  ;;  %v15632_v26 = vcombine.high %v2828_v59, %v2832_v56  ;;  %v2873_v48 = vld [vmem:[#allocation19 + $0x968] sm:$0xff]  ;;  %v15663_v50 = vcombine.low %v2860_v34, %v2864_v1 }
 0x603   : > { %5911 = vmatprep.subr.bf16.mxu1 %v15586_v5  ;;  %v2836_v5 = vld [vmem:[#allocation19 + $0x840] sm:$0xff]  ;;  %v2877_v59 = vld [vmem:[#allocation19 + $0x988] sm:$0xff] }
 0x604   : > { %v2881_v56 = vld [vmem:[#allocation19 + $0x9a8] sm:$0xff] }
 0x605   : > { %5748 = vmatpush1.bf16.msra.mxu0 %v15583_v10  ;;  %v19695_v10 = vpack.c.bf16 %v19691_v39, %v19691_v39 }
 0x606   : > { %5912 = vmatpush1.bf16.msra.mxu1 %v15585_v11  ;;  %5749 = vmatprep.subr.bf16.mxu0 %v15592_v12  ;;  %v15633_v11 = vcombine.low %v2829_v61, %v2833_v63  ;;  %v15640_v12 = vcombine.high %v2836_v5, %v2840_v6  ;;  %v15673_v63 = vcombine.low %v2869_v47, %v2873_v48 }
 0x607   : > { %5913 = vmatprep.subr.bf16.mxu1 %v15594_v13  ;;  %v15642_v13 = vcombine.high %v2837_v7, %v2841_v8 }
 0x609   : > { %5750 = vmatpush1.bf16.msra.mxu0 %v15591_v18  ;;  %v15639_v18 = vcombine.low %v2836_v5, %v2840_v6  ;;  %v2885_v5 = vld [vmem:[#allocation19 + $0x9c8] sm:$0xff] }
 0x60a   : > { %5914 = vmatpush1.bf16.msra.mxu1 %v15593_v19  ;;  %5751 = vmatprep.subr.bf16.mxu0 %v15600_v20  ;;  %v15641_v19 = vcombine.low %v2837_v7, %v2841_v8  ;;  %v15648_v20 = vcombine.high %v2844_v14, %v2848_v15  ;;  %v2889_v6 = vld [vmem:[#allocation19 + $0x9e8] sm:$0xff]  ;;  %v15681_v8 = vcombine.low %v2877_v59, %v2881_v56 }
 0x60b   : > { %5915 = vmatprep.subr.bf16.mxu1 %v15602_v21  ;;  %v15650_v21 = vcombine.high %v2845_v16, %v2849_v17 }
 0x60d   : > { %5752 = vmatpush1.bf16.msra.mxu0 %v15599_v28  ;;  %v15647_v28 = vcombine.low %v2844_v14, %v2848_v15  ;;  %v2893_v14 = vld [vmem:[#allocation19 + $0xa08] sm:$0xff] }
 0x60e   : > { %5916 = vmatpush1.bf16.msra.mxu1 %v15601_v31  ;;  %5753 = vmatprep.subr.bf16.mxu0 %v15608_v29  ;;  %v15649_v31 = vcombine.low %v2845_v16, %v2849_v17  ;;  %v15656_v29 = vcombine.high %v2852_v22, %v2856_v23  ;;  %v2897_v15 = vld [vmem:[#allocation19 + $0xa28] sm:$0xff]  ;;  %v15689_v17 = vcombine.low %v2885_v5, %v2889_v6 }
 0x60f   : > { %5917 = vmatprep.subr.bf16.mxu1 %v15610_v32  ;;  %v15658_v32 = vcombine.high %v2853_v24, %v2857_v25  ;;  %v15697_v25 = vcombine.low %v2893_v14, %v2897_v15 }
 0x611   : > { %5754 = vmatpush1.bf16.msra.mxu0 %v15607_v40  ;;  %v15655_v40 = vcombine.low %v2852_v22, %v2856_v23  ;;  %v2901_v22 = vld [vmem:[#allocation19 + $0xa48] sm:$0xff] }
 0x612   : > { %5918 = vmatpush1.bf16.msra.mxu1 %v15609_v42  ;;  %5755 = vmatprep.subr.bf16.mxu0 %v15616_v43  ;;  %v15664_v42 = vcombine.high %v2860_v34, %v2864_v1  ;;  %v15666_v43 = vcombine.high %v2861_v36, %v2865_v38  ;;  %v2905_v23 = vld [vmem:[#allocation19 + $0xa68] sm:$0xff] }
 0x613   : > { %5919 = vmatprep.subr.bf16.mxu1 %v15618_v44  ;;  %v2868_v44 = vld [vmem:[#allocation19 + $0x940] sm:$0xff]  ;;  %v2909_v34 = vld [vmem:[#allocation19 + $0xa88] sm:$0xff] }
 0x614   : > { %v15672_v54 = vcombine.high %v2868_v44, %v2872_v46  ;;  %v15671_v61 = vcombine.low %v2868_v44, %v2872_v46  ;;  %v2913_v1 = vld [vmem:[#allocation19 + $0xaa8] sm:$0xff] }
 0x615   : > { %5756 = vmatpush1.bf16.msra.mxu0 %v15615_v51  ;;  %v15665_v51 = vcombine.low %v2861_v36, %v2865_v38  ;;  %v15705_v38 = vcombine.low %v2901_v22, %v2905_v23  ;;  %v2917_v44 = vld [vmem:[#allocation19 + $0xac8] sm:$0xff] }
 0x616   : > { %5920 = vmatpush1.bf16.msra.mxu1 %v15617_v57  ;;  %5757 = vmatprep.subr.bf16.mxu0 %v15624_v58  ;;  %v15674_v57 = vcombine.high %v2869_v47, %v2873_v48  ;;  %v2876_v58 = vld [vmem:[#allocation19 + $0x980] sm:$0xff]  ;;  %v2921_v46 = vld [vmem:[#allocation19 + $0xae8] sm:$0xff]  ;;  %v15713_v48 = vcombine.low %v2909_v34, %v2913_v1 }
 0x617   : > { %5921 = vmatprep.subr.bf16.mxu1 %v15626_v33  ;;  %v2880_v33 = vld [vmem:[#allocation19 + $0x9a0] sm:$0xff] }
 0x618   : > { %v15679_v7 = vcombine.low %v2876_v58, %v2880_v33 }
 0x619   : > { %5758 = vmatpush1.bf16.msra.mxu0 %v15623_v2  ;;  %v15680_v2 = vcombine.high %v2876_v58, %v2880_v33  ;;  %v2925_v58 = vld [vmem:[#allocation19 + $0xb08] sm:$0xff] }
 0x61a   : > { %5922 = vmatpush1.bf16.msra.mxu1 %v15625_v3  ;;  %5768 = vmatprep.subr.bf16.mxu0 %v15632_v26  ;;  %v15682_v3 = vcombine.high %v2877_v59, %v2881_v56  ;;  %v2884_v26 = vld [vmem:[#allocation19 + $0x9c0] sm:$0xff]  ;;  %v2929_v33 = vld [vmem:[#allocation19 + $0xb28] sm:$0xff]  ;;  %v15721_v56 = vcombine.low %v2917_v44, %v2921_v46 }
 0x61b   : > { %5932 = vmatprep.subr.bf16.mxu1 %v15634_v62  ;;  %v2888_v62 = vld [vmem:[#allocation19 + $0x9e0] sm:$0xff] }
 0x61c   : > { %5760 = vmatmul.mubr.bf16.vlgmr.msra.gmra.mrb[24].mxu0 %v19695_v10  ;;  %v15687_v16 = vcombine.low %v2884_v26, %v2888_v62 }
 0x61d   : > { %5924 = vmatmul.mubr.bf16.vlgmr.msra.gmra.mrb[24].mxu1 %v19695_v10  ;;  %5769 = vmatpush1.bf16.msra.mxu0 %v15631_v9  ;;  %v15688_v9 = vcombine.high %v2884_v26, %v2888_v62  ;;  %v2933_v26 = vld [vmem:[#allocation19 + $0xb48] sm:$0xff] }
 0x61e   : > { %5933 = vmatpush1.bf16.msra.mxu1 %v15633_v11  ;;  %5770 = vmatprep.subr.bf16.mxu0 %v15640_v12  ;;  %v15690_v11 = vcombine.high %v2885_v5, %v2889_v6  ;;  %v2892_v12 = vld [vmem:[#allocation19 + $0xa00] sm:$0xff]  ;;  %v2937_v62 = vld [vmem:[#allocation19 + $0xb68] sm:$0xff]  ;;  %v15729_v6 = vcombine.low %v2925_v58, %v2929_v33 }
 0x61f   : > { %5934 = vmatprep.subr.bf16.mxu1 %v15642_v13  ;;  %v2896_v13 = vld [vmem:[#allocation19 + $0xa20] sm:$0xff] }
 0x620   : > { %v15695_v24 = vcombine.low %v2892_v12, %v2896_v13 }
 0x621   : > { %5771 = vmatpush1.bf16.msra.mxu0 %v15639_v18  ;;  %v15696_v18 = vcombine.high %v2892_v12, %v2896_v13  ;;  %v2941_v12 = vld [vmem:[#allocation19 + $0xb88] sm:$0xff] }
 0x622   : > { %5935 = vmatpush1.bf16.msra.mxu1 %v15641_v19  ;;  %5772 = vmatprep.subr.bf16.mxu0 %v15648_v20  ;;  %v15698_v19 = vcombine.high %v2893_v14, %v2897_v15  ;;  %v2900_v20 = vld [vmem:[#allocation19 + $0xa40] sm:$0xff]  ;;  %v2945_v13 = vld [vmem:[#allocation19 + $0xba8] sm:$0xff]  ;;  %v15737_v15 = vcombine.low %v2933_v26, %v2937_v62 }
 0x623   : > { %5936 = vmatprep.subr.bf16.mxu1 %v15650_v21  ;;  %v2904_v21 = vld [vmem:[#allocation19 + $0xa60] sm:$0xff] }
 0x624   : > { %v15703_v36 = vcombine.low %v2900_v20, %v2904_v21 }
 0x625   : > { %5773 = vmatpush1.bf16.msra.mxu0 %v15647_v28  ;;  %v15704_v28 = vcombine.high %v2900_v20, %v2904_v21  ;;  %v2949_v20 = vld [vmem:[#allocation19 + $0xbc8] sm:$0xff] }
 0x626   : > { %5937 = vmatpush1.bf16.msra.mxu1 %v15649_v31  ;;  %5774 = vmatprep.subr.bf16.mxu0 %v15656_v29  ;;  %v15706_v31 = vcombine.high %v2901_v22, %v2905_v23  ;;  %v2908_v29 = vld [vmem:[#allocation19 + $0xa80] sm:$0xff]  ;;  %v2953_v21 = vld [vmem:[#allocation19 + $0xbe8] sm:$0xff]  ;;  %v15745_v23 = vcombine.low %v2941_v12, %v2945_v13 }
 0x627   : > { %5938 = vmatprep.subr.bf16.mxu1 %v15658_v32  ;;  %v2912_v32 = vld [vmem:[#allocation19 + $0xaa0] sm:$0xff] }
 0x628   : > { %v15711_v47 = vcombine.low %v2908_v29, %v2912_v32 }
 0x629   : > { %5775 = vmatpush1.bf16.msra.mxu0 %v15655_v40  ;;  %v15712_v40 = vcombine.high %v2908_v29, %v2912_v32  ;;  %v2957_v29 = vld [vmem:[#allocation19 + $0xc08] sm:$0xff] }
 0x62a   : > { %5939 = vmatpush1.bf16.msra.mxu1 %v15657_v41  ;;  %5776 = vmatprep.subr.bf16.mxu0 %v15664_v42  ;;  %v15714_v41 = vcombine.high %v2909_v34, %v2913_v1  ;;  %v2916_v42 = vld [vmem:[#allocation19 + $0xac0] sm:$0xff]  ;;  %v2961_v32 = vld [vmem:[#allocation19 + $0xc28] sm:$0xff]  ;;  %v15753_v1 = vcombine.low %v2949_v20, %v2953_v21 }
 0x62b   : > { %5940 = vmatprep.subr.bf16.mxu1 %v15666_v43  ;;  %v2920_v43 = vld [vmem:[#allocation19 + $0xae0] sm:$0xff] }
 0x62c   : > { %v15719_v59 = vcombine.low %v2916_v42, %v2920_v43 }
 0x62d   : > { %5777 = vmatpush1.bf16.msra.mxu0 %v15663_v50  ;;  %v15720_v50 = vcombine.high %v2916_v42, %v2920_v43 }
 0x62e   : > { %5941 = vmatpush1.bf16.msra.mxu1 %v15665_v51  ;;  %5778 = vmatprep.subr.bf16.mxu0 %v15672_v54  ;;  %v15722_v51 = vcombine.high %v2917_v44, %v2921_v46  ;;  %v2924_v54 = vld [vmem:[#allocation19 + $0xb00] sm:$0xff] }
 0x62f   : > { %5942 = vmatprep.subr.bf16.mxu1 %v15674_v57  ;;  %v2928_v57 = vld [vmem:[#allocation19 + $0xb20] sm:$0xff] }
 0x630   : > { %v15727_v5 = vcombine.low %v2924_v54, %v2928_v57 }
 0x631   : > { %5779 = vmatpush1.bf16.msra.mxu0 %v15671_v61  ;;  %v15728_v61 = vcombine.high %v2924_v54, %v2928_v57 }
 0x632   : > { %5943 = vmatpush1.bf16.msra.mxu1 %v15673_v63  ;;  %5780 = vmatprep.subr.bf16.mxu0 %v15680_v2  ;;  %v15730_v63 = vcombine.high %v2925_v58, %v2929_v33  ;;  %v2932_v2 = vld [vmem:[#allocation19 + $0xb40] sm:$0xff] }
 0x633   : > { %5944 = vmatprep.subr.bf16.mxu1 %v15682_v3  ;;  %v2936_v3 = vld [vmem:[#allocation19 + $0xb60] sm:$0xff] }
 0x634   : > { %v15735_v14 = vcombine.low %v2932_v2, %v2936_v3 }
 0x635   : > { %5781 = vmatpush1.bf16.msra.mxu0 %v15679_v7  ;;  %v15736_v7 = vcombine.high %v2932_v2, %v2936_v3  ;;  %v2964_v3 = vld [vmem:[#allocation19 + $0xc40] sm:$0xff] }
 0x636   : > { %5945 = vmatpush1.bf16.msra.mxu1 %v15681_v8  ;;  %5782 = vmatprep.subr.bf16.mxu0 %v15688_v9  ;;  %v15738_v8 = vcombine.high %v2933_v26, %v2937_v62  ;;  %v2940_v9 = vld [vmem:[#allocation19 + $0xb80] sm:$0xff] }
 0x637   : > { %5946 = vmatprep.subr.bf16.mxu1 %v15690_v11  ;;  %v2944_v11 = vld [vmem:[#allocation19 + $0xba0] sm:$0xff] }
 0x638   : > { %v15743_v22 = vcombine.low %v2940_v9, %v2944_v11  ;;  %v2968_v62 = vld [vmem:[#allocation19 + $0xc60] sm:$0xff] }
 0x639   : > { %5783 = vmatpush1.bf16.msra.mxu0 %v15687_v16  ;;  %v15744_v16 = vcombine.high %v2940_v9, %v2944_v11  ;;  %v15761_v9 = vcombine.low %v2957_v29, %v2961_v32 }
 0x63a   : > { %5947 = vmatpush1.bf16.msra.mxu1 %v15689_v17  ;;  %5784 = vmatprep.subr.bf16.mxu0 %v15696_v18  ;;  %v15746_v17 = vcombine.high %v2941_v12, %v2945_v13  ;;  %v2948_v18 = vld [vmem:[#allocation19 + $0xbc0] sm:$0xff]  ;;  %v15768_v13 = vcombine.high %v2964_v3, %v2968_v62 }
 0x63b   : > { %5948 = vmatprep.subr.bf16.mxu1 %v15698_v19  ;;  %v2952_v19 = vld [vmem:[#allocation19 + $0xbe0] sm:$0xff] }
 0x63c   : > { %v15751_v34 = vcombine.low %v2948_v18, %v2952_v19  ;;  %v2972_v12 = vld [vmem:[#allocation19 + $0xc80] sm:$0xff] }
 0x63d   : > { %5785 = vmatpush1.bf16.msra.mxu0 %v15695_v24  ;;  %v15752_v24 = vcombine.high %v2948_v18, %v2952_v19  ;;  %v15767_v19 = vcombine.low %v2964_v3, %v2968_v62  ;;  %v3009_v3 = vld [vmem:[#allocation19 + $0xda8] sm:$0xff] }
 0x63e   : > { %5949 = vmatpush1.bf16.msra.mxu1 %v15697_v25  ;;  %5786 = vmatprep.subr.bf16.mxu0 %v15704_v28  ;;  %v15754_v25 = vcombine.high %v2949_v20, %v2953_v21  ;;  %v2956_v28 = vld [vmem:[#allocation19 + $0xc00] sm:$0xff] }
 0x63f   : > { %5950 = vmatprep.subr.bf16.mxu1 %v15706_v31  ;;  %v2960_v31 = vld [vmem:[#allocation19 + $0xc20] sm:$0xff] }
 0x641   : > { %5787 = vmatpush1.bf16.msra.mxu0 %v15703_v36  ;;  %v15760_v36 = vcombine.high %v2956_v28, %v2960_v31 }
 0x642   : > { %5951 = vmatpush1.bf16.msra.mxu1 %v15705_v38  ;;  %5788 = vmatprep.subr.bf16.mxu0 %v15712_v40  ;;  %v15762_v38 = vcombine.high %v2957_v29, %v2961_v32  ;;  %v2289_v40 = vld [vmem:[#allocation18] sm:$0xf] }
 0x643   : > { %5952 = vmatprep.subr.bf16.mxu1 %v15714_v41  ;;  %v2294_v41 = vrot.slane %v2289_v40, %v19658_v60  ;;  %v2302_v42 = vrot.slane %v2289_v40, %v19686_v52  ;;  %v2298_v43 = vrot.slane %v2289_v40, %v19635_v55  ;;  %v2306_v44 = vrot.slane %v2289_v40, %v19661_v0  ;;  %v2993_v40 = vld [vmem:[#allocation19 + $0xd28] sm:$0xff] }
 0x645   : > { %5789 = vmatpush1.bf16.msra.mxu0 %v15711_v47 }
 0x646   : > { %5953 = vmatpush1.bf16.msra.mxu1 %v15713_v48  ;;  %5790 = vmatprep.subr.bf16.mxu0 %v15720_v50 }
 0x647   : > { %5954 = vmatprep.subr.bf16.mxu1 %v15722_v51 }
 0x649   : > { %5791 = vmatpush1.bf16.msra.mxu0 %v15719_v59 }
 0x64a   : > { %5955 = vmatpush1.bf16.msra.mxu1 %v15721_v56  ;;  %5792 = vmatprep.subr.bf16.mxu0 %v15728_v61 }
 0x64b   : > { %5956 = vmatprep.subr.bf16.mxu1 %v15730_v63 }
 0x64d   : > { %5793 = vmatpush1.bf16.msra.mxu0 %v15727_v5  ;;  %v2965_v5 = vld [vmem:[#allocation19 + $0xc48] sm:$0xff] }
 0x64e   : > { %5957 = vmatpush1.bf16.msra.mxu1 %v15729_v6  ;;  %5794 = vmatprep.subr.bf16.mxu0 %v15736_v7  ;;  %v2969_v6 = vld [vmem:[#allocation19 + $0xc68] sm:$0xff] }
 0x64f   : > { %5958 = vmatprep.subr.bf16.mxu1 %v15738_v8  ;;  %v15759_v8 = vcombine.low %v2956_v28, %v2960_v31  ;;  %v15769_v20 = vcombine.low %v2965_v5, %v2969_v6  ;;  %v2985_v28 = vld [vmem:[#allocation19 + $0xce8] sm:$0xff] }
 0x651   : > { %5795 = vmatpush1.bf16.msra.mxu0 %v15735_v14  ;;  %v15770_v14 = vcombine.high %v2965_v5, %v2969_v6 }
 0x652   : > { %5959 = vmatpush1.bf16.msra.mxu1 %v15737_v15  ;;  %5796 = vmatprep.subr.bf16.mxu0 %v15744_v16  ;;  %v2976_v15 = vld [vmem:[#allocation19 + $0xca0] sm:$0xff]  ;;  %v2973_v16 = vld [vmem:[#allocation19 + $0xc88] sm:$0xff] }
 0x653   : > { %5960 = vmatprep.subr.bf16.mxu1 %v15746_v17  ;;  %v2977_v17 = vld [vmem:[#allocation19 + $0xca8] sm:$0xff]  ;;  %v15776_v21 = vcombine.high %v2972_v12, %v2976_v15  ;;  %v15775_v31 = vcombine.low %v2972_v12, %v2976_v15  ;;  %v3016_v12 = vld [vmem:[#allocation19 + $0xde0] sm:$0xff] }
 0x654   : > { %v15777_v29 = vcombine.low %v2973_v16, %v2977_v17 }
 0x655   : > { %5797 = vmatpush1.bf16.msra.mxu0 %v15743_v22  ;;  %v15778_v22 = vcombine.high %v2973_v16, %v2977_v17 }
 0x656   : > { %5961 = vmatpush1.bf16.msra.mxu1 %v15745_v23  ;;  %5798 = vmatprep.subr.bf16.mxu0 %v15752_v24  ;;  %v2980_v23 = vld [vmem:[#allocation19 + $0xcc0] sm:$0xff] }
 0x657   : > { %5962 = vmatprep.subr.bf16.mxu1 %v15754_v25  ;;  %v2984_v24 = vld [vmem:[#allocation19 + $0xce0] sm:$0xff]  ;;  %v2981_v25 = vld [vmem:[#allocation19 + $0xcc8] sm:$0xff] }
 0x658   : > { %v15784_v32 = vcombine.high %v2980_v23, %v2984_v24 }
 0x659   : > { %5799 = vmatpush1.bf16.msra.mxu0 %v15751_v34  ;;  %v15786_v34 = vcombine.high %v2981_v25, %v2985_v28 }
 0x65a   : > { %5963 = vmatpush1.bf16.msra.mxu1 %v15753_v1  ;;  %5809 = vmatprep.subr.bf16.mxu0 %v15760_v36  ;;  %v2988_v1 = vld [vmem:[#allocation19 + $0xd00] sm:$0xff] }
 0x65b   : > { %5973 = vmatprep.subr.bf16.mxu1 %v15762_v38  ;;  %v2992_v36 = vld [vmem:[#allocation19 + $0xd20] sm:$0xff]  ;;  %v2989_v38 = vld [vmem:[#allocation19 + $0xd08] sm:$0xff] }
 0x66f   : > { %v2512_v46 = vpop.f32.mrb[20].mxu0  ;;  %v2553_v47 = vpop.f32.mrb[20].mxu1 }
 0x670   : > { %v2513_v48 = vadd.f32 %v2512_v46, %v2294_v41  ;;  %v19703_v50 = vadd.f32 %v2553_v47, %v2302_v42  ;;  %v2514_v51 = vpop.f32.mrb[21].mxu0  ;;  %v2555_v54 = vpop.f32.mrb[21].mxu1  ;;  %v15783_v41 = vcombine.low %v2980_v23, %v2984_v24  ;;  %v15785_v42 = vcombine.low %v2981_v25, %v2985_v28  ;;  %v2996_v46 = vld [vmem:[#allocation19 + $0xd40] sm:$0xff]  ;;  %v3025_v23 = vld [vmem:[#allocation19 + $0xe28] sm:$0xff] }
 0x671   : > { %v2515_v57 = vadd.f32 %v2514_v51, %v2298_v43  ;;  %v2556_v58 = vadd.f32 %v2555_v54, %v2306_v44  ;;  %v2516_v33 = vpop.f32.mrb[22].mxu0  ;;  %v2557_v59 = vpop.f32.mrb[22].mxu1  ;;  %v15792_v43 = vcombine.high %v2988_v1, %v2992_v36  ;;  %v15794_v44 = vcombine.high %v2989_v38, %v2993_v40  ;;  %v3000_v47 = vld [vmem:[#allocation19 + $0xd60] sm:$0xff]  ;;  %v3001_v51 = vld [vmem:[#allocation19 + $0xd68] sm:$0xff] }
 0x672   : > { %v19705_v56 = vmax.f32 %v2513_v48, 0.0  ;;  %v2517_v61 = vpop.f32.mrb[23].mxu0  ;;  %v2558_v63 = vpop.f32.mrb[23].mxu1  ;;  %v2997_v48 = vld [vmem:[#allocation19 + $0xd48] sm:$0xff]  ;;  %v15791_v54 = vcombine.low %v2988_v1, %v2992_v36  ;;  %v3004_v59 = vld [vmem:[#allocation19 + $0xd80] sm:$0xff]  ;;  %v15799_v62 = vcombine.low %v2996_v46, %v3000_v47 }
 0x673   : > { %v19707_v2 = vmax.f32 %v2515_v57, 0.0  ;;  %v19709_v26 = vmax.f32 %v2556_v58, 0.0  ;;  %v15793_v57 = vcombine.low %v2989_v38, %v2993_v40  ;;  %v15800_v58 = vcombine.high %v2996_v46, %v3000_v47  ;;  %v3008_v61 = vld [vmem:[#allocation19 + $0xda0] sm:$0xff]  ;;  %v3005_v63 = vld [vmem:[#allocation19 + $0xd88] sm:$0xff] }
 0x674   : > { %v19717_v11 = vpack.c.bf16 %v19705_v56, %v19705_v56  ;;  %v15802_v33 = vcombine.high %v2997_v48, %v3001_v51  ;;  %v15801_v5 = vcombine.low %v2997_v48, %v3001_v51  ;;  %v15808_v6 = vcombine.high %v3004_v59, %v3008_v61  ;;  %v3033_v1 = vld [vmem:[#allocation19 + $0xe68] sm:$0xff] }
 0x675   : > { %v19713_v7 = vpack.c.bf16 %v19707_v2, %v19707_v2  ;;  %v19723_v18 = vpack.c.bf16 %v19709_v26, %v19709_v26  ;;  %v15807_v15 = vcombine.low %v3004_v59, %v3008_v61  ;;  %v15809_v16 = vcombine.low %v3005_v63, %v3009_v3  ;;  %v3041_v46 = vld [vmem:[#allocation19 + $0xea8] sm:$0xff] }
 0x676   : > { %v3049_v59 = vld [vmem:[#allocation19 + $0xee8] sm:$0xff] }
 0x677   : > { %5800 = vmatprep.mubr.bf16.mxu0 %v19713_v7  ;;  %5964 = vmatprep.mubr.bf16.mxu1 %v19713_v7 }
 0x678   : > { %5801 = vmatmul.mubr.bf16.vlgmr.msra.gmra.mrb[24].mxu0 %v19717_v11  ;;  %5965 = vmatmul.mubr.bf16.vlgmr.msra.gmra.mrb[24].mxu1 %v19717_v11 }
 0x679   : > { %5810 = vmatpush1.bf16.msra.mxu0 %v15759_v8  ;;  %5974 = vmatpush1.bf16.msra.mxu1 %v15761_v9  ;;  %v15810_v8 = vcombine.high %v3005_v63, %v3009_v3  ;;  %v3012_v9 = vld [vmem:[#allocation19 + $0xdc0] sm:$0xff] }
 0x67a   : > { %5841 = vmatprep.mubr.bf16.mxu0 %v19723_v18  ;;  %6005 = vmatprep.mubr.bf16.mxu1 %v19723_v18  ;;  %v15816_v17 = vcombine.high %v3012_v9, %v3016_v12  ;;  %v15815_v24 = vcombine.low %v3012_v9, %v3016_v12  ;;  %v3057_v9 = vld [vmem:[#allocation19 + $0xf28] sm:$0xff] }
 0x67b   : > { %5811 = vmatprep.subr.bf16.mxu0 %v15768_v13  ;;  %5975 = vmatprep.subr.bf16.mxu1 %v15770_v14  ;;  %v3013_v13 = vld [vmem:[#allocation19 + $0xdc8] sm:$0xff] }
 0x67c   : > { %v3017_v14 = vld [vmem:[#allocation19 + $0xde8] sm:$0xff] }
 0x67d   : > { %5812 = vmatpush1.bf16.msra.mxu0 %v15767_v19  ;;  %5976 = vmatpush1.bf16.msra.mxu1 %v15769_v20  ;;  %v15818_v19 = vcombine.high %v3013_v13, %v3017_v14  ;;  %v3020_v20 = vld [vmem:[#allocation19 + $0xe00] sm:$0xff]  ;;  %v15817_v25 = vcombine.low %v3013_v13, %v3017_v14 }
 0x67e   : > { %5813 = vmatprep.subr.bf16.mxu0 %v15776_v21  ;;  %5977 = vmatprep.subr.bf16.mxu1 %v15778_v22  ;;  %v3024_v21 = vld [vmem:[#allocation19 + $0xe20] sm:$0xff]  ;;  %v3021_v22 = vld [vmem:[#allocation19 + $0xe08] sm:$0xff] }
 0x67f   : > { %v15824_v28 = vcombine.high %v3020_v20, %v3024_v21  ;;  %v15823_v36 = vcombine.low %v3020_v20, %v3024_v21  ;;  %v15825_v38 = vcombine.low %v3021_v22, %v3025_v23  ;;  %v3065_v20 = vld [vmem:[#allocation19 + $0xf68] sm:$0xff] }
 0x681   : > { %5814 = vmatpush1.bf16.msra.mxu0 %v15775_v31  ;;  %5978 = vmatpush1.bf16.msra.mxu1 %v15777_v29  ;;  %v15826_v31 = vcombine.high %v3021_v22, %v3025_v23  ;;  %v3028_v29 = vld [vmem:[#allocation19 + $0xe40] sm:$0xff] }
 0x682   : > { %5815 = vmatprep.subr.bf16.mxu0 %v15784_v32  ;;  %5979 = vmatprep.subr.bf16.mxu1 %v15786_v34  ;;  %v3032_v32 = vld [vmem:[#allocation19 + $0xe60] sm:$0xff]  ;;  %v3029_v34 = vld [vmem:[#allocation19 + $0xe48] sm:$0xff] }
 0x683   : > { %v15832_v40 = vcombine.high %v3028_v29, %v3032_v32  ;;  %v15831_v47 = vcombine.low %v3028_v29, %v3032_v32  ;;  %v15833_v48 = vcombine.low %v3029_v34, %v3033_v1  ;;  %v3073_v29 = vld [vmem:[#allocation19 + $0xfa8] sm:$0xff] }
 0x685   : > { %5816 = vmatpush1.bf16.msra.mxu0 %v15783_v41  ;;  %5980 = vmatpush1.bf16.msra.mxu1 %v15785_v42  ;;  %v15834_v41 = vcombine.high %v3029_v34, %v3033_v1  ;;  %v3036_v42 = vld [vmem:[#allocation19 + $0xe80] sm:$0xff] }
 0x686   : > { %5817 = vmatprep.subr.bf16.mxu0 %v15792_v43  ;;  %5981 = vmatprep.subr.bf16.mxu1 %v15794_v44  ;;  %v3040_v43 = vld [vmem:[#allocation19 + $0xea0] sm:$0xff]  ;;  %v3037_v44 = vld [vmem:[#allocation19 + $0xe88] sm:$0xff] }
 0x687   : > { %v15840_v51 = vcombine.high %v3036_v42, %v3040_v43  ;;  %v15839_v61 = vcombine.low %v3036_v42, %v3040_v43  ;;  %v15841_v63 = vcombine.low %v3037_v44, %v3041_v46  ;;  %v3081_v42 = vld [vmem:[#allocation19 + $0xfe8] sm:$0xff] }
 0x689   : > { %5818 = vmatpush1.bf16.msra.mxu0 %v15791_v54  ;;  %5982 = vmatpush1.bf16.msra.mxu1 %v15793_v57  ;;  %v15842_v54 = vcombine.high %v3037_v44, %v3041_v46  ;;  %v3044_v57 = vld [vmem:[#allocation19 + $0xec0] sm:$0xff] }
 0x68a   : > { %5819 = vmatprep.subr.bf16.mxu0 %v15800_v58  ;;  %5983 = vmatprep.subr.bf16.mxu1 %v15802_v33  ;;  %v3048_v58 = vld [vmem:[#allocation19 + $0xee0] sm:$0xff]  ;;  %v3045_v33 = vld [vmem:[#allocation19 + $0xec8] sm:$0xff] }
 0x68b   : > { %v15848_v3 = vcombine.high %v3044_v57, %v3048_v58  ;;  %v15847_v12 = vcombine.low %v3044_v57, %v3048_v58  ;;  %v15849_v13 = vcombine.low %v3045_v33, %v3049_v59  ;;  %v2579_v57 = vld [vmem:[#allocation19 + $0x38] sm:$0xff] }
 0x68d   : > { %5820 = vmatpush1.bf16.msra.mxu0 %v15799_v62  ;;  %5984 = vmatpush1.bf16.msra.mxu1 %v15801_v5  ;;  %v15850_v62 = vcombine.high %v3045_v33, %v3049_v59  ;;  %v3052_v5 = vld [vmem:[#allocation19 + $0xf00] sm:$0xff]  ;;  %v19730_v59 = vmax.f32 %v19703_v50, 0.0 }
 0x68e   : > { %5821 = vmatprep.subr.bf16.mxu0 %v15808_v6  ;;  %5985 = vmatprep.subr.bf16.mxu1 %v15810_v8  ;;  %v3056_v6 = vld [vmem:[#allocation19 + $0xf20] sm:$0xff]  ;;  %v3053_v8 = vld [vmem:[#allocation19 + $0xf08] sm:$0xff] }
 0x68f   : > { %v15856_v14 = vcombine.high %v3052_v5, %v3056_v6  ;;  %v15855_v21 = vcombine.low %v3052_v5, %v3056_v6  ;;  %v15857_v22 = vcombine.low %v3053_v8, %v3057_v9  ;;  %v2583_v5 = vld [vmem:[#allocation19 + $0x58] sm:$0xff] }
 0x690   : > { %v2587_v6 = vld [vmem:[#allocation19 + $0x78] sm:$0xff] }
 0x691   : > { %5822 = vmatpush1.bf16.msra.mxu0 %v15807_v15  ;;  %5986 = vmatpush1.bf16.msra.mxu1 %v15809_v16  ;;  %v15858_v15 = vcombine.high %v3053_v8, %v3057_v9  ;;  %v3060_v16 = vld [vmem:[#allocation19 + $0xf40] sm:$0xff]  ;;  %v19734_v9 = vpack.c.bf16 %v19730_v59, %v19730_v59 }
 0x692   : > { %5823 = vmatprep.subr.bf16.mxu0 %v15816_v17  ;;  %5987 = vmatprep.subr.bf16.mxu1 %v15818_v19  ;;  %v3064_v17 = vld [vmem:[#allocation19 + $0xf60] sm:$0xff]  ;;  %v3061_v19 = vld [vmem:[#allocation19 + $0xf48] sm:$0xff] }
 0x693   : > { %v15864_v23 = vcombine.high %v3060_v16, %v3064_v17  ;;  %v15863_v32 = vcombine.low %v3060_v16, %v3064_v17  ;;  %v15865_v34 = vcombine.low %v3061_v19, %v3065_v20  ;;  %v2591_v16 = vld [vmem:[#allocation19 + $0x98] sm:$0xff] }
 0x694   : > { %v2595_v17 = vld [vmem:[#allocation19 + $0xb8] sm:$0xff] }
 0x695   : > { %5824 = vmatpush1.bf16.msra.mxu0 %v15815_v24  ;;  %5988 = vmatpush1.bf16.msra.mxu1 %v15817_v25  ;;  %v15866_v24 = vcombine.high %v3061_v19, %v3065_v20  ;;  %v3068_v25 = vld [vmem:[#allocation19 + $0xf80] sm:$0xff]  ;;  %v15389_v20 = vcombine.low %v2583_v5, %v2587_v6 }
 0x696   : > { %5825 = vmatprep.subr.bf16.mxu0 %v15824_v28  ;;  %5989 = vmatprep.subr.bf16.mxu1 %v15826_v31  ;;  %v3072_v28 = vld [vmem:[#allocation19 + $0xfa0] sm:$0xff]  ;;  %v3069_v31 = vld [vmem:[#allocation19 + $0xf88] sm:$0xff] }
 0x697   : > { %v15872_v1 = vcombine.high %v3068_v25, %v3072_v28  ;;  %v15871_v43 = vcombine.low %v3068_v25, %v3072_v28  ;;  %v15873_v44 = vcombine.low %v3069_v31, %v3073_v29  ;;  %v2599_v25 = vld [vmem:[#allocation19 + $0xd8] sm:$0xff] }
 0x698   : > { %v2603_v28 = vld [vmem:[#allocation19 + $0xf8] sm:$0xff] }
 0x699   : > { %5826 = vmatpush1.bf16.msra.mxu0 %v15823_v36  ;;  %5990 = vmatpush1.bf16.msra.mxu1 %v15825_v38  ;;  %v15874_v36 = vcombine.high %v3069_v31, %v3073_v29  ;;  %v3076_v38 = vld [vmem:[#allocation19 + $0xfc0] sm:$0xff]  ;;  %v15397_v29 = vcombine.low %v2591_v16, %v2595_v17 }
 0x69a   : > { %5827 = vmatprep.subr.bf16.mxu0 %v15832_v40  ;;  %5991 = vmatprep.subr.bf16.mxu1 %v15834_v41  ;;  %v3080_v40 = vld [vmem:[#allocation19 + $0xfe0] sm:$0xff]  ;;  %v3077_v41 = vld [vmem:[#allocation19 + $0xfc8] sm:$0xff] }
 0x69b   : > { %v15880_v46 = vcombine.high %v3076_v38, %v3080_v40  ;;  %v15879_v58 = vcombine.low %v3076_v38, %v3080_v40  ;;  %v15881_v33 = vcombine.low %v3077_v41, %v3081_v42  ;;  %v2611_v38 = vld [vmem:[#allocation19 + $0x138] sm:$0xff] }
 0x69d   : > { %5828 = vmatpush1.bf16.msra.mxu0 %v15831_v47  ;;  %5992 = vmatpush1.bf16.msra.mxu1 %v15833_v48  ;;  %v15882_v47 = vcombine.high %v3077_v41, %v3081_v42  ;;  %v2574_v48 = vld [vmem:[#allocation19 + $0x10] sm:$0xff]  ;;  %v15405_v41 = vcombine.low %v2599_v25, %v2603_v28 }
 0x69e   : > { %5829 = vmatprep.subr.bf16.mxu0 %v15840_v51  ;;  %5993 = vmatprep.subr.bf16.mxu1 %v15842_v54  ;;  %v2578_v51 = vld [vmem:[#allocation19 + $0x30] sm:$0xff]  ;;  %v2575_v54 = vld [vmem:[#allocation19 + $0x18] sm:$0xff] }
 0x69f   : > { %v15379_v8 = vcombine.low %v2574_v48, %v2578_v51 }
 0x6a1   : > { %5830 = vmatpush1.bf16.msra.mxu0 %v15839_v61  ;;  %5994 = vmatpush1.bf16.msra.mxu1 %v15841_v63  ;;  %v15380_v61 = vcombine.high %v2574_v48, %v2578_v51  ;;  %v15382_v63 = vcombine.high %v2575_v54, %v2579_v57  ;;  %v2619_v48 = vld [vmem:[#allocation19 + $0x178] sm:$0xff] }
 0x6a2   : > { %5831 = vmatprep.subr.bf16.mxu0 %v15848_v3  ;;  %5995 = vmatprep.subr.bf16.mxu1 %v15850_v62  ;;  %v2582_v3 = vld [vmem:[#allocation19 + $0x50] sm:$0xff] }
 0x6a3   : > { %v2586_v62 = vld [vmem:[#allocation19 + $0x70] sm:$0xff] }
 0x6a4   : > { %v15388_v50 = vcombine.high %v2582_v3, %v2586_v62  ;;  %v15387_v19 = vcombine.low %v2582_v3, %v2586_v62  ;;  %v2627_v3 = vld [vmem:[#allocation19 + $0x1b8] sm:$0xff] }
 0x6a5   : > { %5832 = vmatpush1.bf16.msra.mxu0 %v15847_v12  ;;  %5996 = vmatpush1.bf16.msra.mxu1 %v15849_v13  ;;  %v15381_v12 = vcombine.low %v2575_v54, %v2579_v57  ;;  %v15390_v13 = vcombine.high %v2583_v5, %v2587_v6 }
 0x6a6   : > { %5833 = vmatprep.subr.bf16.mxu0 %v15856_v14  ;;  %5997 = vmatprep.subr.bf16.mxu1 %v15858_v15  ;;  %v2590_v14 = vld [vmem:[#allocation19 + $0x90] sm:$0xff] }
 0x6a7   : > { %v2594_v15 = vld [vmem:[#allocation19 + $0xb0] sm:$0xff] }
 0x6a8   : > { %v15395_v31 = vcombine.low %v2590_v14, %v2594_v15 }
 0x6a9   : > { %5834 = vmatpush1.bf16.msra.mxu0 %v15855_v21  ;;  %5998 = vmatpush1.bf16.msra.mxu1 %v15857_v22  ;;  %v15396_v21 = vcombine.high %v2590_v14, %v2594_v15  ;;  %v15398_v22 = vcombine.high %v2591_v16, %v2595_v17  ;;  %v2635_v14 = vld [vmem:[#allocation19 + $0x1f8] sm:$0xff] }
 0x6aa   : > { %5835 = vmatprep.subr.bf16.mxu0 %v15864_v23  ;;  %5999 = vmatprep.subr.bf16.mxu1 %v15866_v24  ;;  %v2598_v23 = vld [vmem:[#allocation19 + $0xd0] sm:$0xff] }
 0x6ab   : > { %v2602_v24 = vld [vmem:[#allocation19 + $0xf0] sm:$0xff] }
 0x6ac   : > { %v15403_v40 = vcombine.low %v2598_v23, %v2602_v24 }
 0x6ad   : > { %5836 = vmatpush1.bf16.msra.mxu0 %v15863_v32  ;;  %6000 = vmatpush1.bf16.msra.mxu1 %v15865_v34  ;;  %v15404_v32 = vcombine.high %v2598_v23, %v2602_v24  ;;  %v15406_v34 = vcombine.high %v2599_v25, %v2603_v28  ;;  %v2643_v23 = vld [vmem:[#allocation19 + $0x238] sm:$0xff] }
 0x6ae   : > { %5837 = vmatprep.subr.bf16.mxu0 %v15872_v1  ;;  %6001 = vmatprep.subr.bf16.mxu1 %v15874_v36  ;;  %v2606_v1 = vld [vmem:[#allocation19 + $0x110] sm:$0xff] }
 0x6af   : > { %v2610_v36 = vld [vmem:[#allocation19 + $0x130] sm:$0xff] }
 0x6b0   : > { %v15412_v42 = vcombine.high %v2606_v1, %v2610_v36  ;;  %v15411_v51 = vcombine.low %v2606_v1, %v2610_v36  ;;  %v2651_v1 = vld [vmem:[#allocation19 + $0x278] sm:$0xff] }
 0x6b1   : > { %5838 = vmatpush1.bf16.msra.mxu0 %v15871_v43  ;;  %6002 = vmatpush1.bf16.msra.mxu1 %v15873_v44  ;;  %v2614_v44 = vld [vmem:[#allocation19 + $0x150] sm:$0xff] }
 0x6b2   : > { %5839 = vmatprep.subr.bf16.mxu0 %v15880_v46  ;;  %6003 = vmatprep.subr.bf16.mxu1 %v15882_v47  ;;  %v2618_v46 = vld [vmem:[#allocation19 + $0x170] sm:$0xff]  ;;  %v2615_v47 = vld [vmem:[#allocation19 + $0x158] sm:$0xff] }
 0x6b3   : > { %v15420_v57 = vcombine.high %v2614_v44, %v2618_v46  ;;  %v15419_v62 = vcombine.low %v2614_v44, %v2618_v46  ;;  %v15421_v5 = vcombine.low %v2615_v47, %v2619_v48  ;;  %v2659_v44 = vld [vmem:[#allocation19 + $0x2b8] sm:$0xff] }
 0x6b5   : > { %5840 = vmatpush1.bf16.msra.mxu0 %v15879_v58  ;;  %6004 = vmatpush1.bf16.msra.mxu1 %v15881_v33  ;;  %v15422_v58 = vcombine.high %v2615_v47, %v2619_v48  ;;  %v2622_v33 = vld [vmem:[#allocation19 + $0x190] sm:$0xff] }
 0x6b6   : > { %6014 = vmatprep.subr.bf16.mxu0 %v15380_v61  ;;  %6178 = vmatprep.subr.bf16.mxu1 %v15382_v63  ;;  %v2626_v61 = vld [vmem:[#allocation19 + $0x1b0] sm:$0xff]  ;;  %v2623_v63 = vld [vmem:[#allocation19 + $0x198] sm:$0xff] }
 0x6b7   : > { %v15428_v6 = vcombine.high %v2622_v33, %v2626_v61  ;;  %v15427_v15 = vcombine.low %v2622_v33, %v2626_v61  ;;  %v15429_v16 = vcombine.low %v2623_v63, %v2627_v3  ;;  %v2667_v33 = vld [vmem:[#allocation19 + $0x2f8] sm:$0xff] }
 0x6b8   : > { %5842 = vmatmul.mubr.bf16.vlgmr.msra.gmra.mrb[24].mxu0 %v19734_v9  ;;  %6006 = vmatmul.mubr.bf16.vlgmr.msra.gmra.mrb[24].mxu1 %v19734_v9 }
 0x6b9   : > { %6015 = vmatpush1.bf16.msra.mxu0 %v15379_v8  ;;  %6046 = vmatprep.mubr.bf16.mxu0 %v19647_v53  ;;  %v15430_v8 = vcombine.high %v2623_v63, %v2627_v3 }
 0x6ba   : > { %6179 = vmatpush1.bf16.msra.mxu1 %v15381_v12  ;;  %6210 = vmatprep.mubr.bf16.mxu1 %v19647_v53  ;;  %v2607_v53 = vld [vmem:[#allocation19 + $0x118] sm:$0xff]  ;;  %v2630_v12 = vld [vmem:[#allocation19 + $0x1d0] sm:$0xff] }
 0x6bb   : > { %6016 = vmatprep.subr.bf16.mxu0 %v15388_v50  ;;  %6180 = vmatprep.subr.bf16.mxu1 %v15390_v13  ;;  %v15414_v43 = vcombine.high %v2607_v53, %v2611_v38  ;;  %v15413_v54 = vcombine.low %v2607_v53, %v2611_v38  ;;  %v2634_v50 = vld [vmem:[#allocation19 + $0x1f0] sm:$0xff]  ;;  %v2631_v13 = vld [vmem:[#allocation19 + $0x1d8] sm:$0xff] }
 0x6bc   : > { %v15436_v17 = vcombine.high %v2630_v12, %v2634_v50  ;;  %v15435_v24 = vcombine.low %v2630_v12, %v2634_v50  ;;  %v15437_v25 = vcombine.low %v2631_v13, %v2635_v14  ;;  %v2675_v12 = vld [vmem:[#allocation19 + $0x338] sm:$0xff] }
 0x6bd   : > { %6017 = vmatpush1.bf16.msra.mxu0 %v15387_v19  ;;  %v15438_v19 = vcombine.high %v2631_v13, %v2635_v14 }
 0x6be   : > { %6181 = vmatpush1.bf16.msra.mxu1 %v15389_v20  ;;  %6018 = vmatprep.subr.bf16.mxu0 %v15396_v21  ;;  %v2638_v20 = vld [vmem:[#allocation19 + $0x210] sm:$0xff] }
 0x6bf   : > { %6182 = vmatprep.subr.bf16.mxu1 %v15398_v22  ;;  %v2642_v21 = vld [vmem:[#allocation19 + $0x230] sm:$0xff]  ;;  %v2639_v22 = vld [vmem:[#allocation19 + $0x218] sm:$0xff] }
 0x6c0   : > { %v15444_v28 = vcombine.high %v2638_v20, %v2642_v21  ;;  %v15443_v36 = vcombine.low %v2638_v20, %v2642_v21  ;;  %v15445_v53 = vcombine.low %v2639_v22, %v2643_v23  ;;  %v2683_v20 = vld [vmem:[#allocation19 + $0x378] sm:$0xff] }
 0x6c1   : > { %6019 = vmatpush1.bf16.msra.mxu0 %v15395_v31  ;;  %v15446_v31 = vcombine.high %v2639_v22, %v2643_v23 }
 0x6c2   : > { %6183 = vmatpush1.bf16.msra.mxu1 %v15397_v29  ;;  %6020 = vmatprep.subr.bf16.mxu0 %v15404_v32  ;;  %v2646_v29 = vld [vmem:[#allocation19 + $0x250] sm:$0xff] }
 0x6c3   : > { %6184 = vmatprep.subr.bf16.mxu1 %v15406_v34  ;;  %v2650_v32 = vld [vmem:[#allocation19 + $0x270] sm:$0xff]  ;;  %v2647_v34 = vld [vmem:[#allocation19 + $0x258] sm:$0xff] }
 0x6c4   : > { %v15452_v38 = vcombine.high %v2646_v29, %v2650_v32  ;;  %v15451_v46 = vcombine.low %v2646_v29, %v2650_v32  ;;  %v15453_v47 = vcombine.low %v2647_v34, %v2651_v1  ;;  %v2691_v29 = vld [vmem:[#allocation19 + $0x3b8] sm:$0xff] }
 0x6c5   : > { %6021 = vmatpush1.bf16.msra.mxu0 %v15403_v40  ;;  %v15454_v40 = vcombine.high %v2647_v34, %v2651_v1 }
 0x6c6   : > { %6185 = vmatpush1.bf16.msra.mxu1 %v15405_v41  ;;  %6022 = vmatprep.subr.bf16.mxu0 %v15412_v42  ;;  %v2654_v41 = vld [vmem:[#allocation19 + $0x290] sm:$0xff] }
 0x6c7   : > { %6186 = vmatprep.subr.bf16.mxu1 %v15414_v43  ;;  %v2658_v42 = vld [vmem:[#allocation19 + $0x2b0] sm:$0xff]  ;;  %v2655_v43 = vld [vmem:[#allocation19 + $0x298] sm:$0xff] }
 0x6c8   : > { %v15460_v48 = vcombine.high %v2654_v41, %v2658_v42  ;;  %v15459_v61 = vcombine.low %v2654_v41, %v2658_v42  ;;  %v15461_v63 = vcombine.low %v2655_v43, %v2659_v44  ;;  %v2699_v41 = vld [vmem:[#allocation19 + $0x3f8] sm:$0xff] }
 0x6c9   : > { %6023 = vmatpush1.bf16.msra.mxu0 %v15411_v51  ;;  %v15462_v51 = vcombine.high %v2655_v43, %v2659_v44 }
 0x6ca   : > { %6187 = vmatpush1.bf16.msra.mxu1 %v15413_v54  ;;  %6024 = vmatprep.subr.bf16.mxu0 %v15420_v57  ;;  %v2662_v54 = vld [vmem:[#allocation19 + $0x2d0] sm:$0xff] }
 0x6cb   : > { %6188 = vmatprep.subr.bf16.mxu1 %v15422_v58  ;;  %v2666_v57 = vld [vmem:[#allocation19 + $0x2f0] sm:$0xff]  ;;  %v2663_v58 = vld [vmem:[#allocation19 + $0x2d8] sm:$0xff] }
 0x6cc   : > { %v15468_v3 = vcombine.high %v2662_v54, %v2666_v57  ;;  %v15467_v50 = vcombine.low %v2662_v54, %v2666_v57  ;;  %v15469_v13 = vcombine.low %v2663_v58, %v2667_v33  ;;  %v2707_v54 = vld [vmem:[#allocation19 + $0x438] sm:$0xff] }
 0x6cd   : > { %6025 = vmatpush1.bf16.msra.mxu0 %v15419_v62  ;;  %v15470_v62 = vcombine.high %v2663_v58, %v2667_v33 }
 0x6ce   : > { %6189 = vmatpush1.bf16.msra.mxu1 %v15421_v5  ;;  %6026 = vmatprep.subr.bf16.mxu0 %v15428_v6  ;;  %v2670_v5 = vld [vmem:[#allocation19 + $0x310] sm:$0xff] }
 0x6cf   : > { %6190 = vmatprep.subr.bf16.mxu1 %v15430_v8  ;;  %v2674_v6 = vld [vmem:[#allocation19 + $0x330] sm:$0xff]  ;;  %v2671_v8 = vld [vmem:[#allocation19 + $0x318] sm:$0xff] }
 0x6d0   : > { %v15476_v14 = vcombine.high %v2670_v5, %v2674_v6  ;;  %v15475_v21 = vcombine.low %v2670_v5, %v2674_v6  ;;  %v15477_v22 = vcombine.low %v2671_v8, %v2675_v12  ;;  %v2711_v5 = vld [vmem:[#allocation19 + $0x458] sm:$0xff] }
 0x6d1   : > { %6027 = vmatpush1.bf16.msra.mxu0 %v15427_v15  ;;  %v15478_v15 = vcombine.high %v2671_v8, %v2675_v12  ;;  %v2715_v6 = vld [vmem:[#allocation19 + $0x478] sm:$0xff] }
 0x6d2   : > { %6191 = vmatpush1.bf16.msra.mxu1 %v15429_v16  ;;  %6028 = vmatprep.subr.bf16.mxu0 %v15436_v17  ;;  %v2678_v16 = vld [vmem:[#allocation19 + $0x350] sm:$0xff] }
 0x6d3   : > { %6192 = vmatprep.subr.bf16.mxu1 %v15438_v19  ;;  %v2682_v17 = vld [vmem:[#allocation19 + $0x370] sm:$0xff]  ;;  %v2679_v19 = vld [vmem:[#allocation19 + $0x358] sm:$0xff] }
 0x6d4   : > { %v15484_v23 = vcombine.high %v2678_v16, %v2682_v17  ;;  %v15483_v32 = vcombine.low %v2678_v16, %v2682_v17  ;;  %v15485_v34 = vcombine.low %v2679_v19, %v2683_v20  ;;  %v2723_v16 = vld [vmem:[#allocation19 + $0x4b8] sm:$0xff] }
 0x6d5   : > { %6029 = vmatpush1.bf16.msra.mxu0 %v15435_v24  ;;  %v15486_v24 = vcombine.high %v2679_v19, %v2683_v20  ;;  %v15517_v19 = vcombine.low %v2711_v5, %v2715_v6 }
 0x6d6   : > { %6193 = vmatpush1.bf16.msra.mxu1 %v15437_v25  ;;  %6030 = vmatprep.subr.bf16.mxu0 %v15444_v28  ;;  %v2686_v25 = vld [vmem:[#allocation19 + $0x390] sm:$0xff] }
 0x6d7   : > { %6194 = vmatprep.subr.bf16.mxu1 %v15446_v31  ;;  %v2690_v28 = vld [vmem:[#allocation19 + $0x3b0] sm:$0xff]  ;;  %v2687_v31 = vld [vmem:[#allocation19 + $0x398] sm:$0xff] }
 0x6d8   : > { %v15492_v1 = vcombine.high %v2686_v25, %v2690_v28  ;;  %v15491_v42 = vcombine.low %v2686_v25, %v2690_v28  ;;  %v15493_v43 = vcombine.low %v2687_v31, %v2691_v29  ;;  %v2731_v25 = vld [vmem:[#allocation19 + $0x4f8] sm:$0xff] }
 0x6d9   : > { %6031 = vmatpush1.bf16.msra.mxu0 %v15443_v36  ;;  %v15494_v36 = vcombine.high %v2687_v31, %v2691_v29 }
 0x6da   : > { %6195 = vmatpush1.bf16.msra.mxu1 %v15445_v53  ;;  %6032 = vmatprep.subr.bf16.mxu0 %v15452_v38  ;;  %v2694_v53 = vld [vmem:[#allocation19 + $0x3d0] sm:$0xff] }
 0x6db   : > { %6196 = vmatprep.subr.bf16.mxu1 %v15454_v40  ;;  %v2698_v38 = vld [vmem:[#allocation19 + $0x3f0] sm:$0xff]  ;;  %v2695_v40 = vld [vmem:[#allocation19 + $0x3d8] sm:$0xff] }
 0x6dc   : > { %v15500_v44 = vcombine.high %v2694_v53, %v2698_v38  ;;  %v15499_v57 = vcombine.low %v2694_v53, %v2698_v38  ;;  %v15501_v58 = vcombine.low %v2695_v40, %v2699_v41 }
 0x6dd   : > { %6033 = vmatpush1.bf16.msra.mxu0 %v15451_v46  ;;  %v15502_v46 = vcombine.high %v2695_v40, %v2699_v41  ;;  %v2742_v41 = vld [vmem:[#allocation19 + $0x550] sm:$0xff] }
 0x6de   : > { %6197 = vmatpush1.bf16.msra.mxu1 %v15453_v47  ;;  %6034 = vmatprep.subr.bf16.mxu0 %v15460_v48  ;;  %v2702_v47 = vld [vmem:[#allocation19 + $0x410] sm:$0xff] }
 0x6df   : > { %6198 = vmatprep.subr.bf16.mxu1 %v15462_v51  ;;  %v2706_v48 = vld [vmem:[#allocation19 + $0x430] sm:$0xff]  ;;  %v2703_v51 = vld [vmem:[#allocation19 + $0x418] sm:$0xff] }
 0x6e0   : > { %v15508_v33 = vcombine.high %v2702_v47, %v2706_v48  ;;  %v15509_v8 = vcombine.low %v2703_v51, %v2707_v54 }
 0x6e1   : > { %6035 = vmatpush1.bf16.msra.mxu0 %v15459_v61  ;;  %v15510_v61 = vcombine.high %v2703_v51, %v2707_v54  ;;  %v2750_v54 = vld [vmem:[#allocation19 + $0x590] sm:$0xff] }
 0x6e2   : > { %6199 = vmatpush1.bf16.msra.mxu1 %v15461_v63  ;;  %6036 = vmatprep.subr.bf16.mxu0 %v15468_v3  ;;  %v2710_v63 = vld [vmem:[#allocation19 + $0x450] sm:$0xff] }
 0x6e3   : > { %6200 = vmatprep.subr.bf16.mxu1 %v15470_v62  ;;  %v2714_v3 = vld [vmem:[#allocation19 + $0x470] sm:$0xff]  ;;  %v15507_v62 = vcombine.low %v2702_v47, %v2706_v48 }
 0x6e4   : > { %v15516_v12 = vcombine.high %v2710_v63, %v2714_v3  ;;  %v15515_v17 = vcombine.low %v2710_v63, %v2714_v3 }
 0x6e5   : > { %6037 = vmatpush1.bf16.msra.mxu0 %v15467_v50  ;;  %v2718_v50 = vld [vmem:[#allocation19 + $0x490] sm:$0xff] }
 0x6e6   : > { %6201 = vmatpush1.bf16.msra.mxu1 %v15469_v13  ;;  %6038 = vmatprep.subr.bf16.mxu0 %v15476_v14  ;;  %v2722_v13 = vld [vmem:[#allocation19 + $0x4b0] sm:$0xff]  ;;  %v15518_v14 = vcombine.high %v2711_v5, %v2715_v6 }
 0x6e7   : > { %6202 = vmatprep.subr.bf16.mxu1 %v15478_v15  ;;  %v2719_v15 = vld [vmem:[#allocation19 + $0x498] sm:$0xff]  ;;  %v15524_v20 = vcombine.high %v2718_v50, %v2722_v13  ;;  %v15523_v28 = vcombine.low %v2718_v50, %v2722_v13  ;;  %v2758_v5 = vld [vmem:[#allocation19 + $0x5d0] sm:$0xff] }
 0x6e8   : > { %v2762_v6 = vld [vmem:[#allocation19 + $0x5f0] sm:$0xff] }
 0x6e9   : > { %6039 = vmatpush1.bf16.msra.mxu0 %v15475_v21  ;;  %v15526_v21 = vcombine.high %v2719_v15, %v2723_v16 }
 0x6ea   : > { %6203 = vmatpush1.bf16.msra.mxu1 %v15477_v22  ;;  %6040 = vmatprep.subr.bf16.mxu0 %v15484_v23  ;;  %v2726_v22 = vld [vmem:[#allocation19 + $0x4d0] sm:$0xff] }
 0x6eb   : > { %6204 = vmatprep.subr.bf16.mxu1 %v15486_v24  ;;  %v2730_v23 = vld [vmem:[#allocation19 + $0x4f0] sm:$0xff]  ;;  %v2727_v24 = vld [vmem:[#allocation19 + $0x4d8] sm:$0xff] }
 0x6ec   : > { %v15532_v31 = vcombine.high %v2726_v22, %v2730_v23  ;;  %v15534_v29 = vcombine.high %v2727_v24, %v2731_v25  ;;  %v15533_v53 = vcombine.low %v2727_v24, %v2731_v25  ;;  %v2774_v25 = vld [vmem:[#allocation19 + $0x650] sm:$0xff] }
 0x6ed   : > { %6041 = vmatpush1.bf16.msra.mxu0 %v15483_v32  ;;  %v2734_v32 = vld [vmem:[#allocation19 + $0x510] sm:$0xff] }
 0x6ee   : > { %6205 = vmatpush1.bf16.msra.mxu1 %v15485_v34  ;;  %6042 = vmatprep.subr.bf16.mxu0 %v15492_v1  ;;  %v2738_v34 = vld [vmem:[#allocation19 + $0x530] sm:$0xff]  ;;  %v2735_v1 = vld [vmem:[#allocation19 + $0x518] sm:$0xff] }
 0x6ef   : > { %6206 = vmatprep.subr.bf16.mxu1 %v15494_v36  ;;  %v2739_v36 = vld [vmem:[#allocation19 + $0x538] sm:$0xff]  ;;  %v15540_v38 = vcombine.high %v2734_v32, %v2738_v34 }
 0x6f0   : > { %v15542_v40 = vcombine.high %v2735_v1, %v2739_v36  ;;  %v15541_v47 = vcombine.low %v2735_v1, %v2739_v36  ;;  %v2782_v36 = vld [vmem:[#allocation19 + $0x690] sm:$0xff] }
 0x6f1   : > { %6043 = vmatpush1.bf16.msra.mxu0 %v15491_v42  ;;  %v2746_v42 = vld [vmem:[#allocation19 + $0x570] sm:$0xff] }
 0x6f2   : > { %6207 = vmatpush1.bf16.msra.mxu1 %v15493_v43  ;;  %6044 = vmatprep.subr.bf16.mxu0 %v15500_v44  ;;  %v2743_v43 = vld [vmem:[#allocation19 + $0x558] sm:$0xff]  ;;  %v15548_v48 = vcombine.high %v2742_v41, %v2746_v42 }
 0x6f3   : > { %6208 = vmatprep.subr.bf16.mxu1 %v15502_v46  ;;  %v2747_v44 = vld [vmem:[#allocation19 + $0x578] sm:$0xff]  ;;  %v15539_v46 = vcombine.low %v2734_v32, %v2738_v34 }
 0x6f4   : > { %v15550_v51 = vcombine.high %v2743_v43, %v2747_v44  ;;  %v15549_v63 = vcombine.low %v2743_v43, %v2747_v44  ;;  %v2790_v44 = vld [vmem:[#allocation19 + $0x6d0] sm:$0xff] }
 0x6f5   : > { %6045 = vmatpush1.bf16.msra.mxu0 %v15499_v57  ;;  %v2754_v57 = vld [vmem:[#allocation19 + $0x5b0] sm:$0xff] }
 0x6f6   : > { %6209 = vmatpush1.bf16.msra.mxu1 %v15501_v58  ;;  %6055 = vmatprep.subr.bf16.mxu0 %v15508_v33  ;;  %v2751_v58 = vld [vmem:[#allocation19 + $0x598] sm:$0xff]  ;;  %v15556_v3 = vcombine.high %v2750_v54, %v2754_v57  ;;  %v15555_v50 = vcombine.low %v2750_v54, %v2754_v57 }
 0x6f7   : > { %6219 = vmatprep.subr.bf16.mxu1 %v15510_v61  ;;  %v2755_v33 = vld [vmem:[#allocation19 + $0x5b8] sm:$0xff]  ;;  %v15547_v61 = vcombine.low %v2742_v41, %v2746_v42 }
 0x6f8   : > { %6047 = vmatmul.mubr.bf16.vlgmr.msra.gmra.mrb[28].mxu0 %v19675_v35  ;;  %v15557_v13 = vcombine.low %v2751_v58, %v2755_v33 }
 0x6f9   : > { %6211 = vmatmul.mubr.bf16.vlgmr.msra.gmra.mrb[28].mxu1 %v19675_v35  ;;  %6056 = vmatpush1.bf16.msra.mxu0 %v15507_v62  ;;  %v15525_v35 = vcombine.low %v2719_v15, %v2723_v16  ;;  %v15558_v62 = vcombine.high %v2751_v58, %v2755_v33  ;;  %v2766_v16 = vld [vmem:[#allocation19 + $0x610] sm:$0xff] }
 0x6fa   : > { %6087 = vmatprep.mubr.bf16.mxu0 %v19679_v37  ;;  %6220 = vmatpush1.bf16.msra.mxu1 %v15509_v8  ;;  %v2759_v8 = vld [vmem:[#allocation19 + $0x5d8] sm:$0xff]  ;;  %v2798_v33 = vld [vmem:[#allocation19 + $0x710] sm:$0xff] }
 0x6fb   : > { %6251 = vmatprep.mubr.bf16.mxu1 %v19679_v37  ;;  %6057 = vmatprep.subr.bf16.mxu0 %v15516_v12  ;;  %v15531_v37 = vcombine.low %v2726_v22, %v2730_v23  ;;  %v2763_v12 = vld [vmem:[#allocation19 + $0x5f8] sm:$0xff] }
 0x6fc   : > { %6221 = vmatprep.subr.bf16.mxu1 %v15518_v14  ;;  %v15564_v14 = vcombine.high %v2758_v5, %v2762_v6  ;;  %v15566_v15 = vcombine.high %v2759_v8, %v2763_v12  ;;  %v15565_v22 = vcombine.low %v2759_v8, %v2763_v12  ;;  %v2806_v12 = vld [vmem:[#allocation19 + $0x750] sm:$0xff] }
 0x6fd   : > { %6058 = vmatpush1.bf16.msra.mxu0 %v15515_v17  ;;  %v2770_v17 = vld [vmem:[#allocation19 + $0x630] sm:$0xff] }
 0x6fe   : > { %6222 = vmatpush1.bf16.msra.mxu1 %v15517_v19  ;;  %6059 = vmatprep.subr.bf16.mxu0 %v15524_v20  ;;  %v2767_v19 = vld [vmem:[#allocation19 + $0x618] sm:$0xff]  ;;  %v15572_v23 = vcombine.high %v2766_v16, %v2770_v17 }
 0x6ff   : > { %6223 = vmatprep.subr.bf16.mxu1 %v15526_v21  ;;  %v2771_v20 = vld [vmem:[#allocation19 + $0x638] sm:$0xff]  ;;  %v15563_v21 = vcombine.low %v2758_v5, %v2762_v6 }
 0x700   : > { %v15574_v24 = vcombine.high %v2767_v19, %v2771_v20  ;;  %v15573_v32 = vcombine.low %v2767_v19, %v2771_v20  ;;  %v2814_v20 = vld [vmem:[#allocation19 + $0x790] sm:$0xff] }
 0x701   : > { %6060 = vmatpush1.bf16.msra.mxu0 %v15523_v28  ;;  %v2778_v28 = vld [vmem:[#allocation19 + $0x670] sm:$0xff] }
 0x702   : > { %6224 = vmatpush1.bf16.msra.mxu1 %v15525_v35  ;;  %6061 = vmatprep.subr.bf16.mxu0 %v15532_v31  ;;  %v2775_v35 = vld [vmem:[#allocation19 + $0x658] sm:$0xff]  ;;  %v15580_v34 = vcombine.high %v2774_v25, %v2778_v28 }
 0x703   : > { %6225 = vmatprep.subr.bf16.mxu1 %v15534_v29  ;;  %v2779_v31 = vld [vmem:[#allocation19 + $0x678] sm:$0xff]  ;;  %v15571_v29 = vcombine.low %v2766_v16, %v2770_v17 }
 0x704   : > { %v15582_v1 = vcombine.high %v2775_v35, %v2779_v31  ;;  %v15581_v41 = vcombine.low %v2775_v35, %v2779_v31  ;;  %v2822_v31 = vld [vmem:[#allocation19 + $0x7d0] sm:$0xff] }
 0x705   : > { %6062 = vmatpush1.bf16.msra.mxu0 %v15531_v37  ;;  %v2786_v37 = vld [vmem:[#allocation19 + $0x6b0] sm:$0xff] }
 0x706   : > { %6226 = vmatpush1.bf16.msra.mxu1 %v15533_v53  ;;  %6063 = vmatprep.subr.bf16.mxu0 %v15540_v38  ;;  %v2783_v53 = vld [vmem:[#allocation19 + $0x698] sm:$0xff]  ;;  %v15588_v42 = vcombine.high %v2782_v36, %v2786_v37 }
 0x707   : > { %6227 = vmatprep.subr.bf16.mxu1 %v15542_v40  ;;  %v2787_v38 = vld [vmem:[#allocation19 + $0x6b8] sm:$0xff]  ;;  %v15579_v40 = vcombine.low %v2774_v25, %v2778_v28 }
 0x708   : > { %v15590_v43 = vcombine.high %v2783_v53, %v2787_v38  ;;  %v15589_v54 = vcombine.low %v2783_v53, %v2787_v38  ;;  %v2830_v38 = vld [vmem:[#allocation19 + $0x810] sm:$0xff] }
 0x709   : > { %6064 = vmatpush1.bf16.msra.mxu0 %v15539_v46  ;;  %v2794_v46 = vld [vmem:[#allocation19 + $0x6f0] sm:$0xff] }
 0x70a   : > { %6228 = vmatpush1.bf16.msra.mxu1 %v15541_v47  ;;  %6065 = vmatprep.subr.bf16.mxu0 %v15548_v48  ;;  %v2791_v47 = vld [vmem:[#allocation19 + $0x6d8] sm:$0xff]  ;;  %v15596_v57 = vcombine.high %v2790_v44, %v2794_v46 }
 0x70b   : > { %6229 = vmatprep.subr.bf16.mxu1 %v15550_v51  ;;  %v2795_v48 = vld [vmem:[#allocation19 + $0x6f8] sm:$0xff]  ;;  %v15587_v51 = vcombine.low %v2782_v36, %v2786_v37 }
 0x70c   : > { %v15598_v58 = vcombine.high %v2791_v47, %v2795_v48  ;;  %v15597_v5 = vcombine.low %v2791_v47, %v2795_v48  ;;  %v2838_v48 = vld [vmem:[#allocation19 + $0x850] sm:$0xff] }
 0x70d   : > { %6066 = vmatpush1.bf16.msra.mxu0 %v15547_v61  ;;  %v2802_v61 = vld [vmem:[#allocation19 + $0x730] sm:$0xff] }
 0x70e   : > { %6230 = vmatpush1.bf16.msra.mxu1 %v15549_v63  ;;  %6067 = vmatprep.subr.bf16.mxu0 %v15556_v3  ;;  %v2799_v63 = vld [vmem:[#allocation19 + $0x718] sm:$0xff]  ;;  %v15604_v6 = vcombine.high %v2798_v33, %v2802_v61 }
 0x70f   : > { %6231 = vmatprep.subr.bf16.mxu1 %v15558_v62  ;;  %v2803_v3 = vld [vmem:[#allocation19 + $0x738] sm:$0xff]  ;;  %v15595_v62 = vcombine.low %v2790_v44, %v2794_v46 }
 0x710   : > { %v15606_v8 = vcombine.high %v2799_v63, %v2803_v3  ;;  %v15605_v16 = vcombine.low %v2799_v63, %v2803_v3  ;;  %v2846_v63 = vld [vmem:[#allocation19 + $0x890] sm:$0xff] }
 0x711   : > { %6068 = vmatpush1.bf16.msra.mxu0 %v15555_v50  ;;  %v2810_v50 = vld [vmem:[#allocation19 + $0x770] sm:$0xff] }
 0x712   : > { %6232 = vmatpush1.bf16.msra.mxu1 %v15557_v13  ;;  %6069 = vmatprep.subr.bf16.mxu0 %v15564_v14  ;;  %v2807_v13 = vld [vmem:[#allocation19 + $0x758] sm:$0xff]  ;;  %v15612_v17 = vcombine.high %v2806_v12, %v2810_v50  ;;  %v2850_v3 = vld [vmem:[#allocation19 + $0x8b0] sm:$0xff] }
 0x713   : > { %6233 = vmatprep.subr.bf16.mxu1 %v15566_v15  ;;  %v2811_v14 = vld [vmem:[#allocation19 + $0x778] sm:$0xff]  ;;  %v15603_v15 = vcombine.low %v2798_v33, %v2802_v61 }
 0x714   : > { %v15614_v19 = vcombine.high %v2807_v13, %v2811_v14  ;;  %v15613_v25 = vcombine.low %v2807_v13, %v2811_v14  ;;  %v2854_v14 = vld [vmem:[#allocation19 + $0x8d0] sm:$0xff] }
 0x715   : > { %6070 = vmatpush1.bf16.msra.mxu0 %v15563_v21  ;;  %v2818_v21 = vld [vmem:[#allocation19 + $0x7b0] sm:$0xff] }
 0x716   : > { %6234 = vmatpush1.bf16.msra.mxu1 %v15565_v22  ;;  %6071 = vmatprep.subr.bf16.mxu0 %v15572_v23  ;;  %v2815_v22 = vld [vmem:[#allocation19 + $0x798] sm:$0xff]  ;;  %v15620_v28 = vcombine.high %v2814_v20, %v2818_v21 }
 0x717   : > { %6235 = vmatprep.subr.bf16.mxu1 %v15574_v24  ;;  %v2819_v23 = vld [vmem:[#allocation19 + $0x7b8] sm:$0xff]  ;;  %v15611_v24 = vcombine.low %v2806_v12, %v2810_v50  ;;  %v15652_v50 = vcombine.high %v2846_v63, %v2850_v3 }
 0x718   : > { %v15622_v35 = vcombine.high %v2815_v22, %v2819_v23  ;;  %v15621_v36 = vcombine.low %v2815_v22, %v2819_v23  ;;  %v2862_v22 = vld [vmem:[#allocation19 + $0x910] sm:$0xff] }
 0x719   : > { %6072 = vmatpush1.bf16.msra.mxu0 %v15571_v29  ;;  %v2826_v29 = vld [vmem:[#allocation19 + $0x7f0] sm:$0xff] }
 0x71a   : > { %6236 = vmatpush1.bf16.msra.mxu1 %v15573_v32  ;;  %6073 = vmatprep.subr.bf16.mxu0 %v15580_v34  ;;  %v2823_v32 = vld [vmem:[#allocation19 + $0x7d8] sm:$0xff]  ;;  %v15628_v37 = vcombine.high %v2822_v31, %v2826_v29  ;;  %v2866_v23 = vld [vmem:[#allocation19 + $0x930] sm:$0xff] }
 0x71b   : > { %6237 = vmatprep.subr.bf16.mxu1 %v15582_v1  ;;  %v2827_v34 = vld [vmem:[#allocation19 + $0x7f8] sm:$0xff]  ;;  %v15619_v1 = vcombine.low %v2814_v20, %v2818_v21 }
 0x71c   : > { %v15630_v53 = vcombine.high %v2823_v32, %v2827_v34  ;;  %v15629_v44 = vcombine.low %v2823_v32, %v2827_v34  ;;  %v2874_v32 = vld [vmem:[#allocation19 + $0x970] sm:$0xff]  ;;  %v2871_v34 = vld [vmem:[#allocation19 + $0x958] sm:$0xff] }
 0x71d   : > { %6074 = vmatpush1.bf16.msra.mxu0 %v15579_v40  ;;  %v2834_v40 = vld [vmem:[#allocation19 + $0x830] sm:$0xff] }
 0x71e   : > { %6238 = vmatpush1.bf16.msra.mxu1 %v15581_v41  ;;  %6075 = vmatprep.subr.bf16.mxu0 %v15588_v42  ;;  %v2831_v41 = vld [vmem:[#allocation19 + $0x818] sm:$0xff]  ;;  %v15636_v46 = vcombine.high %v2830_v38, %v2834_v40 }
 0x71f   : > { %6239 = vmatprep.subr.bf16.mxu1 %v15590_v43  ;;  %v2835_v42 = vld [vmem:[#allocation19 + $0x838] sm:$0xff]  ;;  %v15627_v43 = vcombine.low %v2822_v31, %v2826_v29  ;;  %v2870_v29 = vld [vmem:[#allocation19 + $0x950] sm:$0xff] }
 0x720   : > { %v15638_v47 = vcombine.high %v2831_v41, %v2835_v42  ;;  %v15637_v33 = vcombine.low %v2831_v41, %v2835_v42  ;;  %v2882_v41 = vld [vmem:[#allocation19 + $0x9b0] sm:$0xff]  ;;  %v2879_v42 = vld [vmem:[#allocation19 + $0x998] sm:$0xff] }
 0x721   : > { %6076 = vmatpush1.bf16.msra.mxu0 %v15587_v51  ;;  %v2842_v51 = vld [vmem:[#allocation19 + $0x870] sm:$0xff] }
 0x722   : > { %6240 = vmatpush1.bf16.msra.mxu1 %v15589_v54  ;;  %6077 = vmatprep.subr.bf16.mxu0 %v15596_v57  ;;  %v15635_v54 = vcombine.low %v2830_v38, %v2834_v40  ;;  %v2839_v57 = vld [vmem:[#allocation19 + $0x858] sm:$0xff]  ;;  %v15644_v61 = vcombine.high %v2838_v48, %v2842_v51  ;;  %v2878_v40 = vld [vmem:[#allocation19 + $0x990] sm:$0xff] }
 0x723   : > { %6241 = vmatprep.subr.bf16.mxu1 %v15598_v58  ;;  %v2843_v58 = vld [vmem:[#allocation19 + $0x878] sm:$0xff] }
 0x724   : > { %v15645_v12 = vcombine.low %v2839_v57, %v2843_v58 }
 0x725   : > { %6078 = vmatpush1.bf16.msra.mxu0 %v15595_v62  ;;  %v15646_v62 = vcombine.high %v2839_v57, %v2843_v58  ;;  %v2887_v57 = vld [vmem:[#allocation19 + $0x9d8] sm:$0xff] }
 0x726   : > { %6242 = vmatpush1.bf16.msra.mxu1 %v15597_v5  ;;  %6079 = vmatprep.subr.bf16.mxu0 %v15604_v6  ;;  %v2847_v5 = vld [vmem:[#allocation19 + $0x898] sm:$0xff] }
 0x727   : > { %6243 = vmatprep.subr.bf16.mxu1 %v15606_v8  ;;  %v2851_v6 = vld [vmem:[#allocation19 + $0x8b8] sm:$0xff]  ;;  %v15643_v8 = vcombine.low %v2838_v48, %v2842_v51  ;;  %v2886_v51 = vld [vmem:[#allocation19 + $0x9d0] sm:$0xff] }
 0x728   : > { %v15654_v13 = vcombine.high %v2847_v5, %v2851_v6  ;;  %v2891_v58 = vld [vmem:[#allocation19 + $0x9f8] sm:$0xff] }
 0x729   : > { %6080 = vmatpush1.bf16.msra.mxu0 %v15603_v15  ;;  %v2858_v15 = vld [vmem:[#allocation19 + $0x8f0] sm:$0xff] }
 0x72a   : > { %6244 = vmatpush1.bf16.msra.mxu1 %v15605_v16  ;;  %6081 = vmatprep.subr.bf16.mxu0 %v15612_v17  ;;  %v2855_v16 = vld [vmem:[#allocation19 + $0x8d8] sm:$0xff]  ;;  %v15660_v20 = vcombine.high %v2854_v14, %v2858_v15 }
 0x72b   : > { %6245 = vmatprep.subr.bf16.mxu1 %v15614_v19  ;;  %v2859_v17 = vld [vmem:[#allocation19 + $0x8f8] sm:$0xff]  ;;  %v15651_v19 = vcombine.low %v2846_v63, %v2850_v3  ;;  %v15694_v3 = vcombine.high %v2887_v57, %v2891_v58 }
 0x72c   : > { %v15662_v21 = vcombine.high %v2855_v16, %v2859_v17 }
 0x72d   : > { %6082 = vmatpush1.bf16.msra.mxu0 %v15611_v24  ;;  %v2863_v24 = vld [vmem:[#allocation19 + $0x918] sm:$0xff] }
 0x72e   : > { %6246 = vmatpush1.bf16.msra.mxu1 %v15613_v25  ;;  %6083 = vmatprep.subr.bf16.mxu0 %v15620_v28  ;;  %v2867_v25 = vld [vmem:[#allocation19 + $0x938] sm:$0xff]  ;;  %v15661_v28 = vcombine.low %v2855_v16, %v2859_v17  ;;  %v2906_v16 = vld [vmem:[#allocation19 + $0xa70] sm:$0xff] }
 0x72f   : > { %6247 = vmatprep.subr.bf16.mxu1 %v15622_v35  ;;  %v15668_v35 = vcombine.high %v2862_v22, %v2866_v23  ;;  %v15670_v31 = vcombine.high %v2863_v24, %v2867_v25  ;;  %v2903_v17 = vld [vmem:[#allocation19 + $0xa58] sm:$0xff] }
 0x731   : > { %6084 = vmatpush1.bf16.msra.mxu0 %v15619_v1  ;;  %v2875_v1 = vld [vmem:[#allocation19 + $0x978] sm:$0xff] }
 0x732   : > { %6248 = vmatpush1.bf16.msra.mxu1 %v15621_v36  ;;  %6085 = vmatprep.subr.bf16.mxu0 %v15628_v37  ;;  %v15667_v36 = vcombine.low %v2862_v22, %v2866_v23  ;;  %v15669_v37 = vcombine.low %v2863_v24, %v2867_v25  ;;  %v15678_v38 = vcombine.high %v2871_v34, %v2875_v1  ;;  %v2910_v23 = vld [vmem:[#allocation19 + $0xa90] sm:$0xff]  ;;  %v2911_v25 = vld [vmem:[#allocation19 + $0xa98] sm:$0xff] }
 0x733   : > { %6249 = vmatprep.subr.bf16.mxu1 %v15630_v53  ;;  %v15676_v53 = vcombine.high %v2870_v29, %v2874_v32  ;;  %v2914_v24 = vld [vmem:[#allocation19 + $0xab0] sm:$0xff] }
 0x735   : > { %6086 = vmatpush1.bf16.msra.mxu0 %v15627_v43  ;;  %v2883_v43 = vld [vmem:[#allocation19 + $0x9b8] sm:$0xff] }
 0x736   : > { %6250 = vmatpush1.bf16.msra.mxu1 %v15629_v44  ;;  %6096 = vmatprep.subr.bf16.mxu0 %v15636_v46  ;;  %v15675_v44 = vcombine.low %v2870_v29, %v2874_v32  ;;  %v15677_v46 = vcombine.low %v2871_v34, %v2875_v1  ;;  %v15686_v48 = vcombine.high %v2879_v42, %v2883_v43  ;;  %v2918_v32 = vld [vmem:[#allocation19 + $0xad0] sm:$0xff]  ;;  %v2919_v1 = vld [vmem:[#allocation19 + $0xad8] sm:$0xff] }
 0x737   : > { %6260 = vmatprep.subr.bf16.mxu1 %v15638_v47  ;;  %v15684_v47 = vcombine.high %v2878_v40, %v2882_v41  ;;  %v2922_v34 = vld [vmem:[#allocation19 + $0xaf0] sm:$0xff] }
 0x738   : > { %6088 = vmatmul.mubr.bf16.vlgmr.msra.gmra.mrb[28].mxu0 %v19695_v10 }
 0x739   : > { %6252 = vmatmul.mubr.bf16.vlgmr.msra.gmra.mrb[28].mxu1 %v19695_v10  ;;  %6097 = vmatpush1.bf16.msra.mxu0 %v15635_v54  ;;  %v15653_v10 = vcombine.low %v2847_v5, %v2851_v6  ;;  %v2890_v54 = vld [vmem:[#allocation19 + $0x9f0] sm:$0xff]  ;;  %v2895_v6 = vld [vmem:[#allocation19 + $0xa18] sm:$0xff] }
 0x73a   : > { %6128 = vmatprep.mubr.bf16.mxu0 %v19713_v7  ;;  %6261 = vmatpush1.bf16.msra.mxu1 %v15637_v33  ;;  %v15683_v33 = vcombine.low %v2878_v40, %v2882_v41  ;;  %v15692_v63 = vcombine.high %v2886_v51, %v2890_v54  ;;  %v2898_v5 = vld [vmem:[#allocation19 + $0xa30] sm:$0xff] }
 0x73b   : > { %6292 = vmatprep.mubr.bf16.mxu1 %v19713_v7  ;;  %6098 = vmatprep.subr.bf16.mxu0 %v15644_v61  ;;  %v15659_v7 = vcombine.low %v2854_v14, %v2858_v15  ;;  %v15685_v61 = vcombine.low %v2879_v42, %v2883_v43  ;;  %v2902_v15 = vld [vmem:[#allocation19 + $0xa50] sm:$0xff]  ;;  %v2927_v43 = vld [vmem:[#allocation19 + $0xb18] sm:$0xff] }
 0x73c   : > { %6262 = vmatprep.subr.bf16.mxu1 %v15646_v62  ;;  %v2894_v62 = vld [vmem:[#allocation19 + $0xa10] sm:$0xff] }
 0x73d   : > { %6099 = vmatpush1.bf16.msra.mxu0 %v15643_v8  ;;  %v2899_v8 = vld [vmem:[#allocation19 + $0xa38] sm:$0xff]  ;;  %v2926_v41 = vld [vmem:[#allocation19 + $0xb10] sm:$0xff] }
 0x73e   : > { %6263 = vmatpush1.bf16.msra.mxu1 %v15645_v12  ;;  %6100 = vmatprep.subr.bf16.mxu0 %v15652_v50  ;;  %v15691_v12 = vcombine.low %v2886_v51, %v2890_v54  ;;  %v15693_v50 = vcombine.low %v2887_v57, %v2891_v58  ;;  %v15702_v14 = vcombine.high %v2895_v6, %v2899_v8  ;;  %v2930_v42 = vld [vmem:[#allocation19 + $0xb30] sm:$0xff]  ;;  %v2935_v58 = vld [vmem:[#allocation19 + $0xb58] sm:$0xff] }
 0x73f   : > { %6264 = vmatprep.subr.bf16.mxu1 %v15654_v13  ;;  %v15700_v13 = vcombine.high %v2894_v62, %v2898_v5  ;;  %v2934_v54 = vld [vmem:[#allocation19 + $0xb50] sm:$0xff] }
 0x740   : > { %v2938_v57 = vld [vmem:[#allocation19 + $0xb70] sm:$0xff] }
 0x741   : > { %6101 = vmatpush1.bf16.msra.mxu0 %v15651_v19  ;;  %v2907_v19 = vld [vmem:[#allocation19 + $0xa78] sm:$0xff] }
 0x742   : > { %6265 = vmatpush1.bf16.msra.mxu1 %v15653_v10  ;;  %6102 = vmatprep.subr.bf16.mxu0 %v15660_v20  ;;  %v15699_v10 = vcombine.low %v2894_v62, %v2898_v5  ;;  %v15701_v20 = vcombine.low %v2895_v6, %v2899_v8  ;;  %v15710_v22 = vcombine.high %v2903_v17, %v2907_v19  ;;  %v2942_v5 = vld [vmem:[#allocation19 + $0xb90] sm:$0xff]  ;;  %v2943_v8 = vld [vmem:[#allocation19 + $0xb98] sm:$0xff] }
 0x743   : > { %6266 = vmatprep.subr.bf16.mxu1 %v15662_v21  ;;  %v15708_v21 = vcombine.high %v2902_v15, %v2906_v16  ;;  %v2946_v6 = vld [vmem:[#allocation19 + $0xbb0] sm:$0xff] }
 0x745   : > { %6103 = vmatpush1.bf16.msra.mxu0 %v15659_v7  ;;  %v2915_v7 = vld [vmem:[#allocation19 + $0xab8] sm:$0xff] }
 0x746   : > { %6267 = vmatpush1.bf16.msra.mxu1 %v15661_v28  ;;  %6104 = vmatprep.subr.bf16.mxu0 %v15668_v35  ;;  %v15707_v28 = vcombine.low %v2902_v15, %v2906_v16  ;;  %v15709_v35 = vcombine.low %v2903_v17, %v2907_v19  ;;  %v15718_v29 = vcombine.high %v2911_v25, %v2915_v7  ;;  %v2950_v16 = vld [vmem:[#allocation19 + $0xbd0] sm:$0xff]  ;;  %v2951_v19 = vld [vmem:[#allocation19 + $0xbd8] sm:$0xff] }
 0x747   : > { %6268 = vmatprep.subr.bf16.mxu1 %v15670_v31  ;;  %v15716_v31 = vcombine.high %v2910_v23, %v2914_v24  ;;  %v2954_v17 = vld [vmem:[#allocation19 + $0xbf0] sm:$0xff] }
 0x749   : > { %6105 = vmatpush1.bf16.msra.mxu0 %v15667_v36  ;;  %v2923_v36 = vld [vmem:[#allocation19 + $0xaf8] sm:$0xff] }
 0x74a   : > { %6269 = vmatpush1.bf16.msra.mxu1 %v15669_v37  ;;  %6106 = vmatprep.subr.bf16.mxu0 %v15676_v53  ;;  %v15715_v37 = vcombine.low %v2910_v23, %v2914_v24  ;;  %v15717_v53 = vcombine.low %v2911_v25, %v2915_v7  ;;  %v15726_v40 = vcombine.high %v2919_v1, %v2923_v36  ;;  %v2958_v24 = vld [vmem:[#allocation19 + $0xc10] sm:$0xff]  ;;  %v2959_v7 = vld [vmem:[#allocation19 + $0xc18] sm:$0xff] }
 0x74b   : > { %6270 = vmatprep.subr.bf16.mxu1 %v15678_v38  ;;  %v15724_v38 = vcombine.high %v2918_v32, %v2922_v34  ;;  %v2962_v25 = vld [vmem:[#allocation19 + $0xc30] sm:$0xff] }
 0x74d   : > { %6107 = vmatpush1.bf16.msra.mxu0 %v15675_v44  ;;  %v2931_v44 = vld [vmem:[#allocation19 + $0xb38] sm:$0xff] }
 0x74e   : > { %6271 = vmatpush1.bf16.msra.mxu1 %v15677_v46  ;;  %6108 = vmatprep.subr.bf16.mxu0 %v15684_v47  ;;  %v15723_v46 = vcombine.low %v2918_v32, %v2922_v34  ;;  %v15725_v47 = vcombine.low %v2919_v1, %v2923_v36  ;;  %v15734_v51 = vcombine.high %v2927_v43, %v2931_v44  ;;  %v2966_v34 = vld [vmem:[#allocation19 + $0xc50] sm:$0xff] }
 0x74f   : > { %6272 = vmatprep.subr.bf16.mxu1 %v15686_v48  ;;  %v15732_v48 = vcombine.high %v2926_v41, %v2930_v42  ;;  %v2970_v1 = vld [vmem:[#allocation19 + $0xc70] sm:$0xff]  ;;  %v15763_v36 = vcombine.low %v2958_v24, %v2962_v25 }
 0x751   : > { %6109 = vmatpush1.bf16.msra.mxu0 %v15683_v33  ;;  %v2939_v33 = vld [vmem:[#allocation19 + $0xb78] sm:$0xff] }
 0x752   : > { %6273 = vmatpush1.bf16.msra.mxu1 %v15685_v61  ;;  %6110 = vmatprep.subr.bf16.mxu0 %v15692_v63  ;;  %v15731_v61 = vcombine.low %v2926_v41, %v2930_v42  ;;  %v15733_v63 = vcombine.low %v2927_v43, %v2931_v44  ;;  %v15742_v62 = vcombine.high %v2935_v58, %v2939_v33  ;;  %v2974_v41 = vld [vmem:[#allocation19 + $0xc90] sm:$0xff]  ;;  %v2975_v44 = vld [vmem:[#allocation19 + $0xc98] sm:$0xff] }
 0x753   : > { %6274 = vmatprep.subr.bf16.mxu1 %v15694_v3  ;;  %v15740_v3 = vcombine.high %v2934_v54, %v2938_v57  ;;  %v2978_v42 = vld [vmem:[#allocation19 + $0xcb0] sm:$0xff] }
 0x755   : > { %6111 = vmatpush1.bf16.msra.mxu0 %v15691_v12  ;;  %v2947_v12 = vld [vmem:[#allocation19 + $0xbb8] sm:$0xff] }
 0x756   : > { %6275 = vmatpush1.bf16.msra.mxu1 %v15693_v50  ;;  %6112 = vmatprep.subr.bf16.mxu0 %v15700_v13  ;;  %v15739_v50 = vcombine.low %v2934_v54, %v2938_v57  ;;  %v15741_v13 = vcombine.low %v2935_v58, %v2939_v33  ;;  %v15750_v15 = vcombine.high %v2943_v8, %v2947_v12  ;;  %v2982_v57 = vld [vmem:[#allocation19 + $0xcd0] sm:$0xff]  ;;  %v2983_v33 = vld [vmem:[#allocation19 + $0xcd8] sm:$0xff] }
 0x757   : > { %6276 = vmatprep.subr.bf16.mxu1 %v15702_v14  ;;  %v15748_v14 = vcombine.high %v2942_v5, %v2946_v6  ;;  %v2986_v58 = vld [vmem:[#allocation19 + $0xcf0] sm:$0xff] }
 0x759   : > { %6113 = vmatpush1.bf16.msra.mxu0 %v15699_v10  ;;  %v2955_v10 = vld [vmem:[#allocation19 + $0xbf8] sm:$0xff] }
 0x75a   : > { %6277 = vmatpush1.bf16.msra.mxu1 %v15701_v20  ;;  %6114 = vmatprep.subr.bf16.mxu0 %v15708_v21  ;;  %v15747_v20 = vcombine.low %v2942_v5, %v2946_v6  ;;  %v15749_v21 = vcombine.low %v2943_v8, %v2947_v12  ;;  %v15758_v23 = vcombine.high %v2951_v19, %v2955_v10  ;;  %v2990_v5 = vld [vmem:[#allocation19 + $0xd10] sm:$0xff]  ;;  %v2991_v8 = vld [vmem:[#allocation19 + $0xd18] sm:$0xff] }
 0x75b   : > { %6278 = vmatprep.subr.bf16.mxu1 %v15710_v22  ;;  %v15756_v22 = vcombine.high %v2950_v16, %v2954_v17  ;;  %v2994_v6 = vld [vmem:[#allocation19 + $0xd30] sm:$0xff]  ;;  %v2995_v12 = vld [vmem:[#allocation19 + $0xd38] sm:$0xff] }
 0x75d   : > { %6115 = vmatpush1.bf16.msra.mxu0 %v15707_v28  ;;  %v2963_v28 = vld [vmem:[#allocation19 + $0xc38] sm:$0xff] }
 0x75e   : > { %6279 = vmatpush1.bf16.msra.mxu1 %v15709_v35  ;;  %6116 = vmatprep.subr.bf16.mxu0 %v15716_v31  ;;  %v15755_v35 = vcombine.low %v2950_v16, %v2954_v17  ;;  %v15757_v31 = vcombine.low %v2951_v19, %v2955_v10  ;;  %v15766_v32 = vcombine.high %v2959_v7, %v2963_v28  ;;  %v3002_v16 = vld [vmem:[#allocation19 + $0xd70] sm:$0xff]  ;;  %v2999_v17 = vld [vmem:[#allocation19 + $0xd58] sm:$0xff] }
 0x75f   : > { %6280 = vmatprep.subr.bf16.mxu1 %v15718_v29  ;;  %v15764_v29 = vcombine.high %v2958_v24, %v2962_v25  ;;  %v3003_v19 = vld [vmem:[#allocation19 + $0xd78] sm:$0xff]  ;;  %v15795_v10 = vcombine.low %v2990_v5, %v2994_v6  ;;  %v3010_v24 = vld [vmem:[#allocation19 + $0xdb0] sm:$0xff] }
 0x760   : > { %v3007_v25 = vld [vmem:[#allocation19 + $0xd98] sm:$0xff] }
 0x761   : > { %6117 = vmatpush1.bf16.msra.mxu0 %v15715_v37  ;;  %v2967_v37 = vld [vmem:[#allocation19 + $0xc58] sm:$0xff] }
 0x762   : > { %6281 = vmatpush1.bf16.msra.mxu1 %v15717_v53  ;;  %6118 = vmatprep.subr.bf16.mxu0 %v15724_v38  ;;  %v2971_v53 = vld [vmem:[#allocation19 + $0xc78] sm:$0xff]  ;;  %v15765_v38 = vcombine.low %v2959_v7, %v2963_v28 }
 0x763   : > { %6282 = vmatprep.subr.bf16.mxu1 %v15726_v40  ;;  %v15772_v40 = vcombine.high %v2966_v34, %v2970_v1  ;;  %v15774_v43 = vcombine.high %v2967_v37, %v2971_v53  ;;  %v3011_v7 = vld [vmem:[#allocation19 + $0xdb8] sm:$0xff] }
 0x765   : > { %6119 = vmatpush1.bf16.msra.mxu0 %v15723_v46  ;;  %v2979_v46 = vld [vmem:[#allocation19 + $0xcb8] sm:$0xff] }
 0x766   : > { %6283 = vmatpush1.bf16.msra.mxu1 %v15725_v47  ;;  %6120 = vmatprep.subr.bf16.mxu0 %v15732_v48  ;;  %v15771_v47 = vcombine.low %v2966_v34, %v2970_v1  ;;  %v15773_v48 = vcombine.low %v2967_v37, %v2971_v53  ;;  %v15782_v54 = vcombine.high %v2975_v44, %v2979_v46  ;;  %v3014_v1 = vld [vmem:[#allocation19 + $0xdd0] sm:$0xff] }
 0x767   : > { %6284 = vmatprep.subr.bf16.mxu1 %v15734_v51  ;;  %v15780_v51 = vcombine.high %v2974_v41, %v2978_v42  ;;  %v15814_v34 = vcombine.high %v3007_v25, %v3011_v7 }
 0x769   : > { %6121 = vmatpush1.bf16.msra.mxu0 %v15731_v61  ;;  %v2987_v61 = vld [vmem:[#allocation19 + $0xcf8] sm:$0xff] }
 0x76a   : > { %6285 = vmatpush1.bf16.msra.mxu1 %v15733_v63  ;;  %6122 = vmatprep.subr.bf16.mxu0 %v15740_v3  ;;  %v15779_v63 = vcombine.low %v2974_v41, %v2978_v42  ;;  %v15788_v3 = vcombine.high %v2982_v57, %v2986_v58 }
 0x76b   : > { %6286 = vmatprep.subr.bf16.mxu1 %v15742_v62  ;;  %v15790_v62 = vcombine.high %v2983_v33, %v2987_v61 }
 0x76d   : > { %6123 = vmatpush1.bf16.msra.mxu0 %v15739_v50  ;;  %v15789_v50 = vcombine.low %v2983_v33, %v2987_v61  ;;  %v3027_v33 = vld [vmem:[#allocation19 + $0xe38] sm:$0xff] }
 0x76e   : > { %6287 = vmatpush1.bf16.msra.mxu1 %v15741_v13  ;;  %6124 = vmatprep.subr.bf16.mxu0 %v15748_v14  ;;  %v15796_v13 = vcombine.high %v2990_v5, %v2994_v6  ;;  %v15798_v14 = vcombine.high %v2991_v8, %v2995_v12  ;;  %v3034_v5 = vld [vmem:[#allocation19 + $0xe70] sm:$0xff]  ;;  %v3031_v6 = vld [vmem:[#allocation19 + $0xe58] sm:$0xff] }
 0x76f   : > { %6288 = vmatprep.subr.bf16.mxu1 %v15750_v15  ;;  %v2998_v15 = vld [vmem:[#allocation19 + $0xd50] sm:$0xff] }
 0x770   : > { %v15803_v28 = vcombine.low %v2998_v15, %v3002_v16 }
 0x771   : > { %6125 = vmatpush1.bf16.msra.mxu0 %v15747_v20  ;;  %v15797_v20 = vcombine.low %v2991_v8, %v2995_v12  ;;  %v3035_v8 = vld [vmem:[#allocation19 + $0xe78] sm:$0xff] }
 0x772   : > { %6289 = vmatpush1.bf16.msra.mxu1 %v15749_v21  ;;  %6126 = vmatprep.subr.bf16.mxu0 %v15756_v22  ;;  %v15804_v21 = vcombine.high %v2998_v15, %v3002_v16  ;;  %v15806_v22 = vcombine.high %v2999_v17, %v3003_v19  ;;  %v3042_v15 = vld [vmem:[#allocation19 + $0xeb0] sm:$0xff]  ;;  %v3039_v16 = vld [vmem:[#allocation19 + $0xe98] sm:$0xff] }
 0x773   : > { %6290 = vmatprep.subr.bf16.mxu1 %v15758_v23  ;;  %v3006_v23 = vld [vmem:[#allocation19 + $0xd90] sm:$0xff] }
 0x775   : > { %6127 = vmatpush1.bf16.msra.mxu0 %v15755_v35  ;;  %v15805_v35 = vcombine.low %v2999_v17, %v3003_v19  ;;  %v3043_v17 = vld [vmem:[#allocation19 + $0xeb8] sm:$0xff] }
 0x776   : > { %6291 = vmatpush1.bf16.msra.mxu1 %v15757_v31  ;;  %6137 = vmatprep.subr.bf16.mxu0 %v15764_v29  ;;  %v15812_v31 = vcombine.high %v3006_v23, %v3010_v24 }
 0x777   : > { %6301 = vmatprep.subr.bf16.mxu1 %v15766_v32 }
 0x778   : > { %6129 = vmatmul.mubr.bf16.vlgmr.msra.gmra.mrb[28].mxu0 %v19717_v11 }
 0x779   : > { %6293 = vmatmul.mubr.bf16.vlgmr.msra.gmra.mrb[28].mxu1 %v19717_v11  ;;  %6138 = vmatpush1.bf16.msra.mxu0 %v15763_v36  ;;  %v15781_v11 = vcombine.low %v2975_v44, %v2979_v46  ;;  %v3018_v36 = vld [vmem:[#allocation19 + $0xdf0] sm:$0xff] }
 0x77a   : > { %6169 = vmatprep.mubr.bf16.mxu0 %v19723_v18  ;;  %6302 = vmatpush1.bf16.msra.mxu1 %v15765_v38  ;;  %v3015_v38 = vld [vmem:[#allocation19 + $0xdd8] sm:$0xff]  ;;  %v15819_v61 = vcombine.low %v3014_v1, %v3018_v36 }
 0x77b   : > { %6333 = vmatprep.mubr.bf16.mxu1 %v19723_v18  ;;  %6139 = vmatprep.subr.bf16.mxu0 %v15772_v40  ;;  %v15787_v18 = vcombine.low %v2982_v57, %v2986_v58  ;;  %v3019_v40 = vld [vmem:[#allocation19 + $0xdf8] sm:$0xff]  ;;  %v3026_v57 = vld [vmem:[#allocation19 + $0xe30] sm:$0xff] }
 0x77c   : > { %6303 = vmatprep.subr.bf16.mxu1 %v15774_v43  ;;  %v15811_v43 = vcombine.low %v3006_v23, %v3010_v24  ;;  %v3023_v58 = vld [vmem:[#allocation19 + $0xe18] sm:$0xff]  ;;  %v3050_v23 = vld [vmem:[#allocation19 + $0xef0] sm:$0xff] }
 0x77d   : > { %6140 = vmatpush1.bf16.msra.mxu0 %v15771_v47  ;;  %v15813_v47 = vcombine.low %v3007_v25, %v3011_v7  ;;  %v3047_v24 = vld [vmem:[#allocation19 + $0xed8] sm:$0xff] }
 0x77e   : > { %6304 = vmatpush1.bf16.msra.mxu1 %v15773_v48  ;;  %6141 = vmatprep.subr.bf16.mxu0 %v15780_v51  ;;  %v15820_v48 = vcombine.high %v3014_v1, %v3018_v36  ;;  %v15822_v51 = vcombine.high %v3015_v38, %v3019_v40  ;;  %v3051_v25 = vld [vmem:[#allocation19 + $0xef8] sm:$0xff]  ;;  %v3058_v1 = vld [vmem:[#allocation19 + $0xf30] sm:$0xff] }
 0x77f   : > { %6305 = vmatprep.subr.bf16.mxu1 %v15782_v54  ;;  %v3022_v54 = vld [vmem:[#allocation19 + $0xe10] sm:$0xff]  ;;  %v3055_v36 = vld [vmem:[#allocation19 + $0xf18] sm:$0xff] }
 0x780   : > { %v15827_v12 = vcombine.low %v3022_v54, %v3026_v57 }
 0x781   : > { %6142 = vmatpush1.bf16.msra.mxu0 %v15779_v63  ;;  %v15821_v63 = vcombine.low %v3015_v38, %v3019_v40  ;;  %v3059_v38 = vld [vmem:[#allocation19 + $0xf38] sm:$0xff] }
 0x782   : > { %6306 = vmatpush1.bf16.msra.mxu1 %v15781_v11  ;;  %6143 = vmatprep.subr.bf16.mxu0 %v15788_v3  ;;  %v15828_v11 = vcombine.high %v3022_v54, %v3026_v57  ;;  %v15830_v3 = vcombine.high %v3023_v58, %v3027_v33  ;;  %v15861_v54 = vcombine.low %v3055_v36, %v3059_v38 }
 0x783   : > { %6307 = vmatprep.subr.bf16.mxu1 %v15790_v62  ;;  %v3030_v62 = vld [vmem:[#allocation19 + $0xe50] sm:$0xff] }
 0x784   : > { %v15835_v19 = vcombine.low %v3030_v62, %v3034_v5 }
 0x785   : > { %6144 = vmatpush1.bf16.msra.mxu0 %v15787_v18  ;;  %v15829_v18 = vcombine.low %v3023_v58, %v3027_v33  ;;  %v3070_v33 = vld [vmem:[#allocation19 + $0xf90] sm:$0xff] }
 0x786   : > { %6308 = vmatpush1.bf16.msra.mxu1 %v15789_v50  ;;  %6145 = vmatprep.subr.bf16.mxu0 %v15796_v13  ;;  %v15836_v50 = vcombine.high %v3030_v62, %v3034_v5  ;;  %v15838_v13 = vcombine.high %v3031_v6, %v3035_v8 }
 0x787   : > { %6309 = vmatprep.subr.bf16.mxu1 %v15798_v14  ;;  %v3038_v14 = vld [vmem:[#allocation19 + $0xe90] sm:$0xff] }
 0x788   : > { %v15843_v7 = vcombine.low %v3038_v14, %v3042_v15 }
 0x789   : > { %6146 = vmatpush1.bf16.msra.mxu0 %v15795_v10  ;;  %v15837_v10 = vcombine.low %v3031_v6, %v3035_v8  ;;  %v3078_v8 = vld [vmem:[#allocation19 + $0xfd0] sm:$0xff] }
 0x78a   : > { %6310 = vmatpush1.bf16.msra.mxu1 %v15797_v20  ;;  %6147 = vmatprep.subr.bf16.mxu0 %v15804_v21  ;;  %v15844_v20 = vcombine.high %v3038_v14, %v3042_v15  ;;  %v15846_v21 = vcombine.high %v3039_v16, %v3043_v17 }
 0x78b   : > { %v19752_v29 = vpop.f32.mrb[24].mxu0  ;;  %v19754_v32 = vpop.f32.mrb[24].mxu1  ;;  %6311 = vmatprep.subr.bf16.mxu1 %v15806_v22  ;;  %v3046_v22 = vld [vmem:[#allocation19 + $0xed0] sm:$0xff] }
 0x78c   : > { %v19756_v37 = vpop.f32.mrb[25].mxu0  ;;  %v19758_v53 = vpop.f32.mrb[25].mxu1  ;;  %v15851_v40 = vcombine.low %v3046_v22, %v3050_v23 }
 0x78d   : > { %v5847_v41 = vpop.f32.mrb[26].mxu0  ;;  %v6011_v42 = vpop.f32.mrb[26].mxu1  ;;  %6148 = vmatpush1.bf16.msra.mxu0 %v15803_v28  ;;  %v15845_v28 = vcombine.low %v3039_v16, %v3043_v17 }
 0x78e   : > { %6312 = vmatpush1.bf16.msra.mxu1 %v15805_v35  ;;  %v5848_v44 = vpop.f32.mrb[27].mxu0  ;;  %v6012_v46 = vpop.f32.mrb[27].mxu1  ;;  %6149 = vmatprep.subr.bf16.mxu0 %v15812_v31  ;;  %v15852_v35 = vcombine.high %v3046_v22, %v3050_v23  ;;  %v15854_v31 = vcombine.high %v3047_v24, %v3051_v25  ;;  %v15853_v41 = vcombine.low %v3047_v24, %v3051_v25  ;;  %v6482_v22 = vld [vmem:[#allocation22 + $0x420] sm:$0xff] }
 0x78f   : > { %6313 = vmatprep.subr.bf16.mxu1 %v15814_v34  ;;  %v3054_v34 = vld [vmem:[#allocation19 + $0xf10] sm:$0xff] }
 0x790   : > { %v15860_v42 = vcombine.high %v3054_v34, %v3058_v1  ;;  %v3062_v44 = vld [vmem:[#allocation19 + $0xf50] sm:$0xff] }
 0x791   : > { %6150 = vmatpush1.bf16.msra.mxu0 %v15811_v43  ;;  %v15862_v43 = vcombine.high %v3055_v36, %v3059_v38  ;;  %v3066_v46 = vld [vmem:[#allocation19 + $0xf70] sm:$0xff]  ;;  %v6486_v38 = vld [vmem:[#allocation22 + $0x440] sm:$0xff] }
 0x792   : > { %6314 = vmatpush1.bf16.msra.mxu1 %v15813_v47  ;;  %6151 = vmatprep.subr.bf16.mxu0 %v15820_v48  ;;  %v3063_v47 = vld [vmem:[#allocation19 + $0xf58] sm:$0xff]  ;;  %v15868_v57 = vcombine.high %v3062_v44, %v3066_v46 }
 0x793   : > { %6315 = vmatprep.subr.bf16.mxu1 %v15822_v51  ;;  %v3067_v48 = vld [vmem:[#allocation19 + $0xf78] sm:$0xff]  ;;  %v15859_v51 = vcombine.low %v3054_v34, %v3058_v1  ;;  %v6362_v34 = vld [vmem:[#allocation22 + $0x60] sm:$0xff] }
 0x794   : > { %v15870_v58 = vcombine.high %v3063_v47, %v3067_v48  ;;  %v15869_v62 = vcombine.low %v3063_v47, %v3067_v48  ;;  %v6494_v47 = vld [vmem:[#allocation22 + $0x480] sm:$0xff] }
 0x795   : > { %6152 = vmatpush1.bf16.msra.mxu0 %v15819_v61  ;;  %v3074_v61 = vld [vmem:[#allocation19 + $0xfb0] sm:$0xff]  ;;  %v6498_v48 = vld [vmem:[#allocation22 + $0x4a0] sm:$0xff] }
 0x796   : > { %6316 = vmatpush1.bf16.msra.mxu1 %v15821_v63  ;;  %6153 = vmatprep.subr.bf16.mxu0 %v15828_v11  ;;  %v3071_v63 = vld [vmem:[#allocation19 + $0xf98] sm:$0xff]  ;;  %v15876_v5 = vcombine.high %v3070_v33, %v3074_v61  ;;  %v15875_v14 = vcombine.low %v3070_v33, %v3074_v61  ;;  %v6374_v33 = vld [vmem:[#allocation22 + $0xc0] sm:$0xff] }
 0x797   : > { %6317 = vmatprep.subr.bf16.mxu1 %v15830_v3  ;;  %v3075_v11 = vld [vmem:[#allocation19 + $0xfb8] sm:$0xff]  ;;  %v15867_v3 = vcombine.low %v3062_v44, %v3066_v46  ;;  %v6370_v44 = vld [vmem:[#allocation22 + $0xa0] sm:$0xff] }
 0x798   : > { %v15878_v6 = vcombine.high %v3071_v63, %v3075_v11  ;;  %v15877_v15 = vcombine.low %v3071_v63, %v3075_v11  ;;  %v6378_v61 = vld [vmem:[#allocation22 + $0xe0] sm:$0xff] }
 0x799   : > { %6154 = vmatpush1.bf16.msra.mxu0 %v15827_v12  ;;  %v3082_v12 = vld [vmem:[#allocation19 + $0xff0] sm:$0xff]  ;;  %v6502_v63 = vld [vmem:[#allocation22 + $0x4c0] sm:$0xff] }
 0x79a   : > { %6318 = vmatpush1.bf16.msra.mxu1 %v15829_v18  ;;  %6155 = vmatprep.subr.bf16.mxu0 %v15836_v50  ;;  %v3079_v18 = vld [vmem:[#allocation19 + $0xfd8] sm:$0xff]  ;;  %v15884_v16 = vcombine.high %v3078_v8, %v3082_v12  ;;  %v15883_v24 = vcombine.low %v3078_v8, %v3082_v12  ;;  %v6506_v11 = vld [vmem:[#allocation22 + $0x4e0] sm:$0xff] }
 0x79b   : > { %6319 = vmatprep.subr.bf16.mxu1 %v15838_v13  ;;  %v3083_v50 = vld [vmem:[#allocation19 + $0xff8] sm:$0xff]  ;;  %v19760_v13 = vld [vmem:[#allocation21] sm:$0xff]  ;;  %v6386_v8 = vld [vmem:[#allocation22 + $0x120] sm:$0xff] }
 0x79c   : > { %v15886_v17 = vcombine.high %v3079_v18, %v3083_v50  ;;  %v3101_v23 = vrot.slane %v19760_v13, %v19661_v0  ;;  %v15885_v25 = vcombine.low %v3079_v18, %v3083_v50  ;;  %v6510_v12 = vld [vmem:[#allocation22 + $0x500] sm:$0xff]  ;;  %v15911_v50 = vcombine.low %v6374_v33, %v6378_v61 }
 0x79d   : > { %6156 = vmatpush1.bf16.msra.mxu0 %v15835_v19  ;;  %v6350_v19 = vld [vmem:[#allocation22] sm:$0xff] }
 0x79e   : > { %6320 = vmatpush1.bf16.msra.mxu1 %v15837_v10  ;;  %6157 = vmatprep.subr.bf16.mxu0 %v15844_v20  ;;  %v6354_v10 = vld [vmem:[#allocation22 + $0x20] sm:$0xff]  ;;  %v3093_v20 = vrot.slane %v19760_v13, %v19635_v55  ;;  %v17193_v1 = vadd.f32 %v19758_v53, %v3101_v23 }
 0x79f   : > { %6321 = vmatprep.subr.bf16.mxu1 %v15846_v21  ;;  %v6478_v21 = vld [vmem:[#allocation22 + $0x400] sm:$0xff]  ;;  %v15887_v36 = vcombine.low %v6350_v19, %v6354_v10 }
 0x7a0   : > { %v6514_v18 = vld [vmem:[#allocation22 + $0x520] sm:$0xff] }
 0x7a1   : > { %6158 = vmatpush1.bf16.msra.mxu0 %v15843_v7  ;;  %v15888_v7 = vcombine.high %v6350_v19, %v6354_v10  ;;  %v6394_v19 = vld [vmem:[#allocation22 + $0x160] sm:$0xff] }
 0x7a2   : > { %6322 = vmatpush1.bf16.msra.mxu1 %v15845_v28  ;;  %6159 = vmatprep.subr.bf16.mxu0 %v15852_v35  ;;  %v16016_v28 = vcombine.high %v6478_v21, %v6482_v22  ;;  %v17191_v35 = vadd.f32 %v19756_v37, %v3093_v20  ;;  %v6518_v10 = vld [vmem:[#allocation22 + $0x540] sm:$0xff] }
 0x7a3   : > { %6323 = vmatprep.subr.bf16.mxu1 %v15854_v31  ;;  %v6358_v31 = vld [vmem:[#allocation22 + $0x40] sm:$0xff] }
 0x7a4   : > { %v19768_v46 = vpack.c.bf16 %v17191_v35, %v17191_v35  ;;  %v15895_v53 = vcombine.low %v6358_v31, %v6362_v34  ;;  %v6522_v20 = vld [vmem:[#allocation22 + $0x560] sm:$0xff] }
 0x7a5   : > { %6160 = vmatpush1.bf16.msra.mxu0 %v15851_v40  ;;  %v6490_v40 = vld [vmem:[#allocation22 + $0x460] sm:$0xff] }
 0x7a6   : > { %6324 = vmatpush1.bf16.msra.mxu1 %v15853_v41  ;;  %6161 = vmatprep.subr.bf16.mxu0 %v15860_v42  ;;  %v16015_v41 = vcombine.low %v6478_v21, %v6482_v22  ;;  %v15896_v42 = vcombine.high %v6358_v31, %v6362_v34  ;;  %v16024_v37 = vcombine.high %v6486_v38, %v6490_v40  ;;  %v6530_v35 = vld [vmem:[#allocation22 + $0x5a0] sm:$0xff] }
 0x7a7   : > { %6325 = vmatprep.subr.bf16.mxu1 %v15862_v43  ;;  %v6366_v43 = vld [vmem:[#allocation22 + $0x80] sm:$0xff]  ;;  %v16047_v22 = vcombine.low %v6510_v12, %v6514_v18  ;;  %v16055_v34 = vcombine.low %v6518_v10, %v6522_v20 }
 0x7a9   : > { %6162 = vmatpush1.bf16.msra.mxu0 %v15859_v51  ;;  %v19771_v51 = vpack.c.bf16 %v17193_v1, %v17193_v1 }
 0x7aa   : > { %6326 = vmatpush1.bf16.msra.mxu1 %v15861_v54  ;;  %6163 = vmatprep.subr.bf16.mxu0 %v15868_v57  ;;  %v16023_v54 = vcombine.low %v6486_v38, %v6490_v40  ;;  %v15904_v57 = vcombine.high %v6366_v43, %v6370_v44  ;;  %v6406_v38 = vld [vmem:[#allocation22 + $0x1c0] sm:$0xff] }
 0x7ab   : > { %6327 = vmatprep.subr.bf16.mxu1 %v15870_v58  ;;  %v16032_v58 = vcombine.high %v6494_v47, %v6498_v48  ;;  %v6410_v40 = vld [vmem:[#allocation22 + $0x1e0] sm:$0xff] }
 0x7ad   : > { %6164 = vmatpush1.bf16.msra.mxu0 %v15867_v3  ;;  %v15903_v3 = vcombine.low %v6366_v43, %v6370_v44 }
 0x7ae   : > { %6328 = vmatpush1.bf16.msra.mxu1 %v15869_v62  ;;  %6165 = vmatprep.subr.bf16.mxu0 %v15876_v5  ;;  %v15912_v62 = vcombine.high %v6374_v33, %v6378_v61  ;;  %v16040_v5 = vcombine.high %v6502_v63, %v6506_v11 }
 0x7af   : > { %6329 = vmatprep.subr.bf16.mxu1 %v15878_v6  ;;  %v6382_v6 = vld [vmem:[#allocation22 + $0x100] sm:$0xff] }
 0x7b0   : > { %v15919_v21 = vcombine.low %v6382_v6, %v6386_v8 }
 0x7b1   : > { %6166 = vmatpush1.bf16.msra.mxu0 %v15875_v14  ;;  %v16039_v14 = vcombine.low %v6502_v63, %v6506_v11  ;;  %v6422_v11 = vld [vmem:[#allocation22 + $0x240] sm:$0xff] }
 0x7b2   : > { %6330 = vmatpush1.bf16.msra.mxu1 %v15877_v15  ;;  %6167 = vmatprep.subr.bf16.mxu0 %v15884_v16  ;;  %v15920_v15 = vcombine.high %v6382_v6, %v6386_v8  ;;  %v16048_v16 = vcombine.high %v6510_v12, %v6514_v18  ;;  %v6430_v18 = vld [vmem:[#allocation22 + $0x280] sm:$0xff] }
 0x7b3   : > { %6331 = vmatprep.subr.bf16.mxu1 %v15886_v17  ;;  %v6390_v17 = vld [vmem:[#allocation22 + $0x140] sm:$0xff] }
 0x7b4   : > { %v15928_v23 = vcombine.high %v6390_v17, %v6394_v19  ;;  %v15927_v31 = vcombine.low %v6390_v17, %v6394_v19 }
 0x7b5   : > { %6168 = vmatpush1.bf16.msra.mxu0 %v15883_v24  ;;  %v16056_v24 = vcombine.high %v6518_v10, %v6522_v20  ;;  %v6438_v20 = vld [vmem:[#allocation22 + $0x2c0] sm:$0xff] }
 0x7b6   : > { %6332 = vmatpush1.bf16.msra.mxu1 %v15885_v25  ;;  %9464 = vmatprep.subr.bf16.mxu0 %v15888_v7  ;;  %v6398_v25 = vld [vmem:[#allocation22 + $0x180] sm:$0xff] }
 0x7b7   : > { %9505 = vmatprep.subr.bf16.mxu1 %v16016_v28  ;;  %v6402_v7 = vld [vmem:[#allocation22 + $0x1a0] sm:$0xff] }
 0x7b8   : > { %6170 = vmatmul.mubr.bf16.vlgmr.msra.gmra.mrb[28].mxu0 %v19734_v9  ;;  %v6526_v28 = vld [vmem:[#allocation22 + $0x580] sm:$0xff]  ;;  %v15936_v1 = vcombine.high %v6398_v25, %v6402_v7  ;;  %v15935_v43 = vcombine.low %v6398_v25, %v6402_v7 }
 0x7b9   : > { %6334 = vmatmul.mubr.bf16.vlgmr.msra.gmra.mrb[28].mxu1 %v19734_v9  ;;  %9465 = vmatpush1.bf16.msra.mxu0 %v15887_v36  ;;  %v16031_v9 = vcombine.low %v6494_v47, %v6498_v48  ;;  %v16064_v36 = vcombine.high %v6526_v28, %v6530_v35  ;;  %v16063_v44 = vcombine.low %v6526_v28, %v6530_v35  ;;  %v6414_v48 = vld [vmem:[#allocation22 + $0x200] sm:$0xff] }
 0x7ba   : > { %9496 = vmatprep.mubr.bf16.mxu0 %v19768_v46  ;;  %9506 = vmatpush1.bf16.msra.mxu1 %v16015_v41  ;;  %v6534_v41 = vld [vmem:[#allocation22 + $0x5c0] sm:$0xff] }
 0x7bb   : > { %9537 = vmatprep.mubr.bf16.mxu1 %v19771_v51  ;;  %9466 = vmatprep.subr.bf16.mxu0 %v15896_v42  ;;  %v6538_v42 = vld [vmem:[#allocation22 + $0x5e0] sm:$0xff] }
 0x7bc   : > { %9507 = vmatprep.subr.bf16.mxu1 %v16024_v37  ;;  %v15944_v37 = vcombine.high %v6406_v38, %v6410_v40  ;;  %v16072_v47 = vcombine.high %v6534_v41, %v6538_v42  ;;  %v16071_v33 = vcombine.low %v6534_v41, %v6538_v42  ;;  %v6446_v35 = vld [vmem:[#allocation22 + $0x300] sm:$0xff] }
 0x7bd   : > { %9467 = vmatpush1.bf16.msra.mxu0 %v15895_v53  ;;  %v6418_v53 = vld [vmem:[#allocation22 + $0x220] sm:$0xff] }
 0x7be   : > { %9508 = vmatpush1.bf16.msra.mxu1 %v16023_v54  ;;  %9468 = vmatprep.subr.bf16.mxu0 %v15904_v57  ;;  %v6542_v54 = vld [vmem:[#allocation22 + $0x600] sm:$0xff]  ;;  %v15952_v61 = vcombine.high %v6414_v48, %v6418_v53 }
 0x7bf   : > { %9509 = vmatprep.subr.bf16.mxu1 %v16032_v58  ;;  %v6546_v57 = vld [vmem:[#allocation22 + $0x620] sm:$0xff]  ;;  %v15943_v58 = vcombine.low %v6406_v38, %v6410_v40 }
 0x7c0   : > { %v16080_v63 = vcombine.high %v6542_v54, %v6546_v57  ;;  %v16079_v6 = vcombine.low %v6542_v54, %v6546_v57  ;;  %v6454_v42 = vld [vmem:[#allocation22 + $0x340] sm:$0xff] }
 0x7c1   : > { %9469 = vmatpush1.bf16.msra.mxu0 %v15903_v3  ;;  %v6426_v3 = vld [vmem:[#allocation22 + $0x260] sm:$0xff] }
 0x7c2   : > { %9510 = vmatpush1.bf16.msra.mxu1 %v16031_v9  ;;  %9470 = vmatprep.subr.bf16.mxu0 %v15912_v62  ;;  %v6550_v9 = vld [vmem:[#allocation22 + $0x640] sm:$0xff]  ;;  %v15960_v8 = vcombine.high %v6422_v11, %v6426_v3 }
 0x7c3   : > { %9511 = vmatprep.subr.bf16.mxu1 %v16040_v5  ;;  %v6554_v62 = vld [vmem:[#allocation22 + $0x660] sm:$0xff]  ;;  %v15951_v5 = vcombine.low %v6414_v48, %v6418_v53 }
 0x7c4   : > { %v16088_v12 = vcombine.high %v6550_v9, %v6554_v62  ;;  %v16087_v17 = vcombine.low %v6550_v9, %v6554_v62  ;;  %v6462_v57 = vld [vmem:[#allocation22 + $0x380] sm:$0xff] }
 0x7c5   : > { %9471 = vmatpush1.bf16.msra.mxu0 %v15911_v50  ;;  %v6434_v50 = vld [vmem:[#allocation22 + $0x2a0] sm:$0xff] }
 0x7c6   : > { %9512 = vmatpush1.bf16.msra.mxu1 %v16039_v14  ;;  %9472 = vmatprep.subr.bf16.mxu0 %v15920_v15  ;;  %v6558_v14 = vld [vmem:[#allocation22 + $0x680] sm:$0xff]  ;;  %v15968_v19 = vcombine.high %v6430_v18, %v6434_v50 }
 0x7c7   : > { %9513 = vmatprep.subr.bf16.mxu1 %v16048_v16  ;;  %v6562_v15 = vld [vmem:[#allocation22 + $0x6a0] sm:$0xff]  ;;  %v15959_v16 = vcombine.low %v6422_v11, %v6426_v3 }
 0x7c8   : > { %v16096_v10 = vcombine.high %v6558_v14, %v6562_v15  ;;  %v16095_v25 = vcombine.low %v6558_v14, %v6562_v15  ;;  %v6470_v62 = vld [vmem:[#allocation22 + $0x3c0] sm:$0xff]  ;;  %v3097_v15 = vrot.slane %v19760_v13, %v19686_v52 }
 0x7c9   : > { %9473 = vmatpush1.bf16.msra.mxu0 %v15919_v21  ;;  %v6442_v21 = vld [vmem:[#allocation22 + $0x2e0] sm:$0xff] }
 0x7ca   : > { %9514 = vmatpush1.bf16.msra.mxu1 %v16047_v22  ;;  %9474 = vmatprep.subr.bf16.mxu0 %v15928_v23  ;;  %v6566_v22 = vld [vmem:[#allocation22 + $0x6c0] sm:$0xff]  ;;  %v15976_v7 = vcombine.high %v6438_v20, %v6442_v21 }
 0x7cb   : > { %9515 = vmatprep.subr.bf16.mxu1 %v16056_v24  ;;  %v6570_v23 = vld [vmem:[#allocation22 + $0x6e0] sm:$0xff]  ;;  %v15967_v24 = vcombine.low %v6430_v18, %v6434_v50  ;;  %v3089_v18 = vrot.slane %v19760_v13, %v19658_v60 }
 0x7cc   : > { %v16104_v28 = vcombine.high %v6566_v22, %v6570_v23  ;;  %v16103_v38 = vcombine.low %v6566_v22, %v6570_v23 }
 0x7cd   : > { %9475 = vmatpush1.bf16.msra.mxu0 %v15927_v31  ;;  %v6450_v31 = vld [vmem:[#allocation22 + $0x320] sm:$0xff]  ;;  %v17190_v22 = vadd.f32 %v19752_v29, %v3089_v18 }
 0x7ce   : > { %9516 = vmatpush1.bf16.msra.mxu1 %v16055_v34  ;;  %9476 = vmatprep.subr.bf16.mxu0 %v15936_v1  ;;  %v6574_v34 = vld [vmem:[#allocation22 + $0x700] sm:$0xff]  ;;  %v15984_v40 = vcombine.high %v6446_v35, %v6450_v31 }
 0x7cf   : > { %9517 = vmatprep.subr.bf16.mxu1 %v16064_v36  ;;  %v6578_v1 = vld [vmem:[#allocation22 + $0x720] sm:$0xff]  ;;  %v15975_v36 = vcombine.low %v6438_v20, %v6442_v21 }
 0x7d0   : > { %v16112_v41 = vcombine.high %v6574_v34, %v6578_v1  ;;  %v16111_v48 = vcombine.low %v6574_v34, %v6578_v1  ;;  %v6738_v20 = vld [vmem:[#allocation22 + $0xc20] sm:$0xff] }
 0x7d1   : > { %9477 = vmatpush1.bf16.msra.mxu0 %v15935_v43  ;;  %v6458_v43 = vld [vmem:[#allocation22 + $0x360] sm:$0xff] }
 0x7d2   : > { %9518 = vmatpush1.bf16.msra.mxu1 %v16063_v44  ;;  %9478 = vmatprep.subr.bf16.mxu0 %v15944_v37  ;;  %v6582_v44 = vld [vmem:[#allocation22 + $0x740] sm:$0xff]  ;;  %v15992_v53 = vcombine.high %v6454_v42, %v6458_v43 }
 0x7d3   : > { %9519 = vmatprep.subr.bf16.mxu1 %v16072_v47  ;;  %v6586_v37 = vld [vmem:[#allocation22 + $0x760] sm:$0xff]  ;;  %v15983_v47 = vcombine.low %v6446_v35, %v6450_v31 }
 0x7d4   : > { %v16120_v54 = vcombine.high %v6582_v44, %v6586_v37  ;;  %v16119_v11 = vcombine.low %v6582_v44, %v6586_v37  ;;  %v6618_v35 = vld [vmem:[#allocation22 + $0x860] sm:$0xff] }
 0x7d5   : > { %9479 = vmatpush1.bf16.msra.mxu0 %v15943_v58  ;;  %v6466_v58 = vld [vmem:[#allocation22 + $0x3a0] sm:$0xff] }
 0x7d6   : > { %9520 = vmatpush1.bf16.msra.mxu1 %v16071_v33  ;;  %9480 = vmatprep.subr.bf16.mxu0 %v15952_v61  ;;  %v6590_v33 = vld [vmem:[#allocation22 + $0x780] sm:$0xff]  ;;  %v16000_v3 = vcombine.high %v6462_v57, %v6466_v58 }
 0x7d7   : > { %9521 = vmatprep.subr.bf16.mxu1 %v16080_v63  ;;  %v6594_v61 = vld [vmem:[#allocation22 + $0x7a0] sm:$0xff]  ;;  %v15991_v63 = vcombine.low %v6454_v42, %v6458_v43 }
 0x7d8   : > { %v16128_v9 = vcombine.high %v6590_v33, %v6594_v61  ;;  %v16127_v50 = vcombine.low %v6590_v33, %v6594_v61  ;;  %v6742_v31 = vld [vmem:[#allocation22 + $0xc40] sm:$0xff] }
 0x7d9   : > { %9481 = vmatpush1.bf16.msra.mxu0 %v15951_v5  ;;  %v6474_v5 = vld [vmem:[#allocation22 + $0x3e0] sm:$0xff] }
 0x7da   : > { %9522 = vmatpush1.bf16.msra.mxu1 %v16079_v6  ;;  %9482 = vmatprep.subr.bf16.mxu0 %v15960_v8  ;;  %v6598_v6 = vld [vmem:[#allocation22 + $0x7c0] sm:$0xff]  ;;  %v16008_v14 = vcombine.high %v6470_v62, %v6474_v5  ;;  %v16007_v21 = vcombine.low %v6470_v62, %v6474_v5 }
 0x7db   : > { %9523 = vmatprep.subr.bf16.mxu1 %v16088_v12  ;;  %v6602_v8 = vld [vmem:[#allocation22 + $0x7e0] sm:$0xff]  ;;  %v15999_v12 = vcombine.low %v6462_v57, %v6466_v58 }
 0x7dc   : > { %v16135_v23 = vcombine.low %v6598_v6, %v6602_v8  ;;  %v6746_v34 = vld [vmem:[#allocation22 + $0xc60] sm:$0xff] }
 0x7dd   : > { %9483 = vmatpush1.bf16.msra.mxu0 %v15959_v16  ;;  %v16136_v16 = vcombine.high %v6598_v6, %v6602_v8  ;;  %v6622_v42 = vld [vmem:[#allocation22 + $0x880] sm:$0xff] }
 0x7de   : > { %9524 = vmatpush1.bf16.msra.mxu1 %v16087_v17  ;;  %9484 = vmatprep.subr.bf16.mxu0 %v15968_v19  ;;  %v6606_v17 = vld [vmem:[#allocation22 + $0x800] sm:$0xff] }
 0x7df   : > { %9525 = vmatprep.subr.bf16.mxu1 %v16096_v10  ;;  %v6610_v19 = vld [vmem:[#allocation22 + $0x820] sm:$0xff] }
 0x7e0   : > { %v6734_v10 = vld [vmem:[#allocation22 + $0xc00] sm:$0xff]  ;;  %v16143_v1 = vcombine.low %v6606_v17, %v6610_v19 }
 0x7e1   : > { %9485 = vmatpush1.bf16.msra.mxu0 %v15967_v24  ;;  %v16144_v24 = vcombine.high %v6606_v17, %v6610_v19  ;;  %v6750_v43 = vld [vmem:[#allocation22 + $0xc80] sm:$0xff] }
 0x7e2   : > { %9526 = vmatpush1.bf16.msra.mxu1 %v16095_v25  ;;  %9486 = vmatprep.subr.bf16.mxu0 %v15976_v7  ;;  %v17192_v25 = vadd.f32 %v19754_v32, %v3097_v15  ;;  %v16272_v7 = vcombine.high %v6734_v10, %v6738_v20  ;;  %v6626_v32 = vld [vmem:[#allocation22 + $0x8a0] sm:$0xff] }
 0x7e3   : > { %9527 = vmatprep.subr.bf16.mxu1 %v16104_v28  ;;  %v6614_v28 = vld [vmem:[#allocation22 + $0x840] sm:$0xff]  ;;  %v16159_v61 = vcombine.low %v6622_v42, %v6626_v32 }
 0x7e4   : > { %v16152_v29 = vcombine.high %v6614_v28, %v6618_v35  ;;  %v6754_v44 = vld [vmem:[#allocation22 + $0xca0] sm:$0xff]  ;;  %v16151_v37 = vcombine.low %v6614_v28, %v6618_v35 }
 0x7e5   : > { %9487 = vmatpush1.bf16.msra.mxu0 %v15975_v36  ;;  %v19782_v36 = vpack.c.bf16 %v17190_v22, %v17190_v22  ;;  %v6634_v57 = vld [vmem:[#allocation22 + $0x8e0] sm:$0xff] }
 0x7e6   : > { %9528 = vmatpush1.bf16.msra.mxu1 %v16103_v38  ;;  %9488 = vmatprep.subr.bf16.mxu0 %v15984_v40  ;;  %v16271_v38 = vcombine.low %v6734_v10, %v6738_v20  ;;  %v19784_v40 = vpack.c.bf16 %v17192_v25, %v17192_v25  ;;  %v6758_v58 = vld [vmem:[#allocation22 + $0xcc0] sm:$0xff] }
 0x7e7   : > { %9529 = vmatprep.subr.bf16.mxu1 %v16112_v41  ;;  %v16280_v41 = vcombine.high %v6742_v31, %v6746_v34  ;;  %v6762_v33 = vld [vmem:[#allocation22 + $0xce0] sm:$0xff] }
 0x7e8   : > { %v6642_v62 = vld [vmem:[#allocation22 + $0x920] sm:$0xff] }
 0x7e9   : > { %9489 = vmatpush1.bf16.msra.mxu0 %v15983_v47  ;;  %v16279_v47 = vcombine.low %v6742_v31, %v6746_v34  ;;  %v6766_v5 = vld [vmem:[#allocation22 + $0xd00] sm:$0xff] }
 0x7ea   : > { %9530 = vmatpush1.bf16.msra.mxu1 %v16111_v48  ;;  %9490 = vmatprep.subr.bf16.mxu0 %v15992_v53  ;;  %v16160_v48 = vcombine.high %v6622_v42, %v6626_v32  ;;  %v16288_v53 = vcombine.high %v6750_v43, %v6754_v44  ;;  %v6770_v6 = vld [vmem:[#allocation22 + $0xd20] sm:$0xff] }
 0x7eb   : > { %9531 = vmatprep.subr.bf16.mxu1 %v16120_v54  ;;  %v6630_v54 = vld [vmem:[#allocation22 + $0x8c0] sm:$0xff]  ;;  %v16303_v10 = vcombine.low %v6766_v5, %v6770_v6 }
 0x7ec   : > { %v16167_v8 = vcombine.low %v6630_v54, %v6634_v57  ;;  %v6650_v15 = vld [vmem:[#allocation22 + $0x960] sm:$0xff] }
 0x7ed   : > { %9491 = vmatpush1.bf16.msra.mxu0 %v15991_v63  ;;  %v16287_v63 = vcombine.low %v6750_v43, %v6754_v44  ;;  %v6778_v17 = vld [vmem:[#allocation22 + $0xd60] sm:$0xff] }
 0x7ee   : > { %9532 = vmatpush1.bf16.msra.mxu1 %v16119_v11  ;;  %9492 = vmatprep.subr.bf16.mxu0 %v16000_v3  ;;  %v16168_v11 = vcombine.high %v6630_v54, %v6634_v57  ;;  %v16296_v3 = vcombine.high %v6758_v58, %v6762_v33  ;;  %v6654_v22 = vld [vmem:[#allocation22 + $0x980] sm:$0xff]  ;;  %v19790_v54 = vld [vmem:[#allocation22 + $0x28] sm:$0xff] }
 0x7ef   : > { %9533 = vmatprep.subr.bf16.mxu1 %v16128_v9  ;;  %v6638_v9 = vld [vmem:[#allocation22 + $0x900] sm:$0xff]  ;;  %v19792_v57 = vld [vmem:[#allocation22 + $0x408] sm:$0xff] }
 0x7f0   : > { %v16176_v18 = vcombine.high %v6638_v9, %v6642_v62  ;;  %v16175_v19 = vcombine.low %v6638_v9, %v6642_v62  ;;  %v6786_v25 = vld [vmem:[#allocation22 + $0xda0] sm:$0xff] }
 0x7f1   : > { %9493 = vmatpush1.bf16.msra.mxu0 %v15999_v12  ;;  %v16295_v12 = vcombine.low %v6758_v58, %v6762_v33  ;;  %v6662_v34 = vld [vmem:[#allocation22 + $0x9c0] sm:$0xff] }
 0x7f2   : > { %9534 = vmatpush1.bf16.msra.mxu1 %v16127_v50  ;;  %9494 = vmatprep.subr.bf16.mxu0 %v16008_v14  ;;  %v16304_v50 = vcombine.high %v6766_v5, %v6770_v6  ;;  %v6646_v14 = vld [vmem:[#allocation22 + $0x940] sm:$0xff] }
 0x7f3   : > { %9535 = vmatprep.subr.bf16.mxu1 %v16136_v16  ;;  %v6774_v16 = vld [vmem:[#allocation22 + $0xd40] sm:$0xff]  ;;  %v16184_v20 = vcombine.high %v6646_v14, %v6650_v15 }
 0x7f4   : > { %v16311_v28 = vcombine.low %v6774_v16, %v6778_v17  ;;  %v6670_v43 = vld [vmem:[#allocation22 + $0xa00] sm:$0xff] }
 0x7f5   : > { %9495 = vmatpush1.bf16.msra.mxu0 %v16007_v21  ;;  %v16312_v21 = vcombine.high %v6774_v16, %v6778_v17  ;;  %v6678_v62 = vld [vmem:[#allocation22 + $0xa40] sm:$0xff] }
 0x7f6   : > { %9536 = vmatpush1.bf16.msra.mxu1 %v16135_v23  ;;  %9546 = vmatprep.subr.bf16.mxu0 %v16144_v24  ;;  %v6658_v23 = vld [vmem:[#allocation22 + $0x9a0] sm:$0xff] }
 0x7f7   : > { %9587 = vmatprep.subr.bf16.mxu1 %v16272_v7  ;;  %v6782_v24 = vld [vmem:[#allocation22 + $0xd80] sm:$0xff]  ;;  %v16183_v7 = vcombine.low %v6646_v14, %v6650_v15  ;;  %v16192_v35 = vcombine.high %v6654_v22, %v6658_v23 }
 0x7f8   : > { %9497 = vmatmul.mubr.bf16.vlgmr.msra.gmra.mrb[32].mxu0 %v19782_v36  ;;  %v16320_v31 = vcombine.high %v6782_v24, %v6786_v25  ;;  %v16319_v42 = vcombine.low %v6782_v24, %v6786_v25  ;;  %v6682_v5 = vld [vmem:[#allocation22 + $0xa60] sm:$0xff] }
 0x7f9   : > { %9538 = vmatmul.mubr.bf16.vlgmr.msra.gmra.mrb[32].mxu1 %v19784_v40  ;;  %9547 = vmatpush1.bf16.msra.mxu0 %v16143_v1  ;;  %v6666_v1 = vld [vmem:[#allocation22 + $0x9e0] sm:$0xff] }
 0x7fa   : > { %9588 = vmatpush1.bf16.msra.mxu1 %v16271_v38  ;;  %9548 = vmatprep.subr.bf16.mxu0 %v16152_v29  ;;  %v6790_v38 = vld [vmem:[#allocation22 + $0xdc0] sm:$0xff]  ;;  %v16200_v32 = vcombine.high %v6662_v34, %v6666_v1  ;;  %v16199_v58 = vcombine.low %v6662_v34, %v6666_v1 }
 0x7fb   : > { %9589 = vmatprep.subr.bf16.mxu1 %v16280_v41  ;;  %v6794_v29 = vld [vmem:[#allocation22 + $0xde0] sm:$0xff]  ;;  %v16191_v41 = vcombine.low %v6654_v22, %v6658_v23 }
 0x7fc   : > { %v16328_v44 = vcombine.high %v6790_v38, %v6794_v29  ;;  %v16327_v33 = vcombine.low %v6790_v38, %v6794_v29  ;;  %v6806_v6 = vld [vmem:[#allocation22 + $0xe40] sm:$0xff] }
 0x7fd   : > { %9549 = vmatpush1.bf16.msra.mxu0 %v16151_v37  ;;  %v6674_v37 = vld [vmem:[#allocation22 + $0xa20] sm:$0xff] }
 0x7fe   : > { %9590 = vmatpush1.bf16.msra.mxu1 %v16279_v47  ;;  %9550 = vmatprep.subr.bf16.mxu0 %v16160_v48  ;;  %v6798_v47 = vld [vmem:[#allocation22 + $0xe00] sm:$0xff] }
 0x7ff   : > { %9591 = vmatprep.subr.bf16.mxu1 %v16288_v53  ;;  %v6802_v48 = vld [vmem:[#allocation22 + $0xe20] sm:$0xff]  ;;  %v19788_v53 = vld [vmem:[#allocation22 + $0x8] sm:$0xff] }
 0x800   : > { %v16336_v9 = vcombine.high %v6798_v47, %v6802_v48  ;;  %v6686_v15 = vld [vmem:[#allocation22 + $0xa80] sm:$0xff] }
 0x801   : > { %9551 = vmatpush1.bf16.msra.mxu0 %v16159_v61  ;;  %v19794_v61 = vld [vmem:[#allocation22 + $0x428] sm:$0xff]  ;;  %v6690_v16 = vld [vmem:[#allocation22 + $0xaa0] sm:$0xff] }
 0x802   : > { %9592 = vmatpush1.bf16.msra.mxu1 %v16287_v63  ;;  %9552 = vmatprep.subr.bf16.mxu0 %v16168_v11  ;;  %v16208_v63 = vcombine.high %v6670_v43, %v6674_v37  ;;  %v15889_v11 = vcombine.low %v19788_v53, %v19790_v54  ;;  %v6814_v17 = vld [vmem:[#allocation22 + $0xe80] sm:$0xff] }
 0x803   : > { %9593 = vmatprep.subr.bf16.mxu1 %v16296_v3  ;;  %v16017_v3 = vcombine.low %v19792_v57, %v19794_v61  ;;  %v6694_v23 = vld [vmem:[#allocation22 + $0xac0] sm:$0xff] }
 0x804   : > { %v6698_v24 = vld [vmem:[#allocation22 + $0xae0] sm:$0xff] }
 0x805   : > { %9553 = vmatpush1.bf16.msra.mxu0 %v16167_v8  ;;  %v6810_v8 = vld [vmem:[#allocation22 + $0xe60] sm:$0xff] }
 0x806   : > { %9594 = vmatpush1.bf16.msra.mxu1 %v16295_v12  ;;  %9554 = vmatprep.subr.bf16.mxu0 %v16176_v18  ;;  %v16207_v12 = vcombine.low %v6670_v43, %v6674_v37  ;;  %v16335_v18 = vcombine.low %v6798_v47, %v6802_v48  ;;  %v16344_v14 = vcombine.high %v6806_v6, %v6810_v8  ;;  %v6822_v25 = vld [vmem:[#allocation22 + $0xec0] sm:$0xff] }
 0x807   : > { %9595 = vmatprep.subr.bf16.mxu1 %v16304_v50  ;;  %v16216_v50 = vcombine.high %v6678_v62, %v6682_v5  ;;  %v6702_v1 = vld [vmem:[#allocation22 + $0xb00] sm:$0xff] }
 0x808   : > { %v6706_v38 = vld [vmem:[#allocation22 + $0xb20] sm:$0xff] }
 0x809   : > { %9555 = vmatpush1.bf16.msra.mxu0 %v16175_v19  ;;  %v6818_v19 = vld [vmem:[#allocation22 + $0xea0] sm:$0xff]  ;;  %v16240_v43 = vcombine.high %v6702_v1, %v6706_v38 }
 0x80a   : > { %9596 = vmatpush1.bf16.msra.mxu1 %v16303_v10  ;;  %9556 = vmatprep.subr.bf16.mxu0 %v16184_v20  ;;  %v16215_v10 = vcombine.low %v6678_v62, %v6682_v5  ;;  %v16343_v20 = vcombine.low %v6806_v6, %v6810_v8  ;;  %v16352_v22 = vcombine.high %v6814_v17, %v6818_v19  ;;  %v6830_v29 = vld [vmem:[#allocation22 + $0xf00] sm:$0xff] }
 0x80b   : > { %9597 = vmatprep.subr.bf16.mxu1 %v16312_v21  ;;  %v16224_v21 = vcombine.high %v6686_v15, %v6690_v16  ;;  %v6710_v37 = vld [vmem:[#allocation22 + $0xb40] sm:$0xff] }
 0x80c   : > { %v6714_v47 = vld [vmem:[#allocation22 + $0xb60] sm:$0xff] }
 0x80d   : > { %9557 = vmatpush1.bf16.msra.mxu0 %v16183_v7  ;;  %v6826_v7 = vld [vmem:[#allocation22 + $0xee0] sm:$0xff] }
 0x80e   : > { %9598 = vmatpush1.bf16.msra.mxu1 %v16311_v28  ;;  %9558 = vmatprep.subr.bf16.mxu0 %v16192_v35  ;;  %v16223_v28 = vcombine.low %v6686_v15, %v6690_v16  ;;  %v16351_v35 = vcombine.low %v6814_v17, %v6818_v19  ;;  %v16360_v34 = vcombine.high %v6822_v25, %v6826_v7  ;;  %v6838_v48 = vld [vmem:[#allocation22 + $0xf40] sm:$0xff] }
 0x80f   : > { %9599 = vmatprep.subr.bf16.mxu1 %v16320_v31  ;;  %v16232_v31 = vcombine.high %v6694_v23, %v6698_v24  ;;  %v6718_v5 = vld [vmem:[#allocation22 + $0xb80] sm:$0xff] }
 0x810   : > { %v6722_v6 = vld [vmem:[#allocation22 + $0xba0] sm:$0xff] }
 0x811   : > { %9559 = vmatpush1.bf16.msra.mxu0 %v16191_v41  ;;  %v6834_v41 = vld [vmem:[#allocation22 + $0xf20] sm:$0xff] }
 0x812   : > { %9600 = vmatpush1.bf16.msra.mxu1 %v16319_v42  ;;  %9560 = vmatprep.subr.bf16.mxu0 %v16200_v32  ;;  %v16231_v42 = vcombine.low %v6694_v23, %v6698_v24  ;;  %v16359_v32 = vcombine.low %v6822_v25, %v6826_v7  ;;  %v6846_v8 = vld [vmem:[#allocation22 + $0xf80] sm:$0xff]  ;;  %v15890_v7 = vcombine.high %v19788_v53, %v19790_v54 }
 0x813   : > { %9601 = vmatprep.subr.bf16.mxu1 %v16328_v44  ;;  %v16368_v44 = vcombine.high %v6830_v29, %v6834_v41  ;;  %v6726_v16 = vld [vmem:[#allocation22 + $0xbc0] sm:$0xff] }
 0x814   : > { %v6730_v17 = vld [vmem:[#allocation22 + $0xbe0] sm:$0xff] }
 0x815   : > { %9561 = vmatpush1.bf16.msra.mxu0 %v16199_v58  ;;  %v6842_v58 = vld [vmem:[#allocation22 + $0xf60] sm:$0xff]  ;;  %v16263_v24 = vcombine.low %v6726_v16, %v6730_v17 }
 0x816   : > { %9602 = vmatpush1.bf16.msra.mxu1 %v16327_v33  ;;  %9562 = vmatprep.subr.bf16.mxu0 %v16208_v63  ;;  %v16239_v33 = vcombine.low %v6702_v1, %v6706_v38  ;;  %v16367_v63 = vcombine.low %v6830_v29, %v6834_v41  ;;  %v16376_v62 = vcombine.high %v6838_v48, %v6842_v58  ;;  %v6854_v19 = vld [vmem:[#allocation22 + $0xfc0] sm:$0xff]  ;;  %v19814_v1 = vsub.s32 7, %v19632_v49 }
 0x817   : > { %9603 = vmatprep.subr.bf16.mxu1 %v16336_v9  ;;  %v16248_v9 = vcombine.high %v6710_v37, %v6714_v47 }
 0x819   : > { %9563 = vmatpush1.bf16.msra.mxu0 %v16207_v12  ;;  %v6850_v12 = vld [vmem:[#allocation22 + $0xfa0] sm:$0xff] }
 0x81a   : > { %9604 = vmatpush1.bf16.msra.mxu1 %v16335_v18  ;;  %9564 = vmatprep.subr.bf16.mxu0 %v16216_v50  ;;  %v16247_v18 = vcombine.low %v6710_v37, %v6714_v47  ;;  %v16375_v50 = vcombine.low %v6838_v48, %v6842_v58  ;;  %v16384_v15 = vcombine.high %v6846_v8, %v6850_v12 }
 0x81b   : > { %9605 = vmatprep.subr.bf16.mxu1 %v16344_v14  ;;  %v16256_v14 = vcombine.high %v6718_v5, %v6722_v6 }
 0x81d   : > { %9565 = vmatpush1.bf16.msra.mxu0 %v16215_v10  ;;  %v6858_v10 = vld [vmem:[#allocation22 + $0xfe0] sm:$0xff] }
 0x81e   : > { %9606 = vmatpush1.bf16.msra.mxu1 %v16343_v20  ;;  %9566 = vmatprep.subr.bf16.mxu0 %v16224_v21  ;;  %v16255_v20 = vcombine.low %v6718_v5, %v6722_v6  ;;  %v16383_v21 = vcombine.low %v6846_v8, %v6850_v12  ;;  %v16392_v23 = vcombine.high %v6854_v19, %v6858_v10  ;;  %v6363_v5 = vld [vmem:[#allocation22 + $0x68] sm:$0xff] }
 0x81f   : > { %9607 = vmatprep.subr.bf16.mxu1 %v16352_v22  ;;  %v16264_v22 = vcombine.high %v6726_v16, %v6730_v17  ;;  %v16391_v25 = vcombine.low %v6854_v19, %v6858_v10  ;;  %v6487_v12 = vld [vmem:[#allocation22 + $0x448] sm:$0xff] }
 0x820   : > { %v6367_v16 = vld [vmem:[#allocation22 + $0x88] sm:$0xff] }
 0x821   : > { %9567 = vmatpush1.bf16.msra.mxu0 %v16223_v28  ;;  %v16018_v28 = vcombine.high %v19792_v57, %v19794_v61  ;;  %v6371_v17 = vld [vmem:[#allocation22 + $0xa8] sm:$0xff] }
 0x822   : > { %9608 = vmatpush1.bf16.msra.mxu1 %v16351_v35  ;;  %9568 = vmatprep.subr.bf16.mxu0 %v16232_v31  ;;  %v19805_v35 = vsub.s32 4, %v19632_v49  ;;  %v19808_v31 = vsub.s32 6, %v19632_v49  ;;  %v6495_v10 = vld [vmem:[#allocation22 + $0x488] sm:$0xff]  ;;  %v15905_v53 = vcombine.low %v6367_v16, %v6371_v17 }
 0x823   : > { %9609 = vmatprep.subr.bf16.mxu1 %v16360_v34  ;;  %v19811_v34 = vsub.s32 5, %v19632_v49 }
 0x824   : > { %v3105_v38 = vrot.slane %v19760_v13, %v19805_v35  ;;  %v3113_v29 = vrot.slane %v19760_v13, %v19808_v31 }
 0x825   : > { %9569 = vmatpush1.bf16.msra.mxu0 %v16231_v42  ;;  %v3109_v41 = vrot.slane %v19760_v13, %v19811_v34  ;;  %v3117_v42 = vrot.slane %v19760_v13, %v19814_v1 }
 0x826   : > { %9610 = vmatpush1.bf16.msra.mxu1 %v16359_v32  ;;  %9570 = vmatprep.subr.bf16.mxu0 %v16240_v43 }
 0x827   : > { %9611 = vmatprep.subr.bf16.mxu1 %v16368_v44 }
 0x829   : > { %9571 = vmatpush1.bf16.msra.mxu0 %v16239_v33 }
 0x82a   : > { %9612 = vmatpush1.bf16.msra.mxu1 %v16367_v63  ;;  %9572 = vmatprep.subr.bf16.mxu0 %v16248_v9 }
 0x82b   : > { %9613 = vmatprep.subr.bf16.mxu1 %v16376_v62  ;;  %v6359_v62 = vld [vmem:[#allocation22 + $0x48] sm:$0xff] }
 0x82d   : > { %9573 = vmatpush1.bf16.msra.mxu0 %v16247_v18  ;;  %v6491_v18 = vld [vmem:[#allocation22 + $0x468] sm:$0xff] }
 0x82e   : > { %9614 = vmatpush1.bf16.msra.mxu1 %v16375_v50  ;;  %9574 = vmatprep.subr.bf16.mxu0 %v16256_v14  ;;  %v16026_v19 = vcombine.high %v6487_v12, %v6491_v18 }
 0x82f   : > { %9615 = vmatprep.subr.bf16.mxu1 %v16384_v15  ;;  %v15898_v15 = vcombine.high %v6359_v62, %v6363_v5 }
 0x831   : > { %9575 = vmatpush1.bf16.msra.mxu0 %v16255_v20  ;;  %v6499_v20 = vld [vmem:[#allocation22 + $0x4a8] sm:$0xff] }
 0x832   : > { %9616 = vmatpush1.bf16.msra.mxu1 %v16383_v21  ;;  %9576 = vmatprep.subr.bf16.mxu0 %v16264_v22  ;;  %v15897_v21 = vcombine.low %v6359_v62, %v6363_v5  ;;  %v16025_v22 = vcombine.low %v6487_v12, %v6491_v18  ;;  %v16033_v54 = vcombine.low %v6495_v10, %v6499_v20  ;;  %v6399_v62 = vld [vmem:[#allocation22 + $0x188] sm:$0xff] }
 0x833   : > { %9617 = vmatprep.subr.bf16.mxu1 %v16392_v23  ;;  %v15906_v23 = vcombine.high %v6367_v16, %v6371_v17  ;;  %v6403_v5 = vld [vmem:[#allocation22 + $0x1a8] sm:$0xff] }
 0x834   : > { %v6531_v12 = vld [vmem:[#allocation22 + $0x5a8] sm:$0xff]  ;;  %v15938_v16 = vcombine.high %v6399_v62, %v6403_v5 }
 0x835   : > { %9577 = vmatpush1.bf16.msra.mxu0 %v16263_v24  ;;  %v16034_v24 = vcombine.high %v6495_v10, %v6499_v20  ;;  %v6411_v10 = vld [vmem:[#allocation22 + $0x1e8] sm:$0xff] }
 0x836   : > { %9618 = vmatpush1.bf16.msra.mxu1 %v16391_v25  ;;  %9628 = vmatprep.subr.bf16.mxu0 %v15890_v7  ;;  %v6375_v25 = vld [vmem:[#allocation22 + $0xc8] sm:$0xff] }
 0x837   : > { %9669 = vmatprep.subr.bf16.mxu1 %v16018_v28  ;;  %v6379_v7 = vld [vmem:[#allocation22 + $0xe8] sm:$0xff] }
 0x838   : > { %v6503_v28 = vld [vmem:[#allocation22 + $0x4c8] sm:$0xff]  ;;  %v15914_v57 = vcombine.high %v6375_v25, %v6379_v7 }
 0x839   : > { %v6535_v20 = vld [vmem:[#allocation22 + $0x5c8] sm:$0xff] }
 0x88b   : > { %v6171_v32 = vpop.f32.mrb[28].mxu0 }
 0x88c   : > { %v17194_v43 = vadd.f32 %v6171_v32, %v3105_v38  ;;  %v6335_v44 = vpop.f32.mrb[28].mxu1  ;;  %v6173_v37 = vpop.f32.mrb[29].mxu0  ;;  %v6507_v38 = vld [vmem:[#allocation22 + $0x4e8] sm:$0xff] }
 0x88d   : > { %v17196_v47 = vadd.f32 %v6335_v44, %v3113_v29  ;;  %v17195_v48 = vadd.f32 %v6173_v37, %v3109_v41  ;;  %v6337_v49 = vpop.f32.mrb[29].mxu1  ;;  %v6175_v58 = vpop.f32.mrb[30].mxu0  ;;  %v16042_v61 = vcombine.high %v6503_v28, %v6507_v38  ;;  %v6511_v29 = vld [vmem:[#allocation22 + $0x508] sm:$0xff]  ;;  %v16041_v32 = vcombine.low %v6503_v28, %v6507_v38 }
 0x88e   : > { %v17197_v33 = vadd.f32 %v6337_v49, %v3117_v42  ;;  %v6339_v63 = vpop.f32.mrb[30].mxu1  ;;  %v6176_v9 = vpop.f32.mrb[31].mxu0  ;;  %v19826_v50 = vpack.c.bf16 %v17194_v43, %v17194_v43  ;;  %v6515_v41 = vld [vmem:[#allocation22 + $0x528] sm:$0xff]  ;;  %v15913_v42 = vcombine.low %v6375_v25, %v6379_v7 }
 0x88f   : > { %v19824_v6 = vpack.c.bf16 %v17195_v48, %v17195_v48  ;;  %v6340_v8 = vpop.f32.mrb[31].mxu1  ;;  %v19830_v14 = vpack.c.bf16 %v17196_v47, %v17196_v47  ;;  %v16050_v44 = vcombine.high %v6511_v29, %v6515_v41  ;;  %v6391_v37 = vld [vmem:[#allocation22 + $0x148] sm:$0xff] }
 0x890   : > { %v19828_v13 = vpack.c.bf16 %v17197_v33, %v17197_v33  ;;  %v6395_v47 = vld [vmem:[#allocation22 + $0x168] sm:$0xff]  ;;  %v16049_v33 = vcombine.low %v6511_v29, %v6515_v41 }
 0x891   : > { %9578 = vmatprep.mubr.bf16.mxu0 %v19824_v6  ;;  %v6519_v48 = vld [vmem:[#allocation22 + $0x548] sm:$0xff]  ;;  %v15930_v63 = vcombine.high %v6391_v37, %v6395_v47  ;;  %v15929_v18 = vcombine.low %v6391_v37, %v6395_v47 }
 0x892   : > { %9619 = vmatprep.mubr.bf16.mxu1 %v19828_v13  ;;  %9579 = vmatmul.mubr.bf16.vlgmr.msra.gmra.mrb[36].mxu0 %v19826_v50  ;;  %v6523_v49 = vld [vmem:[#allocation22 + $0x568] sm:$0xff] }
 0x893   : > { %9620 = vmatmul.mubr.bf16.vlgmr.msra.gmra.mrb[36].mxu1 %v19830_v14  ;;  %9629 = vmatpush1.bf16.msra.mxu0 %v15889_v11  ;;  %v6383_v11 = vld [vmem:[#allocation22 + $0x108] sm:$0xff]  ;;  %v16058_v9 = vcombine.high %v6519_v48, %v6523_v49 }
 0x894   : > { %9670 = vmatpush1.bf16.msra.mxu1 %v16017_v3  ;;  %9660 = vmatprep.mubr.bf16.mxu0 %v19768_v46  ;;  %v6387_v3 = vld [vmem:[#allocation22 + $0x128] sm:$0xff] }
 0x895   : > { %9701 = vmatprep.mubr.bf16.mxu1 %v19771_v51  ;;  %9630 = vmatprep.subr.bf16.mxu0 %v15898_v15  ;;  %v15922_v43 = vcombine.high %v6383_v11, %v6387_v3  ;;  %v15921_v58 = vcombine.low %v6383_v11, %v6387_v3  ;;  %v6527_v8 = vld [vmem:[#allocation22 + $0x588] sm:$0xff]  ;;  %v16057_v15 = vcombine.low %v6519_v48, %v6523_v49 }
 0x896   : > { %9671 = vmatprep.subr.bf16.mxu1 %v16026_v19  ;;  %v16066_v17 = vcombine.high %v6527_v8, %v6531_v12  ;;  %v6407_v19 = vld [vmem:[#allocation22 + $0x1c8] sm:$0xff] }
 0x897   : > { %9631 = vmatpush1.bf16.msra.mxu0 %v15897_v21  ;;  %v6539_v21 = vld [vmem:[#allocation22 + $0x5e8] sm:$0xff] }
 0x898   : > { %9672 = vmatpush1.bf16.msra.mxu1 %v16025_v22  ;;  %9632 = vmatprep.subr.bf16.mxu0 %v15906_v23  ;;  %v15937_v22 = vcombine.low %v6399_v62, %v6403_v5  ;;  %v16065_v23 = vcombine.low %v6527_v8, %v6531_v12  ;;  %v16074_v25 = vcombine.high %v6535_v20, %v6539_v21  ;;  %v6415_v7 = vld [vmem:[#allocation22 + $0x208] sm:$0xff] }
 0x899   : > { %9673 = vmatprep.subr.bf16.mxu1 %v16034_v24  ;;  %v15946_v24 = vcombine.high %v6407_v19, %v6411_v10  ;;  %v6419_v28 = vld [vmem:[#allocation22 + $0x228] sm:$0xff] }
 0x89a   : > { %v6543_v38 = vld [vmem:[#allocation22 + $0x608] sm:$0xff] }
 0x89b   : > { %9633 = vmatpush1.bf16.msra.mxu0 %v15905_v53  ;;  %v6547_v53 = vld [vmem:[#allocation22 + $0x628] sm:$0xff] }
 0x89c   : > { %9674 = vmatpush1.bf16.msra.mxu1 %v16033_v54  ;;  %9634 = vmatprep.subr.bf16.mxu0 %v15914_v57  ;;  %v15945_v54 = vcombine.low %v6407_v19, %v6411_v10  ;;  %v16073_v57 = vcombine.low %v6535_v20, %v6539_v21  ;;  %v16082_v11 = vcombine.high %v6543_v38, %v6547_v53  ;;  %v6423_v3 = vld [vmem:[#allocation22 + $0x248] sm:$0xff] }
 0x89d   : > { %9675 = vmatprep.subr.bf16.mxu1 %v16042_v61  ;;  %v15954_v61 = vcombine.high %v6415_v7, %v6419_v28  ;;  %v6427_v29 = vld [vmem:[#allocation22 + $0x268] sm:$0xff] }
 0x89e   : > { %v6551_v41 = vld [vmem:[#allocation22 + $0x648] sm:$0xff] }
 0x89f   : > { %9635 = vmatpush1.bf16.msra.mxu0 %v15913_v42  ;;  %v6555_v42 = vld [vmem:[#allocation22 + $0x668] sm:$0xff] }
 0x8a0   : > { %9676 = vmatpush1.bf16.msra.mxu1 %v16041_v32  ;;  %9636 = vmatprep.subr.bf16.mxu0 %v15922_v43  ;;  %v15953_v32 = vcombine.low %v6415_v7, %v6419_v28  ;;  %v16081_v43 = vcombine.low %v6543_v38, %v6547_v53  ;;  %v16090_v37 = vcombine.high %v6551_v41, %v6555_v42  ;;  %v6431_v47 = vld [vmem:[#allocation22 + $0x288] sm:$0xff] }
 0x8a1   : > { %9677 = vmatprep.subr.bf16.mxu1 %v16050_v44  ;;  %v15962_v44 = vcombine.high %v6423_v3, %v6427_v29  ;;  %v6435_v48 = vld [vmem:[#allocation22 + $0x2a8] sm:$0xff] }
 0x8a2   : > { %v6559_v49 = vld [vmem:[#allocation22 + $0x688] sm:$0xff] }
 0x8a3   : > { %9637 = vmatpush1.bf16.msra.mxu0 %v15921_v58  ;;  %v6563_v58 = vld [vmem:[#allocation22 + $0x6a8] sm:$0xff] }
 0x8a4   : > { %9678 = vmatpush1.bf16.msra.mxu1 %v16049_v33  ;;  %9638 = vmatprep.subr.bf16.mxu0 %v15930_v63  ;;  %v15961_v33 = vcombine.low %v6423_v3, %v6427_v29  ;;  %v16089_v63 = vcombine.low %v6551_v41, %v6555_v42  ;;  %v16098_v62 = vcombine.high %v6559_v49, %v6563_v58  ;;  %v6439_v5 = vld [vmem:[#allocation22 + $0x2c8] sm:$0xff] }
 0x8a5   : > { %9679 = vmatprep.subr.bf16.mxu1 %v16058_v9  ;;  %v15970_v9 = vcombine.high %v6431_v47, %v6435_v48  ;;  %v6443_v8 = vld [vmem:[#allocation22 + $0x2e8] sm:$0xff] }
 0x8a6   : > { %v6567_v12 = vld [vmem:[#allocation22 + $0x6c8] sm:$0xff] }
 0x8a7   : > { %9639 = vmatpush1.bf16.msra.mxu0 %v15929_v18  ;;  %v6571_v18 = vld [vmem:[#allocation22 + $0x6e8] sm:$0xff] }
 0x8a8   : > { %9680 = vmatpush1.bf16.msra.mxu1 %v16057_v15  ;;  %9640 = vmatprep.subr.bf16.mxu0 %v15938_v16  ;;  %v15969_v15 = vcombine.low %v6431_v47, %v6435_v48  ;;  %v16097_v16 = vcombine.low %v6559_v49, %v6563_v58  ;;  %v16106_v19 = vcombine.high %v6567_v12, %v6571_v18  ;;  %v6447_v10 = vld [vmem:[#allocation22 + $0x308] sm:$0xff]  ;;  %v6862_v48 = vld [vmem:[#allocation24] sm:$0xff] }
 0x8a9   : > { %9681 = vmatprep.subr.bf16.mxu1 %v16066_v17  ;;  %v15978_v17 = vcombine.high %v6439_v5, %v6443_v8  ;;  %v6451_v20 = vld [vmem:[#allocation22 + $0x328] sm:$0xff] }
 0x8aa   : > { %v6575_v21 = vld [vmem:[#allocation22 + $0x708] sm:$0xff] }
 0x8ab   : > { %9641 = vmatpush1.bf16.msra.mxu0 %v15937_v22  ;;  %v6579_v22 = vld [vmem:[#allocation22 + $0x728] sm:$0xff] }
 0x8ac   : > { %9682 = vmatpush1.bf16.msra.mxu1 %v16065_v23  ;;  %9642 = vmatprep.subr.bf16.mxu0 %v15946_v24  ;;  %v15977_v23 = vcombine.low %v6439_v5, %v6443_v8  ;;  %v16105_v24 = vcombine.low %v6567_v12, %v6571_v18  ;;  %v16114_v7 = vcombine.high %v6575_v21, %v6579_v22  ;;  %v6455_v28 = vld [vmem:[#allocation22 + $0x348] sm:$0xff] }
 0x8ad   : > { %9683 = vmatprep.subr.bf16.mxu1 %v16074_v25  ;;  %v15986_v25 = vcombine.high %v6447_v10, %v6451_v20  ;;  %v6459_v38 = vld [vmem:[#allocation22 + $0x368] sm:$0xff]  ;;  %v6867_v5 = vrot.slane %v6862_v48, %v19658_v60  ;;  %v6871_v12 = vrot.slane %v6862_v48, %v19635_v55 }
 0x8ae   : > { %v6583_v53 = vld [vmem:[#allocation22 + $0x748] sm:$0xff] }
 0x8af   : > { %9643 = vmatpush1.bf16.msra.mxu0 %v15945_v54  ;;  %v6587_v54 = vld [vmem:[#allocation22 + $0x768] sm:$0xff] }
 0x8b0   : > { %9684 = vmatpush1.bf16.msra.mxu1 %v16073_v57  ;;  %9644 = vmatprep.subr.bf16.mxu0 %v15954_v61  ;;  %v15985_v57 = vcombine.low %v6447_v10, %v6451_v20  ;;  %v16113_v61 = vcombine.low %v6575_v21, %v6579_v22  ;;  %v16122_v3 = vcombine.high %v6583_v53, %v6587_v54  ;;  %v6463_v29 = vld [vmem:[#allocation22 + $0x388] sm:$0xff] }
 0x8b1   : > { %9685 = vmatprep.subr.bf16.mxu1 %v16082_v11  ;;  %v15994_v11 = vcombine.high %v6455_v28, %v6459_v38  ;;  %v6467_v41 = vld [vmem:[#allocation22 + $0x3a8] sm:$0xff] }
 0x8b2   : > { %v6591_v42 = vld [vmem:[#allocation22 + $0x788] sm:$0xff] }
 0x8b3   : > { %9645 = vmatpush1.bf16.msra.mxu0 %v15953_v32  ;;  %v6595_v32 = vld [vmem:[#allocation22 + $0x7a8] sm:$0xff] }
 0x8b4   : > { %9686 = vmatpush1.bf16.msra.mxu1 %v16081_v43  ;;  %9646 = vmatprep.subr.bf16.mxu0 %v15962_v44  ;;  %v15993_v43 = vcombine.low %v6455_v28, %v6459_v38  ;;  %v16121_v44 = vcombine.low %v6583_v53, %v6587_v54  ;;  %v16130_v47 = vcombine.high %v6591_v42, %v6595_v32  ;;  %v6471_v49 = vld [vmem:[#allocation22 + $0x3c8] sm:$0xff] }
 0x8b5   : > { %9687 = vmatprep.subr.bf16.mxu1 %v16090_v37  ;;  %v16002_v37 = vcombine.high %v6463_v29, %v6467_v41  ;;  %v6475_v58 = vld [vmem:[#allocation22 + $0x3e8] sm:$0xff] }
 0x8b6   : > { %v16010_v8 = vcombine.high %v6471_v49, %v6475_v58  ;;  %v16009_v20 = vcombine.low %v6471_v49, %v6475_v58  ;;  %v6627_v48 = vld [vmem:[#allocation22 + $0x8a8] sm:$0xff] }
 0x8b7   : > { %9647 = vmatpush1.bf16.msra.mxu0 %v15961_v33  ;;  %v6599_v33 = vld [vmem:[#allocation22 + $0x7c8] sm:$0xff] }
 0x8b8   : > { %9688 = vmatpush1.bf16.msra.mxu1 %v16089_v63  ;;  %9648 = vmatprep.subr.bf16.mxu0 %v15970_v9  ;;  %v6603_v63 = vld [vmem:[#allocation22 + $0x7e8] sm:$0xff]  ;;  %v16001_v9 = vcombine.low %v6463_v29, %v6467_v41 }
 0x8b9   : > { %9689 = vmatprep.subr.bf16.mxu1 %v16098_v62  ;;  %v16129_v62 = vcombine.low %v6591_v42, %v6595_v32  ;;  %v16138_v18 = vcombine.high %v6599_v33, %v6603_v63  ;;  %v6743_v32 = vld [vmem:[#allocation22 + $0xc48] sm:$0xff] }
 0x8ba   : > { %v6751_v58 = vld [vmem:[#allocation22 + $0xc88] sm:$0xff] }
 0x8bb   : > { %9649 = vmatpush1.bf16.msra.mxu0 %v15969_v15  ;;  %v6607_v15 = vld [vmem:[#allocation22 + $0x808] sm:$0xff] }
 0x8bc   : > { %9690 = vmatpush1.bf16.msra.mxu1 %v16097_v16  ;;  %9650 = vmatprep.subr.bf16.mxu0 %v15978_v17  ;;  %v6611_v16 = vld [vmem:[#allocation22 + $0x828] sm:$0xff] }
 0x8bd   : > { %9691 = vmatprep.subr.bf16.mxu1 %v16106_v19  ;;  %v6735_v17 = vld [vmem:[#allocation22 + $0xc08] sm:$0xff]  ;;  %v16145_v42 = vcombine.low %v6607_v15, %v6611_v16 }
 0x8be   : > { %v6739_v19 = vld [vmem:[#allocation22 + $0xc28] sm:$0xff] }
 0x8bf   : > { %9651 = vmatpush1.bf16.msra.mxu0 %v15977_v23  ;;  %v16274_v53 = vcombine.high %v6735_v17, %v6739_v19 }
 0x8c0   : > { %9692 = vmatpush1.bf16.msra.mxu1 %v16105_v24  ;;  %9652 = vmatprep.subr.bf16.mxu0 %v15986_v25  ;;  %v16137_v24 = vcombine.low %v6599_v33, %v6603_v63  ;;  %v16146_v25 = vcombine.high %v6607_v15, %v6611_v16  ;;  %v6755_v33 = vld [vmem:[#allocation22 + $0xca8] sm:$0xff] }
 0x8c1   : > { %9693 = vmatprep.subr.bf16.mxu1 %v16114_v7  ;;  %v6763_v15 = vld [vmem:[#allocation22 + $0xce8] sm:$0xff] }
 0x8c3   : > { %9653 = vmatpush1.bf16.msra.mxu0 %v15985_v57 }
 0x8c4   : > { %9694 = vmatpush1.bf16.msra.mxu1 %v16113_v61  ;;  %9654 = vmatprep.subr.bf16.mxu0 %v15994_v11  ;;  %v6615_v11 = vld [vmem:[#allocation22 + $0x848] sm:$0xff] }
 0x8c5   : > { %9695 = vmatprep.subr.bf16.mxu1 %v16122_v3  ;;  %v6619_v3 = vld [vmem:[#allocation22 + $0x868] sm:$0xff] }
 0x8c6   : > { %v16153_v63 = vcombine.low %v6615_v11, %v6619_v3 }
 0x8c7   : > { %9655 = vmatpush1.bf16.msra.mxu0 %v15993_v43  ;;  %v6747_v43 = vld [vmem:[#allocation22 + $0xc68] sm:$0xff] }
 0x8c8   : > { %9696 = vmatpush1.bf16.msra.mxu1 %v16121_v44  ;;  %9656 = vmatprep.subr.bf16.mxu0 %v16002_v37  ;;  %v16273_v44 = vcombine.low %v6735_v17, %v6739_v19  ;;  %v16154_v37 = vcombine.high %v6615_v11, %v6619_v3  ;;  %v16282_v49 = vcombine.high %v6743_v32, %v6747_v43 }
 0x8c9   : > { %9697 = vmatprep.subr.bf16.mxu1 %v16130_v47  ;;  %v6623_v47 = vld [vmem:[#allocation22 + $0x888] sm:$0xff]  ;;  %v16289_v17 = vcombine.low %v6751_v58, %v6755_v33 }
 0x8ca   : > { %v16161_v16 = vcombine.low %v6623_v47, %v6627_v48 }
 0x8cb   : > { %9657 = vmatpush1.bf16.msra.mxu0 %v16001_v9  ;;  %v9498_v10 = vpop.f32.mrb[32].mxu0  ;;  %v16281_v9 = vcombine.low %v6743_v32, %v6747_v43  ;;  %v6655_v32 = vld [vmem:[#allocation22 + $0x988] sm:$0xff] }
 0x8cc   : > { %9698 = vmatpush1.bf16.msra.mxu1 %v16129_v62  ;;  %v9499_v21 = vadd.f32 %v9498_v10, %v6867_v5  ;;  %v9539_v22 = vpop.f32.mrb[32].mxu1  ;;  %v9500_v23 = vpop.f32.mrb[33].mxu0  ;;  %9658 = vmatprep.subr.bf16.mxu0 %v16010_v8  ;;  %v16162_v62 = vcombine.high %v6623_v47, %v6627_v48  ;;  %v16290_v5 = vcombine.high %v6751_v58, %v6755_v33  ;;  %v6631_v8 = vld [vmem:[#allocation22 + $0x8c8] sm:$0xff] }
 0x8cd   : > { %v9501_v7 = vadd.f32 %v9500_v23, %v6871_v12  ;;  %v9541_v28 = vpop.f32.mrb[33].mxu1  ;;  %v9502_v38 = vpop.f32.mrb[34].mxu0  ;;  %9699 = vmatprep.subr.bf16.mxu1 %v16138_v18  ;;  %v6635_v12 = vld [vmem:[#allocation22 + $0x8e8] sm:$0xff] }
 0x8ce   : > { %v19846_v54 = vadd.f32 %v9539_v22, %v9499_v21  ;;  %v9543_v57 = vpop.f32.mrb[34].mxu1  ;;  %v9503_v61 = vpop.f32.mrb[35].mxu0  ;;  %v6759_v18 = vld [vmem:[#allocation22 + $0xcc8] sm:$0xff]  ;;  %v16170_v19 = vcombine.high %v6631_v8, %v6635_v12 }
 0x8cf   : > { %v19848_v29 = vadd.f32 %v9541_v28, %v9501_v7  ;;  %v9544_v41 = vpop.f32.mrb[35].mxu1  ;;  %9659 = vmatpush1.bf16.msra.mxu0 %v16009_v20  ;;  %v16298_v10 = vcombine.high %v6759_v18, %v6763_v15  ;;  %v6639_v20 = vld [vmem:[#allocation22 + $0x908] sm:$0xff] }
 0x8d0   : > { %9700 = vmatpush1.bf16.msra.mxu1 %v16137_v24  ;;  %9710 = vmatprep.subr.bf16.mxu0 %v16146_v25  ;;  %v6643_v21 = vld [vmem:[#allocation22 + $0x928] sm:$0xff]  ;;  %v16169_v24 = vcombine.low %v6631_v8, %v6635_v12  ;;  %v16297_v25 = vcombine.low %v6759_v18, %v6763_v15 }
 0x8d1   : > { %9751 = vmatprep.subr.bf16.mxu1 %v16274_v53  ;;  %v6767_v22 = vld [vmem:[#allocation22 + $0xd08] sm:$0xff]  ;;  %v16178_v7 = vcombine.high %v6639_v20, %v6643_v21  ;;  %v16177_v11 = vcombine.low %v6639_v20, %v6643_v21 }
 0x8d2   : > { %9661 = vmatmul.mubr.bf16.vlgmr.msra.gmra.mrb[40].mxu0 %v19782_v36  ;;  %v6771_v23 = vld [vmem:[#allocation22 + $0xd28] sm:$0xff] }
 0x8d3   : > { %9702 = vmatmul.mubr.bf16.vlgmr.msra.gmra.mrb[40].mxu1 %v19784_v40  ;;  %9711 = vmatpush1.bf16.msra.mxu0 %v16145_v42  ;;  %v16306_v28 = vcombine.high %v6767_v22, %v6771_v23  ;;  %v6647_v38 = vld [vmem:[#allocation22 + $0x948] sm:$0xff]  ;;  %v16305_v3 = vcombine.low %v6767_v22, %v6771_v23 }
 0x8d4   : > { %9742 = vmatprep.mubr.bf16.mxu0 %v19824_v6  ;;  %9752 = vmatpush1.bf16.msra.mxu1 %v16273_v44  ;;  %v6651_v53 = vld [vmem:[#allocation22 + $0x968] sm:$0xff] }
 0x8d5   : > { %9783 = vmatprep.mubr.bf16.mxu1 %v19828_v13  ;;  %9712 = vmatprep.subr.bf16.mxu0 %v16154_v37  ;;  %v6775_v57 = vld [vmem:[#allocation22 + $0xd48] sm:$0xff]  ;;  %v16186_v41 = vcombine.high %v6647_v38, %v6651_v53  ;;  %v16185_v47 = vcombine.low %v6647_v38, %v6651_v53 }
 0x8d6   : > { %9753 = vmatprep.subr.bf16.mxu1 %v16282_v49  ;;  %v6779_v61 = vld [vmem:[#allocation22 + $0xd68] sm:$0xff] }
 0x8d7   : > { %9713 = vmatpush1.bf16.msra.mxu0 %v16153_v63  ;;  %v16314_v42 = vcombine.high %v6775_v57, %v6779_v61  ;;  %v6659_v43 = vld [vmem:[#allocation22 + $0x9a8] sm:$0xff]  ;;  %v16313_v48 = vcombine.low %v6775_v57, %v6779_v61 }
 0x8d8   : > { %9754 = vmatpush1.bf16.msra.mxu1 %v16281_v9  ;;  %9714 = vmatprep.subr.bf16.mxu0 %v16162_v62  ;;  %v6783_v44 = vld [vmem:[#allocation22 + $0xd88] sm:$0xff]  ;;  %v16194_v49 = vcombine.high %v6655_v32, %v6659_v43 }
 0x8d9   : > { %9755 = vmatprep.subr.bf16.mxu1 %v16290_v5  ;;  %v6787_v37 = vld [vmem:[#allocation22 + $0xda8] sm:$0xff]  ;;  %v16193_v5 = vcombine.low %v6655_v32, %v6659_v43 }
 0x8da   : > { %v16322_v58 = vcombine.high %v6783_v44, %v6787_v37  ;;  %v6663_v33 = vld [vmem:[#allocation22 + $0x9c8] sm:$0xff]  ;;  %v16321_v8 = vcombine.low %v6783_v44, %v6787_v37 }
 0x8db   : > { %9715 = vmatpush1.bf16.msra.mxu0 %v16161_v16  ;;  %v6667_v63 = vld [vmem:[#allocation22 + $0x9e8] sm:$0xff] }
 0x8dc   : > { %9756 = vmatpush1.bf16.msra.mxu1 %v16289_v17  ;;  %9716 = vmatprep.subr.bf16.mxu0 %v16170_v19  ;;  %v6791_v9 = vld [vmem:[#allocation22 + $0xdc8] sm:$0xff]  ;;  %v16202_v12 = vcombine.high %v6663_v33, %v6667_v63 }
 0x8dd   : > { %9757 = vmatprep.subr.bf16.mxu1 %v16298_v10  ;;  %v6795_v62 = vld [vmem:[#allocation22 + $0xde8] sm:$0xff]  ;;  %v16201_v10 = vcombine.low %v6663_v33, %v6667_v63 }
 0x8de   : > { %v16330_v18 = vcombine.high %v6791_v9, %v6795_v62  ;;  %v6671_v15 = vld [vmem:[#allocation22 + $0xa08] sm:$0xff]  ;;  %v16329_v20 = vcombine.low %v6791_v9, %v6795_v62 }
 0x8df   : > { %9717 = vmatpush1.bf16.msra.mxu0 %v16169_v24  ;;  %v6675_v16 = vld [vmem:[#allocation22 + $0xa28] sm:$0xff] }
 0x8e0   : > { %9758 = vmatpush1.bf16.msra.mxu1 %v16297_v25  ;;  %9718 = vmatprep.subr.bf16.mxu0 %v16178_v7  ;;  %v6799_v17 = vld [vmem:[#allocation22 + $0xe08] sm:$0xff]  ;;  %v16210_v21 = vcombine.high %v6671_v15, %v6675_v16 }
 0x8e1   : > { %9759 = vmatprep.subr.bf16.mxu1 %v16306_v28  ;;  %v6803_v19 = vld [vmem:[#allocation22 + $0xe28] sm:$0xff]  ;;  %v16209_v28 = vcombine.low %v6671_v15, %v6675_v16 }
 0x8e2   : > { %v16338_v22 = vcombine.high %v6799_v17, %v6803_v19  ;;  %v6679_v23 = vld [vmem:[#allocation22 + $0xa48] sm:$0xff]  ;;  %v16337_v38 = vcombine.low %v6799_v17, %v6803_v19 }
 0x8e3   : > { %9719 = vmatpush1.bf16.msra.mxu0 %v16177_v11  ;;  %v6683_v24 = vld [vmem:[#allocation22 + $0xa68] sm:$0xff] }
 0x8e4   : > { %9760 = vmatpush1.bf16.msra.mxu1 %v16305_v3  ;;  %9720 = vmatprep.subr.bf16.mxu0 %v16186_v41  ;;  %v6807_v25 = vld [vmem:[#allocation22 + $0xe48] sm:$0xff]  ;;  %v16218_v53 = vcombine.high %v6679_v23, %v6683_v24 }
 0x8e5   : > { %9761 = vmatprep.subr.bf16.mxu1 %v16314_v42  ;;  %v6811_v7 = vld [vmem:[#allocation22 + $0xe68] sm:$0xff]  ;;  %v16217_v42 = vcombine.low %v6679_v23, %v6683_v24 }
 0x8e6   : > { %v16346_v57 = vcombine.high %v6807_v25, %v6811_v7  ;;  %v6687_v61 = vld [vmem:[#allocation22 + $0xa88] sm:$0xff]  ;;  %v16345_v32 = vcombine.low %v6807_v25, %v6811_v7 }
 0x8e7   : > { %9721 = vmatpush1.bf16.msra.mxu0 %v16185_v47  ;;  %v6691_v11 = vld [vmem:[#allocation22 + $0xaa8] sm:$0xff] }
 0x8e8   : > { %9762 = vmatpush1.bf16.msra.mxu1 %v16313_v48  ;;  %9722 = vmatprep.subr.bf16.mxu0 %v16194_v49  ;;  %v6815_v3 = vld [vmem:[#allocation22 + $0xe88] sm:$0xff]  ;;  %v16226_v43 = vcombine.high %v6687_v61, %v6691_v11 }
 0x8e9   : > { %9763 = vmatprep.subr.bf16.mxu1 %v16322_v58  ;;  %v6819_v41 = vld [vmem:[#allocation22 + $0xea8] sm:$0xff]  ;;  %v16225_v58 = vcombine.low %v6687_v61, %v6691_v11 }
 0x8ea   : > { %v16354_v44 = vcombine.high %v6815_v3, %v6819_v41  ;;  %v6695_v37 = vld [vmem:[#allocation22 + $0xac8] sm:$0xff]  ;;  %v16353_v33 = vcombine.low %v6815_v3, %v6819_v41 }
 0x8eb   : > { %9723 = vmatpush1.bf16.msra.mxu0 %v16193_v5  ;;  %v6699_v47 = vld [vmem:[#allocation22 + $0xae8] sm:$0xff] }
 0x8ec   : > { %9764 = vmatpush1.bf16.msra.mxu1 %v16321_v8  ;;  %9724 = vmatprep.subr.bf16.mxu0 %v16202_v12  ;;  %v6823_v48 = vld [vmem:[#allocation22 + $0xec8] sm:$0xff]  ;;  %v16234_v63 = vcombine.high %v6695_v37, %v6699_v47 }
 0x8ed   : > { %9765 = vmatprep.subr.bf16.mxu1 %v16330_v18  ;;  %v6827_v49 = vld [vmem:[#allocation22 + $0xee8] sm:$0xff]  ;;  %v16233_v18 = vcombine.low %v6695_v37, %v6699_v47 }
 0x8ee   : > { %v16362_v9 = vcombine.high %v6823_v48, %v6827_v49  ;;  %v6703_v62 = vld [vmem:[#allocation22 + $0xb08] sm:$0xff]  ;;  %v16361_v15 = vcombine.low %v6823_v48, %v6827_v49  ;;  %v6352_v49 = vld [vmem:[#allocation22 + $0x10] sm:$0xff] }
 0x8ef   : > { %9725 = vmatpush1.bf16.msra.mxu0 %v16201_v10  ;;  %v6707_v5 = vld [vmem:[#allocation22 + $0xb28] sm:$0xff] }
 0x8f0   : > { %9766 = vmatpush1.bf16.msra.mxu1 %v16329_v20  ;;  %9726 = vmatprep.subr.bf16.mxu0 %v16210_v21  ;;  %v6831_v8 = vld [vmem:[#allocation22 + $0xf08] sm:$0xff]  ;;  %v16242_v16 = vcombine.high %v6703_v62, %v6707_v5 }
 0x8f1   : > { %9767 = vmatprep.subr.bf16.mxu1 %v16338_v22  ;;  %v6835_v12 = vld [vmem:[#allocation22 + $0xf28] sm:$0xff]  ;;  %v16241_v22 = vcombine.low %v6703_v62, %v6707_v5 }
 0x8f2   : > { %v16370_v17 = vcombine.high %v6831_v8, %v6835_v12  ;;  %v6711_v19 = vld [vmem:[#allocation22 + $0xb48] sm:$0xff]  ;;  %v16369_v23 = vcombine.low %v6831_v8, %v6835_v12  ;;  %v6360_v12 = vld [vmem:[#allocation22 + $0x50] sm:$0xff] }
 0x8f3   : > { %9727 = vmatpush1.bf16.msra.mxu0 %v16209_v28  ;;  %v6715_v10 = vld [vmem:[#allocation22 + $0xb68] sm:$0xff] }
 0x8f4   : > { %9768 = vmatpush1.bf16.msra.mxu1 %v16337_v38  ;;  %9728 = vmatprep.subr.bf16.mxu0 %v16218_v53  ;;  %v6839_v20 = vld [vmem:[#allocation22 + $0xf48] sm:$0xff]  ;;  %v16250_v24 = vcombine.high %v6711_v19, %v6715_v10 }
 0x8f5   : > { %9769 = vmatprep.subr.bf16.mxu1 %v16346_v57  ;;  %v6843_v21 = vld [vmem:[#allocation22 + $0xf68] sm:$0xff]  ;;  %v16249_v57 = vcombine.low %v6711_v19, %v6715_v10 }
 0x8f6   : > { %v16378_v25 = vcombine.high %v6839_v20, %v6843_v21  ;;  %v6719_v7 = vld [vmem:[#allocation22 + $0xb88] sm:$0xff]  ;;  %v16377_v61 = vcombine.low %v6839_v20, %v6843_v21  ;;  %v6368_v20 = vld [vmem:[#allocation22 + $0x90] sm:$0xff] }
 0x8f7   : > { %9729 = vmatpush1.bf16.msra.mxu0 %v16217_v42  ;;  %v6723_v28 = vld [vmem:[#allocation22 + $0xba8] sm:$0xff]  ;;  %v6372_v21 = vld [vmem:[#allocation22 + $0xb0] sm:$0xff] }
 0x8f8   : > { %9770 = vmatpush1.bf16.msra.mxu1 %v16345_v32  ;;  %9730 = vmatprep.subr.bf16.mxu0 %v16226_v43  ;;  %v6847_v38 = vld [vmem:[#allocation22 + $0xf88] sm:$0xff]  ;;  %v16258_v11 = vcombine.high %v6719_v7, %v6723_v28 }
 0x8f9   : > { %9771 = vmatprep.subr.bf16.mxu1 %v16354_v44  ;;  %v6851_v53 = vld [vmem:[#allocation22 + $0xfa8] sm:$0xff]  ;;  %v16257_v44 = vcombine.low %v6719_v7, %v6723_v28  ;;  %v15908_v28 = vcombine.high %v6368_v20, %v6372_v21 }
 0x8fa   : > { %v16386_v3 = vcombine.high %v6847_v38, %v6851_v53  ;;  %v6727_v41 = vld [vmem:[#allocation22 + $0xbc8] sm:$0xff]  ;;  %v16385_v37 = vcombine.low %v6847_v38, %v6851_v53  ;;  %v6376_v53 = vld [vmem:[#allocation22 + $0xd0] sm:$0xff] }
 0x8fb   : > { %9731 = vmatpush1.bf16.msra.mxu0 %v16225_v58  ;;  %v6731_v42 = vld [vmem:[#allocation22 + $0xbe8] sm:$0xff]  ;;  %v6356_v58 = vld [vmem:[#allocation22 + $0x30] sm:$0xff] }
 0x8fc   : > { %9772 = vmatpush1.bf16.msra.mxu1 %v16353_v33  ;;  %9732 = vmatprep.subr.bf16.mxu0 %v16234_v63  ;;  %v6855_v32 = vld [vmem:[#allocation22 + $0xfc8] sm:$0xff]  ;;  %v16266_v47 = vcombine.high %v6727_v41, %v6731_v42  ;;  %v6480_v33 = vld [vmem:[#allocation22 + $0x410] sm:$0xff]  ;;  %v15892_v5 = vcombine.high %v6352_v49, %v6356_v58 }
 0x8fd   : > { %9773 = vmatprep.subr.bf16.mxu1 %v16362_v9  ;;  %v6859_v43 = vld [vmem:[#allocation22 + $0xfe8] sm:$0xff]  ;;  %v6484_v63 = vld [vmem:[#allocation22 + $0x430] sm:$0xff]  ;;  %v16265_v9 = vcombine.low %v6727_v41, %v6731_v42 }
 0x8fe   : > { %v16394_v48 = vcombine.high %v6855_v32, %v6859_v43  ;;  %v16393_v62 = vcombine.low %v6855_v32, %v6859_v43  ;;  %v16020_v8 = vcombine.high %v6480_v33, %v6484_v63  ;;  %v16019_v19 = vcombine.low %v6480_v33, %v6484_v63  ;;  %v6384_v43 = vld [vmem:[#allocation22 + $0x110] sm:$0xff] }
 0x8ff   : > { %9733 = vmatpush1.bf16.msra.mxu0 %v16233_v18  ;;  %v6364_v18 = vld [vmem:[#allocation22 + $0x70] sm:$0xff] }
 0x900   : > { %9774 = vmatpush1.bf16.msra.mxu1 %v16361_v15  ;;  %9734 = vmatprep.subr.bf16.mxu0 %v16242_v16  ;;  %v15891_v15 = vcombine.low %v6352_v49, %v6356_v58  ;;  %v6488_v16 = vld [vmem:[#allocation22 + $0x450] sm:$0xff]  ;;  %v15900_v10 = vcombine.high %v6360_v12, %v6364_v18 }
 0x901   : > { %9775 = vmatprep.subr.bf16.mxu1 %v16370_v17  ;;  %v6492_v17 = vld [vmem:[#allocation22 + $0x470] sm:$0xff] }
 0x902   : > { %v16027_v7 = vcombine.low %v6488_v16, %v6492_v17  ;;  %v6392_v63 = vld [vmem:[#allocation22 + $0x150] sm:$0xff] }
 0x903   : > { %9735 = vmatpush1.bf16.msra.mxu0 %v16241_v22  ;;  %v16028_v22 = vcombine.high %v6488_v16, %v6492_v17  ;;  %v6400_v16 = vld [vmem:[#allocation22 + $0x190] sm:$0xff] }
 0x904   : > { %9776 = vmatpush1.bf16.msra.mxu1 %v16369_v23  ;;  %9736 = vmatprep.subr.bf16.mxu0 %v16250_v24  ;;  %v6496_v23 = vld [vmem:[#allocation22 + $0x490] sm:$0xff] }
 0x905   : > { %9777 = vmatprep.subr.bf16.mxu1 %v16378_v25  ;;  %v6500_v24 = vld [vmem:[#allocation22 + $0x4b0] sm:$0xff]  ;;  %v15899_v25 = vcombine.low %v6360_v12, %v6364_v18 }
 0x906   : > { %v16036_v38 = vcombine.high %v6496_v23, %v6500_v24  ;;  %v16035_v41 = vcombine.low %v6496_v23, %v6500_v24  ;;  %v6404_v17 = vld [vmem:[#allocation22 + $0x1b0] sm:$0xff] }
 0x907   : > { %9737 = vmatpush1.bf16.msra.mxu0 %v16249_v57  ;;  %v6380_v57 = vld [vmem:[#allocation22 + $0xf0] sm:$0xff] }
 0x908   : > { %9778 = vmatpush1.bf16.msra.mxu1 %v16377_v61  ;;  %9738 = vmatprep.subr.bf16.mxu0 %v16258_v11  ;;  %v6504_v61 = vld [vmem:[#allocation22 + $0x4d0] sm:$0xff]  ;;  %v15916_v42 = vcombine.high %v6376_v53, %v6380_v57 }
 0x909   : > { %9779 = vmatprep.subr.bf16.mxu1 %v16386_v3  ;;  %v6508_v11 = vld [vmem:[#allocation22 + $0x4f0] sm:$0xff]  ;;  %v15907_v3 = vcombine.low %v6368_v20, %v6372_v21 }
 0x90a   : > { %v16044_v32 = vcombine.high %v6504_v61, %v6508_v11  ;;  %v16043_v49 = vcombine.low %v6504_v61, %v6508_v11  ;;  %v6408_v24 = vld [vmem:[#allocation22 + $0x1d0] sm:$0xff] }
 0x90b   : > { %9739 = vmatpush1.bf16.msra.mxu0 %v16257_v44  ;;  %v6388_v44 = vld [vmem:[#allocation22 + $0x130] sm:$0xff] }
 0x90c   : > { %9780 = vmatpush1.bf16.msra.mxu1 %v16385_v37  ;;  %9740 = vmatprep.subr.bf16.mxu0 %v16266_v47  ;;  %v6512_v37 = vld [vmem:[#allocation22 + $0x510] sm:$0xff]  ;;  %v15924_v58 = vcombine.high %v6384_v43, %v6388_v44 }
 0x90d   : > { %9781 = vmatprep.subr.bf16.mxu1 %v16394_v48  ;;  %v6516_v47 = vld [vmem:[#allocation22 + $0x530] sm:$0xff]  ;;  %v15915_v48 = vcombine.low %v6376_v53, %v6380_v57 }
 0x90e   : > { %v16052_v33 = vcombine.high %v6512_v37, %v6516_v47  ;;  %v16051_v12 = vcombine.low %v6512_v37, %v6516_v47  ;;  %v6416_v11 = vld [vmem:[#allocation22 + $0x210] sm:$0xff] }
 0x90f   : > { %9741 = vmatpush1.bf16.msra.mxu0 %v16265_v9  ;;  %v6396_v9 = vld [vmem:[#allocation22 + $0x170] sm:$0xff] }
 0x910   : > { %9782 = vmatpush1.bf16.msra.mxu1 %v16393_v62  ;;  %9792 = vmatprep.subr.bf16.mxu0 %v15892_v5  ;;  %v6520_v62 = vld [vmem:[#allocation22 + $0x550] sm:$0xff]  ;;  %v15932_v18 = vcombine.high %v6392_v63, %v6396_v9  ;;  %v15931_v20 = vcombine.low %v6392_v63, %v6396_v9 }
 0x911   : > { %9833 = vmatprep.subr.bf16.mxu1 %v16020_v8  ;;  %v6524_v5 = vld [vmem:[#allocation22 + $0x570] sm:$0xff]  ;;  %v15923_v8 = vcombine.low %v6384_v43, %v6388_v44 }
 0x912   : > { %9743 = vmatmul.mubr.bf16.vlgmr.msra.gmra.mrb[44].mxu0 %v19826_v50  ;;  %v16059_v21 = vcombine.low %v6520_v62, %v6524_v5  ;;  %v6424_v47 = vld [vmem:[#allocation22 + $0x250] sm:$0xff] }
 0x913   : > { %9784 = vmatmul.mubr.bf16.vlgmr.msra.gmra.mrb[44].mxu1 %v19830_v14  ;;  %9793 = vmatpush1.bf16.msra.mxu0 %v15891_v15  ;;  %v16060_v15 = vcombine.high %v6520_v62, %v6524_v5  ;;  %v6432_v5 = vld [vmem:[#allocation22 + $0x290] sm:$0xff] }
 0x914   : > { %9824 = vmatprep.mubr.bf16.mxu0 %v19768_v46  ;;  %9834 = vmatpush1.bf16.msra.mxu1 %v16019_v19  ;;  %v6528_v19 = vld [vmem:[#allocation22 + $0x590] sm:$0xff] }
 0x915   : > { %9865 = vmatprep.mubr.bf16.mxu1 %v19771_v51  ;;  %9794 = vmatprep.subr.bf16.mxu0 %v15900_v10  ;;  %v6532_v10 = vld [vmem:[#allocation22 + $0x5b0] sm:$0xff] }
 0x916   : > { %9835 = vmatprep.subr.bf16.mxu1 %v16028_v22  ;;  %v15940_v22 = vcombine.high %v6400_v16, %v6404_v17  ;;  %v16068_v23 = vcombine.high %v6528_v19, %v6532_v10  ;;  %v16067_v53 = vcombine.low %v6528_v19, %v6532_v10  ;;  %v6440_v10 = vld [vmem:[#allocation22 + $0x2d0] sm:$0xff] }
 0x917   : > { %9795 = vmatpush1.bf16.msra.mxu0 %v15899_v25  ;;  %v6412_v25 = vld [vmem:[#allocation22 + $0x1f0] sm:$0xff] }
 0x918   : > { %9836 = vmatpush1.bf16.msra.mxu1 %v16027_v7  ;;  %9796 = vmatprep.subr.bf16.mxu0 %v15908_v28  ;;  %v6536_v7 = vld [vmem:[#allocation22 + $0x5d0] sm:$0xff]  ;;  %v15948_v57 = vcombine.high %v6408_v24, %v6412_v25 }
 0x919   : > { %9837 = vmatprep.subr.bf16.mxu1 %v16036_v38  ;;  %v6540_v28 = vld [vmem:[#allocation22 + $0x5f0] sm:$0xff]  ;;  %v15939_v38 = vcombine.low %v6400_v16, %v6404_v17 }
 0x91a   : > { %v16076_v61 = vcombine.high %v6536_v7, %v6540_v28  ;;  %v16075_v43 = vcombine.low %v6536_v7, %v6540_v28  ;;  %v6448_v28 = vld [vmem:[#allocation22 + $0x310] sm:$0xff] }
 0x91b   : > { %9797 = vmatpush1.bf16.msra.mxu0 %v15907_v3  ;;  %v6420_v3 = vld [vmem:[#allocation22 + $0x230] sm:$0xff] }
 0x91c   : > { %9838 = vmatpush1.bf16.msra.mxu1 %v16035_v41  ;;  %9798 = vmatprep.subr.bf16.mxu0 %v15916_v42  ;;  %v6544_v41 = vld [vmem:[#allocation22 + $0x610] sm:$0xff]  ;;  %v15956_v44 = vcombine.high %v6416_v11, %v6420_v3 }
 0x91d   : > { %9839 = vmatprep.subr.bf16.mxu1 %v16044_v32  ;;  %v6548_v42 = vld [vmem:[#allocation22 + $0x630] sm:$0xff]  ;;  %v15947_v32 = vcombine.low %v6408_v24, %v6412_v25 }
 0x91e   : > { %v16084_v37 = vcombine.high %v6544_v41, %v6548_v42  ;;  %v16083_v63 = vcombine.low %v6544_v41, %v6548_v42  ;;  %v6456_v42 = vld [vmem:[#allocation22 + $0x350] sm:$0xff] }
 0x91f   : > { %9799 = vmatpush1.bf16.msra.mxu0 %v15915_v48  ;;  %v6428_v48 = vld [vmem:[#allocation22 + $0x270] sm:$0xff] }
 0x920   : > { %9840 = vmatpush1.bf16.msra.mxu1 %v16043_v49  ;;  %9800 = vmatprep.subr.bf16.mxu0 %v15924_v58  ;;  %v6552_v49 = vld [vmem:[#allocation22 + $0x650] sm:$0xff]  ;;  %v15964_v9 = vcombine.high %v6424_v47, %v6428_v48 }
 0x921   : > { %9841 = vmatprep.subr.bf16.mxu1 %v16052_v33  ;;  %v6556_v58 = vld [vmem:[#allocation22 + $0x670] sm:$0xff]  ;;  %v15955_v33 = vcombine.low %v6416_v11, %v6420_v3 }
 0x922   : > { %v16092_v62 = vcombine.high %v6552_v49, %v6556_v58  ;;  %v16091_v16 = vcombine.low %v6552_v49, %v6556_v58  ;;  %v6464_v58 = vld [vmem:[#allocation22 + $0x390] sm:$0xff] }
 0x923   : > { %9801 = vmatpush1.bf16.msra.mxu0 %v15923_v8  ;;  %v6436_v8 = vld [vmem:[#allocation22 + $0x2b0] sm:$0xff] }
 0x924   : > { %9842 = vmatpush1.bf16.msra.mxu1 %v16051_v12  ;;  %9802 = vmatprep.subr.bf16.mxu0 %v15932_v18  ;;  %v6560_v12 = vld [vmem:[#allocation22 + $0x690] sm:$0xff]  ;;  %v15972_v17 = vcombine.high %v6432_v5, %v6436_v8 }
 0x925   : > { %9843 = vmatprep.subr.bf16.mxu1 %v16060_v15  ;;  %v6564_v18 = vld [vmem:[#allocation22 + $0x6b0] sm:$0xff]  ;;  %v15963_v15 = vcombine.low %v6424_v47, %v6428_v48 }
 0x926   : > { %v16100_v19 = vcombine.high %v6560_v12, %v6564_v18  ;;  %v16099_v24 = vcombine.low %v6560_v12, %v6564_v18  ;;  %v6472_v18 = vld [vmem:[#allocation22 + $0x3d0] sm:$0xff] }
 0x927   : > { %9803 = vmatpush1.bf16.msra.mxu0 %v15931_v20  ;;  %v6444_v20 = vld [vmem:[#allocation22 + $0x2f0] sm:$0xff] }
 0x928   : > { %9844 = vmatpush1.bf16.msra.mxu1 %v16059_v21  ;;  %9804 = vmatprep.subr.bf16.mxu0 %v15940_v22  ;;  %v6568_v21 = vld [vmem:[#allocation22 + $0x6d0] sm:$0xff]  ;;  %v15980_v25 = vcombine.high %v6440_v10, %v6444_v20 }
 0x929   : > { %9845 = vmatprep.subr.bf16.mxu1 %v16068_v23  ;;  %v6572_v22 = vld [vmem:[#allocation22 + $0x6f0] sm:$0xff]  ;;  %v15971_v23 = vcombine.low %v6432_v5, %v6436_v8 }
 0x92a   : > { %v16108_v7 = vcombine.high %v6568_v21, %v6572_v22  ;;  %v16107_v11 = vcombine.low %v6568_v21, %v6572_v22  ;;  %v6608_v22 = vld [vmem:[#allocation22 + $0x810] sm:$0xff] }
 0x92b   : > { %9805 = vmatpush1.bf16.msra.mxu0 %v15939_v38  ;;  %v6452_v38 = vld [vmem:[#allocation22 + $0x330] sm:$0xff] }
 0x92c   : > { %9846 = vmatpush1.bf16.msra.mxu1 %v16067_v53  ;;  %9806 = vmatprep.subr.bf16.mxu0 %v15948_v57  ;;  %v6576_v53 = vld [vmem:[#allocation22 + $0x710] sm:$0xff]  ;;  %v15988_v3 = vcombine.high %v6448_v28, %v6452_v38 }
 0x92d   : > { %9847 = vmatprep.subr.bf16.mxu1 %v16076_v61  ;;  %v6580_v57 = vld [vmem:[#allocation22 + $0x730] sm:$0xff]  ;;  %v15979_v61 = vcombine.low %v6440_v10, %v6444_v20 }
 0x92e   : > { %v16116_v41 = vcombine.high %v6576_v53, %v6580_v57  ;;  %v16115_v47 = vcombine.low %v6576_v53, %v6580_v57  ;;  %v6616_v57 = vld [vmem:[#allocation22 + $0x850] sm:$0xff] }
 0x92f   : > { %9807 = vmatpush1.bf16.msra.mxu0 %v15947_v32  ;;  %v6460_v32 = vld [vmem:[#allocation22 + $0x370] sm:$0xff] }
 0x930   : > { %9848 = vmatpush1.bf16.msra.mxu1 %v16075_v43  ;;  %9808 = vmatprep.subr.bf16.mxu0 %v15956_v44  ;;  %v6584_v43 = vld [vmem:[#allocation22 + $0x750] sm:$0xff]  ;;  %v15996_v48 = vcombine.high %v6456_v42, %v6460_v32 }
 0x931   : > { %9849 = vmatprep.subr.bf16.mxu1 %v16084_v37  ;;  %v6588_v44 = vld [vmem:[#allocation22 + $0x770] sm:$0xff]  ;;  %v15987_v37 = vcombine.low %v6448_v28, %v6452_v38 }
 0x932   : > { %v16124_v49 = vcombine.high %v6584_v43, %v6588_v44  ;;  %v16123_v5 = vcombine.low %v6584_v43, %v6588_v44  ;;  %v6624_v43 = vld [vmem:[#allocation22 + $0x890] sm:$0xff] }
 0x933   : > { %9809 = vmatpush1.bf16.msra.mxu0 %v15955_v33  ;;  %v6468_v33 = vld [vmem:[#allocation22 + $0x3b0] sm:$0xff] }
 0x934   : > { %9850 = vmatpush1.bf16.msra.mxu1 %v16083_v63  ;;  %9810 = vmatprep.subr.bf16.mxu0 %v15964_v9  ;;  %v6592_v63 = vld [vmem:[#allocation22 + $0x790] sm:$0xff]  ;;  %v16004_v8 = vcombine.high %v6464_v58, %v6468_v33 }
 0x935   : > { %9851 = vmatprep.subr.bf16.mxu1 %v16092_v62  ;;  %v6596_v9 = vld [vmem:[#allocation22 + $0x7b0] sm:$0xff]  ;;  %v15995_v62 = vcombine.low %v6456_v42, %v6460_v32 }
 0x936   : > { %v16132_v12 = vcombine.high %v6592_v63, %v6596_v9  ;;  %v16131_v10 = vcombine.low %v6592_v63, %v6596_v9  ;;  %v6628_v44 = vld [vmem:[#allocation22 + $0x8b0] sm:$0xff] }
 0x937   : > { %9811 = vmatpush1.bf16.msra.mxu0 %v15963_v15  ;;  %v6476_v15 = vld [vmem:[#allocation22 + $0x3f0] sm:$0xff] }
 0x938   : > { %9852 = vmatpush1.bf16.msra.mxu1 %v16091_v16  ;;  %9812 = vmatprep.subr.bf16.mxu0 %v15972_v17  ;;  %v6600_v16 = vld [vmem:[#allocation22 + $0x7d0] sm:$0xff]  ;;  %v16012_v20 = vcombine.high %v6472_v18, %v6476_v15 }
 0x939   : > { %9853 = vmatprep.subr.bf16.mxu1 %v16100_v19  ;;  %v6604_v17 = vld [vmem:[#allocation22 + $0x7f0] sm:$0xff]  ;;  %v16003_v19 = vcombine.low %v6464_v58, %v6468_v33  ;;  %v16164_v33 = vcombine.high %v6624_v43, %v6628_v44 }
 0x93a   : > { %v16140_v21 = vcombine.high %v6600_v16, %v6604_v17  ;;  %v16139_v28 = vcombine.low %v6600_v16, %v6604_v17  ;;  %v6632_v9 = vld [vmem:[#allocation22 + $0x8d0] sm:$0xff] }
 0x93b   : > { %9813 = vmatpush1.bf16.msra.mxu0 %v15971_v23  ;;  %v6612_v23 = vld [vmem:[#allocation22 + $0x830] sm:$0xff] }
 0x93c   : > { %9854 = vmatpush1.bf16.msra.mxu1 %v16099_v24  ;;  %9814 = vmatprep.subr.bf16.mxu0 %v15980_v25  ;;  %v6736_v24 = vld [vmem:[#allocation22 + $0xc10] sm:$0xff]  ;;  %v16148_v38 = vcombine.high %v6608_v22, %v6612_v23 }
 0x93d   : > { %9855 = vmatprep.subr.bf16.mxu1 %v16108_v7  ;;  %v6740_v25 = vld [vmem:[#allocation22 + $0xc30] sm:$0xff]  ;;  %v16011_v7 = vcombine.low %v6472_v18, %v6476_v15 }
 0x93e   : > { %v16276_v53 = vcombine.high %v6736_v24, %v6740_v25  ;;  %v16275_v42 = vcombine.low %v6736_v24, %v6740_v25  ;;  %v6640_v17 = vld [vmem:[#allocation22 + $0x910] sm:$0xff] }
 0x93f   : > { %9815 = vmatpush1.bf16.msra.mxu0 %v15979_v61  ;;  %v6620_v61 = vld [vmem:[#allocation22 + $0x870] sm:$0xff] }
 0x940   : > { %9856 = vmatpush1.bf16.msra.mxu1 %v16107_v11  ;;  %9816 = vmatprep.subr.bf16.mxu0 %v15988_v3  ;;  %v16147_v11 = vcombine.low %v6608_v22, %v6612_v23  ;;  %v6744_v3 = vld [vmem:[#allocation22 + $0xc50] sm:$0xff]  ;;  %v16156_v32 = vcombine.high %v6616_v57, %v6620_v61 }
 0x941   : > { %9857 = vmatprep.subr.bf16.mxu1 %v16116_v41  ;;  %v6748_v41 = vld [vmem:[#allocation22 + $0xc70] sm:$0xff] }
 0x942   : > { %v16283_v58 = vcombine.low %v6744_v3, %v6748_v41  ;;  %v6648_v25 = vld [vmem:[#allocation22 + $0x950] sm:$0xff] }
 0x943   : > { %9817 = vmatpush1.bf16.msra.mxu0 %v15987_v37  ;;  %v16284_v37 = vcombine.high %v6744_v3, %v6748_v41  ;;  %v6656_v3 = vld [vmem:[#allocation22 + $0x990] sm:$0xff] }
 0x944   : > { %9858 = vmatpush1.bf16.msra.mxu1 %v16115_v47  ;;  %9818 = vmatprep.subr.bf16.mxu0 %v15996_v48  ;;  %v6752_v47 = vld [vmem:[#allocation22 + $0xc90] sm:$0xff] }
 0x945   : > { %9859 = vmatprep.subr.bf16.mxu1 %v16124_v49  ;;  %v6756_v48 = vld [vmem:[#allocation22 + $0xcb0] sm:$0xff]  ;;  %v16155_v49 = vcombine.low %v6616_v57, %v6620_v61 }
 0x946   : > { %v16292_v63 = vcombine.high %v6752_v47, %v6756_v48  ;;  %v16291_v18 = vcombine.low %v6752_v47, %v6756_v48  ;;  %v6660_v41 = vld [vmem:[#allocation22 + $0x9b0] sm:$0xff] }
 0x947   : > { %9819 = vmatpush1.bf16.msra.mxu0 %v15995_v62  ;;  %v6636_v62 = vld [vmem:[#allocation22 + $0x8f0] sm:$0xff] }
 0x948   : > { %9860 = vmatpush1.bf16.msra.mxu1 %v16123_v5  ;;  %9820 = vmatprep.subr.bf16.mxu0 %v16004_v8  ;;  %v6760_v5 = vld [vmem:[#allocation22 + $0xcd0] sm:$0xff]  ;;  %v16172_v15 = vcombine.high %v6632_v9, %v6636_v62 }
 0x949   : > { %9861 = vmatprep.subr.bf16.mxu1 %v16132_v12  ;;  %v6764_v8 = vld [vmem:[#allocation22 + $0xcf0] sm:$0xff]  ;;  %v16163_v12 = vcombine.low %v6624_v43, %v6628_v44 }
 0x94a   : > { %v16300_v16 = vcombine.high %v6760_v5, %v6764_v8  ;;  %v16299_v22 = vcombine.low %v6760_v5, %v6764_v8  ;;  %v6796_v5 = vld [vmem:[#allocation22 + $0xdf0] sm:$0xff] }
 0x94b   : > { %9821 = vmatpush1.bf16.msra.mxu0 %v16003_v19  ;;  %v6644_v19 = vld [vmem:[#allocation22 + $0x930] sm:$0xff] }
 0x94c   : > { %9862 = vmatpush1.bf16.msra.mxu1 %v16131_v10  ;;  %9822 = vmatprep.subr.bf16.mxu0 %v16012_v20  ;;  %v6768_v10 = vld [vmem:[#allocation22 + $0xd10] sm:$0xff]  ;;  %v16180_v23 = vcombine.high %v6640_v17, %v6644_v19 }
 0x94d   : > { %9863 = vmatprep.subr.bf16.mxu1 %v16140_v21  ;;  %v6772_v20 = vld [vmem:[#allocation22 + $0xd30] sm:$0xff]  ;;  %v16171_v21 = vcombine.low %v6632_v9, %v6636_v62 }
 0x94e   : > { %v16308_v24 = vcombine.high %v6768_v10, %v6772_v20  ;;  %v16307_v57 = vcombine.low %v6768_v10, %v6772_v20  ;;  %v6792_v62 = vld [vmem:[#allocation22 + $0xdd0] sm:$0xff] }
 0x94f   : > { %9823 = vmatpush1.bf16.msra.mxu0 %v16011_v7  ;;  %v6652_v7 = vld [vmem:[#allocation22 + $0x970] sm:$0xff] }
 0x950   : > { %9864 = vmatpush1.bf16.msra.mxu1 %v16139_v28  ;;  %9874 = vmatprep.subr.bf16.mxu0 %v16148_v38  ;;  %v6776_v28 = vld [vmem:[#allocation22 + $0xd50] sm:$0xff]  ;;  %v16188_v61 = vcombine.high %v6648_v25, %v6652_v7  ;;  %v16187_v43 = vcombine.low %v6648_v25, %v6652_v7 }
 0x951   : > { %9915 = vmatprep.subr.bf16.mxu1 %v16276_v53  ;;  %v6780_v38 = vld [vmem:[#allocation22 + $0xd70] sm:$0xff]  ;;  %v16179_v53 = vcombine.low %v6640_v17, %v6644_v19 }
 0x952   : > { %9825 = vmatmul.mubr.bf16.vlgmr.msra.gmra.mrb[48].mxu0 %v19782_v36  ;;  %v16315_v44 = vcombine.low %v6776_v28, %v6780_v38  ;;  %v6804_v25 = vld [vmem:[#allocation22 + $0xe30] sm:$0xff] }
 0x953   : > { %9866 = vmatmul.mubr.bf16.vlgmr.msra.gmra.mrb[48].mxu1 %v19784_v40  ;;  %9875 = vmatpush1.bf16.msra.mxu0 %v16147_v11  ;;  %v16316_v11 = vcombine.high %v6776_v28, %v6780_v38  ;;  %v16331_v28 = vcombine.low %v6792_v62, %v6796_v5 }
 0x954   : > { %9906 = vmatprep.mubr.bf16.mxu0 %v19824_v6  ;;  %9916 = vmatpush1.bf16.msra.mxu1 %v16275_v42  ;;  %v6784_v42 = vld [vmem:[#allocation22 + $0xd90] sm:$0xff] }
 0x955   : > { %9947 = vmatprep.mubr.bf16.mxu1 %v19828_v13  ;;  %9876 = vmatprep.subr.bf16.mxu0 %v16156_v32  ;;  %v6788_v32 = vld [vmem:[#allocation22 + $0xdb0] sm:$0xff] }
 0x956   : > { %9917 = vmatprep.subr.bf16.mxu1 %v16284_v37  ;;  %v16196_v37 = vcombine.high %v6656_v3, %v6660_v41  ;;  %v16324_v48 = vcombine.high %v6784_v42, %v6788_v32  ;;  %v16323_v10 = vcombine.low %v6784_v42, %v6788_v32 }
 0x957   : > { %9877 = vmatpush1.bf16.msra.mxu0 %v16155_v49  ;;  %v6664_v49 = vld [vmem:[#allocation22 + $0x9d0] sm:$0xff] }
 0x958   : > { %9918 = vmatpush1.bf16.msra.mxu1 %v16283_v58  ;;  %9878 = vmatprep.subr.bf16.mxu0 %v16164_v33  ;;  %v6668_v58 = vld [vmem:[#allocation22 + $0x9f0] sm:$0xff] }
 0x959   : > { %9919 = vmatprep.subr.bf16.mxu1 %v16292_v63  ;;  %v16204_v20 = vcombine.high %v6664_v49, %v6668_v58  ;;  %v16203_v7 = vcombine.low %v6664_v49, %v6668_v58 }
 0x95b   : > { %9879 = vmatpush1.bf16.msra.mxu0 %v16163_v12 }
 0x95c   : > { %9920 = vmatpush1.bf16.msra.mxu1 %v16291_v18  ;;  %9880 = vmatprep.subr.bf16.mxu0 %v16172_v15  ;;  %v16195_v15 = vcombine.low %v6656_v3, %v6660_v41  ;;  %v6812_v3 = vld [vmem:[#allocation22 + $0xe70] sm:$0xff] }
 0x95d   : > { %9921 = vmatprep.subr.bf16.mxu1 %v16300_v16 }
 0x95f   : > { %9881 = vmatpush1.bf16.msra.mxu0 %v16171_v21 }
 0x960   : > { %9922 = vmatpush1.bf16.msra.mxu1 %v16299_v22  ;;  %9882 = vmatprep.subr.bf16.mxu0 %v16180_v23  ;;  %v16332_v22 = vcombine.high %v6792_v62, %v6796_v5  ;;  %v6672_v23 = vld [vmem:[#allocation22 + $0xa10] sm:$0xff] }
 0x961   : > { %9923 = vmatprep.subr.bf16.mxu1 %v16308_v24  ;;  %v6676_v24 = vld [vmem:[#allocation22 + $0xa30] sm:$0xff] }
 0x962   : > { %v16212_v38 = vcombine.high %v6672_v23, %v6676_v24  ;;  %v16211_v41 = vcombine.low %v6672_v23, %v6676_v24  ;;  %v6700_v62 = vld [vmem:[#allocation22 + $0xaf0] sm:$0xff] }
 0x963   : > { %9883 = vmatpush1.bf16.msra.mxu0 %v16179_v53  ;;  %v6824_v5 = vld [vmem:[#allocation22 + $0xed0] sm:$0xff] }
 0x964   : > { %9924 = vmatpush1.bf16.msra.mxu1 %v16307_v57  ;;  %9884 = vmatprep.subr.bf16.mxu0 %v16188_v61  ;;  %v6680_v57 = vld [vmem:[#allocation22 + $0xa50] sm:$0xff] }
 0x965   : > { %v9580_v47 = vpop.f32.mrb[36].mxu0  ;;  %9925 = vmatprep.subr.bf16.mxu1 %v16316_v11  ;;  %v6684_v61 = vld [vmem:[#allocation22 + $0xa70] sm:$0xff] }
 0x966   : > { %v9581_v33 = vadd.f32 %v9580_v47, %v19846_v54  ;;  %v9621_v63 = vpop.f32.mrb[36].mxu1  ;;  %v9582_v9 = vpop.f32.mrb[37].mxu0  ;;  %v6808_v11 = vld [vmem:[#allocation22 + $0xe50] sm:$0xff]  ;;  %v16220_v32 = vcombine.high %v6680_v57, %v6684_v61  ;;  %v16219_v49 = vcombine.low %v6680_v57, %v6684_v61 }
 0x967   : > { %v9583_v8 = vadd.f32 %v9582_v9, %v19848_v29  ;;  %v9623_v12 = vpop.f32.mrb[37].mxu1  ;;  %9885 = vmatpush1.bf16.msra.mxu0 %v16187_v43  ;;  %v9584_v18 = vpop.f32.mrb[38].mxu0  ;;  %v6800_v29 = vld [vmem:[#allocation22 + $0xe10] sm:$0xff]  ;;  %v16348_v43 = vcombine.high %v6808_v11, %v6812_v3  ;;  %v16347_v58 = vcombine.low %v6808_v11, %v6812_v3 }
 0x968   : > { %v19864_v16 = vadd.f32 %v9621_v63, %v9581_v33  ;;  %9926 = vmatpush1.bf16.msra.mxu1 %v16315_v44  ;;  %v9625_v17 = vpop.f32.mrb[38].mxu1  ;;  %v9585_v19 = vpop.f32.mrb[39].mxu0  ;;  %9886 = vmatprep.subr.bf16.mxu0 %v16196_v37  ;;  %v16340_v53 = vcombine.high %v6800_v29, %v6804_v25  ;;  %v16339_v42 = vcombine.low %v6800_v29, %v6804_v25  ;;  %v6688_v44 = vld [vmem:[#allocation22 + $0xa90] sm:$0xff] }
 0x969   : > { %v19866_v21 = vadd.f32 %v9623_v12, %v9583_v8  ;;  %v9626_v54 = vpop.f32.mrb[39].mxu1  ;;  %9927 = vmatprep.subr.bf16.mxu1 %v16324_v48  ;;  %v6692_v37 = vld [vmem:[#allocation22 + $0xab0] sm:$0xff] }
 0x96a   : > { %v6816_v47 = vld [vmem:[#allocation22 + $0xe90] sm:$0xff]  ;;  %v16228_v33 = vcombine.high %v6688_v44, %v6692_v37  ;;  %v16227_v12 = vcombine.low %v6688_v44, %v6692_v37 }
 0x96b   : > { %9887 = vmatpush1.bf16.msra.mxu0 %v16195_v15  ;;  %v6820_v48 = vld [vmem:[#allocation22 + $0xeb0] sm:$0xff] }
 0x96c   : > { %9928 = vmatpush1.bf16.msra.mxu1 %v16323_v10  ;;  %9888 = vmatprep.subr.bf16.mxu0 %v16204_v20  ;;  %v16356_v63 = vcombine.high %v6816_v47, %v6820_v48  ;;  %v6696_v9 = vld [vmem:[#allocation22 + $0xad0] sm:$0xff]  ;;  %v16355_v18 = vcombine.low %v6816_v47, %v6820_v48 }
 0x96d   : > { %9929 = vmatprep.subr.bf16.mxu1 %v16332_v22  ;;  %v6828_v8 = vld [vmem:[#allocation22 + $0xef0] sm:$0xff]  ;;  %v16236_v15 = vcombine.high %v6696_v9, %v6700_v62  ;;  %v16235_v22 = vcombine.low %v6696_v9, %v6700_v62 }
 0x96e   : > { %v16364_v17 = vcombine.high %v6824_v5, %v6828_v8  ;;  %v6704_v19 = vld [vmem:[#allocation22 + $0xb10] sm:$0xff]  ;;  %v16363_v23 = vcombine.low %v6824_v5, %v6828_v8  ;;  %v6353_v8 = vld [vmem:[#allocation22 + $0x18] sm:$0xff] }
 0x96f   : > { %9889 = vmatpush1.bf16.msra.mxu0 %v16203_v7  ;;  %v6708_v10 = vld [vmem:[#allocation22 + $0xb30] sm:$0xff] }
 0x970   : > { %9930 = vmatpush1.bf16.msra.mxu1 %v16331_v28  ;;  %9890 = vmatprep.subr.bf16.mxu0 %v16212_v38  ;;  %v6832_v20 = vld [vmem:[#allocation22 + $0xf10] sm:$0xff]  ;;  %v16244_v24 = vcombine.high %v6704_v19, %v6708_v10 }
 0x971   : > { %9931 = vmatprep.subr.bf16.mxu1 %v16340_v53  ;;  %v6836_v54 = vld [vmem:[#allocation22 + $0xf30] sm:$0xff]  ;;  %v16243_v53 = vcombine.low %v6704_v19, %v6708_v10 }
 0x972   : > { %v16372_v29 = vcombine.high %v6832_v20, %v6836_v54  ;;  %v6712_v25 = vld [vmem:[#allocation22 + $0xb50] sm:$0xff]  ;;  %v16371_v57 = vcombine.low %v6832_v20, %v6836_v54  ;;  %v6361_v54 = vld [vmem:[#allocation22 + $0x58] sm:$0xff] }
 0x973   : > { %9891 = vmatpush1.bf16.msra.mxu0 %v16211_v41  ;;  %v6716_v7 = vld [vmem:[#allocation22 + $0xb70] sm:$0xff] }
 0x974   : > { %9932 = vmatpush1.bf16.msra.mxu1 %v16339_v42  ;;  %9892 = vmatprep.subr.bf16.mxu0 %v16220_v32  ;;  %v6840_v28 = vld [vmem:[#allocation22 + $0xf50] sm:$0xff]  ;;  %v16252_v61 = vcombine.high %v6712_v25, %v6716_v7 }
 0x975   : > { %9933 = vmatprep.subr.bf16.mxu1 %v16348_v43  ;;  %v6844_v38 = vld [vmem:[#allocation22 + $0xf70] sm:$0xff]  ;;  %v16251_v43 = vcombine.low %v6712_v25, %v6716_v7 }
 0x976   : > { %v16380_v11 = vcombine.high %v6840_v28, %v6844_v38  ;;  %v6720_v3 = vld [vmem:[#allocation22 + $0xb90] sm:$0xff]  ;;  %v16379_v44 = vcombine.low %v6840_v28, %v6844_v38  ;;  %v6369_v28 = vld [vmem:[#allocation22 + $0x98] sm:$0xff] }
 0x977   : > { %9893 = vmatpush1.bf16.msra.mxu0 %v16219_v49  ;;  %v6724_v41 = vld [vmem:[#allocation22 + $0xbb0] sm:$0xff]  ;;  %v6373_v38 = vld [vmem:[#allocation22 + $0xb8] sm:$0xff] }
 0x978   : > { %9934 = vmatpush1.bf16.msra.mxu1 %v16347_v58  ;;  %9894 = vmatprep.subr.bf16.mxu0 %v16228_v33  ;;  %v6848_v42 = vld [vmem:[#allocation22 + $0xf90] sm:$0xff]  ;;  %v16260_v37 = vcombine.high %v6720_v3, %v6724_v41 }
 0x979   : > { %9935 = vmatprep.subr.bf16.mxu1 %v16356_v63  ;;  %v6852_v32 = vld [vmem:[#allocation22 + $0xfb0] sm:$0xff]  ;;  %v16259_v63 = vcombine.low %v6720_v3, %v6724_v41  ;;  %v15910_v41 = vcombine.high %v6369_v28, %v6373_v38 }
 0x97a   : > { %v16388_v47 = vcombine.high %v6848_v42, %v6852_v32  ;;  %v6728_v48 = vld [vmem:[#allocation22 + $0xbd0] sm:$0xff]  ;;  %v16387_v9 = vcombine.low %v6848_v42, %v6852_v32  ;;  %v6377_v32 = vld [vmem:[#allocation22 + $0xd8] sm:$0xff] }
 0x97b   : > { %9895 = vmatpush1.bf16.msra.mxu0 %v16227_v12  ;;  %v6732_v49 = vld [vmem:[#allocation22 + $0xbf0] sm:$0xff]  ;;  %v6357_v12 = vld [vmem:[#allocation22 + $0x38] sm:$0xff] }
 0x97c   : > { %9936 = vmatpush1.bf16.msra.mxu1 %v16355_v18  ;;  %9896 = vmatprep.subr.bf16.mxu0 %v16236_v15  ;;  %v6856_v58 = vld [vmem:[#allocation22 + $0xfd0] sm:$0xff]  ;;  %v16268_v62 = vcombine.high %v6728_v48, %v6732_v49  ;;  %v6481_v18 = vld [vmem:[#allocation22 + $0x418] sm:$0xff]  ;;  %v15894_v10 = vcombine.high %v6353_v8, %v6357_v12 }
 0x97d   : > { %9937 = vmatprep.subr.bf16.mxu1 %v16364_v17  ;;  %v6860_v33 = vld [vmem:[#allocation22 + $0xff0] sm:$0xff]  ;;  %v6485_v15 = vld [vmem:[#allocation22 + $0x438] sm:$0xff]  ;;  %v16267_v17 = vcombine.low %v6728_v48, %v6732_v49 }
 0x97e   : > { %v16396_v5 = vcombine.high %v6856_v58, %v6860_v33  ;;  %v16395_v19 = vcombine.low %v6856_v58, %v6860_v33  ;;  %v16022_v20 = vcombine.high %v6481_v18, %v6485_v15  ;;  %v16021_v25 = vcombine.low %v6481_v18, %v6485_v15  ;;  %v6385_v58 = vld [vmem:[#allocation22 + $0x118] sm:$0xff] }
 0x97f   : > { %9897 = vmatpush1.bf16.msra.mxu0 %v16235_v22  ;;  %v6365_v22 = vld [vmem:[#allocation22 + $0x78] sm:$0xff] }
 0x980   : > { %9938 = vmatpush1.bf16.msra.mxu1 %v16363_v23  ;;  %9898 = vmatprep.subr.bf16.mxu0 %v16244_v24  ;;  %v15893_v23 = vcombine.low %v6353_v8, %v6357_v12  ;;  %v6489_v24 = vld [vmem:[#allocation22 + $0x458] sm:$0xff]  ;;  %v15902_v7 = vcombine.high %v6361_v54, %v6365_v22 }
 0x981   : > { %9939 = vmatprep.subr.bf16.mxu1 %v16372_v29  ;;  %v6493_v29 = vld [vmem:[#allocation22 + $0x478] sm:$0xff] }
 0x982   : > { %v16029_v3 = vcombine.low %v6489_v24, %v6493_v29  ;;  %v6389_v33 = vld [vmem:[#allocation22 + $0x138] sm:$0xff] }
 0x983   : > { %9899 = vmatpush1.bf16.msra.mxu0 %v16243_v53  ;;  %v16030_v53 = vcombine.high %v6489_v24, %v6493_v29  ;;  %v6393_v12 = vld [vmem:[#allocation22 + $0x158] sm:$0xff]  ;;  %v19872_v24 = vld [vmem:[#allocation24] sm:$0xff] }
 0x984   : > { %9940 = vmatpush1.bf16.msra.mxu1 %v16371_v57  ;;  %9900 = vmatprep.subr.bf16.mxu0 %v16252_v61  ;;  %v6497_v57 = vld [vmem:[#allocation22 + $0x498] sm:$0xff]  ;;  %v6875_v29 = vrot.slane %v19872_v24, %v19686_v52 }
 0x985   : > { %9941 = vmatprep.subr.bf16.mxu1 %v16380_v11  ;;  %v6501_v61 = vld [vmem:[#allocation22 + $0x4b8] sm:$0xff]  ;;  %v15901_v11 = vcombine.low %v6361_v54, %v6365_v22 }
 0x986   : > { %v16038_v42 = vcombine.high %v6497_v57, %v6501_v61  ;;  %v16037_v48 = vcombine.low %v6497_v57, %v6501_v61  ;;  %v6397_v18 = vld [vmem:[#allocation22 + $0x178] sm:$0xff] }
 0x987   : > { %9901 = vmatpush1.bf16.msra.mxu0 %v16251_v43  ;;  %v6381_v43 = vld [vmem:[#allocation22 + $0xf8] sm:$0xff] }
 0x988   : > { %9942 = vmatpush1.bf16.msra.mxu1 %v16379_v44  ;;  %9902 = vmatprep.subr.bf16.mxu0 %v16260_v37  ;;  %v6505_v44 = vld [vmem:[#allocation22 + $0x4d8] sm:$0xff]  ;;  %v15918_v49 = vcombine.high %v6377_v32, %v6381_v43 }
 0x989   : > { %9943 = vmatprep.subr.bf16.mxu1 %v16388_v47  ;;  %v6509_v37 = vld [vmem:[#allocation22 + $0x4f8] sm:$0xff]  ;;  %v15909_v47 = vcombine.low %v6369_v28, %v6373_v38  ;;  %v6879_v28 = vrot.slane %v19872_v24, %v19661_v0  ;;  %v15933_v38 = vcombine.low %v6393_v12, %v6397_v18 }
 0x98a   : > { %v6521_v15 = vld [vmem:[#allocation22 + $0x558] sm:$0xff] }
 0x98b   : > { %9903 = vmatpush1.bf16.msra.mxu0 %v16259_v63  ;;  %v6513_v63 = vld [vmem:[#allocation22 + $0x518] sm:$0xff] }
 0x98c   : > { %9944 = vmatpush1.bf16.msra.mxu1 %v16387_v9  ;;  %9904 = vmatprep.subr.bf16.mxu0 %v16268_v62  ;;  %v6517_v9 = vld [vmem:[#allocation22 + $0x538] sm:$0xff]  ;;  %v16045_v62 = vcombine.low %v6505_v44, %v6509_v37 }
 0x98d   : > { %9945 = vmatprep.subr.bf16.mxu1 %v16396_v5  ;;  %v15926_v5 = vcombine.high %v6385_v58, %v6389_v33  ;;  %v16054_v8 = vcombine.high %v6513_v63, %v6517_v9  ;;  %v6401_v22 = vld [vmem:[#allocation22 + $0x198] sm:$0xff] }
 0x98f   : > { %9905 = vmatpush1.bf16.msra.mxu0 %v16267_v17  ;;  %v6525_v17 = vld [vmem:[#allocation22 + $0x578] sm:$0xff] }
 0x990   : > { %9946 = vmatpush1.bf16.msra.mxu1 %v16395_v19  ;;  %9956 = vmatprep.subr.bf16.mxu0 %v15894_v10  ;;  %v15925_v19 = vcombine.low %v6385_v58, %v6389_v33  ;;  %v16053_v10 = vcombine.low %v6513_v63, %v6517_v9  ;;  %v16062_v54 = vcombine.high %v6521_v15, %v6525_v17 }
 0x991   : > { %9997 = vmatprep.subr.bf16.mxu1 %v16022_v20  ;;  %v15934_v20 = vcombine.high %v6393_v12, %v6397_v18  ;;  %v6417_v12 = vld [vmem:[#allocation22 + $0x218] sm:$0xff] }
 0x992   : > { %9907 = vmatmul.mubr.bf16.vlgmr.msra.gmra.mrb[52].mxu0 %v19826_v50  ;;  %v6421_v18 = vld [vmem:[#allocation22 + $0x238] sm:$0xff] }
 0x993   : > { %9948 = vmatmul.mubr.bf16.vlgmr.msra.gmra.mrb[52].mxu1 %v19830_v14  ;;  %9957 = vmatpush1.bf16.msra.mxu0 %v15893_v23  ;;  %v6405_v23 = vld [vmem:[#allocation22 + $0x1b8] sm:$0xff] }
 0x994   : > { %9988 = vmatprep.mubr.bf16.mxu0 %v19768_v46  ;;  %9998 = vmatpush1.bf16.msra.mxu1 %v16021_v25  ;;  %v16046_v46 = vcombine.high %v6505_v44, %v6509_v37  ;;  %v6529_v25 = vld [vmem:[#allocation22 + $0x598] sm:$0xff]  ;;  %v15942_v57 = vcombine.high %v6401_v22, %v6405_v23 }
 0x995   : > { %10029 = vmatprep.mubr.bf16.mxu1 %v19771_v51  ;;  %9958 = vmatprep.subr.bf16.mxu0 %v15902_v7  ;;  %v15917_v51 = vcombine.low %v6377_v32, %v6381_v43  ;;  %v6533_v7 = vld [vmem:[#allocation22 + $0x5b8] sm:$0xff] }
 0x996   : > { %9999 = vmatprep.subr.bf16.mxu1 %v16030_v53  ;;  %v16061_v53 = vcombine.low %v6521_v15, %v6525_v17  ;;  %v6537_v44 = vld [vmem:[#allocation22 + $0x5d8] sm:$0xff]  ;;  %v16069_v9 = vcombine.low %v6529_v25, %v6533_v7 }
 0x997   : > { %9959 = vmatpush1.bf16.msra.mxu0 %v15901_v11  ;;  %v16070_v11 = vcombine.high %v6529_v25, %v6533_v7  ;;  %v6541_v37 = vld [vmem:[#allocation22 + $0x5f8] sm:$0xff]  ;;  %v15957_v7 = vcombine.low %v6417_v12, %v6421_v18 }
 0x998   : > { %10000 = vmatpush1.bf16.msra.mxu1 %v16029_v3  ;;  %9960 = vmatprep.subr.bf16.mxu0 %v15910_v41  ;;  %v6409_v3 = vld [vmem:[#allocation22 + $0x1d8] sm:$0xff] }
 0x999   : > { %10001 = vmatprep.subr.bf16.mxu1 %v16038_v42  ;;  %v6413_v41 = vld [vmem:[#allocation22 + $0x1f8] sm:$0xff] }
 0x99a   : > { %v6545_v15 = vld [vmem:[#allocation22 + $0x618] sm:$0xff] }
 0x99b   : > { %9961 = vmatpush1.bf16.msra.mxu0 %v15909_v47  ;;  %v6549_v17 = vld [vmem:[#allocation22 + $0x638] sm:$0xff] }
 0x99c   : > { %10002 = vmatpush1.bf16.msra.mxu1 %v16037_v48  ;;  %9962 = vmatprep.subr.bf16.mxu0 %v15918_v49  ;;  %v6557_v25 = vld [vmem:[#allocation22 + $0x678] sm:$0xff] }
 0x99d   : > { %10003 = vmatprep.subr.bf16.mxu1 %v16046_v46  ;;  %v15941_v46 = vcombine.low %v6401_v22, %v6405_v23  ;;  %v6425_v22 = vld [vmem:[#allocation22 + $0x258] sm:$0xff] }
 0x99e   : > { %v6429_v23 = vld [vmem:[#allocation22 + $0x278] sm:$0xff] }
 0x99f   : > { %9963 = vmatpush1.bf16.msra.mxu0 %v15917_v51  ;;  %v15950_v51 = vcombine.high %v6409_v3, %v6413_v41 }
 0x9a0   : > { %10004 = vmatpush1.bf16.msra.mxu1 %v16045_v62  ;;  %9964 = vmatprep.subr.bf16.mxu0 %v15926_v5 }
 0x9a1   : > { %10005 = vmatprep.subr.bf16.mxu1 %v16054_v8  ;;  %v16078_v8 = vcombine.high %v6537_v44, %v6541_v37 }
 0x9a3   : > { %9965 = vmatpush1.bf16.msra.mxu0 %v15925_v19  ;;  %v15949_v19 = vcombine.low %v6409_v3, %v6413_v41  ;;  %v6565_v3 = vld [vmem:[#allocation22 + $0x6b8] sm:$0xff]  ;;  %v15965_v41 = vcombine.low %v6425_v22, %v6429_v23 }
 0x9a4   : > { %10006 = vmatpush1.bf16.msra.mxu1 %v16053_v10  ;;  %9966 = vmatprep.subr.bf16.mxu0 %v15934_v20  ;;  %v16077_v10 = vcombine.low %v6537_v44, %v6541_v37  ;;  %v15958_v20 = vcombine.high %v6417_v12, %v6421_v18  ;;  %v6441_v44 = vld [vmem:[#allocation22 + $0x2d8] sm:$0xff] }
 0x9a5   : > { %v9662_v61 = vpop.f32.mrb[40].mxu0  ;;  %10007 = vmatprep.subr.bf16.mxu1 %v16062_v54  ;;  %v16086_v54 = vcombine.high %v6545_v15, %v6549_v17  ;;  %v6445_v37 = vld [vmem:[#allocation22 + $0x2f8] sm:$0xff] }
 0x9a6   : > { %v9663_v42 = vadd.f32 %v9662_v61, %v6875_v29  ;;  %v9703_v32 = vpop.f32.mrb[40].mxu1  ;;  %v9664_v43 = vpop.f32.mrb[41].mxu0  ;;  %v6553_v29 = vld [vmem:[#allocation22 + $0x658] sm:$0xff]  ;;  %v15981_v12 = vcombine.low %v6441_v44, %v6445_v37 }
 0x9a7   : > { %v9665_v47 = vadd.f32 %v9664_v43, %v6879_v28  ;;  %v9705_v48 = vpop.f32.mrb[41].mxu1  ;;  %v9666_v49 = vpop.f32.mrb[42].mxu0  ;;  %9967 = vmatpush1.bf16.msra.mxu0 %v15933_v38  ;;  %v16085_v28 = vcombine.low %v6545_v15, %v6549_v17  ;;  %v15966_v38 = vcombine.high %v6425_v22, %v6429_v23  ;;  %v6437_v61 = vld [vmem:[#allocation22 + $0x2b8] sm:$0xff] }
 0x9a8   : > { %v19878_v58 = vadd.f32 %v9703_v32, %v9663_v42  ;;  %v9707_v33 = vpop.f32.mrb[42].mxu1  ;;  %10008 = vmatpush1.bf16.msra.mxu1 %v16061_v53  ;;  %v9667_v63 = vpop.f32.mrb[43].mxu0  ;;  %9968 = vmatprep.subr.bf16.mxu0 %v15942_v57  ;;  %v16094_v53 = vcombine.high %v6553_v29, %v6557_v25  ;;  %v6433_v57 = vld [vmem:[#allocation22 + $0x298] sm:$0xff]  ;;  %v16093_v42 = vcombine.low %v6553_v29, %v6557_v25 }
 0x9a9   : > { %v19880_v62 = vadd.f32 %v9705_v48, %v9665_v47  ;;  %v9708_v5 = vpop.f32.mrb[43].mxu1  ;;  %10009 = vmatprep.subr.bf16.mxu1 %v16070_v11  ;;  %v6561_v11 = vld [vmem:[#allocation22 + $0x698] sm:$0xff]  ;;  %v15974_v32 = vcombine.high %v6433_v57, %v6437_v61  ;;  %v15973_v49 = vcombine.low %v6433_v57, %v6437_v61  ;;  %v15982_v33 = vcombine.high %v6441_v44, %v6445_v37 }
 0x9aa   : > { %v16102_v43 = vcombine.high %v6561_v11, %v6565_v3  ;;  %v6569_v47 = vld [vmem:[#allocation22 + $0x6d8] sm:$0xff] }
 0x9ab   : > { %9969 = vmatpush1.bf16.msra.mxu0 %v15941_v46  ;;  %v6573_v48 = vld [vmem:[#allocation22 + $0x6f8] sm:$0xff]  ;;  %v16101_v46 = vcombine.low %v6561_v11, %v6565_v3 }
 0x9ac   : > { %10010 = vmatpush1.bf16.msra.mxu1 %v16069_v9  ;;  %9970 = vmatprep.subr.bf16.mxu0 %v15950_v51  ;;  %v16110_v63 = vcombine.high %v6569_v47, %v6573_v48  ;;  %v6449_v9 = vld [vmem:[#allocation22 + $0x318] sm:$0xff]  ;;  %v16109_v18 = vcombine.low %v6569_v47, %v6573_v48 }
 0x9ad   : > { %10011 = vmatprep.subr.bf16.mxu1 %v16078_v8  ;;  %v6453_v51 = vld [vmem:[#allocation22 + $0x338] sm:$0xff] }
 0x9ae   : > { %v6577_v5 = vld [vmem:[#allocation22 + $0x718] sm:$0xff]  ;;  %v15990_v15 = vcombine.high %v6449_v9, %v6453_v51  ;;  %v15989_v22 = vcombine.low %v6449_v9, %v6453_v51 }
 0x9af   : > { %9971 = vmatpush1.bf16.msra.mxu0 %v15949_v19  ;;  %v6581_v8 = vld [vmem:[#allocation22 + $0x738] sm:$0xff] }
 0x9b0   : > { %10012 = vmatpush1.bf16.msra.mxu1 %v16077_v10  ;;  %9972 = vmatprep.subr.bf16.mxu0 %v15958_v20  ;;  %v16118_v17 = vcombine.high %v6577_v5, %v6581_v8  ;;  %v6457_v19 = vld [vmem:[#allocation22 + $0x358] sm:$0xff]  ;;  %v16117_v23 = vcombine.low %v6577_v5, %v6581_v8 }
 0x9b1   : > { %10013 = vmatprep.subr.bf16.mxu1 %v16086_v54  ;;  %v6461_v10 = vld [vmem:[#allocation22 + $0x378] sm:$0xff] }
 0x9b2   : > { %v6585_v20 = vld [vmem:[#allocation22 + $0x758] sm:$0xff]  ;;  %v15998_v29 = vcombine.high %v6457_v19, %v6461_v10  ;;  %v15997_v57 = vcombine.low %v6457_v19, %v6461_v10 }
 0x9b3   : > { %9973 = vmatpush1.bf16.msra.mxu0 %v15957_v7  ;;  %v6589_v54 = vld [vmem:[#allocation22 + $0x778] sm:$0xff] }
 0x9b4   : > { %10014 = vmatpush1.bf16.msra.mxu1 %v16085_v28  ;;  %9974 = vmatprep.subr.bf16.mxu0 %v15966_v38  ;;  %v16126_v25 = vcombine.high %v6585_v20, %v6589_v54  ;;  %v6465_v7 = vld [vmem:[#allocation22 + $0x398] sm:$0xff]  ;;  %v16125_v61 = vcombine.low %v6585_v20, %v6589_v54 }
 0x9b5   : > { %10015 = vmatprep.subr.bf16.mxu1 %v16094_v53  ;;  %v6469_v28 = vld [vmem:[#allocation22 + $0x3b8] sm:$0xff] }
 0x9b6   : > { %v6593_v38 = vld [vmem:[#allocation22 + $0x798] sm:$0xff]  ;;  %v16006_v11 = vcombine.high %v6465_v7, %v6469_v28  ;;  %v16005_v44 = vcombine.low %v6465_v7, %v6469_v28 }
 0x9b7   : > { %9975 = vmatpush1.bf16.msra.mxu0 %v15965_v41  ;;  %v6597_v53 = vld [vmem:[#allocation22 + $0x7b8] sm:$0xff] }
 0x9b8   : > { %10016 = vmatpush1.bf16.msra.mxu1 %v16093_v42  ;;  %9976 = vmatprep.subr.bf16.mxu0 %v15974_v32  ;;  %v16134_v3 = vcombine.high %v6593_v38, %v6597_v53  ;;  %v6473_v41 = vld [vmem:[#allocation22 + $0x3d8] sm:$0xff]  ;;  %v16133_v37 = vcombine.low %v6593_v38, %v6597_v53 }
 0x9b9   : > { %10017 = vmatprep.subr.bf16.mxu1 %v16102_v43  ;;  %v6477_v42 = vld [vmem:[#allocation22 + $0x3f8] sm:$0xff] }
 0x9ba   : > { %v6601_v32 = vld [vmem:[#allocation22 + $0x7d8] sm:$0xff]  ;;  %v16014_v47 = vcombine.high %v6473_v41, %v6477_v42  ;;  %v16013_v9 = vcombine.low %v6473_v41, %v6477_v42 }
 0x9bb   : > { %9977 = vmatpush1.bf16.msra.mxu0 %v15973_v49  ;;  %v6605_v43 = vld [vmem:[#allocation22 + $0x7f8] sm:$0xff] }
 0x9bc   : > { %10018 = vmatpush1.bf16.msra.mxu1 %v16101_v46  ;;  %9978 = vmatprep.subr.bf16.mxu0 %v15982_v33  ;;  %v16142_v48 = vcombine.high %v6601_v32, %v6605_v43  ;;  %v6609_v49 = vld [vmem:[#allocation22 + $0x818] sm:$0xff]  ;;  %v16141_v51 = vcombine.low %v6601_v32, %v6605_v43 }
 0x9bd   : > { %10019 = vmatprep.subr.bf16.mxu1 %v16110_v63  ;;  %v6613_v46 = vld [vmem:[#allocation22 + $0x838] sm:$0xff] }
 0x9be   : > { %v6737_v33 = vld [vmem:[#allocation22 + $0xc18] sm:$0xff]  ;;  %v16150_v5 = vcombine.high %v6609_v49, %v6613_v46 }
 0x9bf   : > { %9979 = vmatpush1.bf16.msra.mxu0 %v15981_v12  ;;  %v6741_v63 = vld [vmem:[#allocation22 + $0xc38] sm:$0xff] }
 0x9c0   : > { %10020 = vmatpush1.bf16.msra.mxu1 %v16109_v18  ;;  %9980 = vmatprep.subr.bf16.mxu0 %v15990_v15  ;;  %v16278_v8 = vcombine.high %v6737_v33, %v6741_v63  ;;  %v6617_v12 = vld [vmem:[#allocation22 + $0x858] sm:$0xff]  ;;  %v16149_v15 = vcombine.low %v6609_v49, %v6613_v46  ;;  %v16277_v10 = vcombine.low %v6737_v33, %v6741_v63 }
 0x9c1   : > { %10021 = vmatprep.subr.bf16.mxu1 %v16118_v17  ;;  %v6621_v18 = vld [vmem:[#allocation22 + $0x878] sm:$0xff] }
 0x9c2   : > { %v6745_v17 = vld [vmem:[#allocation22 + $0xc58] sm:$0xff]  ;;  %v16158_v20 = vcombine.high %v6617_v12, %v6621_v18  ;;  %v16157_v7 = vcombine.low %v6617_v12, %v6621_v18 }
 0x9c3   : > { %9981 = vmatpush1.bf16.msra.mxu0 %v15989_v22  ;;  %v6749_v19 = vld [vmem:[#allocation22 + $0xc78] sm:$0xff] }
 0x9c4   : > { %10022 = vmatpush1.bf16.msra.mxu1 %v16117_v23  ;;  %9982 = vmatprep.subr.bf16.mxu0 %v15998_v29  ;;  %v6625_v54 = vld [vmem:[#allocation22 + $0x898] sm:$0xff]  ;;  %v16286_v23 = vcombine.high %v6745_v17, %v6749_v19  ;;  %v16285_v28 = vcombine.low %v6745_v17, %v6749_v19 }
 0x9c5   : > { %10023 = vmatprep.subr.bf16.mxu1 %v16126_v25  ;;  %v6629_v22 = vld [vmem:[#allocation22 + $0x8b8] sm:$0xff] }
 0x9c6   : > { %v6753_v29 = vld [vmem:[#allocation22 + $0xc98] sm:$0xff]  ;;  %v16166_v38 = vcombine.high %v6625_v54, %v6629_v22 }
 0x9c7   : > { %9983 = vmatpush1.bf16.msra.mxu0 %v15997_v57  ;;  %v6757_v25 = vld [vmem:[#allocation22 + $0xcb8] sm:$0xff] }
 0x9c8   : > { %10024 = vmatpush1.bf16.msra.mxu1 %v16125_v61  ;;  %9984 = vmatprep.subr.bf16.mxu0 %v16006_v11  ;;  %v16294_v53 = vcombine.high %v6753_v29, %v6757_v25  ;;  %v6633_v57 = vld [vmem:[#allocation22 + $0x8d8] sm:$0xff] }
 0x9c9   : > { %10025 = vmatprep.subr.bf16.mxu1 %v16134_v3  ;;  %v6637_v61 = vld [vmem:[#allocation22 + $0x8f8] sm:$0xff]  ;;  %v16165_v3 = vcombine.low %v6625_v54, %v6629_v22 }
 0x9ca   : > { %v6765_v11 = vld [vmem:[#allocation22 + $0xcf8] sm:$0xff]  ;;  %v16174_v41 = vcombine.high %v6633_v57, %v6637_v61 }
 0x9cb   : > { %9985 = vmatpush1.bf16.msra.mxu0 %v16005_v44  ;;  %v6641_v42 = vld [vmem:[#allocation22 + $0x918] sm:$0xff] }
 0x9cc   : > { %10026 = vmatpush1.bf16.msra.mxu1 %v16133_v37  ;;  %9986 = vmatprep.subr.bf16.mxu0 %v16014_v47  ;;  %v6645_v32 = vld [vmem:[#allocation22 + $0x938] sm:$0xff] }
 0x9cd   : > { %10027 = vmatprep.subr.bf16.mxu1 %v16142_v48  ;;  %v6769_v43 = vld [vmem:[#allocation22 + $0xd18] sm:$0xff]  ;;  %v16182_v47 = vcombine.high %v6641_v42, %v6645_v32 }
 0x9ce   : > { %v6773_v44 = vld [vmem:[#allocation22 + $0xd38] sm:$0xff] }
 0x9cf   : > { %9987 = vmatpush1.bf16.msra.mxu0 %v16013_v9  ;;  %v16310_v48 = vcombine.high %v6769_v43, %v6773_v44  ;;  %v6649_v49 = vld [vmem:[#allocation22 + $0x958] sm:$0xff]  ;;  %v16181_v9 = vcombine.low %v6641_v42, %v6645_v32 }
 0x9d0   : > { %10028 = vmatpush1.bf16.msra.mxu1 %v16141_v51  ;;  %10038 = vmatprep.subr.bf16.mxu0 %v16150_v5  ;;  %v6653_v46 = vld [vmem:[#allocation22 + $0x978] sm:$0xff]  ;;  %v16309_v51 = vcombine.low %v6769_v43, %v6773_v44 }
 0x9d1   : > { %10079 = vmatprep.subr.bf16.mxu1 %v16278_v8  ;;  %v6777_v33 = vld [vmem:[#allocation22 + $0xd58] sm:$0xff]  ;;  %v16190_v5 = vcombine.high %v6649_v49, %v6653_v46  ;;  %v16189_v19 = vcombine.low %v6649_v49, %v6653_v46 }
 0x9d2   : > { %9989 = vmatmul.mubr.bf16.vlgmr.msra.gmra.mrb[56].mxu0 %v19782_v36  ;;  %v6761_v36 = vld [vmem:[#allocation22 + $0xcd8] sm:$0xff] }
 0x9d3   : > { %10030 = vmatmul.mubr.bf16.vlgmr.msra.gmra.mrb[56].mxu1 %v19784_v40  ;;  %10039 = vmatpush1.bf16.msra.mxu0 %v16149_v15  ;;  %v16293_v40 = vcombine.low %v6753_v29, %v6757_v25  ;;  %v16301_v37 = vcombine.low %v6761_v36, %v6765_v11  ;;  %v6781_v63 = vld [vmem:[#allocation22 + $0xd78] sm:$0xff] }
 0x9d4   : > { %10070 = vmatprep.mubr.bf16.mxu0 %v19824_v6  ;;  %10080 = vmatpush1.bf16.msra.mxu1 %v16277_v10  ;;  %v16302_v6 = vcombine.high %v6761_v36, %v6765_v11  ;;  %v16318_v8 = vcombine.high %v6777_v33, %v6781_v63  ;;  %v6657_v12 = vld [vmem:[#allocation22 + $0x998] sm:$0xff]  ;;  %v16317_v10 = vcombine.low %v6777_v33, %v6781_v63 }
 0x9d5   : > { %10111 = vmatprep.mubr.bf16.mxu1 %v19828_v13  ;;  %10040 = vmatprep.subr.bf16.mxu0 %v16158_v20  ;;  %v16173_v13 = vcombine.low %v6633_v57, %v6637_v61  ;;  %v6661_v18 = vld [vmem:[#allocation22 + $0x9b8] sm:$0xff] }
 0x9d6   : > { %10081 = vmatprep.subr.bf16.mxu1 %v16286_v23  ;;  %v6785_v15 = vld [vmem:[#allocation22 + $0xd98] sm:$0xff]  ;;  %v16198_v20 = vcombine.high %v6657_v12, %v6661_v18  ;;  %v16197_v11 = vcombine.low %v6657_v12, %v6661_v18 }
 0x9d7   : > { %10041 = vmatpush1.bf16.msra.mxu0 %v16157_v7  ;;  %v6789_v17 = vld [vmem:[#allocation22 + $0xdb8] sm:$0xff] }
 0x9d8   : > { %10082 = vmatpush1.bf16.msra.mxu1 %v16285_v28  ;;  %10042 = vmatprep.subr.bf16.mxu0 %v16166_v38  ;;  %v16326_v22 = vcombine.high %v6785_v15, %v6789_v17  ;;  %v6665_v23 = vld [vmem:[#allocation22 + $0x9d8] sm:$0xff] }
 0x9d9   : > { %10083 = vmatprep.subr.bf16.mxu1 %v16294_v53  ;;  %v6669_v29 = vld [vmem:[#allocation22 + $0x9f8] sm:$0xff] }
 0x9da   : > { %v6793_v38 = vld [vmem:[#allocation22 + $0xdd8] sm:$0xff]  ;;  %v16206_v42 = vcombine.high %v6665_v23, %v6669_v29 }
 0x9db   : > { %10043 = vmatpush1.bf16.msra.mxu0 %v16165_v3  ;;  %v6797_v53 = vld [vmem:[#allocation22 + $0xdf8] sm:$0xff] }
 0x9dc   : > { %10084 = vmatpush1.bf16.msra.mxu1 %v16293_v40  ;;  %10044 = vmatprep.subr.bf16.mxu0 %v16174_v41  ;;  %v16334_v43 = vcombine.high %v6793_v38, %v6797_v53  ;;  %v6673_v44 = vld [vmem:[#allocation22 + $0xa18] sm:$0xff] }
 0x9dd   : > { %10085 = vmatprep.subr.bf16.mxu1 %v16302_v6  ;;  %v16325_v6 = vcombine.low %v6785_v15, %v6789_v17  ;;  %v6681_v33 = vld [vmem:[#allocation22 + $0xa58] sm:$0xff] }
 0x9de   : > { %v6685_v63 = vld [vmem:[#allocation22 + $0xa78] sm:$0xff] }
 0x9df   : > { %10045 = vmatpush1.bf16.msra.mxu0 %v16173_v13  ;;  %v6677_v13 = vld [vmem:[#allocation22 + $0xa38] sm:$0xff]  ;;  %v16222_v12 = vcombine.high %v6681_v33, %v6685_v63 }
 0x9e0   : > { %10086 = vmatpush1.bf16.msra.mxu1 %v16301_v37  ;;  %10046 = vmatprep.subr.bf16.mxu0 %v16182_v47  ;;  %v6805_v37 = vld [vmem:[#allocation22 + $0xe38] sm:$0xff]  ;;  %v16205_v47 = vcombine.low %v6665_v23, %v6669_v29  ;;  %v16214_v49 = vcombine.high %v6673_v44, %v6677_v13 }
 0x9e1   : > { %10087 = vmatprep.subr.bf16.mxu1 %v16310_v48  ;;  %v16333_v48 = vcombine.low %v6793_v38, %v6797_v53  ;;  %v6689_v15 = vld [vmem:[#allocation22 + $0xa98] sm:$0xff] }
 0x9e2   : > { %v6693_v17 = vld [vmem:[#allocation22 + $0xab8] sm:$0xff] }
 0x9e3   : > { %10047 = vmatpush1.bf16.msra.mxu0 %v16181_v9  ;;  %v6809_v9 = vld [vmem:[#allocation22 + $0xe58] sm:$0xff]  ;;  %v16229_v38 = vcombine.low %v6689_v15, %v6693_v17 }
 0x9e4   : > { %10088 = vmatpush1.bf16.msra.mxu1 %v16309_v51  ;;  %10048 = vmatprep.subr.bf16.mxu0 %v16190_v5  ;;  %v6813_v51 = vld [vmem:[#allocation22 + $0xe78] sm:$0xff]  ;;  %v16213_v5 = vcombine.low %v6673_v44, %v6677_v13 }
 0x9e5   : > { %v9744_v54 = vpop.f32.mrb[44].mxu0  ;;  %10089 = vmatprep.subr.bf16.mxu1 %v16318_v8  ;;  %v16350_v18 = vcombine.high %v6809_v9, %v6813_v51  ;;  %v6697_v29 = vld [vmem:[#allocation22 + $0xad8] sm:$0xff] }
 0x9e6   : > { %v9745_v25 = vadd.f32 %v9744_v54, %v19878_v58  ;;  %v9785_v7 = vpop.f32.mrb[44].mxu1  ;;  %v9746_v28 = vpop.f32.mrb[45].mxu0  ;;  %v16349_v54 = vcombine.low %v6809_v9, %v6813_v51  ;;  %v6713_v44 = vld [vmem:[#allocation22 + $0xb58] sm:$0xff] }
 0x9e7   : > { %v9747_v57 = vadd.f32 %v9746_v28, %v19880_v62  ;;  %v9787_v61 = vpop.f32.mrb[45].mxu1  ;;  %v9748_v36 = vpop.f32.mrb[46].mxu0  ;;  %10049 = vmatpush1.bf16.msra.mxu0 %v16189_v19  ;;  %v6801_v62 = vld [vmem:[#allocation22 + $0xe18] sm:$0xff] }
 0x9e8   : > { %v19888_v3 = vadd.f32 %v9785_v7, %v9745_v25  ;;  %v9789_v40 = vpop.f32.mrb[46].mxu1  ;;  %10090 = vmatpush1.bf16.msra.mxu1 %v16317_v10  ;;  %v9749_v41 = vpop.f32.mrb[47].mxu0  ;;  %10050 = vmatprep.subr.bf16.mxu0 %v16198_v20  ;;  %v16342_v46 = vcombine.high %v6801_v62, %v6805_v37  ;;  %v16341_v8 = vcombine.low %v6801_v62, %v6805_v37  ;;  %v6817_v19 = vld [vmem:[#allocation22 + $0xe98] sm:$0xff] }
 0x9e9   : > { %v19890_v32 = vadd.f32 %v9787_v61, %v9747_v57  ;;  %v9790_v58 = vpop.f32.mrb[47].mxu1  ;;  %10091 = vmatprep.subr.bf16.mxu1 %v16326_v22  ;;  %v6821_v10 = vld [vmem:[#allocation22 + $0xeb8] sm:$0xff]  ;;  %v16221_v20 = vcombine.low %v6681_v33, %v6685_v63  ;;  %v16230_v22 = vcombine.high %v6689_v15, %v6693_v17 }
 0x9ea   : > { %v16358_v23 = vcombine.high %v6817_v19, %v6821_v10  ;;  %v6701_v25 = vld [vmem:[#allocation22 + $0xaf8] sm:$0xff]  ;;  %v16357_v53 = vcombine.low %v6817_v19, %v6821_v10 }
 0x9eb   : > { %10051 = vmatpush1.bf16.msra.mxu0 %v16197_v11  ;;  %v6825_v7 = vld [vmem:[#allocation22 + $0xed8] sm:$0xff]  ;;  %v16238_v57 = vcombine.high %v6697_v29, %v6701_v25 }
 0x9ec   : > { %10092 = vmatpush1.bf16.msra.mxu1 %v16325_v6  ;;  %10052 = vmatprep.subr.bf16.mxu0 %v16206_v42  ;;  %v6829_v28 = vld [vmem:[#allocation22 + $0xef8] sm:$0xff]  ;;  %v16237_v6 = vcombine.low %v6697_v29, %v6701_v25 }
 0x9ed   : > { %10093 = vmatprep.subr.bf16.mxu1 %v16334_v43  ;;  %v16366_v61 = vcombine.high %v6825_v7, %v6829_v28  ;;  %v6705_v36 = vld [vmem:[#allocation22 + $0xb18] sm:$0xff]  ;;  %v16365_v42 = vcombine.low %v6825_v7, %v6829_v28  ;;  %v6883_v7 = vrot.slane %v19872_v24, %v19805_v35  ;;  %v6887_v28 = vrot.slane %v19872_v24, %v19811_v34 }
 0x9ee   : > { %v6709_v11 = vld [vmem:[#allocation22 + $0xb38] sm:$0xff] }
 0x9ef   : > { %10053 = vmatpush1.bf16.msra.mxu0 %v16205_v47  ;;  %v6833_v40 = vld [vmem:[#allocation22 + $0xf18] sm:$0xff]  ;;  %v16246_v58 = vcombine.high %v6705_v36, %v6709_v11  ;;  %v16245_v47 = vcombine.low %v6705_v36, %v6709_v11 }
 0x9f0   : > { %10094 = vmatpush1.bf16.msra.mxu1 %v16333_v48  ;;  %10054 = vmatprep.subr.bf16.mxu0 %v16214_v49  ;;  %v6837_v41 = vld [vmem:[#allocation22 + $0xf38] sm:$0xff] }
 0x9f1   : > { %10095 = vmatprep.subr.bf16.mxu1 %v16342_v46  ;;  %v16374_v43 = vcombine.high %v6833_v40, %v6837_v41  ;;  %v6717_v13 = vld [vmem:[#allocation22 + $0xb78] sm:$0xff]  ;;  %v16373_v48 = vcombine.low %v6833_v40, %v6837_v41 }
 0x9f2   : > { %v6841_v62 = vld [vmem:[#allocation22 + $0xf58] sm:$0xff]  ;;  %v16254_v49 = vcombine.high %v6713_v44, %v6717_v13 }
 0x9f3   : > { %10055 = vmatpush1.bf16.msra.mxu0 %v16213_v5  ;;  %v6845_v37 = vld [vmem:[#allocation22 + $0xf78] sm:$0xff]  ;;  %v16253_v5 = vcombine.low %v6713_v44, %v6717_v13 }
 0x9f4   : > { %10096 = vmatpush1.bf16.msra.mxu1 %v16341_v8  ;;  %10056 = vmatprep.subr.bf16.mxu0 %v16222_v12  ;;  %v16382_v46 = vcombine.high %v6841_v62, %v6845_v37  ;;  %v6721_v33 = vld [vmem:[#allocation22 + $0xb98] sm:$0xff]  ;;  %v16381_v8 = vcombine.low %v6841_v62, %v6845_v37 }
 0x9f5   : > { %10097 = vmatprep.subr.bf16.mxu1 %v16350_v18  ;;  %v6725_v63 = vld [vmem:[#allocation22 + $0xbb8] sm:$0xff] }
 0x9f6   : > { %v6849_v9 = vld [vmem:[#allocation22 + $0xf98] sm:$0xff]  ;;  %v16262_v12 = vcombine.high %v6721_v33, %v6725_v63 }
 0x9f7   : > { %10057 = vmatpush1.bf16.msra.mxu0 %v16221_v20  ;;  %v6853_v51 = vld [vmem:[#allocation22 + $0xfb8] sm:$0xff]  ;;  %v16261_v20 = vcombine.low %v6721_v33, %v6725_v63 }
 0x9f8   : > { %10098 = vmatpush1.bf16.msra.mxu1 %v16349_v54  ;;  %10058 = vmatprep.subr.bf16.mxu0 %v16230_v22  ;;  %v16390_v18 = vcombine.high %v6849_v9, %v6853_v51  ;;  %v6729_v15 = vld [vmem:[#allocation22 + $0xbd8] sm:$0xff]  ;;  %v16389_v54 = vcombine.low %v6849_v9, %v6853_v51  ;;  %v6891_v9 = vrot.slane %v19872_v24, %v19808_v31 }
 0x9f9   : > { %10099 = vmatprep.subr.bf16.mxu1 %v16358_v23  ;;  %v6733_v17 = vld [vmem:[#allocation22 + $0xbf8] sm:$0xff]  ;;  %v6895_v51 = vrot.slane %v19872_v24, %v19814_v1  ;;  %v19912_v24 = vadd.f32 %v19888_v3, %v19691_v39 }
 0x9fa   : > { %v6857_v19 = vld [vmem:[#allocation22 + $0xfd8] sm:$0xff]  ;;  %v16270_v22 = vcombine.high %v6729_v15, %v6733_v17  ;;  %v16269_v29 = vcombine.low %v6729_v15, %v6733_v17 }
 0x9fb   : > { %10059 = vmatpush1.bf16.msra.mxu0 %v16229_v38  ;;  %v6861_v10 = vld [vmem:[#allocation22 + $0xff8] sm:$0xff] }
 0x9fc   : > { %10100 = vmatpush1.bf16.msra.mxu1 %v16357_v53  ;;  %10060 = vmatprep.subr.bf16.mxu0 %v16238_v57  ;;  %v16398_v23 = vcombine.high %v6857_v19, %v6861_v10  ;;  %v16397_v25 = vcombine.low %v6857_v19, %v6861_v10 }
 0x9fd   : > { %10101 = vmatprep.subr.bf16.mxu1 %v16366_v61 }
 0x9ff   : > { %10061 = vmatpush1.bf16.msra.mxu0 %v16237_v6 }
 0xa00   : > { %10102 = vmatpush1.bf16.msra.mxu1 %v16365_v42  ;;  %10062 = vmatprep.subr.bf16.mxu0 %v16246_v58 }
 0xa01   : > { %10103 = vmatprep.subr.bf16.mxu1 %v16374_v43 }
 0xa03   : > { %10063 = vmatpush1.bf16.msra.mxu0 %v16245_v47 }
 0xa04   : > { %10104 = vmatpush1.bf16.msra.mxu1 %v16373_v48  ;;  %10064 = vmatprep.subr.bf16.mxu0 %v16254_v49 }
 0xa05   : > { %10105 = vmatprep.subr.bf16.mxu1 %v16382_v46 }
 0xa07   : > { %10065 = vmatpush1.bf16.msra.mxu0 %v16253_v5 }
 0xa08   : > { %10106 = vmatpush1.bf16.msra.mxu1 %v16381_v8  ;;  %10066 = vmatprep.subr.bf16.mxu0 %v16262_v12 }
 0xa09   : > { %10107 = vmatprep.subr.bf16.mxu1 %v16390_v18 }
 0xa0b   : > { %10067 = vmatpush1.bf16.msra.mxu0 %v16261_v20 }
 0xa0c   : > { %10108 = vmatpush1.bf16.msra.mxu1 %v16389_v54  ;;  %10068 = vmatprep.subr.bf16.mxu0 %v16270_v22 }
 0xa0d   : > { %10109 = vmatprep.subr.bf16.mxu1 %v16398_v23 }
 0xa0f   : > { %10069 = vmatpush1.bf16.msra.mxu0 %v16269_v29  ;;  %v19904_v29 = vadd.f32 %v19864_v16, %v19669_v27  ;;  %v19922_v27 = vadd.f32 %v19890_v32, %v19671_v30 }
 0xa10   : > { %10110 = vmatpush1.bf16.msra.mxu1 %v16397_v25  ;;  %v19908_v25 = vadd.f32 %v19866_v21, %v19642_v4 }
 0xa11   : > { %v10133_v39 = vsel %vm1925_vm9, %v19922_v27, 0.0 }
 0xa12   : > { %10071 = vmatmul.mubr.bf16.vlgmr.msra.gmra.mrb[60].mxu0 %v19826_v50 }
 0xa13   : > { %10112 = vmatmul.mubr.bf16.vlgmr.msra.gmra.mrb[60].mxu1 %v19830_v14 }
 0xa25   : > { %v9826_v38 = vpop.f32.mrb[48].mxu0 }
 0xa26   : > { %v9827_v53 = vadd.f32 %v9826_v38, %v6883_v7  ;;  %v9867_v57 = vpop.f32.mrb[48].mxu1  ;;  %v9828_v61 = vpop.f32.mrb[49].mxu0  ;;  %v10128_v7 = vsel %vm1925_vm9, %v19904_v29, 0.0  ;;  %v10131_v38 = vsel %vm1925_vm9, %v19912_v24, 0.0 }
 0xa27   : > { %v9829_v36 = vadd.f32 %v9828_v61, %v6887_v28  ;;  %v9869_v11 = vpop.f32.mrb[49].mxu1  ;;  %v9830_v40 = vpop.f32.mrb[50].mxu0  ;;  %v10129_v28 = vsel %vm1925_vm9, %v19908_v25, 0.0 }
 0xa28   : > { %v9868_v41 = vadd.f32 %v9867_v57, %v9827_v53  ;;  %v9871_v6 = vpop.f32.mrb[50].mxu1  ;;  %v9831_v42 = vpop.f32.mrb[51].mxu0  ;;  %v10130_v16 = vadd.f32 %v10129_v28, %v10128_v7  ;;  %v17640_v7 = vld [vmem:[%s21334_s1 + $0xa4] ss:$16 sps:$4 sm:$0xff]   ;;  %v17643_v28 = vld [vmem:[%s21334_s1 + $0xac] ss:$16 sps:$4 sm:$0xff]  }
 0xa29   : > { %v9870_v58 = vadd.f32 %v9869_v11, %v9829_v36  ;;  %v9872_v50 = vpop.f32.mrb[51].mxu1 }
 0xa2a   : > { %v10132_v21 = vadd.f32 %v10131_v38, %v10130_v16  ;;  %v17638_v38 = vld [vmem:[%s21334_s1 + $0xa0] ss:$16 sps:$4 sm:$0xff]   ;;  %v17641_v16 = vld [vmem:[%s21334_s1 + $0xa8] ss:$16 sps:$4 sm:$0xff]  }
 0xa2c   : > { %v10134_v57 = vadd.f32 %v10133_v39, %v10132_v21  ;;  %v17646_v21 = vld [vmem:[%s21334_s1 + $0xc4] ss:$16 sps:$4 sm:$0xff]   ;;  %v17649_v39 = vld [vmem:[%s21334_s1 + $0xcc] ss:$16 sps:$4 sm:$0xff]  }
 0xa65   : > { %v9908_v43 = vpop.f32.mrb[52].mxu0 }
 0xa66   : > { %v9909_v14 = vadd.f32 %v9908_v43, %v9868_v41  ;;  %v9949_v44 = vpop.f32.mrb[52].mxu1  ;;  %v9910_v13 = vpop.f32.mrb[53].mxu0 }
 0xa67   : > { %v9911_v62 = vadd.f32 %v9910_v13, %v9870_v58  ;;  %v9951_v37 = vpop.f32.mrb[53].mxu1  ;;  %v9912_v47 = vpop.f32.mrb[54].mxu0 }
 0xa68   : > { %v9950_v48 = vadd.f32 %v9949_v44, %v9909_v14  ;;  %v9953_v49 = vpop.f32.mrb[54].mxu1  ;;  %v9913_v46 = vpop.f32.mrb[55].mxu0 }
 0xa69   : > { %v9952_v33 = vadd.f32 %v9951_v37, %v9911_v62  ;;  %v9954_v63 = vpop.f32.mrb[55].mxu1  ;;  %v17608_v49 = vld [vmem:[%s21334_s1] ss:$16 sps:$4 sm:$0xff]   ;;  %v17613_v46 = vld [vmem:[%s21334_s1 + $0xc] ss:$16 sps:$4 sm:$0xff]  }
 0xa6a   : > { %v19925_v4 = vadd.f32 %v9950_v48, %v19705_v56  ;;  %v17619_v63 = vld [vmem:[%s21334_s1 + $0x2c] ss:$16 sps:$4 sm:$0xff]   ;;  %12021 = vmatprep.subr.bf16.mxu1 %v17613_v46 }
 0xa6b   : > { %v19932_v53 = vadd.f32 %v9952_v33, %v19707_v2  ;;  %v17616_v33 = vld [vmem:[%s21334_s1 + $0x24] ss:$16 sps:$4 sm:$0xff]  }
 0xa6c   : > { %v10135_v3 = vsel %vm1925_vm9, %v19925_v4, 0.0 }
 0xa6d   : > { %v10136_v32 = vadd.f32 %v10135_v3, %v10134_v57  ;;  %v10137_v6 = vsel %vm1925_vm9, %v19932_v53, 0.0  ;;  %v17644_v3 = vld [vmem:[%s21334_s1 + $0xc0] ss:$16 sps:$4 sm:$0xff]   ;;  %v17647_v57 = vld [vmem:[%s21334_s1 + $0xc8] ss:$16 sps:$4 sm:$0xff]  }
 0xa6f   : > { %v10138_v13 = vadd.f32 %v10137_v6, %v10136_v32  ;;  %v17658_v32 = vld [vmem:[%s21334_s1 + $0x104] ss:$16 sps:$4 sm:$0xff]  }
 0xa70   : > { %v17664_v6 = vld [vmem:[%s21334_s1 + $0x124] ss:$16 sps:$4 sm:$0xff]  }
 0xaa5   : > { %v9990_v5 = vpop.f32.mrb[56].mxu0 }
 0xaa6   : > { %v9991_v8 = vadd.f32 %v9990_v5, %v6891_v9  ;;  %v10031_v12 = vpop.f32.mrb[56].mxu1  ;;  %v9992_v18 = vpop.f32.mrb[57].mxu0  ;;  %v17614_v9 = vld [vmem:[%s21334_s1 + $0x20] ss:$16 sps:$4 sm:$0xff]   ;;  %v17622_v5 = vld [vmem:[%s21334_s1 + $0x44] ss:$16 sps:$4 sm:$0xff]  }
 0xaa7   : > { %v9993_v15 = vadd.f32 %v9992_v18, %v6895_v51  ;;  %v10033_v17 = vpop.f32.mrb[57].mxu1  ;;  %v9994_v19 = vpop.f32.mrb[58].mxu0  ;;  %v17617_v51 = vld [vmem:[%s21334_s1 + $0x28] ss:$16 sps:$4 sm:$0xff]  }
 0xaa8   : > { %v10032_v10 = vadd.f32 %v10031_v12, %v9991_v8  ;;  %v10035_v20 = vpop.f32.mrb[58].mxu1  ;;  %v9995_v54 = vpop.f32.mrb[59].mxu0  ;;  %v17625_v8 = vld [vmem:[%s21334_s1 + $0x4c] ss:$16 sps:$4 sm:$0xff]   ;;  %v17620_v12 = vld [vmem:[%s21334_s1 + $0x40] ss:$16 sps:$4 sm:$0xff]  }
 0xaa9   : > { %v10034_v22 = vadd.f32 %v10033_v17, %v9993_v15  ;;  %v10036_v23 = vpop.f32.mrb[59].mxu1  ;;  %v17623_v18 = vld [vmem:[%s21334_s1 + $0x48] ss:$16 sps:$4 sm:$0xff]   ;;  %v17628_v15 = vld [vmem:[%s21334_s1 + $0x64] ss:$16 sps:$4 sm:$0xff]  }
 0xaaa   : > { %v17631_v17 = vld [vmem:[%s21334_s1 + $0x6c] ss:$16 sps:$4 sm:$0xff]   ;;  %v17626_v19 = vld [vmem:[%s21334_s1 + $0x60] ss:$16 sps:$4 sm:$0xff]   ;;  %v17634_v20 = vld [vmem:[%s21334_s1 + $0x84] ss:$16 sps:$4 sm:$0xff]  }
 0xaab   : > { %v17637_v54 = vld [vmem:[%s21334_s1 + $0x8c] ss:$16 sps:$4 sm:$0xff]   ;;  %v17635_v23 = vld [vmem:[%s21334_s1 + $0x88] ss:$16 sps:$4 sm:$0xff]  }
 0xae5   : > { %v10072_v61 = vpop.f32.mrb[60].mxu0 }
 0xae6   : > { %v10073_v36 = vadd.f32 %v10072_v61, %v10032_v10  ;;  %v10113_v11 = vpop.f32.mrb[60].mxu1  ;;  %v10074_v30 = vpop.f32.mrb[61].mxu0  ;;  %v17629_v10 = vld [vmem:[%s21334_s1 + $0x68] ss:$16 sps:$4 sm:$0xff]   ;;  %v17652_v61 = vld [vmem:[%s21334_s1 + $0xe4] ss:$16 sps:$4 sm:$0xff]  }
 0xae7   : > { %v10075_v40 = vadd.f32 %v10074_v30, %v10034_v22  ;;  %v10115_v41 = vpop.f32.mrb[61].mxu1  ;;  %v10076_v56 = vpop.f32.mrb[62].mxu0  ;;  %v17632_v22 = vld [vmem:[%s21334_s1 + $0x80] ss:$16 sps:$4 sm:$0xff]   ;;  %v17653_v30 = vld [vmem:[%s21334_s1 + $0xe8] ss:$16 sps:$4 sm:$0xff]  }
 0xae8   : > { %v10114_v42 = vadd.f32 %v10113_v11, %v10073_v36  ;;  %v10117_v58 = vpop.f32.mrb[62].mxu1  ;;  %v10077_v50 = vpop.f32.mrb[63].mxu0  ;;  %v17655_v36 = vld [vmem:[%s21334_s1 + $0xec] ss:$16 sps:$4 sm:$0xff]   ;;  %v17650_v11 = vld [vmem:[%s21334_s1 + $0xe0] ss:$16 sps:$4 sm:$0xff]  }
 0xae9   : > { %v10116_v43 = vadd.f32 %v10115_v41, %v10075_v40  ;;  %v10118_v14 = vpop.f32.mrb[63].mxu1  ;;  %v17661_v40 = vld [vmem:[%s21334_s1 + $0x10c] ss:$16 sps:$4 sm:$0xff]   ;;  %v17656_v41 = vld [vmem:[%s21334_s1 + $0x100] ss:$16 sps:$4 sm:$0xff]  }
 0xaea   : > { %v19937_v2 = vadd.f32 %v10114_v42, %v19730_v59  ;;  %v17610_v59 = vld [vmem:[%s21334_s1 + $0x4] ss:$16 sps:$4 sm:$0xff]   ;;  %v17659_v56 = vld [vmem:[%s21334_s1 + $0x108] ss:$16 sps:$4 sm:$0xff]   ;;  %v17667_v42 = vld [vmem:[%s21334_s1 + $0x12c] ss:$16 sps:$4 sm:$0xff]  }
 0xaeb   : > { %v19940_v44 = vadd.f32 %v10116_v43, %v19709_v26  ;;  %v17611_v26 = vld [vmem:[%s21334_s1 + $0x8] ss:$16 sps:$4 sm:$0xff]   ;;  %11857 = vmatprep.subr.bf16.mxu0 %v17610_v59  ;;  %v17662_v58 = vld [vmem:[%s21334_s1 + $0x120] ss:$16 sps:$4 sm:$0xff]   ;;  %v17670_v43 = vld [vmem:[%s21334_s1 + $0x144] ss:$16 sps:$4 sm:$0xff]  }
 0xaec   : > { %v10139_v62 = vsel %vm1925_vm9, %v19937_v2, 0.0  ;;  %11858 = vmatpush1.bf16.msra.mxu0 %v17608_v49  ;;  %12022 = vmatpush1.bf16.msra.mxu1 %v17611_v26  ;;  %v17665_v50 = vld [vmem:[%s21334_s1 + $0x128] ss:$16 sps:$4 sm:$0xff]   ;;  %v17673_v14 = vld [vmem:[%s21334_s1 + $0x14c] ss:$16 sps:$4 sm:$0xff]  }
 0xaed   : > { %v10140_v37 = vadd.f32 %v10139_v62, %v10138_v13  ;;  %v10141_v47 = vsel %vm1925_vm9, %v19940_v44, 0.0  ;;  %11859 = vmatprep.subr.bf16.mxu0 %v17616_v33  ;;  %12023 = vmatprep.subr.bf16.mxu1 %v17619_v63  ;;  %v17668_v13 = vld [vmem:[%s21334_s1 + $0x140] ss:$16 sps:$4 sm:$0xff]   ;;  %v17671_v62 = vld [vmem:[%s21334_s1 + $0x148] ss:$16 sps:$4 sm:$0xff]  }
 0xaef   : > { %v10142_v48 = vadd.f32 %v10141_v47, %v10140_v37 }
 0xaf0   : > { %11860 = vmatpush1.bf16.msra.mxu0 %v17614_v9  ;;  %12024 = vmatpush1.bf16.msra.mxu1 %v17617_v51 }
 0xaf1   : > { %10143 = vadd.xlane.f32.xlu0 %v10142_v48  ;;  %11861 = vmatprep.subr.bf16.mxu0 %v17622_v5 }
 0xaf2   : > { %12025 = vmatprep.subr.bf16.mxu1 %v17625_v8 }
 0xaf4   : > { %11862 = vmatpush1.bf16.msra.mxu0 %v17620_v12  ;;  %12026 = vmatpush1.bf16.msra.mxu1 %v17623_v18 }
 0xaf5   : > { %11863 = vmatprep.subr.bf16.mxu0 %v17628_v15  ;;  %12027 = vmatprep.subr.bf16.mxu1 %v17631_v17 }
 0xaf8   : > { %11864 = vmatpush1.bf16.msra.mxu0 %v17626_v19  ;;  %12028 = vmatpush1.bf16.msra.mxu1 %v17629_v10 }
 0xaf9   : > { %11865 = vmatprep.subr.bf16.mxu0 %v17634_v20  ;;  %12029 = vmatprep.subr.bf16.mxu1 %v17637_v54 }
 0xafc   : > { %11866 = vmatpush1.bf16.msra.mxu0 %v17632_v22  ;;  %12030 = vmatpush1.bf16.msra.mxu1 %v17635_v23 }
 0xafd   : > { %11867 = vmatprep.subr.bf16.mxu0 %v17640_v7  ;;  %12031 = vmatprep.subr.bf16.mxu1 %v17643_v28 }
 0xb00   : > { %11868 = vmatpush1.bf16.msra.mxu0 %v17638_v38  ;;  %12032 = vmatpush1.bf16.msra.mxu1 %v17641_v16  ;;  %v17676_v38 = vld [vmem:[%s21334_s1 + $0x164] ss:$16 sps:$4 sm:$0xff]   ;;  %v17679_v16 = vld [vmem:[%s21334_s1 + $0x16c] ss:$16 sps:$4 sm:$0xff]  }
 0xb01   : > { %11869 = vmatprep.subr.bf16.mxu0 %v17646_v21  ;;  %12033 = vmatprep.subr.bf16.mxu1 %v17649_v39  ;;  %v17674_v21 = vld [vmem:[%s21334_s1 + $0x160] ss:$16 sps:$4 sm:$0xff]   ;;  %v17677_v39 = vld [vmem:[%s21334_s1 + $0x168] ss:$16 sps:$4 sm:$0xff]  }
 0xb04   : > { %11870 = vmatpush1.bf16.msra.mxu0 %v17644_v3  ;;  %12034 = vmatpush1.bf16.msra.mxu1 %v17647_v57  ;;  %v17682_v3 = vld [vmem:[%s21334_s1 + $0x184] ss:$16 sps:$4 sm:$0xff]   ;;  %v17685_v57 = vld [vmem:[%s21334_s1 + $0x18c] ss:$16 sps:$4 sm:$0xff]  }
 0xb05   : > { %11871 = vmatprep.subr.bf16.mxu0 %v17652_v61  ;;  %12035 = vmatprep.subr.bf16.mxu1 %v17655_v36  ;;  %v17680_v61 = vld [vmem:[%s21334_s1 + $0x180] ss:$16 sps:$4 sm:$0xff]   ;;  %v17683_v36 = vld [vmem:[%s21334_s1 + $0x188] ss:$16 sps:$4 sm:$0xff]  }
 0xb08   : > { %11872 = vmatpush1.bf16.msra.mxu0 %v17650_v11  ;;  %12036 = vmatpush1.bf16.msra.mxu1 %v17653_v30  ;;  %v17688_v11 = vld [vmem:[%s21334_s1 + $0x1a4] ss:$16 sps:$4 sm:$0xff]   ;;  %v17691_v30 = vld [vmem:[%s21334_s1 + $0x1ac] ss:$16 sps:$4 sm:$0xff]  }
 0xb09   : > { %11873 = vmatprep.subr.bf16.mxu0 %v17658_v32  ;;  %12037 = vmatprep.subr.bf16.mxu1 %v17661_v40  ;;  %v17686_v32 = vld [vmem:[%s21334_s1 + $0x1a0] ss:$16 sps:$4 sm:$0xff]   ;;  %v17689_v40 = vld [vmem:[%s21334_s1 + $0x1a8] ss:$16 sps:$4 sm:$0xff]  }
 0xb0c   : > { %11874 = vmatpush1.bf16.msra.mxu0 %v17656_v41  ;;  %12038 = vmatpush1.bf16.msra.mxu1 %v17659_v56  ;;  %v17694_v41 = vld [vmem:[%s21334_s1 + $0x1c4] ss:$16 sps:$4 sm:$0xff]   ;;  %v17697_v56 = vld [vmem:[%s21334_s1 + $0x1cc] ss:$16 sps:$4 sm:$0xff]  }
 0xb0d   : > { %11875 = vmatprep.subr.bf16.mxu0 %v17664_v6  ;;  %12039 = vmatprep.subr.bf16.mxu1 %v17667_v42  ;;  %v17692_v6 = vld [vmem:[%s21334_s1 + $0x1c0] ss:$16 sps:$4 sm:$0xff]   ;;  %v17695_v42 = vld [vmem:[%s21334_s1 + $0x1c8] ss:$16 sps:$4 sm:$0xff]  }
 0xb10   : > { %11876 = vmatpush1.bf16.msra.mxu0 %v17662_v58  ;;  %12040 = vmatpush1.bf16.msra.mxu1 %v17665_v50  ;;  %v17700_v58 = vld [vmem:[%s21334_s1 + $0x1e4] ss:$16 sps:$4 sm:$0xff]   ;;  %v17703_v50 = vld [vmem:[%s21334_s1 + $0x1ec] ss:$16 sps:$4 sm:$0xff]  }
 0xb11   : > { %11877 = vmatprep.subr.bf16.mxu0 %v17670_v43  ;;  %12041 = vmatprep.subr.bf16.mxu1 %v17673_v14  ;;  %v17698_v43 = vld [vmem:[%s21334_s1 + $0x1e0] ss:$16 sps:$4 sm:$0xff]   ;;  %v17701_v14 = vld [vmem:[%s21334_s1 + $0x1e8] ss:$16 sps:$4 sm:$0xff]  }
 0xb14   : > { %11878 = vmatpush1.bf16.msra.mxu0 %v17668_v13  ;;  %12042 = vmatpush1.bf16.msra.mxu1 %v17671_v62  ;;  %v17706_v13 = vld [vmem:[%s21334_s1 + $0x204] ss:$16 sps:$4 sm:$0xff]   ;;  %v17709_v62 = vld [vmem:[%s21334_s1 + $0x20c] ss:$16 sps:$4 sm:$0xff]  }
 0xb15   : > { %11879 = vmatprep.subr.bf16.mxu0 %v17676_v38  ;;  %12043 = vmatprep.subr.bf16.mxu1 %v17679_v16 }
 0xb18   : > { %11880 = vmatpush1.bf16.msra.mxu0 %v17674_v21  ;;  %12044 = vmatpush1.bf16.msra.mxu1 %v17677_v39 }
 0xb19   : > { %11881 = vmatprep.subr.bf16.mxu0 %v17682_v3  ;;  %12045 = vmatprep.subr.bf16.mxu1 %v17685_v57 }
 0xb1c   : > { %11882 = vmatpush1.bf16.msra.mxu0 %v17680_v61  ;;  %12046 = vmatpush1.bf16.msra.mxu1 %v17683_v36 }
 0xb1d   : > { %11883 = vmatprep.subr.bf16.mxu0 %v17688_v11  ;;  %12047 = vmatprep.subr.bf16.mxu1 %v17691_v30 }
 0xb20   : > { %11884 = vmatpush1.bf16.msra.mxu0 %v17686_v32  ;;  %12048 = vmatpush1.bf16.msra.mxu1 %v17689_v40 }
 0xb21   : > { %11885 = vmatprep.subr.bf16.mxu0 %v17694_v41  ;;  %12049 = vmatprep.subr.bf16.mxu1 %v17697_v56 }
 0xb24   : > { %11886 = vmatpush1.bf16.msra.mxu0 %v17692_v6  ;;  %12050 = vmatpush1.bf16.msra.mxu1 %v17695_v42  ;;  %v17704_v6 = vld [vmem:[%s21334_s1 + $0x200] ss:$16 sps:$4 sm:$0xff]   ;;  %v17707_v42 = vld [vmem:[%s21334_s1 + $0x208] ss:$16 sps:$4 sm:$0xff]  }
 0xb25   : > { %11887 = vmatprep.subr.bf16.mxu0 %v17700_v58  ;;  %12051 = vmatprep.subr.bf16.mxu1 %v17703_v50  ;;  %v17712_v50 = vld [vmem:[%s21334_s1 + $0x224] ss:$16 sps:$4 sm:$0xff]  }
 0xb28   : > { %11888 = vmatpush1.bf16.msra.mxu0 %v17698_v43  ;;  %12052 = vmatpush1.bf16.msra.mxu1 %v17701_v14  ;;  %v17715_v43 = vld [vmem:[%s21334_s1 + $0x22c] ss:$16 sps:$4 sm:$0xff]  }
 0xb29   : > { %11898 = vmatprep.subr.bf16.mxu0 %v17706_v13  ;;  %12062 = vmatprep.subr.bf16.mxu1 %v17709_v62  ;;  %v17710_v13 = vld [vmem:[%s21334_s1 + $0x220] ss:$16 sps:$4 sm:$0xff]   ;;  %v17713_v62 = vld [vmem:[%s21334_s1 + $0x228] ss:$16 sps:$4 sm:$0xff]  }
 0xb7e   : > { %v10144_v37 = vpop.xlane.xlu0 %10143 }
 0xb7f   : > { %v10146_v47 = vmul.f32 0.0009765625, %v10144_v37 }
 0xb81   : > { %v20079_v48 = vsub.f32 %v19904_v29, %v10146_v47  ;;  %v20082_v49 = vsub.f32 %v19908_v25, %v10146_v47  ;;  %v20085_v59 = vsub.f32 %v19912_v24, %v10146_v47  ;;  %v20088_v26 = vsub.f32 %v19922_v27, %v10146_v47 }
 0xb82   : > { %v20091_v46 = vsub.f32 %v19925_v4, %v10146_v47  ;;  %v20100_v25 = vsub.f32 %v19932_v53, %v10146_v47  ;;  %v20107_v51 = vsub.f32 %v19937_v2, %v10146_v47  ;;  %v20113_v53 = vsub.f32 %v19940_v44, %v10146_v47 }
 0xb83   : > { %v10155_v33 = vmul.f32 %v20079_v48, %v20079_v48  ;;  %v10156_v63 = vmul.f32 %v20082_v49, %v20082_v49  ;;  %v10157_v29 = vmul.f32 %v20085_v59, %v20085_v59  ;;  %v10158_v24 = vmul.f32 %v20088_v26, %v20088_v26 }
 0xb84   : > { %v10159_v5 = vmul.f32 %v20091_v46, %v20091_v46  ;;  %v10160_v18 = vmul.f32 %v20100_v25, %v20100_v25  ;;  %v10161_v19 = vmul.f32 %v20107_v51, %v20107_v51  ;;  %v10162_v20 = vmul.f32 %v20113_v53, %v20113_v53 }
 0xb85   : > { %v10163_v27 = vsel %vm1925_vm9, %v10155_v33, 0.0  ;;  %v10164_v4 = vsel %vm1925_vm9, %v10156_v63, 0.0  ;;  %v10166_v8 = vsel %vm1925_vm9, %v10157_v29, 0.0  ;;  %v10168_v15 = vsel %vm1925_vm9, %v10158_v24, 0.0  ;;  %v10191_v63 = vld [vmem:[#allocation25] sm:$0xff]  ;;  %v10241_v29 = vld [vmem:[#allocation27] sm:$0xff] }
 0xb86   : > { %v10165_v9 = vadd.f32 %v10164_v4, %v10163_v27  ;;  %v10170_v2 = vsel %vm1925_vm9, %v10159_v5, 0.0  ;;  %v10172_v54 = vsel %vm1925_vm9, %v10160_v18, 0.0  ;;  %v10174_v44 = vsel %vm1925_vm9, %v10161_v19, 0.0 }
 0xb87   : > { %v10176_v7 = vsel %vm1925_vm9, %v10162_v20, 0.0  ;;  %v10200_v24 = vrot.slane %v10191_v63, %v19635_v55  ;;  %v10196_v27 = vrot.slane %v10191_v63, %v19658_v60  ;;  %v10208_v4 = vrot.slane %v10191_v63, %v19661_v0 }
 0xb88   : > { %v10167_v12 = vadd.f32 %v10166_v8, %v10165_v9  ;;  %v10204_v9 = vrot.slane %v10191_v63, %v19686_v52  ;;  %v10250_v5 = vrot.slane %v10241_v29, %v19635_v55  ;;  %v10216_v8 = vrot.slane %v10191_v63, %v19811_v34 }
 0xb89   : > { %v10224_v18 = vrot.slane %v10191_v63, %v19814_v1  ;;  %v10254_v19 = vrot.slane %v10241_v29, %v19686_v52  ;;  %v10262_v20 = vrot.slane %v10241_v29, %v19805_v35 }
 0xb8a   : > { %v10169_v17 = vadd.f32 %v10168_v15, %v10167_v12  ;;  %v10212_v12 = vrot.slane %v10191_v63, %v19805_v35  ;;  %v10246_v15 = vrot.slane %v10241_v29, %v19658_v60 }
 0xb8c   : > { %v10171_v10 = vadd.f32 %v10170_v2, %v10169_v17  ;;  %v10258_v17 = vrot.slane %v10241_v29, %v19661_v0  ;;  %v10266_v2 = vrot.slane %v10241_v29, %v19811_v34 }
 0xb8e   : > { %v10173_v22 = vadd.f32 %v10172_v54, %v10171_v10  ;;  %v10274_v54 = vrot.slane %v10241_v29, %v19814_v1 }
 0xb90   : > { %v10175_v23 = vadd.f32 %v10174_v44, %v10173_v22  ;;  %v10220_v22 = vrot.slane %v10191_v63, %v19808_v31  ;;  %v10270_v44 = vrot.slane %v10241_v29, %v19808_v31  ;;  %v17719_v63 = vld [vmem:[%s21334_s1 + $0x248] ss:$16 sps:$4 sm:$0xff]   ;;  %v17724_v29 = vld [vmem:[%s21334_s1 + $0x264] ss:$16 sps:$4 sm:$0xff]  }
 0xb92   : > { %v10177_v28 = vadd.f32 %v10176_v7, %v10175_v23 }
 0xb94   : > { %10178 = vadd.xlane.f32.xlu0 %v10177_v28 }
 0xc21   : > { %v10179_v37 = vpop.xlane.xlu0 %10178 }
 0xc22   : > { %v10180_v47 = vmul.f32 0.0009765625, %v10179_v37  ;;  %v17718_v37 = vld [vmem:[%s21334_s1 + $0x244] ss:$16 sps:$4 sm:$0xff]  }
 0xc24   : > { %v10181_v33 = vadd.f32 1e-05, %v10180_v47  ;;  %v17721_v47 = vld [vmem:[%s21334_s1 + $0x24c] ss:$16 sps:$4 sm:$0xff]  }
 0xc26   : > { %18056 = vrsqrt.f32 %v10181_v33  ;;  %v17716_v33 = vld [vmem:[%s21334_s1 + $0x240] ss:$16 sps:$4 sm:$0xff]  }
 0xc30   : > { %v18057_v10 = vpop.eup %18056 }
 0xc31   : > { %v10184_v23 = vmul.f32 %v18057_v10, %v20082_v49  ;;  %v10183_v7 = vmul.f32 %v18057_v10, %v20079_v48  ;;  %v10186_v28 = vmul.f32 %v18057_v10, %v20088_v26  ;;  %v10185_v38 = vmul.f32 %v18057_v10, %v20085_v59 }
 0xc32   : > { %v10188_v16 = vmul.f32 %v18057_v10, %v20100_v25  ;;  %v10187_v21 = vmul.f32 %v18057_v10, %v20091_v46  ;;  %v10190_v39 = vmul.f32 %v18057_v10, %v20113_v53  ;;  %v10189_v3 = vmul.f32 %v18057_v10, %v20107_v51  ;;  %v17745_v10 = vld [vmem:[%s21334_s1 + $0x2cc] ss:$16 sps:$4 sm:$0xff]  }
 0xc33   : > { %v10234_v57 = vmul.f32 %v10200_v24, %v10184_v23  ;;  %v10233_v61 = vmul.f32 %v10196_v27, %v10183_v7  ;;  %v10236_v36 = vmul.f32 %v10208_v4, %v10186_v28  ;;  %v10235_v11 = vmul.f32 %v10204_v9, %v10185_v38  ;;  %v17727_v24 = vld [vmem:[%s21334_s1 + $0x26c] ss:$16 sps:$4 sm:$0xff]   ;;  %v17722_v27 = vld [vmem:[%s21334_s1 + $0x260] ss:$16 sps:$4 sm:$0xff]   ;;  %v17725_v4 = vld [vmem:[%s21334_s1 + $0x268] ss:$16 sps:$4 sm:$0xff]  }
 0xc34   : > { %v10238_v30 = vmul.f32 %v10216_v8, %v10188_v16  ;;  %v10237_v49 = vmul.f32 %v10212_v12, %v10187_v21  ;;  %v10240_v32 = vmul.f32 %v10224_v18, %v10190_v39  ;;  %v10239_v48 = vmul.f32 %v10220_v22, %v10189_v3  ;;  %v17730_v9 = vld [vmem:[%s21334_s1 + $0x284] ss:$16 sps:$4 sm:$0xff]   ;;  %v17728_v8 = vld [vmem:[%s21334_s1 + $0x280] ss:$16 sps:$4 sm:$0xff]   ;;  %v17731_v12 = vld [vmem:[%s21334_s1 + $0x288] ss:$16 sps:$4 sm:$0xff]  }
 0xc35   : > { %v20216_v40 = vadd.f32 %v10250_v5, %v10234_v57  ;;  %v20218_v26 = vadd.f32 %v10246_v15, %v10233_v61  ;;  %v20220_v59 = vadd.f32 %v10258_v17, %v10236_v36  ;;  %v20222_v25 = vadd.f32 %v10254_v19, %v10235_v11  ;;  %v17733_v5 = vld [vmem:[%s21334_s1 + $0x28c] ss:$16 sps:$4 sm:$0xff]   ;;  %v17736_v18 = vld [vmem:[%s21334_s1 + $0x2a4] ss:$16 sps:$4 sm:$0xff]   ;;  %v17734_v17 = vld [vmem:[%s21334_s1 + $0x2a0] ss:$16 sps:$4 sm:$0xff]  }
 0xc36   : > { %v20224_v46 = vadd.f32 %v10266_v2, %v10238_v30  ;;  %v20226_v53 = vadd.f32 %v10262_v20, %v10237_v49  ;;  %v20228_v51 = vadd.f32 %v10274_v54, %v10240_v32  ;;  %v20230_v41 = vadd.f32 %v10270_v44, %v10239_v48  ;;  %v17739_v15 = vld [vmem:[%s21334_s1 + $0x2ac] ss:$16 sps:$4 sm:$0xff]   ;;  %v17737_v19 = vld [vmem:[%s21334_s1 + $0x2a8] ss:$16 sps:$4 sm:$0xff]   ;;  %v17742_v2 = vld [vmem:[%s21334_s1 + $0x2c4] ss:$16 sps:$4 sm:$0xff]  }
 0xc37   : > { %v10292_v56 = vpack.c.bf16 %v20216_v40, %v20216_v40  ;;  %v10291_v58 = vpack.c.bf16 %v20218_v26, %v20218_v26  ;;  %v10294_v14 = vpack.c.bf16 %v20220_v59, %v20220_v59  ;;  %v17740_v20 = vld [vmem:[%s21334_s1 + $0x2c0] ss:$16 sps:$4 sm:$0xff]   ;;  %v17743_v54 = vld [vmem:[%s21334_s1 + $0x2c8] ss:$16 sps:$4 sm:$0xff]   ;;  %v17748_v22 = vld [vmem:[%s21334_s1 + $0x2e4] ss:$16 sps:$4 sm:$0xff]  }
 0xc38   : > { %v17751_v44 = vld [vmem:[%s21334_s1 + $0x2ec] ss:$16 sps:$4 sm:$0xff]   ;;  %v17746_v23 = vld [vmem:[%s21334_s1 + $0x2e0] ss:$16 sps:$4 sm:$0xff]   ;;  %v17749_v7 = vld [vmem:[%s21334_s1 + $0x2e8] ss:$16 sps:$4 sm:$0xff]  }
 0xc39   : > { %11889 = vmatprep.mubr.bf16.mxu0 %v10292_v56  ;;  %12053 = vmatprep.mubr.bf16.mxu1 %v10292_v56  ;;  %v17754_v28 = vld [vmem:[%s21334_s1 + $0x304] ss:$16 sps:$4 sm:$0xff]   ;;  %v17757_v38 = vld [vmem:[%s21334_s1 + $0x30c] ss:$16 sps:$4 sm:$0xff]   ;;  %v17752_v16 = vld [vmem:[%s21334_s1 + $0x300] ss:$16 sps:$4 sm:$0xff]  }
 0xc3a   : > { %11890 = vmatmul.mubr.bf16.vlgmr.msra.gmra.mrb[64].mxu0 %v10291_v58  ;;  %12054 = vmatmul.mubr.bf16.vlgmr.msra.gmra.mrb[64].mxu1 %v10291_v58  ;;  %v17755_v21 = vld [vmem:[%s21334_s1 + $0x308] ss:$16 sps:$4 sm:$0xff]   ;;  %v17760_v39 = vld [vmem:[%s21334_s1 + $0x324] ss:$16 sps:$4 sm:$0xff]   ;;  %v17763_v3 = vld [vmem:[%s21334_s1 + $0x32c] ss:$16 sps:$4 sm:$0xff]  }
 0xc3b   : > { %11899 = vmatpush1.bf16.msra.mxu0 %v17704_v6  ;;  %12063 = vmatpush1.bf16.msra.mxu1 %v17707_v42  ;;  %v17758_v57 = vld [vmem:[%s21334_s1 + $0x320] ss:$16 sps:$4 sm:$0xff]   ;;  %v17761_v61 = vld [vmem:[%s21334_s1 + $0x328] ss:$16 sps:$4 sm:$0xff]   ;;  %v17766_v36 = vld [vmem:[%s21334_s1 + $0x344] ss:$16 sps:$4 sm:$0xff]  }
 0xc3c   : > { %11930 = vmatprep.mubr.bf16.mxu0 %v10294_v14  ;;  %12094 = vmatprep.mubr.bf16.mxu1 %v10294_v14  ;;  %v17769_v11 = vld [vmem:[%s21334_s1 + $0x34c] ss:$16 sps:$4 sm:$0xff]   ;;  %v17764_v30 = vld [vmem:[%s21334_s1 + $0x340] ss:$16 sps:$4 sm:$0xff]   ;;  %v17767_v49 = vld [vmem:[%s21334_s1 + $0x348] ss:$16 sps:$4 sm:$0xff]  }
 0xc3d   : > { %11900 = vmatprep.subr.bf16.mxu0 %v17712_v50  ;;  %12064 = vmatprep.subr.bf16.mxu1 %v17715_v43  ;;  %v17772_v32 = vld [vmem:[%s21334_s1 + $0x364] ss:$16 sps:$4 sm:$0xff]   ;;  %v17775_v48 = vld [vmem:[%s21334_s1 + $0x36c] ss:$16 sps:$4 sm:$0xff]   ;;  %v17770_v56 = vld [vmem:[%s21334_s1 + $0x360] ss:$16 sps:$4 sm:$0xff]  }
 0xc3e   : > { %v17773_v6 = vld [vmem:[%s21334_s1 + $0x368] ss:$16 sps:$4 sm:$0xff]   ;;  %v17778_v42 = vld [vmem:[%s21334_s1 + $0x384] ss:$16 sps:$4 sm:$0xff]   ;;  %v17781_v58 = vld [vmem:[%s21334_s1 + $0x38c] ss:$16 sps:$4 sm:$0xff]  }
 0xc3f   : > { %11901 = vmatpush1.bf16.msra.mxu0 %v17710_v13  ;;  %12065 = vmatpush1.bf16.msra.mxu1 %v17713_v62  ;;  %v17776_v50 = vld [vmem:[%s21334_s1 + $0x380] ss:$16 sps:$4 sm:$0xff]   ;;  %v17779_v43 = vld [vmem:[%s21334_s1 + $0x388] ss:$16 sps:$4 sm:$0xff]   ;;  %v17784_v14 = vld [vmem:[%s21334_s1 + $0x3a4] ss:$16 sps:$4 sm:$0xff]  }
 0xc40   : > { %11902 = vmatprep.subr.bf16.mxu0 %v17718_v37  ;;  %12066 = vmatprep.subr.bf16.mxu1 %v17721_v47  ;;  %v17787_v13 = vld [vmem:[%s21334_s1 + $0x3ac] ss:$16 sps:$4 sm:$0xff]   ;;  %v17782_v62 = vld [vmem:[%s21334_s1 + $0x3a0] ss:$16 sps:$4 sm:$0xff]   ;;  %v17785_v37 = vld [vmem:[%s21334_s1 + $0x3a8] ss:$16 sps:$4 sm:$0xff]  }
 0xc41   : > { %v17790_v47 = vld [vmem:[%s21334_s1 + $0x3c4] ss:$16 sps:$4 sm:$0xff]  }
 0xc43   : > { %11903 = vmatpush1.bf16.msra.mxu0 %v17716_v33  ;;  %12067 = vmatpush1.bf16.msra.mxu1 %v17719_v63  ;;  %v17793_v33 = vld [vmem:[%s21334_s1 + $0x3cc] ss:$16 sps:$4 sm:$0xff]   ;;  %v17788_v63 = vld [vmem:[%s21334_s1 + $0x3c0] ss:$16 sps:$4 sm:$0xff]  }
 0xc44   : > { %11904 = vmatprep.subr.bf16.mxu0 %v17724_v29  ;;  %12068 = vmatprep.subr.bf16.mxu1 %v17727_v24  ;;  %v17791_v29 = vld [vmem:[%s21334_s1 + $0x3c8] ss:$16 sps:$4 sm:$0xff]   ;;  %v17796_v24 = vld [vmem:[%s21334_s1 + $0x3e4] ss:$16 sps:$4 sm:$0xff]  }
 0xc47   : > { %11905 = vmatpush1.bf16.msra.mxu0 %v17722_v27  ;;  %12069 = vmatpush1.bf16.msra.mxu1 %v17725_v4  ;;  %v17799_v27 = vld [vmem:[%s21334_s1 + $0x3ec] ss:$16 sps:$4 sm:$0xff]   ;;  %v17794_v4 = vld [vmem:[%s21334_s1 + $0x3e0] ss:$16 sps:$4 sm:$0xff]  }
 0xc48   : > { %11906 = vmatprep.subr.bf16.mxu0 %v17730_v9  ;;  %12070 = vmatprep.subr.bf16.mxu1 %v17733_v5  ;;  %v17797_v9 = vld [vmem:[%s21334_s1 + $0x3e8] ss:$16 sps:$4 sm:$0xff]   ;;  %v17802_v5 = vld [vmem:[%s21334_s1 + $0x404] ss:$16 sps:$4 sm:$0xff]  }
 0xc4b   : > { %11907 = vmatpush1.bf16.msra.mxu0 %v17728_v8  ;;  %12071 = vmatpush1.bf16.msra.mxu1 %v17731_v12  ;;  %v17805_v8 = vld [vmem:[%s21334_s1 + $0x40c] ss:$16 sps:$4 sm:$0xff]   ;;  %v17800_v12 = vld [vmem:[%s21334_s1 + $0x400] ss:$16 sps:$4 sm:$0xff]  }
 0xc4c   : > { %11908 = vmatprep.subr.bf16.mxu0 %v17736_v18  ;;  %12072 = vmatprep.subr.bf16.mxu1 %v17739_v15  ;;  %v10293_v18 = vpack.c.bf16 %v20222_v25, %v20222_v25  ;;  %v17803_v15 = vld [vmem:[%s21334_s1 + $0x408] ss:$16 sps:$4 sm:$0xff]  }
 0xc4f   : > { %11909 = vmatpush1.bf16.msra.mxu0 %v17734_v17  ;;  %12073 = vmatpush1.bf16.msra.mxu1 %v17737_v19  ;;  %v10296_v17 = vpack.c.bf16 %v20224_v46, %v20224_v46  ;;  %v17808_v19 = vld [vmem:[%s21334_s1 + $0x424] ss:$16 sps:$4 sm:$0xff]  }
 0xc50   : > { %11910 = vmatprep.subr.bf16.mxu0 %v17742_v2  ;;  %12074 = vmatprep.subr.bf16.mxu1 %v17745_v10  ;;  %v17811_v2 = vld [vmem:[%s21334_s1 + $0x42c] ss:$16 sps:$4 sm:$0xff]   ;;  %v17806_v10 = vld [vmem:[%s21334_s1 + $0x420] ss:$16 sps:$4 sm:$0xff]  }
 0xc53   : > { %11911 = vmatpush1.bf16.msra.mxu0 %v17740_v20  ;;  %12075 = vmatpush1.bf16.msra.mxu1 %v17743_v54  ;;  %v17809_v20 = vld [vmem:[%s21334_s1 + $0x428] ss:$16 sps:$4 sm:$0xff]   ;;  %v17814_v54 = vld [vmem:[%s21334_s1 + $0x444] ss:$16 sps:$4 sm:$0xff]  }
 0xc54   : > { %11912 = vmatprep.subr.bf16.mxu0 %v17748_v22  ;;  %12076 = vmatprep.subr.bf16.mxu1 %v17751_v44  ;;  %v17817_v22 = vld [vmem:[%s21334_s1 + $0x44c] ss:$16 sps:$4 sm:$0xff]   ;;  %v17812_v44 = vld [vmem:[%s21334_s1 + $0x440] ss:$16 sps:$4 sm:$0xff]  }
 0xc57   : > { %11913 = vmatpush1.bf16.msra.mxu0 %v17746_v23  ;;  %12077 = vmatpush1.bf16.msra.mxu1 %v17749_v7  ;;  %v17815_v23 = vld [vmem:[%s21334_s1 + $0x448] ss:$16 sps:$4 sm:$0xff]   ;;  %v17820_v7 = vld [vmem:[%s21334_s1 + $0x464] ss:$16 sps:$4 sm:$0xff]  }
 0xc58   : > { %11914 = vmatprep.subr.bf16.mxu0 %v17754_v28  ;;  %12078 = vmatprep.subr.bf16.mxu1 %v17757_v38  ;;  %v17823_v28 = vld [vmem:[%s21334_s1 + $0x46c] ss:$16 sps:$4 sm:$0xff]   ;;  %v17818_v38 = vld [vmem:[%s21334_s1 + $0x460] ss:$16 sps:$4 sm:$0xff]  }
 0xc5b   : > { %11915 = vmatpush1.bf16.msra.mxu0 %v17752_v16  ;;  %12079 = vmatpush1.bf16.msra.mxu1 %v17755_v21  ;;  %v17821_v16 = vld [vmem:[%s21334_s1 + $0x468] ss:$16 sps:$4 sm:$0xff]   ;;  %v17826_v21 = vld [vmem:[%s21334_s1 + $0x484] ss:$16 sps:$4 sm:$0xff]  }
 0xc5c   : > { %11916 = vmatprep.subr.bf16.mxu0 %v17760_v39  ;;  %12080 = vmatprep.subr.bf16.mxu1 %v17763_v3  ;;  %v17829_v39 = vld [vmem:[%s21334_s1 + $0x48c] ss:$16 sps:$4 sm:$0xff]   ;;  %v17824_v3 = vld [vmem:[%s21334_s1 + $0x480] ss:$16 sps:$4 sm:$0xff]  }
 0xc5f   : > { %11917 = vmatpush1.bf16.msra.mxu0 %v17758_v57  ;;  %12081 = vmatpush1.bf16.msra.mxu1 %v17761_v61  ;;  %v17827_v57 = vld [vmem:[%s21334_s1 + $0x488] ss:$16 sps:$4 sm:$0xff]   ;;  %v17832_v61 = vld [vmem:[%s21334_s1 + $0x4a4] ss:$16 sps:$4 sm:$0xff]  }
 0xc60   : > { %11918 = vmatprep.subr.bf16.mxu0 %v17766_v36  ;;  %12082 = vmatprep.subr.bf16.mxu1 %v17769_v11  ;;  %v17835_v36 = vld [vmem:[%s21334_s1 + $0x4ac] ss:$16 sps:$4 sm:$0xff]   ;;  %v17830_v11 = vld [vmem:[%s21334_s1 + $0x4a0] ss:$16 sps:$4 sm:$0xff]  }
 0xc63   : > { %11919 = vmatpush1.bf16.msra.mxu0 %v17764_v30  ;;  %12083 = vmatpush1.bf16.msra.mxu1 %v17767_v49  ;;  %v17833_v30 = vld [vmem:[%s21334_s1 + $0x4a8] ss:$16 sps:$4 sm:$0xff]   ;;  %v17838_v49 = vld [vmem:[%s21334_s1 + $0x4c4] ss:$16 sps:$4 sm:$0xff]  }
 0xc64   : > { %11920 = vmatprep.subr.bf16.mxu0 %v17772_v32  ;;  %12084 = vmatprep.subr.bf16.mxu1 %v17775_v48  ;;  %v17841_v32 = vld [vmem:[%s21334_s1 + $0x4cc] ss:$16 sps:$4 sm:$0xff]   ;;  %v17836_v48 = vld [vmem:[%s21334_s1 + $0x4c0] ss:$16 sps:$4 sm:$0xff]  }
 0xc67   : > { %11921 = vmatpush1.bf16.msra.mxu0 %v17770_v56  ;;  %12085 = vmatpush1.bf16.msra.mxu1 %v17773_v6  ;;  %v17839_v56 = vld [vmem:[%s21334_s1 + $0x4c8] ss:$16 sps:$4 sm:$0xff]   ;;  %v17844_v6 = vld [vmem:[%s21334_s1 + $0x4e4] ss:$16 sps:$4 sm:$0xff]  }
 0xc68   : > { %11922 = vmatprep.subr.bf16.mxu0 %v17778_v42  ;;  %12086 = vmatprep.subr.bf16.mxu1 %v17781_v58  ;;  %v17847_v42 = vld [vmem:[%s21334_s1 + $0x4ec] ss:$16 sps:$4 sm:$0xff]   ;;  %v17842_v58 = vld [vmem:[%s21334_s1 + $0x4e0] ss:$16 sps:$4 sm:$0xff]  }
 0xc6b   : > { %11923 = vmatpush1.bf16.msra.mxu0 %v17776_v50  ;;  %12087 = vmatpush1.bf16.msra.mxu1 %v17779_v43  ;;  %v17845_v50 = vld [vmem:[%s21334_s1 + $0x4e8] ss:$16 sps:$4 sm:$0xff]   ;;  %v17850_v43 = vld [vmem:[%s21334_s1 + $0x504] ss:$16 sps:$4 sm:$0xff]  }
 0xc6c   : > { %11924 = vmatprep.subr.bf16.mxu0 %v17784_v14  ;;  %12088 = vmatprep.subr.bf16.mxu1 %v17787_v13  ;;  %v17853_v14 = vld [vmem:[%s21334_s1 + $0x50c] ss:$16 sps:$4 sm:$0xff]   ;;  %v17848_v13 = vld [vmem:[%s21334_s1 + $0x500] ss:$16 sps:$4 sm:$0xff]  }
 0xc6f   : > { %11925 = vmatpush1.bf16.msra.mxu0 %v17782_v62  ;;  %12089 = vmatpush1.bf16.msra.mxu1 %v17785_v37  ;;  %v17851_v62 = vld [vmem:[%s21334_s1 + $0x508] ss:$16 sps:$4 sm:$0xff]   ;;  %v17856_v37 = vld [vmem:[%s21334_s1 + $0x524] ss:$16 sps:$4 sm:$0xff]  }
 0xc70   : > { %11926 = vmatprep.subr.bf16.mxu0 %v17790_v47  ;;  %12090 = vmatprep.subr.bf16.mxu1 %v17793_v33  ;;  %v17859_v47 = vld [vmem:[%s21334_s1 + $0x52c] ss:$16 sps:$4 sm:$0xff]   ;;  %v17854_v33 = vld [vmem:[%s21334_s1 + $0x520] ss:$16 sps:$4 sm:$0xff]  }
 0xc73   : > { %11927 = vmatpush1.bf16.msra.mxu0 %v17788_v63  ;;  %12091 = vmatpush1.bf16.msra.mxu1 %v17791_v29  ;;  %v17857_v63 = vld [vmem:[%s21334_s1 + $0x528] ss:$16 sps:$4 sm:$0xff]   ;;  %v17862_v29 = vld [vmem:[%s21334_s1 + $0x544] ss:$16 sps:$4 sm:$0xff]  }
 0xc74   : > { %11928 = vmatprep.subr.bf16.mxu0 %v17796_v24  ;;  %12092 = vmatprep.subr.bf16.mxu1 %v17799_v27  ;;  %v17865_v24 = vld [vmem:[%s21334_s1 + $0x54c] ss:$16 sps:$4 sm:$0xff]   ;;  %v17860_v27 = vld [vmem:[%s21334_s1 + $0x540] ss:$16 sps:$4 sm:$0xff]  }
 0xc77   : > { %11929 = vmatpush1.bf16.msra.mxu0 %v17794_v4  ;;  %12093 = vmatpush1.bf16.msra.mxu1 %v17797_v9  ;;  %v17863_v4 = vld [vmem:[%s21334_s1 + $0x548] ss:$16 sps:$4 sm:$0xff]   ;;  %v17868_v9 = vld [vmem:[%s21334_s1 + $0x564] ss:$16 sps:$4 sm:$0xff]  }
 0xc78   : > { %11939 = vmatprep.subr.bf16.mxu0 %v17802_v5  ;;  %12103 = vmatprep.subr.bf16.mxu1 %v17805_v8  ;;  %v17871_v5 = vld [vmem:[%s21334_s1 + $0x56c] ss:$16 sps:$4 sm:$0xff]   ;;  %v17866_v8 = vld [vmem:[%s21334_s1 + $0x560] ss:$16 sps:$4 sm:$0xff]  }
 0xc7a   : > { %11931 = vmatmul.mubr.bf16.vlgmr.msra.gmra.mrb[64].mxu0 %v10293_v18  ;;  %12095 = vmatmul.mubr.bf16.vlgmr.msra.gmra.mrb[64].mxu1 %v10293_v18  ;;  %v17874_v18 = vld [vmem:[%s21334_s1 + $0x584] ss:$16 sps:$4 sm:$0xff]  }
 0xc7b   : > { %11940 = vmatpush1.bf16.msra.mxu0 %v17800_v12  ;;  %11971 = vmatprep.mubr.bf16.mxu0 %v10296_v17  ;;  %v17869_v12 = vld [vmem:[%s21334_s1 + $0x568] ss:$16 sps:$4 sm:$0xff]  }
 0xc7c   : > { %12104 = vmatpush1.bf16.msra.mxu1 %v17803_v15  ;;  %12135 = vmatprep.mubr.bf16.mxu1 %v10296_v17  ;;  %v17877_v15 = vld [vmem:[%s21334_s1 + $0x58c] ss:$16 sps:$4 sm:$0xff]   ;;  %v17872_v17 = vld [vmem:[%s21334_s1 + $0x580] ss:$16 sps:$4 sm:$0xff]  }
 0xc7d   : > { %11941 = vmatprep.subr.bf16.mxu0 %v17808_v19  ;;  %12105 = vmatprep.subr.bf16.mxu1 %v17811_v2  ;;  %v17875_v19 = vld [vmem:[%s21334_s1 + $0x588] ss:$16 sps:$4 sm:$0xff]   ;;  %v17880_v2 = vld [vmem:[%s21334_s1 + $0x5a4] ss:$16 sps:$4 sm:$0xff]  }
 0xc7f   : > { %11942 = vmatpush1.bf16.msra.mxu0 %v17806_v10  ;;  %v17883_v10 = vld [vmem:[%s21334_s1 + $0x5ac] ss:$16 sps:$4 sm:$0xff]  }
 0xc80   : > { %12106 = vmatpush1.bf16.msra.mxu1 %v17809_v20  ;;  %11943 = vmatprep.subr.bf16.mxu0 %v17814_v54  ;;  %v17878_v20 = vld [vmem:[%s21334_s1 + $0x5a0] ss:$16 sps:$4 sm:$0xff]   ;;  %v17881_v54 = vld [vmem:[%s21334_s1 + $0x5a8] ss:$16 sps:$4 sm:$0xff]  }
 0xc81   : > { %12107 = vmatprep.subr.bf16.mxu1 %v17817_v22  ;;  %v17886_v22 = vld [vmem:[%s21334_s1 + $0x5c4] ss:$16 sps:$4 sm:$0xff]  }
 0xc83   : > { %11944 = vmatpush1.bf16.msra.mxu0 %v17812_v44  ;;  %v17889_v44 = vld [vmem:[%s21334_s1 + $0x5cc] ss:$16 sps:$4 sm:$0xff]  }
 0xc84   : > { %12108 = vmatpush1.bf16.msra.mxu1 %v17815_v23  ;;  %11945 = vmatprep.subr.bf16.mxu0 %v17820_v7  ;;  %v17884_v23 = vld [vmem:[%s21334_s1 + $0x5c0] ss:$16 sps:$4 sm:$0xff]   ;;  %v17887_v7 = vld [vmem:[%s21334_s1 + $0x5c8] ss:$16 sps:$4 sm:$0xff]  }
 0xc85   : > { %12109 = vmatprep.subr.bf16.mxu1 %v17823_v28  ;;  %v17892_v28 = vld [vmem:[%s21334_s1 + $0x5e4] ss:$16 sps:$4 sm:$0xff]  }
 0xc87   : > { %11946 = vmatpush1.bf16.msra.mxu0 %v17818_v38  ;;  %v17895_v38 = vld [vmem:[%s21334_s1 + $0x5ec] ss:$16 sps:$4 sm:$0xff]  }
 0xc88   : > { %12110 = vmatpush1.bf16.msra.mxu1 %v17821_v16  ;;  %11947 = vmatprep.subr.bf16.mxu0 %v17826_v21  ;;  %v17890_v16 = vld [vmem:[%s21334_s1 + $0x5e0] ss:$16 sps:$4 sm:$0xff]   ;;  %v17893_v21 = vld [vmem:[%s21334_s1 + $0x5e8] ss:$16 sps:$4 sm:$0xff]  }
 0xc89   : > { %12111 = vmatprep.subr.bf16.mxu1 %v17829_v39  ;;  %v17898_v39 = vld [vmem:[%s21334_s1 + $0x604] ss:$16 sps:$4 sm:$0xff]  }
 0xc8b   : > { %11948 = vmatpush1.bf16.msra.mxu0 %v17824_v3  ;;  %v17901_v3 = vld [vmem:[%s21334_s1 + $0x60c] ss:$16 sps:$4 sm:$0xff]  }
 0xc8c   : > { %12112 = vmatpush1.bf16.msra.mxu1 %v17827_v57  ;;  %11949 = vmatprep.subr.bf16.mxu0 %v17832_v61  ;;  %v17896_v57 = vld [vmem:[%s21334_s1 + $0x600] ss:$16 sps:$4 sm:$0xff]   ;;  %v10295_v61 = vpack.c.bf16 %v20226_v53, %v20226_v53 }
 0xc8d   : > { %12113 = vmatprep.subr.bf16.mxu1 %v17835_v36  ;;  %v17899_v36 = vld [vmem:[%s21334_s1 + $0x608] ss:$16 sps:$4 sm:$0xff]  }
 0xc8f   : > { %11950 = vmatpush1.bf16.msra.mxu0 %v17830_v11  ;;  %v17904_v11 = vld [vmem:[%s21334_s1 + $0x624] ss:$16 sps:$4 sm:$0xff]  }
 0xc90   : > { %12114 = vmatpush1.bf16.msra.mxu1 %v17833_v30  ;;  %11951 = vmatprep.subr.bf16.mxu0 %v17838_v49  ;;  %v10298_v30 = vpack.c.bf16 %v20228_v51, %v20228_v51  ;;  %v17907_v49 = vld [vmem:[%s21334_s1 + $0x62c] ss:$16 sps:$4 sm:$0xff]  }
 0xc91   : > { %12115 = vmatprep.subr.bf16.mxu1 %v17841_v32  ;;  %v17902_v32 = vld [vmem:[%s21334_s1 + $0x620] ss:$16 sps:$4 sm:$0xff]  }
 0xc93   : > { %11952 = vmatpush1.bf16.msra.mxu0 %v17836_v48  ;;  %v17905_v48 = vld [vmem:[%s21334_s1 + $0x628] ss:$16 sps:$4 sm:$0xff]  }
 0xc94   : > { %12116 = vmatpush1.bf16.msra.mxu1 %v17839_v56  ;;  %11953 = vmatprep.subr.bf16.mxu0 %v17844_v6  ;;  %v17910_v56 = vld [vmem:[%s21334_s1 + $0x644] ss:$16 sps:$4 sm:$0xff]   ;;  %v17913_v6 = vld [vmem:[%s21334_s1 + $0x64c] ss:$16 sps:$4 sm:$0xff]  }
 0xc95   : > { %12117 = vmatprep.subr.bf16.mxu1 %v17847_v42  ;;  %v17908_v42 = vld [vmem:[%s21334_s1 + $0x640] ss:$16 sps:$4 sm:$0xff]  }
 0xc97   : > { %11954 = vmatpush1.bf16.msra.mxu0 %v17842_v58  ;;  %v17911_v58 = vld [vmem:[%s21334_s1 + $0x648] ss:$16 sps:$4 sm:$0xff]  }
 0xc98   : > { %12118 = vmatpush1.bf16.msra.mxu1 %v17845_v50  ;;  %11955 = vmatprep.subr.bf16.mxu0 %v17850_v43  ;;  %v17916_v50 = vld [vmem:[%s21334_s1 + $0x664] ss:$16 sps:$4 sm:$0xff]   ;;  %v17919_v43 = vld [vmem:[%s21334_s1 + $0x66c] ss:$16 sps:$4 sm:$0xff]  }
 0xc99   : > { %12119 = vmatprep.subr.bf16.mxu1 %v17853_v14  ;;  %v17914_v14 = vld [vmem:[%s21334_s1 + $0x660] ss:$16 sps:$4 sm:$0xff]  }
 0xc9b   : > { %11956 = vmatpush1.bf16.msra.mxu0 %v17848_v13  ;;  %v17917_v13 = vld [vmem:[%s21334_s1 + $0x668] ss:$16 sps:$4 sm:$0xff]  }
 0xc9c   : > { %12120 = vmatpush1.bf16.msra.mxu1 %v17851_v62  ;;  %11957 = vmatprep.subr.bf16.mxu0 %v17856_v37  ;;  %v17922_v62 = vld [vmem:[%s21334_s1 + $0x684] ss:$16 sps:$4 sm:$0xff]   ;;  %v17925_v37 = vld [vmem:[%s21334_s1 + $0x68c] ss:$16 sps:$4 sm:$0xff]  }
 0xc9d   : > { %12121 = vmatprep.subr.bf16.mxu1 %v17859_v47  ;;  %v17920_v47 = vld [vmem:[%s21334_s1 + $0x680] ss:$16 sps:$4 sm:$0xff]  }
 0xc9f   : > { %11958 = vmatpush1.bf16.msra.mxu0 %v17854_v33  ;;  %v17923_v33 = vld [vmem:[%s21334_s1 + $0x688] ss:$16 sps:$4 sm:$0xff]  }
 0xca0   : > { %12122 = vmatpush1.bf16.msra.mxu1 %v17857_v63  ;;  %11959 = vmatprep.subr.bf16.mxu0 %v17862_v29  ;;  %v17928_v63 = vld [vmem:[%s21334_s1 + $0x6a4] ss:$16 sps:$4 sm:$0xff]   ;;  %v17931_v29 = vld [vmem:[%s21334_s1 + $0x6ac] ss:$16 sps:$4 sm:$0xff]  }
 0xca1   : > { %12123 = vmatprep.subr.bf16.mxu1 %v17865_v24  ;;  %v17926_v24 = vld [vmem:[%s21334_s1 + $0x6a0] ss:$16 sps:$4 sm:$0xff]  }
 0xca3   : > { %11960 = vmatpush1.bf16.msra.mxu0 %v17860_v27  ;;  %v17929_v27 = vld [vmem:[%s21334_s1 + $0x6a8] ss:$16 sps:$4 sm:$0xff]  }
 0xca4   : > { %12124 = vmatpush1.bf16.msra.mxu1 %v17863_v4  ;;  %11961 = vmatprep.subr.bf16.mxu0 %v17868_v9  ;;  %v17934_v4 = vld [vmem:[%s21334_s1 + $0x6c4] ss:$16 sps:$4 sm:$0xff]   ;;  %v17937_v9 = vld [vmem:[%s21334_s1 + $0x6cc] ss:$16 sps:$4 sm:$0xff]  }
 0xca5   : > { %12125 = vmatprep.subr.bf16.mxu1 %v17871_v5  ;;  %v17932_v5 = vld [vmem:[%s21334_s1 + $0x6c0] ss:$16 sps:$4 sm:$0xff]  }
 0xca7   : > { %11962 = vmatpush1.bf16.msra.mxu0 %v17866_v8  ;;  %v17935_v8 = vld [vmem:[%s21334_s1 + $0x6c8] ss:$16 sps:$4 sm:$0xff]  }
 0xca8   : > { %12126 = vmatpush1.bf16.msra.mxu1 %v17869_v12  ;;  %11963 = vmatprep.subr.bf16.mxu0 %v17874_v18  ;;  %v17940_v12 = vld [vmem:[%s21334_s1 + $0x6e4] ss:$16 sps:$4 sm:$0xff]   ;;  %v17943_v18 = vld [vmem:[%s21334_s1 + $0x6ec] ss:$16 sps:$4 sm:$0xff]  }
 0xca9   : > { %12127 = vmatprep.subr.bf16.mxu1 %v17877_v15  ;;  %v17938_v15 = vld [vmem:[%s21334_s1 + $0x6e0] ss:$16 sps:$4 sm:$0xff]  }
 0xcab   : > { %11964 = vmatpush1.bf16.msra.mxu0 %v17872_v17  ;;  %v17941_v17 = vld [vmem:[%s21334_s1 + $0x6e8] ss:$16 sps:$4 sm:$0xff]  }
 0xcac   : > { %12128 = vmatpush1.bf16.msra.mxu1 %v17875_v19  ;;  %11965 = vmatprep.subr.bf16.mxu0 %v17880_v2  ;;  %v17946_v19 = vld [vmem:[%s21334_s1 + $0x704] ss:$16 sps:$4 sm:$0xff]   ;;  %v17949_v2 = vld [vmem:[%s21334_s1 + $0x70c] ss:$16 sps:$4 sm:$0xff]  }
 0xcad   : > { %12129 = vmatprep.subr.bf16.mxu1 %v17883_v10  ;;  %v17944_v10 = vld [vmem:[%s21334_s1 + $0x700] ss:$16 sps:$4 sm:$0xff]  }
 0xcaf   : > { %11966 = vmatpush1.bf16.msra.mxu0 %v17878_v20  ;;  %v17947_v20 = vld [vmem:[%s21334_s1 + $0x708] ss:$16 sps:$4 sm:$0xff]  }
 0xcb0   : > { %12130 = vmatpush1.bf16.msra.mxu1 %v17881_v54  ;;  %11967 = vmatprep.subr.bf16.mxu0 %v17886_v22  ;;  %v17952_v54 = vld [vmem:[%s21334_s1 + $0x724] ss:$16 sps:$4 sm:$0xff]   ;;  %v17955_v22 = vld [vmem:[%s21334_s1 + $0x72c] ss:$16 sps:$4 sm:$0xff]  }
 0xcb1   : > { %12131 = vmatprep.subr.bf16.mxu1 %v17889_v44  ;;  %v17950_v44 = vld [vmem:[%s21334_s1 + $0x720] ss:$16 sps:$4 sm:$0xff]  }
 0xcb3   : > { %11968 = vmatpush1.bf16.msra.mxu0 %v17884_v23  ;;  %v17953_v23 = vld [vmem:[%s21334_s1 + $0x728] ss:$16 sps:$4 sm:$0xff]  }
 0xcb4   : > { %12132 = vmatpush1.bf16.msra.mxu1 %v17887_v7  ;;  %11969 = vmatprep.subr.bf16.mxu0 %v17892_v28  ;;  %v17958_v7 = vld [vmem:[%s21334_s1 + $0x744] ss:$16 sps:$4 sm:$0xff]   ;;  %v17961_v28 = vld [vmem:[%s21334_s1 + $0x74c] ss:$16 sps:$4 sm:$0xff]  }
 0xcb5   : > { %12133 = vmatprep.subr.bf16.mxu1 %v17895_v38  ;;  %v17956_v38 = vld [vmem:[%s21334_s1 + $0x740] ss:$16 sps:$4 sm:$0xff]  }
 0xcb7   : > { %11970 = vmatpush1.bf16.msra.mxu0 %v17890_v16  ;;  %v17959_v16 = vld [vmem:[%s21334_s1 + $0x748] ss:$16 sps:$4 sm:$0xff]  }
 0xcb8   : > { %12134 = vmatpush1.bf16.msra.mxu1 %v17893_v21  ;;  %11980 = vmatprep.subr.bf16.mxu0 %v17898_v39  ;;  %v17964_v21 = vld [vmem:[%s21334_s1 + $0x764] ss:$16 sps:$4 sm:$0xff]   ;;  %v17967_v39 = vld [vmem:[%s21334_s1 + $0x76c] ss:$16 sps:$4 sm:$0xff]  }
 0xcb9   : > { %12144 = vmatprep.subr.bf16.mxu1 %v17901_v3  ;;  %v17962_v3 = vld [vmem:[%s21334_s1 + $0x760] ss:$16 sps:$4 sm:$0xff]  }
 0xcba   : > { %11972 = vmatmul.mubr.bf16.vlgmr.msra.gmra.mrb[64].mxu0 %v10295_v61 }
 0xcbb   : > { %12136 = vmatmul.mubr.bf16.vlgmr.msra.gmra.mrb[64].mxu1 %v10295_v61  ;;  %11981 = vmatpush1.bf16.msra.mxu0 %v17896_v57  ;;  %v17965_v57 = vld [vmem:[%s21334_s1 + $0x768] ss:$16 sps:$4 sm:$0xff]   ;;  %v17970_v61 = vld [vmem:[%s21334_s1 + $0x784] ss:$16 sps:$4 sm:$0xff]  }
 0xcbc   : > { %12012 = vmatprep.mubr.bf16.mxu0 %v10298_v30  ;;  %12145 = vmatpush1.bf16.msra.mxu1 %v17899_v36  ;;  %v17973_v36 = vld [vmem:[%s21334_s1 + $0x78c] ss:$16 sps:$4 sm:$0xff]  }
 0xcbd   : > { %12176 = vmatprep.mubr.bf16.mxu1 %v10298_v30  ;;  %11982 = vmatprep.subr.bf16.mxu0 %v17904_v11  ;;  %v17968_v11 = vld [vmem:[%s21334_s1 + $0x780] ss:$16 sps:$4 sm:$0xff]   ;;  %v17971_v30 = vld [vmem:[%s21334_s1 + $0x788] ss:$16 sps:$4 sm:$0xff]  }
 0xcbe   : > { %12146 = vmatprep.subr.bf16.mxu1 %v17907_v49  ;;  %v17976_v49 = vld [vmem:[%s21334_s1 + $0x7a4] ss:$16 sps:$4 sm:$0xff]  }
 0xcbf   : > { %11983 = vmatpush1.bf16.msra.mxu0 %v17902_v32  ;;  %v17979_v32 = vld [vmem:[%s21334_s1 + $0x7ac] ss:$16 sps:$4 sm:$0xff]  }
 0xcc0   : > { %12147 = vmatpush1.bf16.msra.mxu1 %v17905_v48  ;;  %11984 = vmatprep.subr.bf16.mxu0 %v17910_v56  ;;  %v17974_v48 = vld [vmem:[%s21334_s1 + $0x7a0] ss:$16 sps:$4 sm:$0xff]   ;;  %v17977_v56 = vld [vmem:[%s21334_s1 + $0x7a8] ss:$16 sps:$4 sm:$0xff]  }
 0xcc1   : > { %12148 = vmatprep.subr.bf16.mxu1 %v17913_v6  ;;  %v17982_v6 = vld [vmem:[%s21334_s1 + $0x7c4] ss:$16 sps:$4 sm:$0xff]  }
 0xcc3   : > { %11985 = vmatpush1.bf16.msra.mxu0 %v17908_v42  ;;  %v17985_v42 = vld [vmem:[%s21334_s1 + $0x7cc] ss:$16 sps:$4 sm:$0xff]  }
 0xcc4   : > { %12149 = vmatpush1.bf16.msra.mxu1 %v17911_v58  ;;  %11986 = vmatprep.subr.bf16.mxu0 %v17916_v50  ;;  %v17980_v58 = vld [vmem:[%s21334_s1 + $0x7c0] ss:$16 sps:$4 sm:$0xff]   ;;  %v17983_v50 = vld [vmem:[%s21334_s1 + $0x7c8] ss:$16 sps:$4 sm:$0xff]  }
 0xcc5   : > { %12150 = vmatprep.subr.bf16.mxu1 %v17919_v43  ;;  %v17988_v43 = vld [vmem:[%s21334_s1 + $0x7e4] ss:$16 sps:$4 sm:$0xff]  }
 0xcc7   : > { %11987 = vmatpush1.bf16.msra.mxu0 %v17914_v14  ;;  %v17991_v14 = vld [vmem:[%s21334_s1 + $0x7ec] ss:$16 sps:$4 sm:$0xff]  }
 0xcc8   : > { %12151 = vmatpush1.bf16.msra.mxu1 %v17917_v13  ;;  %11988 = vmatprep.subr.bf16.mxu0 %v17922_v62  ;;  %v12193_v13 = vld [vmem:[#allocation30] sm:$0xff] }
 0xcc9   : > { %12152 = vmatprep.subr.bf16.mxu1 %v17925_v37  ;;  %v12197_v62 = vld [vmem:[#allocation30 + $0x20] sm:$0xff] }
 0xcca   : > { %v12321_v37 = vld [vmem:[#allocation30 + $0x400] sm:$0xff] }
 0xccb   : > { %11989 = vmatpush1.bf16.msra.mxu0 %v17920_v47  ;;  %v12325_v47 = vld [vmem:[#allocation30 + $0x420] sm:$0xff] }
 0xccc   : > { %12153 = vmatpush1.bf16.msra.mxu1 %v17923_v33  ;;  %11990 = vmatprep.subr.bf16.mxu0 %v17928_v63  ;;  %v17986_v33 = vld [vmem:[%s21334_s1 + $0x7e0] ss:$16 sps:$4 sm:$0xff]   ;;  %v17989_v63 = vld [vmem:[%s21334_s1 + $0x7e8] ss:$16 sps:$4 sm:$0xff]  }
 0xccd   : > { %12154 = vmatprep.subr.bf16.mxu1 %v17931_v29  ;;  %v16656_v29 = vcombine.high %v12193_v13, %v12197_v62 }
 0xccf   : > { %11991 = vmatpush1.bf16.msra.mxu0 %v17926_v24  ;;  %v16784_v24 = vcombine.high %v12321_v37, %v12325_v47 }
 0xcd0   : > { %12155 = vmatpush1.bf16.msra.mxu1 %v17929_v27  ;;  %11992 = vmatprep.subr.bf16.mxu0 %v17934_v4  ;;  %v12201_v27 = vld [vmem:[#allocation30 + $0x40] sm:$0xff] }
 0xcd1   : > { %12156 = vmatprep.subr.bf16.mxu1 %v17937_v9  ;;  %v12205_v4 = vld [vmem:[#allocation30 + $0x60] sm:$0xff] }
 0xcd2   : > { %v12329_v9 = vld [vmem:[#allocation30 + $0x440] sm:$0xff] }
 0xcd3   : > { %11993 = vmatpush1.bf16.msra.mxu0 %v17932_v5  ;;  %v12333_v5 = vld [vmem:[#allocation30 + $0x460] sm:$0xff] }
 0xcd4   : > { %12157 = vmatpush1.bf16.msra.mxu1 %v17935_v8  ;;  %11994 = vmatprep.subr.bf16.mxu0 %v17940_v12  ;;  %v16655_v8 = vcombine.low %v12193_v13, %v12197_v62  ;;  %v10297_v12 = vpack.c.bf16 %v20230_v41, %v20230_v41 }
 0xcd5   : > { %12158 = vmatprep.subr.bf16.mxu1 %v17943_v18  ;;  %v16783_v18 = vcombine.low %v12321_v37, %v12325_v47  ;;  %v12241_v37 = vld [vmem:[#allocation30 + $0x180] sm:$0xff] }
 0xcd6   : > { %v12245_v47 = vld [vmem:[#allocation30 + $0x1a0] sm:$0xff] }
 0xcd7   : > { %11995 = vmatpush1.bf16.msra.mxu0 %v17938_v15  ;;  %v16664_v15 = vcombine.high %v12201_v27, %v12205_v4 }
 0xcd8   : > { %12159 = vmatpush1.bf16.msra.mxu1 %v17941_v17  ;;  %11996 = vmatprep.subr.bf16.mxu0 %v17946_v19  ;;  %v16792_v17 = vcombine.high %v12329_v9, %v12333_v5  ;;  %v12209_v19 = vld [vmem:[#allocation30 + $0x80] sm:$0xff] }
 0xcd9   : > { %12160 = vmatprep.subr.bf16.mxu1 %v17949_v2  ;;  %v12213_v2 = vld [vmem:[#allocation30 + $0xa0] sm:$0xff] }
 0xcdb   : > { %11997 = vmatpush1.bf16.msra.mxu0 %v17944_v10  ;;  %v12337_v10 = vld [vmem:[#allocation30 + $0x480] sm:$0xff] }
 0xcdc   : > { %12161 = vmatpush1.bf16.msra.mxu1 %v17947_v20  ;;  %11998 = vmatprep.subr.bf16.mxu0 %v17952_v54  ;;  %v12341_v20 = vld [vmem:[#allocation30 + $0x4a0] sm:$0xff]  ;;  %v16663_v54 = vcombine.low %v12201_v27, %v12205_v4  ;;  %v16704_v27 = vcombine.high %v12241_v37, %v12245_v47 }
 0xcdd   : > { %12162 = vmatprep.subr.bf16.mxu1 %v17955_v22  ;;  %v16791_v22 = vcombine.low %v12329_v9, %v12333_v5  ;;  %v12249_v9 = vld [vmem:[#allocation30 + $0x1c0] sm:$0xff] }
 0xcde   : > { %v12253_v5 = vld [vmem:[#allocation30 + $0x1e0] sm:$0xff] }
 0xcdf   : > { %11999 = vmatpush1.bf16.msra.mxu0 %v17950_v44  ;;  %v16672_v44 = vcombine.high %v12209_v19, %v12213_v2 }
 0xce0   : > { %12163 = vmatpush1.bf16.msra.mxu1 %v17953_v23  ;;  %12000 = vmatprep.subr.bf16.mxu0 %v17958_v7  ;;  %v16800_v23 = vcombine.high %v12337_v10, %v12341_v20  ;;  %v12217_v7 = vld [vmem:[#allocation30 + $0xc0] sm:$0xff] }
 0xce1   : > { %12164 = vmatprep.subr.bf16.mxu1 %v17961_v28  ;;  %v12221_v28 = vld [vmem:[#allocation30 + $0xe0] sm:$0xff] }
 0xce3   : > { %12001 = vmatpush1.bf16.msra.mxu0 %v17956_v38  ;;  %v12345_v38 = vld [vmem:[#allocation30 + $0x4c0] sm:$0xff] }
 0xce4   : > { %12165 = vmatpush1.bf16.msra.mxu1 %v17959_v16  ;;  %12002 = vmatprep.subr.bf16.mxu0 %v17964_v21  ;;  %v12349_v16 = vld [vmem:[#allocation30 + $0x4e0] sm:$0xff]  ;;  %v16671_v21 = vcombine.low %v12209_v19, %v12213_v2 }
 0xce5   : > { %12166 = vmatprep.subr.bf16.mxu1 %v17967_v39  ;;  %v16799_v39 = vcombine.low %v12337_v10, %v12341_v20  ;;  %v12257_v2 = vld [vmem:[#allocation30 + $0x200] sm:$0xff] }
 0xce6   : > { %v12261_v10 = vld [vmem:[#allocation30 + $0x220] sm:$0xff] }
 0xce7   : > { %12003 = vmatpush1.bf16.msra.mxu0 %v17962_v3  ;;  %v16680_v3 = vcombine.high %v12217_v7, %v12221_v28  ;;  %v12385_v20 = vld [vmem:[#allocation30 + $0x600] sm:$0xff] }
 0xce8   : > { %12167 = vmatpush1.bf16.msra.mxu1 %v17965_v57  ;;  %12004 = vmatprep.subr.bf16.mxu0 %v17970_v61  ;;  %v16808_v57 = vcombine.high %v12345_v38, %v12349_v16  ;;  %v12225_v61 = vld [vmem:[#allocation30 + $0x100] sm:$0xff] }
 0xce9   : > { %12168 = vmatprep.subr.bf16.mxu1 %v17973_v36  ;;  %v12229_v36 = vld [vmem:[#allocation30 + $0x120] sm:$0xff] }
 0xceb   : > { %12005 = vmatpush1.bf16.msra.mxu0 %v17968_v11  ;;  %v12353_v11 = vld [vmem:[#allocation30 + $0x500] sm:$0xff] }
 0xcec   : > { %12169 = vmatpush1.bf16.msra.mxu1 %v17971_v30  ;;  %12006 = vmatprep.subr.bf16.mxu0 %v17976_v49  ;;  %v12357_v30 = vld [vmem:[#allocation30 + $0x520] sm:$0xff]  ;;  %v16679_v49 = vcombine.low %v12217_v7, %v12221_v28 }
 0xced   : > { %12170 = vmatprep.subr.bf16.mxu1 %v17979_v32  ;;  %v16807_v32 = vcombine.low %v12345_v38, %v12349_v16  ;;  %v12265_v28 = vld [vmem:[#allocation30 + $0x240] sm:$0xff] }
 0xcee   : > { %v12269_v38 = vld [vmem:[#allocation30 + $0x260] sm:$0xff] }
 0xcef   : > { %12007 = vmatpush1.bf16.msra.mxu0 %v17974_v48  ;;  %v16688_v48 = vcombine.high %v12225_v61, %v12229_v36  ;;  %v12393_v16 = vld [vmem:[#allocation30 + $0x640] sm:$0xff] }
 0xcf0   : > { %12171 = vmatpush1.bf16.msra.mxu1 %v17977_v56  ;;  %12008 = vmatprep.subr.bf16.mxu0 %v17982_v6  ;;  %v16816_v56 = vcombine.high %v12353_v11, %v12357_v30  ;;  %v12233_v6 = vld [vmem:[#allocation30 + $0x140] sm:$0xff] }
 0xcf1   : > { %12172 = vmatprep.subr.bf16.mxu1 %v17985_v42  ;;  %v12237_v42 = vld [vmem:[#allocation30 + $0x160] sm:$0xff] }
 0xcf2   : > { %v16696_v13 = vcombine.high %v12233_v6, %v12237_v42 }
 0xcf3   : > { %12009 = vmatpush1.bf16.msra.mxu0 %v17980_v58  ;;  %v12361_v58 = vld [vmem:[#allocation30 + $0x540] sm:$0xff] }
 0xcf4   : > { %12173 = vmatpush1.bf16.msra.mxu1 %v17983_v50  ;;  %12010 = vmatprep.subr.bf16.mxu0 %v17988_v43  ;;  %v12365_v50 = vld [vmem:[#allocation30 + $0x560] sm:$0xff]  ;;  %v16687_v43 = vcombine.low %v12225_v61, %v12229_v36 }
 0xcf5   : > { %12174 = vmatprep.subr.bf16.mxu1 %v17991_v14  ;;  %v16815_v14 = vcombine.low %v12353_v11, %v12357_v30  ;;  %v16824_v62 = vcombine.high %v12361_v58, %v12365_v50  ;;  %v12273_v36 = vld [vmem:[#allocation30 + $0x280] sm:$0xff] }
 0xcf6   : > { %v12277_v11 = vld [vmem:[#allocation30 + $0x2a0] sm:$0xff] }
 0xcf7   : > { %12011 = vmatpush1.bf16.msra.mxu0 %v17986_v33  ;;  %v12369_v33 = vld [vmem:[#allocation30 + $0x580] sm:$0xff] }
 0xcf8   : > { %12175 = vmatpush1.bf16.msra.mxu1 %v17989_v63  ;;  %13771 = vmatprep.subr.bf16.mxu0 %v16656_v29  ;;  %v12373_v63 = vld [vmem:[#allocation30 + $0x5a0] sm:$0xff]  ;;  %v16695_v29 = vcombine.low %v12233_v6, %v12237_v42 }
 0xcf9   : > { %13812 = vmatprep.subr.bf16.mxu1 %v16784_v24  ;;  %v16823_v24 = vcombine.low %v12361_v58, %v12365_v50  ;;  %v16832_v4 = vcombine.high %v12369_v33, %v12373_v63  ;;  %v12401_v30 = vld [vmem:[#allocation30 + $0x680] sm:$0xff] }
 0xcfa   : > { %12013 = vmatmul.mubr.bf16.vlgmr.msra.gmra.mrb[64].mxu0 %v10297_v12  ;;  %v12281_v42 = vld [vmem:[#allocation30 + $0x2c0] sm:$0xff] }
 0xcfb   : > { %12177 = vmatmul.mubr.bf16.vlgmr.msra.gmra.mrb[64].mxu1 %v10297_v12  ;;  %13772 = vmatpush1.bf16.msra.mxu0 %v16655_v8  ;;  %v12377_v8 = vld [vmem:[#allocation30 + $0x5c0] sm:$0xff] }
 0xcfc   : > { %13813 = vmatpush1.bf16.msra.mxu1 %v16783_v18  ;;  %13773 = vmatprep.subr.bf16.mxu0 %v16664_v15  ;;  %v12381_v12 = vld [vmem:[#allocation30 + $0x5e0] sm:$0xff]  ;;  %v16703_v18 = vcombine.low %v12241_v37, %v12245_v47  ;;  %v16831_v15 = vcombine.low %v12369_v33, %v12373_v63 }
 0xcfd   : > { %13814 = vmatprep.subr.bf16.mxu1 %v16792_v17  ;;  %v16712_v17 = vcombine.high %v12249_v9, %v12253_v5  ;;  %v16840_v19 = vcombine.high %v12377_v8, %v12381_v12  ;;  %v12285_v58 = vld [vmem:[#allocation30 + $0x2e0] sm:$0xff] }
 0xcfe   : > { %v12409_v50 = vld [vmem:[#allocation30 + $0x6c0] sm:$0xff] }
 0xcff   : > { %13774 = vmatpush1.bf16.msra.mxu0 %v16663_v54  ;;  %v12389_v54 = vld [vmem:[#allocation30 + $0x620] sm:$0xff] }
 0xd00   : > { %13815 = vmatpush1.bf16.msra.mxu1 %v16791_v22  ;;  %13775 = vmatprep.subr.bf16.mxu0 %v16672_v44  ;;  %v16711_v22 = vcombine.low %v12249_v9, %v12253_v5  ;;  %v16839_v44 = vcombine.low %v12377_v8, %v12381_v12  ;;  %v16848_v7 = vcombine.high %v12385_v20, %v12389_v54  ;;  %v12289_v47 = vld [vmem:[#allocation30 + $0x300] sm:$0xff] }
 0xd01   : > { %13816 = vmatprep.subr.bf16.mxu1 %v16800_v23  ;;  %v16720_v23 = vcombine.high %v12257_v2, %v12261_v10  ;;  %v12293_v33 = vld [vmem:[#allocation30 + $0x320] sm:$0xff] }
 0xd02   : > { %v12417_v63 = vld [vmem:[#allocation30 + $0x700] sm:$0xff] }
 0xd03   : > { %13776 = vmatpush1.bf16.msra.mxu0 %v16671_v21  ;;  %v12397_v21 = vld [vmem:[#allocation30 + $0x660] sm:$0xff] }
 0xd04   : > { %13817 = vmatpush1.bf16.msra.mxu1 %v16799_v39  ;;  %13777 = vmatprep.subr.bf16.mxu0 %v16680_v3  ;;  %v16719_v39 = vcombine.low %v12257_v2, %v12261_v10  ;;  %v16847_v3 = vcombine.low %v12385_v20, %v12389_v54  ;;  %v16856_v61 = vcombine.high %v12393_v16, %v12397_v21  ;;  %v12297_v5 = vld [vmem:[#allocation30 + $0x340] sm:$0xff] }
 0xd05   : > { %13818 = vmatprep.subr.bf16.mxu1 %v16808_v57  ;;  %v16728_v57 = vcombine.high %v12265_v28, %v12269_v38  ;;  %v12301_v8 = vld [vmem:[#allocation30 + $0x360] sm:$0xff] }
 0xd06   : > { %v12425_v12 = vld [vmem:[#allocation30 + $0x740] sm:$0xff]  ;;  %v16759_v10 = vcombine.low %v12297_v5, %v12301_v8 }
 0xd07   : > { %13778 = vmatpush1.bf16.msra.mxu0 %v16679_v49  ;;  %v12405_v49 = vld [vmem:[#allocation30 + $0x6a0] sm:$0xff] }
 0xd08   : > { %13819 = vmatpush1.bf16.msra.mxu1 %v16807_v32  ;;  %13779 = vmatprep.subr.bf16.mxu0 %v16688_v48  ;;  %v16727_v32 = vcombine.low %v12265_v28, %v12269_v38  ;;  %v16855_v48 = vcombine.low %v12393_v16, %v12397_v21  ;;  %v16864_v6 = vcombine.high %v12401_v30, %v12405_v49  ;;  %v12305_v54 = vld [vmem:[#allocation30 + $0x380] sm:$0xff] }
 0xd09   : > { %13820 = vmatprep.subr.bf16.mxu1 %v16816_v56  ;;  %v16736_v56 = vcombine.high %v12273_v36, %v12277_v11  ;;  %v12313_v21 = vld [vmem:[#allocation30 + $0x3c0] sm:$0xff] }
 0xd0b   : > { %13780 = vmatpush1.bf16.msra.mxu0 %v16687_v43  ;;  %v12413_v43 = vld [vmem:[#allocation30 + $0x6e0] sm:$0xff] }
 0xd0c   : > { %13821 = vmatpush1.bf16.msra.mxu1 %v16815_v14  ;;  %13781 = vmatprep.subr.bf16.mxu0 %v16696_v13  ;;  %v16735_v14 = vcombine.low %v12273_v36, %v12277_v11  ;;  %v16863_v13 = vcombine.low %v12401_v30, %v12405_v49  ;;  %v16872_v37 = vcombine.high %v12409_v50, %v12413_v43  ;;  %v12194_v49 = vld [vmem:[#allocation30 + $0x8] sm:$0xff] }
 0xd0d   : > { %13822 = vmatprep.subr.bf16.mxu1 %v16824_v62  ;;  %v16744_v62 = vcombine.high %v12281_v42, %v12285_v58 }
 0xd0f   : > { %13782 = vmatpush1.bf16.msra.mxu0 %v16695_v29  ;;  %v12421_v29 = vld [vmem:[#allocation30 + $0x720] sm:$0xff] }
 0xd10   : > { %13823 = vmatpush1.bf16.msra.mxu1 %v16823_v24  ;;  %13783 = vmatprep.subr.bf16.mxu0 %v16704_v27  ;;  %v16743_v24 = vcombine.low %v12281_v42, %v12285_v58  ;;  %v16871_v27 = vcombine.low %v12409_v50, %v12413_v43  ;;  %v16880_v9 = vcombine.high %v12417_v63, %v12421_v29  ;;  %v10555_v43 = vld [vmem:[#allocation28] sm:$0xf] }
 0xd11   : > { %13824 = vmatprep.subr.bf16.mxu1 %v16832_v4  ;;  %v16752_v4 = vcombine.high %v12289_v47, %v12293_v33 }
 0xd13   : > { %13784 = vmatpush1.bf16.msra.mxu0 %v16703_v18  ;;  %v12429_v18 = vld [vmem:[#allocation30 + $0x760] sm:$0xff] }
 0xd14   : > { %13825 = vmatpush1.bf16.msra.mxu1 %v16831_v15  ;;  %13785 = vmatprep.subr.bf16.mxu0 %v16712_v17  ;;  %v16751_v15 = vcombine.low %v12289_v47, %v12293_v33  ;;  %v16879_v17 = vcombine.low %v12417_v63, %v12421_v29  ;;  %v16888_v2 = vcombine.high %v12425_v12, %v12429_v18 }
 0xd15   : > { %13826 = vmatprep.subr.bf16.mxu1 %v16840_v19  ;;  %v16760_v19 = vcombine.high %v12297_v5, %v12301_v8  ;;  %v16887_v20 = vcombine.low %v12425_v12, %v12429_v18 }
 0xd17   : > { %13786 = vmatpush1.bf16.msra.mxu0 %v16711_v22  ;;  %v12309_v22 = vld [vmem:[#allocation30 + $0x3a0] sm:$0xff] }
 0xd18   : > { %13827 = vmatpush1.bf16.msra.mxu1 %v16839_v44  ;;  %13787 = vmatprep.subr.bf16.mxu0 %v16720_v23  ;;  %v12433_v44 = vld [vmem:[#allocation30 + $0x780] sm:$0xff]  ;;  %v16768_v23 = vcombine.high %v12305_v54, %v12309_v22  ;;  %v16767_v28 = vcombine.low %v12305_v54, %v12309_v22  ;;  %v12330_v22 = vld [vmem:[#allocation30 + $0x448] sm:$0xff] }
 0xd19   : > { %13828 = vmatprep.subr.bf16.mxu1 %v16848_v7  ;;  %v12437_v7 = vld [vmem:[#allocation30 + $0x7a0] sm:$0xff] }
 0xd1a   : > { %v16895_v38 = vcombine.low %v12433_v44, %v12437_v7  ;;  %v16896_v16 = vcombine.high %v12433_v44, %v12437_v7  ;;  %v12334_v44 = vld [vmem:[#allocation30 + $0x468] sm:$0xff] }
 0xd1b   : > { %13788 = vmatpush1.bf16.msra.mxu0 %v16719_v39  ;;  %v12317_v39 = vld [vmem:[#allocation30 + $0x3e0] sm:$0xff] }
 0xd1c   : > { %13829 = vmatpush1.bf16.msra.mxu1 %v16847_v3  ;;  %13789 = vmatprep.subr.bf16.mxu0 %v16728_v57  ;;  %v12441_v3 = vld [vmem:[#allocation30 + $0x7c0] sm:$0xff]  ;;  %v16776_v57 = vcombine.high %v12313_v21, %v12317_v39  ;;  %v16775_v36 = vcombine.low %v12313_v21, %v12317_v39  ;;  %v12214_v21 = vld [vmem:[#allocation30 + $0xa8] sm:$0xff]  ;;  %v16794_v39 = vcombine.high %v12330_v22, %v12334_v44 }
 0xd1d   : > { %13830 = vmatprep.subr.bf16.mxu1 %v16856_v61  ;;  %v12445_v61 = vld [vmem:[#allocation30 + $0x7e0] sm:$0xff] }
 0xd1e   : > { %v16903_v11 = vcombine.low %v12441_v3, %v12445_v61  ;;  %v16904_v30 = vcombine.high %v12441_v3, %v12445_v61  ;;  %v12338_v3 = vld [vmem:[#allocation30 + $0x488] sm:$0xff] }
 0xd1f   : > { %13790 = vmatpush1.bf16.msra.mxu0 %v16727_v32  ;;  %v12198_v32 = vld [vmem:[#allocation30 + $0x28] sm:$0xff] }
 0xd20   : > { %13831 = vmatpush1.bf16.msra.mxu1 %v16855_v48  ;;  %13791 = vmatprep.subr.bf16.mxu0 %v16736_v56  ;;  %v12322_v48 = vld [vmem:[#allocation30 + $0x408] sm:$0xff]  ;;  %v16658_v56 = vcombine.high %v12194_v49, %v12198_v32  ;;  %v16657_v42 = vcombine.low %v12194_v49, %v12198_v32 }
 0xd21   : > { %13832 = vmatprep.subr.bf16.mxu1 %v16864_v6  ;;  %v12326_v6 = vld [vmem:[#allocation30 + $0x428] sm:$0xff] }
 0xd22   : > { %v16785_v58 = vcombine.low %v12322_v48, %v12326_v6  ;;  %v16786_v50 = vcombine.high %v12322_v48, %v12326_v6  ;;  %v12218_v49 = vld [vmem:[#allocation30 + $0xc8] sm:$0xff] }
 0xd23   : > { %13792 = vmatpush1.bf16.msra.mxu0 %v16735_v14  ;;  %v10560_v14 = vrot.slane %v10555_v43, %v19658_v60  ;;  %v12222_v32 = vld [vmem:[#allocation30 + $0xe8] sm:$0xff] }
 0xd24   : > { %13833 = vmatpush1.bf16.msra.mxu1 %v16863_v13  ;;  %13793 = vmatprep.subr.bf16.mxu0 %v16744_v62  ;;  %v10568_v13 = vrot.slane %v10555_v43, %v19686_v52  ;;  %v10564_v62 = vrot.slane %v10555_v43, %v19635_v55  ;;  %v12346_v48 = vld [vmem:[#allocation30 + $0x4c8] sm:$0xff] }
 0xd25   : > { %13834 = vmatprep.subr.bf16.mxu1 %v16872_v37  ;;  %v10572_v37 = vrot.slane %v10555_v43, %v19661_v0  ;;  %v12226_v43 = vld [vmem:[#allocation30 + $0x108] sm:$0xff] }
 0xd27   : > { %13794 = vmatpush1.bf16.msra.mxu0 %v16743_v24 }
 0xd28   : > { %13835 = vmatpush1.bf16.msra.mxu1 %v16871_v27  ;;  %13795 = vmatprep.subr.bf16.mxu0 %v16752_v4 }
 0xd29   : > { %13836 = vmatprep.subr.bf16.mxu1 %v16880_v9 }
 0xd2b   : > { %13796 = vmatpush1.bf16.msra.mxu0 %v16751_v15 }
 0xd2c   : > { %13837 = vmatpush1.bf16.msra.mxu1 %v16879_v17  ;;  %13797 = vmatprep.subr.bf16.mxu0 %v16760_v19 }
 0xd2d   : > { %13838 = vmatprep.subr.bf16.mxu1 %v16888_v2 }
 0xd2f   : > { %13798 = vmatpush1.bf16.msra.mxu0 %v16759_v10  ;;  %v12202_v10 = vld [vmem:[#allocation30 + $0x48] sm:$0xff] }
 0xd30   : > { %13839 = vmatpush1.bf16.msra.mxu1 %v16887_v20  ;;  %13799 = vmatprep.subr.bf16.mxu0 %v16768_v23  ;;  %v12206_v20 = vld [vmem:[#allocation30 + $0x68] sm:$0xff] }
 0xd31   : > { %13840 = vmatprep.subr.bf16.mxu1 %v16896_v16  ;;  %v12210_v16 = vld [vmem:[#allocation30 + $0x88] sm:$0xff]  ;;  %v16665_v61 = vcombine.low %v12202_v10, %v12206_v20 }
 0xd32   : > { %v16673_v6 = vcombine.low %v12210_v16, %v12214_v21 }
 0xd33   : > { %13800 = vmatpush1.bf16.msra.mxu0 %v16767_v28 }
 0xd34   : > { %13841 = vmatpush1.bf16.msra.mxu1 %v16895_v38  ;;  %13801 = vmatprep.subr.bf16.mxu0 %v16776_v57  ;;  %v16666_v38 = vcombine.high %v12202_v10, %v12206_v20  ;;  %v12342_v57 = vld [vmem:[#allocation30 + $0x4a8] sm:$0xff] }
 0xd35   : > { %13842 = vmatprep.subr.bf16.mxu1 %v16904_v30  ;;  %v16802_v30 = vcombine.high %v12338_v3, %v12342_v57 }
 0xd37   : > { %13802 = vmatpush1.bf16.msra.mxu0 %v16775_v36  ;;  %v16793_v36 = vcombine.low %v12330_v22, %v12334_v44  ;;  %v12250_v44 = vld [vmem:[#allocation30 + $0x1c8] sm:$0xff] }
 0xd38   : > { %13843 = vmatpush1.bf16.msra.mxu1 %v16903_v11  ;;  %13853 = vmatprep.subr.bf16.mxu0 %v16658_v56  ;;  %v16674_v11 = vcombine.high %v12210_v16, %v12214_v21  ;;  %v12350_v56 = vld [vmem:[#allocation30 + $0x4e8] sm:$0xff] }
 0xd39   : > { %13894 = vmatprep.subr.bf16.mxu1 %v16786_v50  ;;  %v16682_v50 = vcombine.high %v12218_v49, %v12222_v32  ;;  %v12378_v16 = vld [vmem:[#allocation30 + $0x5c8] sm:$0xff] }
 0xd3a   : > { %v12382_v21 = vld [vmem:[#allocation30 + $0x5e8] sm:$0xff] }
 0xdcd   : > { %v12014_v47 = vpop.f32.mrb[64].mxu0 }
 0xdce   : > { %v17198_v33 = vadd.f32 %v12014_v47, %v10560_v14  ;;  %v12178_v63 = vpop.f32.mrb[64].mxu1  ;;  %v12016_v29 = vpop.f32.mrb[65].mxu0  ;;  %v12230_v14 = vld [vmem:[#allocation30 + $0x128] sm:$0xff]  ;;  %v16809_v47 = vcombine.low %v12346_v48, %v12350_v56 }
 0xdcf   : > { %v17200_v24 = vadd.f32 %v12178_v63, %v10568_v13  ;;  %v17199_v27 = vadd.f32 %v12016_v29, %v10564_v62  ;;  %v12180_v4 = vpop.f32.mrb[65].mxu1  ;;  %v12018_v9 = vpop.f32.mrb[66].mxu0  ;;  %v12354_v13 = vld [vmem:[#allocation30 + $0x508] sm:$0xff] }
 0xdd0   : > { %v12185_v5 = vmax.f32 %v17198_v33, 0.0  ;;  %v17201_v8 = vadd.f32 %v12180_v4, %v10572_v37  ;;  %v12182_v12 = vpop.f32.mrb[66].mxu1  ;;  %v12019_v18 = vpop.f32.mrb[67].mxu0  ;;  %v12358_v62 = vld [vmem:[#allocation30 + $0x528] sm:$0xff]  ;;  %v16681_v37 = vcombine.low %v12218_v49, %v12222_v32  ;;  %v16690_v33 = vcombine.high %v12226_v43, %v12230_v14 }
 0xdd1   : > { %v12187_v15 = vmax.f32 %v17200_v24, 0.0  ;;  %v12186_v17 = vmax.f32 %v17199_v27, 0.0  ;;  %v12183_v19 = vpop.f32.mrb[67].mxu1  ;;  %v16818_v63 = vcombine.high %v12354_v13, %v12358_v62  ;;  %v12234_v29 = vld [vmem:[#allocation30 + $0x148] sm:$0xff]  ;;  %v16689_v9 = vcombine.low %v12226_v43, %v12230_v14 }
 0xdd2   : > { %v12188_v2 = vmax.f32 %v17201_v8, 0.0  ;;  %v20824_v23 = vpack.c.bf16 %v12185_v5, %v12185_v5  ;;  %v12238_v24 = vld [vmem:[#allocation30 + $0x168] sm:$0xff]  ;;  %v16817_v5 = vcombine.low %v12354_v13, %v12358_v62 }
 0xdd3   : > { %v20822_v54 = vpack.c.bf16 %v12186_v17, %v12186_v17  ;;  %v20828_v28 = vpack.c.bf16 %v12187_v15, %v12187_v15  ;;  %v12362_v27 = vld [vmem:[#allocation30 + $0x548] sm:$0xff]  ;;  %v16698_v8 = vcombine.high %v12234_v29, %v12238_v24 }
 0xdd4   : > { %v20826_v7 = vpack.c.bf16 %v12188_v2, %v12188_v2  ;;  %v12366_v4 = vld [vmem:[#allocation30 + $0x568] sm:$0xff]  ;;  %v16697_v2 = vcombine.low %v12234_v29, %v12238_v24 }
 0xdd5   : > { %13803 = vmatprep.mubr.bf16.mxu0 %v20822_v54  ;;  %v16826_v12 = vcombine.high %v12362_v27, %v12366_v4  ;;  %v12242_v18 = vld [vmem:[#allocation30 + $0x188] sm:$0xff]  ;;  %v16825_v10 = vcombine.low %v12362_v27, %v12366_v4 }
 0xdd6   : > { %13844 = vmatprep.mubr.bf16.mxu1 %v20826_v7  ;;  %13804 = vmatmul.mubr.bf16.vlgmr.msra.gmra.mrb[68].mxu0 %v20824_v23  ;;  %v12246_v15 = vld [vmem:[#allocation30 + $0x1a8] sm:$0xff] }
 0xdd7   : > { %13845 = vmatmul.mubr.bf16.vlgmr.msra.gmra.mrb[68].mxu1 %v20828_v28  ;;  %13854 = vmatpush1.bf16.msra.mxu0 %v16657_v42  ;;  %v16801_v42 = vcombine.low %v12338_v3, %v12342_v57  ;;  %v12370_v17 = vld [vmem:[#allocation30 + $0x588] sm:$0xff]  ;;  %v16706_v20 = vcombine.high %v12242_v18, %v12246_v15 }
 0xdd8   : > { %13895 = vmatpush1.bf16.msra.mxu1 %v16785_v58  ;;  %13885 = vmatprep.mubr.bf16.mxu0 %v20822_v54  ;;  %v16810_v58 = vcombine.high %v12346_v48, %v12350_v56  ;;  %v12374_v19 = vld [vmem:[#allocation30 + $0x5a8] sm:$0xff]  ;;  %v16841_v48 = vcombine.low %v12378_v16, %v12382_v21 }
 0xdd9   : > { %13926 = vmatprep.mubr.bf16.mxu1 %v20826_v7  ;;  %13855 = vmatprep.subr.bf16.mxu0 %v16666_v38  ;;  %v16834_v22 = vcombine.high %v12370_v17, %v12374_v19  ;;  %v12254_v38 = vld [vmem:[#allocation30 + $0x1e8] sm:$0xff]  ;;  %v16833_v3 = vcombine.low %v12370_v17, %v12374_v19 }
 0xdda   : > { %13896 = vmatprep.subr.bf16.mxu1 %v16794_v39  ;;  %v16705_v39 = vcombine.low %v12242_v18, %v12246_v15  ;;  %v16714_v57 = vcombine.high %v12250_v44, %v12254_v38  ;;  %v12390_v49 = vld [vmem:[#allocation30 + $0x628] sm:$0xff]  ;;  %v16713_v32 = vcombine.low %v12250_v44, %v12254_v38 }
 0xddb   : > { %13856 = vmatpush1.bf16.msra.mxu0 %v16665_v61  ;;  %v16842_v61 = vcombine.high %v12378_v16, %v12382_v21  ;;  %v12398_v43 = vld [vmem:[#allocation30 + $0x668] sm:$0xff] }
 0xddc   : > { %13897 = vmatpush1.bf16.msra.mxu1 %v16793_v36  ;;  %13857 = vmatprep.subr.bf16.mxu0 %v16674_v11  ;;  %v12258_v36 = vld [vmem:[#allocation30 + $0x208] sm:$0xff] }
 0xddd   : > { %13898 = vmatprep.subr.bf16.mxu1 %v16802_v30  ;;  %v12262_v11 = vld [vmem:[#allocation30 + $0x228] sm:$0xff] }
 0xdde   : > { %v12386_v30 = vld [vmem:[#allocation30 + $0x608] sm:$0xff]  ;;  %v16722_v56 = vcombine.high %v12258_v36, %v12262_v11  ;;  %v16721_v14 = vcombine.low %v12258_v36, %v12262_v11 }
 0xddf   : > { %13858 = vmatpush1.bf16.msra.mxu0 %v16673_v6  ;;  %v16850_v6 = vcombine.high %v12386_v30, %v12390_v49  ;;  %v16849_v13 = vcombine.low %v12386_v30, %v12390_v49  ;;  %v12406_v29 = vld [vmem:[#allocation30 + $0x6a8] sm:$0xff] }
 0xde0   : > { %13899 = vmatpush1.bf16.msra.mxu1 %v16801_v42  ;;  %13859 = vmatprep.subr.bf16.mxu0 %v16682_v50  ;;  %v12266_v42 = vld [vmem:[#allocation30 + $0x248] sm:$0xff] }
 0xde1   : > { %13900 = vmatprep.subr.bf16.mxu1 %v16810_v58  ;;  %v12270_v50 = vld [vmem:[#allocation30 + $0x268] sm:$0xff] }
 0xde2   : > { %v12394_v58 = vld [vmem:[#allocation30 + $0x648] sm:$0xff]  ;;  %v16730_v62 = vcombine.high %v12266_v42, %v12270_v50  ;;  %v16729_v24 = vcombine.low %v12266_v42, %v12270_v50 }
 0xde3   : > { %13860 = vmatpush1.bf16.msra.mxu0 %v16681_v37  ;;  %v16858_v37 = vcombine.high %v12394_v58, %v12398_v43  ;;  %v16857_v27 = vcombine.low %v12394_v58, %v12398_v43  ;;  %v12414_v18 = vld [vmem:[#allocation30 + $0x6e8] sm:$0xff] }
 0xde4   : > { %13901 = vmatpush1.bf16.msra.mxu1 %v16809_v47  ;;  %13861 = vmatprep.subr.bf16.mxu0 %v16690_v33  ;;  %v12274_v47 = vld [vmem:[#allocation30 + $0x288] sm:$0xff] }
 0xde5   : > { %13902 = vmatprep.subr.bf16.mxu1 %v16818_v63  ;;  %v12278_v33 = vld [vmem:[#allocation30 + $0x2a8] sm:$0xff] }
 0xde6   : > { %v12402_v63 = vld [vmem:[#allocation30 + $0x688] sm:$0xff]  ;;  %v16738_v4 = vcombine.high %v12274_v47, %v12278_v33  ;;  %v16737_v15 = vcombine.low %v12274_v47, %v12278_v33 }
 0xde7   : > { %13862 = vmatpush1.bf16.msra.mxu0 %v16689_v9  ;;  %v16866_v9 = vcombine.high %v12402_v63, %v12406_v29  ;;  %v16865_v17 = vcombine.low %v12402_v63, %v12406_v29  ;;  %v12422_v44 = vld [vmem:[#allocation30 + $0x728] sm:$0xff] }
 0xde8   : > { %13903 = vmatpush1.bf16.msra.mxu1 %v16817_v5  ;;  %13863 = vmatprep.subr.bf16.mxu0 %v16698_v8  ;;  %v12282_v5 = vld [vmem:[#allocation30 + $0x2c8] sm:$0xff] }
 0xde9   : > { %13904 = vmatprep.subr.bf16.mxu1 %v16826_v12  ;;  %v12286_v8 = vld [vmem:[#allocation30 + $0x2e8] sm:$0xff] }
 0xdea   : > { %v12410_v12 = vld [vmem:[#allocation30 + $0x6c8] sm:$0xff]  ;;  %v16746_v19 = vcombine.high %v12282_v5, %v12286_v8  ;;  %v16745_v38 = vcombine.low %v12282_v5, %v12286_v8  ;;  %v12327_v5 = vld [vmem:[#allocation30 + $0x430] sm:$0xff] }
 0xdeb   : > { %13864 = vmatpush1.bf16.msra.mxu0 %v16697_v2  ;;  %v16874_v2 = vcombine.high %v12410_v12, %v12414_v18  ;;  %v16873_v16 = vcombine.low %v12410_v12, %v12414_v18  ;;  %v12430_v36 = vld [vmem:[#allocation30 + $0x768] sm:$0xff] }
 0xdec   : > { %13905 = vmatpush1.bf16.msra.mxu1 %v16825_v10  ;;  %13865 = vmatprep.subr.bf16.mxu0 %v16706_v20  ;;  %v12290_v10 = vld [vmem:[#allocation30 + $0x308] sm:$0xff] }
 0xded   : > { %13906 = vmatprep.subr.bf16.mxu1 %v16834_v22  ;;  %v12294_v20 = vld [vmem:[#allocation30 + $0x328] sm:$0xff] }
 0xdee   : > { %v12418_v22 = vld [vmem:[#allocation30 + $0x708] sm:$0xff]  ;;  %v16754_v21 = vcombine.high %v12290_v10, %v12294_v20  ;;  %v16753_v11 = vcombine.low %v12290_v10, %v12294_v20  ;;  %v12331_v10 = vld [vmem:[#allocation30 + $0x450] sm:$0xff] }
 0xdef   : > { %13866 = vmatpush1.bf16.msra.mxu0 %v16705_v39  ;;  %v16882_v39 = vcombine.high %v12418_v22, %v12422_v44  ;;  %v16881_v30 = vcombine.low %v12418_v22, %v12422_v44  ;;  %v12438_v42 = vld [vmem:[#allocation30 + $0x7a8] sm:$0xff]  ;;  %v12335_v20 = vld [vmem:[#allocation30 + $0x470] sm:$0xff] }
 0xdf0   : > { %13907 = vmatpush1.bf16.msra.mxu1 %v16833_v3  ;;  %13867 = vmatprep.subr.bf16.mxu0 %v16714_v57  ;;  %v12298_v3 = vld [vmem:[#allocation30 + $0x348] sm:$0xff] }
 0xdf1   : > { %13908 = vmatprep.subr.bf16.mxu1 %v16842_v61  ;;  %v12302_v57 = vld [vmem:[#allocation30 + $0x368] sm:$0xff] }
 0xdf2   : > { %v12426_v61 = vld [vmem:[#allocation30 + $0x748] sm:$0xff]  ;;  %v16762_v49 = vcombine.high %v12298_v3, %v12302_v57  ;;  %v16761_v50 = vcombine.low %v12298_v3, %v12302_v57  ;;  %v12343_v3 = vld [vmem:[#allocation30 + $0x4b0] sm:$0xff] }
 0xdf3   : > { %13868 = vmatpush1.bf16.msra.mxu0 %v16713_v32  ;;  %v16890_v32 = vcombine.high %v12426_v61, %v12430_v36  ;;  %v16889_v58 = vcombine.low %v12426_v61, %v12430_v36  ;;  %v12446_v47 = vld [vmem:[#allocation30 + $0x7e8] sm:$0xff]  ;;  %v16795_v61 = vcombine.low %v12331_v10, %v12335_v20 }
 0xdf4   : > { %13909 = vmatpush1.bf16.msra.mxu1 %v16841_v48  ;;  %13869 = vmatprep.subr.bf16.mxu0 %v16722_v56  ;;  %v12306_v48 = vld [vmem:[#allocation30 + $0x388] sm:$0xff] }
 0xdf5   : > { %13910 = vmatprep.subr.bf16.mxu1 %v16850_v6  ;;  %v12310_v56 = vld [vmem:[#allocation30 + $0x3a8] sm:$0xff] }
 0xdf6   : > { %v12434_v6 = vld [vmem:[#allocation30 + $0x788] sm:$0xff]  ;;  %v16770_v43 = vcombine.high %v12306_v48, %v12310_v56  ;;  %v16769_v33 = vcombine.low %v12306_v48, %v12310_v56  ;;  %v12351_v48 = vld [vmem:[#allocation30 + $0x4f0] sm:$0xff] }
 0xdf7   : > { %13870 = vmatpush1.bf16.msra.mxu0 %v16721_v14  ;;  %v16898_v14 = vcombine.high %v12434_v6, %v12438_v42  ;;  %v16897_v63 = vcombine.low %v12434_v6, %v12438_v42 }
 0xdf8   : > { %13911 = vmatpush1.bf16.msra.mxu1 %v16849_v13  ;;  %13871 = vmatprep.subr.bf16.mxu0 %v16730_v62  ;;  %v12314_v13 = vld [vmem:[#allocation30 + $0x3c8] sm:$0xff] }
 0xdf9   : > { %13912 = vmatprep.subr.bf16.mxu1 %v16858_v37  ;;  %v12318_v62 = vld [vmem:[#allocation30 + $0x3e8] sm:$0xff] }
 0xdfa   : > { %v12442_v37 = vld [vmem:[#allocation30 + $0x7c8] sm:$0xff]  ;;  %v16778_v29 = vcombine.high %v12314_v13, %v12318_v62  ;;  %v16777_v8 = vcombine.low %v12314_v13, %v12318_v62  ;;  %v12359_v13 = vld [vmem:[#allocation30 + $0x530] sm:$0xff] }
 0xdfb   : > { %13872 = vmatpush1.bf16.msra.mxu0 %v16729_v24  ;;  %v16906_v24 = vcombine.high %v12442_v37, %v12446_v47  ;;  %v16905_v12 = vcombine.low %v12442_v37, %v12446_v47 }
 0xdfc   : > { %13913 = vmatpush1.bf16.msra.mxu1 %v16857_v27  ;;  %13873 = vmatprep.subr.bf16.mxu0 %v16738_v4  ;;  %v12195_v27 = vld [vmem:[#allocation30 + $0x10] sm:$0xff] }
 0xdfd   : > { %13914 = vmatprep.subr.bf16.mxu1 %v16866_v9  ;;  %v12199_v4 = vld [vmem:[#allocation30 + $0x30] sm:$0xff] }
 0xdfe   : > { %v12323_v9 = vld [vmem:[#allocation30 + $0x410] sm:$0xff]  ;;  %v16660_v18 = vcombine.high %v12195_v27, %v12199_v4 }
 0xdff   : > { %13874 = vmatpush1.bf16.msra.mxu0 %v16737_v15  ;;  %v16788_v15 = vcombine.high %v12323_v9, %v12327_v5  ;;  %v16787_v22 = vcombine.low %v12323_v9, %v12327_v5 }
 0xe00   : > { %13915 = vmatpush1.bf16.msra.mxu1 %v16865_v17  ;;  %13875 = vmatprep.subr.bf16.mxu0 %v16746_v19  ;;  %v12203_v17 = vld [vmem:[#allocation30 + $0x50] sm:$0xff] }
 0xe01   : > { %13916 = vmatprep.subr.bf16.mxu1 %v16874_v2  ;;  %v12207_v19 = vld [vmem:[#allocation30 + $0x70] sm:$0xff]  ;;  %v16659_v2 = vcombine.low %v12195_v27, %v12199_v4 }
 0xe02   : > { %v16668_v44 = vcombine.high %v12203_v17, %v12207_v19  ;;  %v16667_v57 = vcombine.low %v12203_v17, %v12207_v19  ;;  %v12367_v27 = vld [vmem:[#allocation30 + $0x570] sm:$0xff] }
 0xe03   : > { %13876 = vmatpush1.bf16.msra.mxu0 %v16745_v38  ;;  %v12211_v38 = vld [vmem:[#allocation30 + $0x90] sm:$0xff] }
 0xe04   : > { %13917 = vmatpush1.bf16.msra.mxu1 %v16873_v16  ;;  %13877 = vmatprep.subr.bf16.mxu0 %v16754_v21  ;;  %v12215_v16 = vld [vmem:[#allocation30 + $0xb0] sm:$0xff]  ;;  %v16796_v21 = vcombine.high %v12331_v10, %v12335_v20 }
 0xe05   : > { %13918 = vmatprep.subr.bf16.mxu1 %v16882_v39  ;;  %v12339_v39 = vld [vmem:[#allocation30 + $0x490] sm:$0xff]  ;;  %v16676_v36 = vcombine.high %v12211_v38, %v12215_v16  ;;  %v16675_v56 = vcombine.low %v12211_v38, %v12215_v16 }
 0xe06   : > { %v16803_v6 = vcombine.low %v12339_v39, %v12343_v3  ;;  %v12375_v17 = vld [vmem:[#allocation30 + $0x5b0] sm:$0xff] }
 0xe07   : > { %13878 = vmatpush1.bf16.msra.mxu0 %v16753_v11  ;;  %v16804_v11 = vcombine.high %v12339_v39, %v12343_v3  ;;  %v12379_v38 = vld [vmem:[#allocation30 + $0x5d0] sm:$0xff] }
 0xe08   : > { %13919 = vmatpush1.bf16.msra.mxu1 %v16881_v30  ;;  %13879 = vmatprep.subr.bf16.mxu0 %v16762_v49  ;;  %v12219_v30 = vld [vmem:[#allocation30 + $0xd0] sm:$0xff] }
 0xe09   : > { %13920 = vmatprep.subr.bf16.mxu1 %v16890_v32  ;;  %v12223_v49 = vld [vmem:[#allocation30 + $0xf0] sm:$0xff] }
 0xe0a   : > { %v12347_v32 = vld [vmem:[#allocation30 + $0x4d0] sm:$0xff]  ;;  %v16684_v42 = vcombine.high %v12219_v30, %v12223_v49  ;;  %v16683_v62 = vcombine.low %v12219_v30, %v12223_v49 }
 0xe0b   : > { %13880 = vmatpush1.bf16.msra.mxu0 %v16761_v50  ;;  %v16812_v50 = vcombine.high %v12347_v32, %v12351_v48  ;;  %v16811_v37 = vcombine.low %v12347_v32, %v12351_v48  ;;  %v12383_v16 = vld [vmem:[#allocation30 + $0x5f0] sm:$0xff] }
 0xe0c   : > { %13921 = vmatpush1.bf16.msra.mxu1 %v16889_v58  ;;  %13881 = vmatprep.subr.bf16.mxu0 %v16770_v43  ;;  %v12227_v58 = vld [vmem:[#allocation30 + $0x110] sm:$0xff]  ;;  %v16843_v32 = vcombine.low %v12379_v38, %v12383_v16 }
 0xe0d   : > { %13922 = vmatprep.subr.bf16.mxu1 %v16898_v14  ;;  %v12231_v43 = vld [vmem:[#allocation30 + $0x130] sm:$0xff] }
 0xe0e   : > { %v12355_v14 = vld [vmem:[#allocation30 + $0x510] sm:$0xff]  ;;  %v16692_v47 = vcombine.high %v12227_v58, %v12231_v43  ;;  %v16691_v4 = vcombine.low %v12227_v58, %v12231_v43 }
 0xe0f   : > { %13882 = vmatpush1.bf16.msra.mxu0 %v16769_v33  ;;  %v16820_v33 = vcombine.high %v12355_v14, %v12359_v13  ;;  %v16819_v9 = vcombine.low %v12355_v14, %v12359_v13  ;;  %v12391_v30 = vld [vmem:[#allocation30 + $0x630] sm:$0xff] }
 0xe10   : > { %13923 = vmatpush1.bf16.msra.mxu1 %v16897_v63  ;;  %13883 = vmatprep.subr.bf16.mxu0 %v16778_v29  ;;  %v12235_v63 = vld [vmem:[#allocation30 + $0x150] sm:$0xff] }
 0xe11   : > { %13924 = vmatprep.subr.bf16.mxu1 %v16906_v24  ;;  %v12239_v29 = vld [vmem:[#allocation30 + $0x170] sm:$0xff] }
 0xe12   : > { %v12363_v24 = vld [vmem:[#allocation30 + $0x550] sm:$0xff]  ;;  %v16700_v5 = vcombine.high %v12235_v63, %v12239_v29  ;;  %v16699_v19 = vcombine.low %v12235_v63, %v12239_v29 }
 0xe13   : > { %13884 = vmatpush1.bf16.msra.mxu0 %v16777_v8  ;;  %v16828_v8 = vcombine.high %v12363_v24, %v12367_v27  ;;  %v12399_v58 = vld [vmem:[#allocation30 + $0x670] sm:$0xff] }
 0xe14   : > { %13925 = vmatpush1.bf16.msra.mxu1 %v16905_v12  ;;  %13935 = vmatprep.subr.bf16.mxu0 %v16660_v18  ;;  %v12243_v12 = vld [vmem:[#allocation30 + $0x190] sm:$0xff] }
 0xe15   : > { %13976 = vmatprep.subr.bf16.mxu1 %v16788_v15  ;;  %v12247_v18 = vld [vmem:[#allocation30 + $0x1b0] sm:$0xff] }
 0xe16   : > { %13886 = vmatmul.mubr.bf16.vlgmr.msra.gmra.mrb[72].mxu0 %v20824_v23  ;;  %v12371_v15 = vld [vmem:[#allocation30 + $0x590] sm:$0xff]  ;;  %v16708_v10 = vcombine.high %v12243_v12, %v12247_v18 }
 0xe17   : > { %13927 = vmatmul.mubr.bf16.vlgmr.msra.gmra.mrb[72].mxu1 %v20828_v28  ;;  %13936 = vmatpush1.bf16.msra.mxu0 %v16659_v2  ;;  %v16827_v2 = vcombine.low %v12363_v24, %v12367_v27  ;;  %v16836_v20 = vcombine.high %v12371_v15, %v12375_v17  ;;  %v16835_v39 = vcombine.low %v12371_v15, %v12375_v17  ;;  %v12407_v63 = vld [vmem:[#allocation30 + $0x6b0] sm:$0xff] }
 0xe18   : > { %13967 = vmatprep.mubr.bf16.mxu0 %v20822_v54  ;;  %13977 = vmatpush1.bf16.msra.mxu1 %v16787_v22  ;;  %v12251_v22 = vld [vmem:[#allocation30 + $0x1d0] sm:$0xff] }
 0xe19   : > { %14008 = vmatprep.mubr.bf16.mxu1 %v20826_v7  ;;  %13937 = vmatprep.subr.bf16.mxu0 %v16668_v44  ;;  %v12255_v44 = vld [vmem:[#allocation30 + $0x1f0] sm:$0xff] }
 0xe1a   : > { %13978 = vmatprep.subr.bf16.mxu1 %v16796_v21  ;;  %v16707_v21 = vcombine.low %v12243_v12, %v12247_v18  ;;  %v16716_v3 = vcombine.high %v12251_v22, %v12255_v44  ;;  %v16715_v49 = vcombine.low %v12251_v22, %v12255_v44  ;;  %v12415_v12 = vld [vmem:[#allocation30 + $0x6f0] sm:$0xff] }
 0xe1b   : > { %13938 = vmatpush1.bf16.msra.mxu0 %v16667_v57  ;;  %v16844_v57 = vcombine.high %v12379_v38, %v12383_v16  ;;  %v12423_v22 = vld [vmem:[#allocation30 + $0x730] sm:$0xff] }
 0xe1c   : > { %13979 = vmatpush1.bf16.msra.mxu1 %v16795_v61  ;;  %13939 = vmatprep.subr.bf16.mxu0 %v16676_v36  ;;  %v12259_v61 = vld [vmem:[#allocation30 + $0x210] sm:$0xff] }
 0xe1d   : > { %13980 = vmatprep.subr.bf16.mxu1 %v16804_v11  ;;  %v12263_v36 = vld [vmem:[#allocation30 + $0x230] sm:$0xff] }
 0xe1e   : > { %v12387_v11 = vld [vmem:[#allocation30 + $0x610] sm:$0xff]  ;;  %v16724_v48 = vcombine.high %v12259_v61, %v12263_v36  ;;  %v16723_v43 = vcombine.low %v12259_v61, %v12263_v36 }
 0xe1f   : > { %13940 = vmatpush1.bf16.msra.mxu0 %v16675_v56  ;;  %v16852_v56 = vcombine.high %v12387_v11, %v12391_v30  ;;  %v16851_v14 = vcombine.low %v12387_v11, %v12391_v30  ;;  %v12431_v61 = vld [vmem:[#allocation30 + $0x770] sm:$0xff] }
 0xe20   : > { %13981 = vmatpush1.bf16.msra.mxu1 %v16803_v6  ;;  %13941 = vmatprep.subr.bf16.mxu0 %v16684_v42  ;;  %v12267_v6 = vld [vmem:[#allocation30 + $0x250] sm:$0xff] }
 0xe21   : > { %13982 = vmatprep.subr.bf16.mxu1 %v16812_v50  ;;  %v12271_v42 = vld [vmem:[#allocation30 + $0x270] sm:$0xff] }
 0xe22   : > { %v12395_v50 = vld [vmem:[#allocation30 + $0x650] sm:$0xff]  ;;  %v16732_v13 = vcombine.high %v12267_v6, %v12271_v42  ;;  %v16731_v29 = vcombine.low %v12267_v6, %v12271_v42 }
 0xe23   : > { %13942 = vmatpush1.bf16.msra.mxu0 %v16683_v62  ;;  %v16860_v62 = vcombine.high %v12395_v50, %v12399_v58  ;;  %v16859_v24 = vcombine.low %v12395_v50, %v12399_v58  ;;  %v12439_v6 = vld [vmem:[#allocation30 + $0x7b0] sm:$0xff] }
 0xe24   : > { %13983 = vmatpush1.bf16.msra.mxu1 %v16811_v37  ;;  %13943 = vmatprep.subr.bf16.mxu0 %v16692_v47  ;;  %v12275_v37 = vld [vmem:[#allocation30 + $0x290] sm:$0xff] }
 0xe25   : > { %13984 = vmatprep.subr.bf16.mxu1 %v16820_v33  ;;  %v12279_v47 = vld [vmem:[#allocation30 + $0x2b0] sm:$0xff] }
 0xe26   : > { %v12403_v33 = vld [vmem:[#allocation30 + $0x690] sm:$0xff]  ;;  %v16740_v27 = vcombine.high %v12275_v37, %v12279_v47  ;;  %v16739_v18 = vcombine.low %v12275_v37, %v12279_v47 }
 0xe27   : > { %13944 = vmatpush1.bf16.msra.mxu0 %v16691_v4  ;;  %v16868_v4 = vcombine.high %v12403_v33, %v12407_v63  ;;  %v16867_v15 = vcombine.low %v12403_v33, %v12407_v63  ;;  %v12447_v37 = vld [vmem:[#allocation30 + $0x7f0] sm:$0xff] }
 0xe28   : > { %13985 = vmatpush1.bf16.msra.mxu1 %v16819_v9  ;;  %13945 = vmatprep.subr.bf16.mxu0 %v16700_v5  ;;  %v12283_v9 = vld [vmem:[#allocation30 + $0x2d0] sm:$0xff] }
 0xe29   : > { %13986 = vmatprep.subr.bf16.mxu1 %v16828_v8  ;;  %v12287_v5 = vld [vmem:[#allocation30 + $0x2f0] sm:$0xff] }
 0xe2a   : > { %v12411_v8 = vld [vmem:[#allocation30 + $0x6d0] sm:$0xff]  ;;  %v16748_v17 = vcombine.high %v12283_v9, %v12287_v5  ;;  %v16747_v44 = vcombine.low %v12283_v9, %v12287_v5  ;;  %v12328_v9 = vld [vmem:[#allocation30 + $0x438] sm:$0xff] }
 0xe2b   : > { %13946 = vmatpush1.bf16.msra.mxu0 %v16699_v19  ;;  %v16876_v19 = vcombine.high %v12411_v8, %v12415_v12  ;;  %v16875_v38 = vcombine.low %v12411_v8, %v12415_v12 }
 0xe2c   : > { %13987 = vmatpush1.bf16.msra.mxu1 %v16827_v2  ;;  %13947 = vmatprep.subr.bf16.mxu0 %v16708_v10  ;;  %v12291_v2 = vld [vmem:[#allocation30 + $0x310] sm:$0xff] }
 0xe2d   : > { %13988 = vmatprep.subr.bf16.mxu1 %v16836_v20  ;;  %v12295_v10 = vld [vmem:[#allocation30 + $0x330] sm:$0xff] }
 0xe2e   : > { %v12419_v20 = vld [vmem:[#allocation30 + $0x710] sm:$0xff]  ;;  %v16756_v16 = vcombine.high %v12291_v2, %v12295_v10  ;;  %v16755_v36 = vcombine.low %v12291_v2, %v12295_v10  ;;  %v12332_v2 = vld [vmem:[#allocation30 + $0x458] sm:$0xff] }
 0xe2f   : > { %13948 = vmatpush1.bf16.msra.mxu0 %v16707_v21  ;;  %v16884_v21 = vcombine.high %v12419_v20, %v12423_v22  ;;  %v16883_v11 = vcombine.low %v12419_v20, %v12423_v22  ;;  %v12336_v10 = vld [vmem:[#allocation30 + $0x478] sm:$0xff] }
 0xe30   : > { %13989 = vmatpush1.bf16.msra.mxu1 %v16835_v39  ;;  %13949 = vmatprep.subr.bf16.mxu0 %v16716_v3  ;;  %v12299_v39 = vld [vmem:[#allocation30 + $0x350] sm:$0xff] }
 0xe31   : > { %13990 = vmatprep.subr.bf16.mxu1 %v16844_v57  ;;  %v12303_v3 = vld [vmem:[#allocation30 + $0x370] sm:$0xff] }
 0xe32   : > { %v12427_v57 = vld [vmem:[#allocation30 + $0x750] sm:$0xff]  ;;  %v16764_v30 = vcombine.high %v12299_v39, %v12303_v3  ;;  %v16763_v42 = vcombine.low %v12299_v39, %v12303_v3  ;;  %v12344_v39 = vld [vmem:[#allocation30 + $0x4b8] sm:$0xff] }
 0xe33   : > { %13950 = vmatpush1.bf16.msra.mxu0 %v16715_v49  ;;  %v16892_v49 = vcombine.high %v12427_v57, %v12431_v61  ;;  %v16891_v50 = vcombine.low %v12427_v57, %v12431_v61  ;;  %v16797_v57 = vcombine.low %v12332_v2, %v12336_v10 }
 0xe34   : > { %13991 = vmatpush1.bf16.msra.mxu1 %v16843_v32  ;;  %13951 = vmatprep.subr.bf16.mxu0 %v16724_v48  ;;  %v12307_v32 = vld [vmem:[#allocation30 + $0x390] sm:$0xff] }
 0xe35   : > { %13992 = vmatprep.subr.bf16.mxu1 %v16852_v56  ;;  %v12311_v48 = vld [vmem:[#allocation30 + $0x3b0] sm:$0xff] }
 0xe36   : > { %v12435_v56 = vld [vmem:[#allocation30 + $0x790] sm:$0xff]  ;;  %v16772_v58 = vcombine.high %v12307_v32, %v12311_v48  ;;  %v16771_v47 = vcombine.low %v12307_v32, %v12311_v48  ;;  %v12352_v32 = vld [vmem:[#allocation30 + $0x4f8] sm:$0xff] }
 0xe37   : > { %13952 = vmatpush1.bf16.msra.mxu0 %v16723_v43  ;;  %v16900_v43 = vcombine.high %v12435_v56, %v12439_v6  ;;  %v16899_v33 = vcombine.low %v12435_v56, %v12439_v6 }
 0xe38   : > { %13993 = vmatpush1.bf16.msra.mxu1 %v16851_v14  ;;  %13953 = vmatprep.subr.bf16.mxu0 %v16732_v13  ;;  %v12315_v14 = vld [vmem:[#allocation30 + $0x3d0] sm:$0xff] }
 0xe39   : > { %13994 = vmatprep.subr.bf16.mxu1 %v16860_v62  ;;  %v12319_v13 = vld [vmem:[#allocation30 + $0x3f0] sm:$0xff] }
 0xe3a   : > { %v12443_v62 = vld [vmem:[#allocation30 + $0x7d0] sm:$0xff]  ;;  %v16780_v63 = vcombine.high %v12315_v14, %v12319_v13  ;;  %v16779_v5 = vcombine.low %v12315_v14, %v12319_v13 }
 0xe3b   : > { %13954 = vmatpush1.bf16.msra.mxu0 %v16731_v29  ;;  %v16908_v29 = vcombine.high %v12443_v62, %v12447_v37  ;;  %v16907_v8 = vcombine.low %v12443_v62, %v12447_v37  ;;  %v12236_v37 = vld [vmem:[#allocation30 + $0x158] sm:$0xff] }
 0xe3c   : > { %13995 = vmatpush1.bf16.msra.mxu1 %v16859_v24  ;;  %13955 = vmatprep.subr.bf16.mxu0 %v16740_v27  ;;  %v12196_v24 = vld [vmem:[#allocation30 + $0x18] sm:$0xff] }
 0xe3d   : > { %13996 = vmatprep.subr.bf16.mxu1 %v16868_v4  ;;  %v12200_v27 = vld [vmem:[#allocation30 + $0x38] sm:$0xff] }
 0xe3e   : > { %v12324_v4 = vld [vmem:[#allocation30 + $0x418] sm:$0xff]  ;;  %v16662_v12 = vcombine.high %v12196_v24, %v12200_v27 }
 0xe3f   : > { %13956 = vmatpush1.bf16.msra.mxu0 %v16739_v18  ;;  %v16790_v18 = vcombine.high %v12324_v4, %v12328_v9  ;;  %v16789_v20 = vcombine.low %v12324_v4, %v12328_v9  ;;  %v12244_v9 = vld [vmem:[#allocation30 + $0x198] sm:$0xff] }
 0xe40   : > { %13997 = vmatpush1.bf16.msra.mxu1 %v16867_v15  ;;  %13957 = vmatprep.subr.bf16.mxu0 %v16748_v17  ;;  %v12204_v15 = vld [vmem:[#allocation30 + $0x58] sm:$0xff] }
 0xe41   : > { %13998 = vmatprep.subr.bf16.mxu1 %v16876_v19  ;;  %v12208_v17 = vld [vmem:[#allocation30 + $0x78] sm:$0xff]  ;;  %v16661_v19 = vcombine.low %v12196_v24, %v12200_v27 }
 0xe42   : > { %v16670_v22 = vcombine.high %v12204_v15, %v12208_v17  ;;  %v16669_v3 = vcombine.low %v12204_v15, %v12208_v17 }
 0xe43   : > { %13958 = vmatpush1.bf16.msra.mxu0 %v16747_v44  ;;  %v12212_v44 = vld [vmem:[#allocation30 + $0x98] sm:$0xff] }
 0xe44   : > { %13999 = vmatpush1.bf16.msra.mxu1 %v16875_v38  ;;  %13959 = vmatprep.subr.bf16.mxu0 %v16756_v16  ;;  %v12216_v38 = vld [vmem:[#allocation30 + $0xb8] sm:$0xff]  ;;  %v16798_v16 = vcombine.high %v12332_v2, %v12336_v10 }
 0xe45   : > { %14000 = vmatprep.subr.bf16.mxu1 %v16884_v21  ;;  %v12340_v21 = vld [vmem:[#allocation30 + $0x498] sm:$0xff]  ;;  %v16678_v61 = vcombine.high %v12212_v44, %v12216_v38  ;;  %v16677_v48 = vcombine.low %v12212_v44, %v12216_v38 }
 0xe46   : > { %v16805_v56 = vcombine.low %v12340_v21, %v12344_v39  ;;  %v12252_v2 = vld [vmem:[#allocation30 + $0x1d8] sm:$0xff] }
 0xe47   : > { %13960 = vmatpush1.bf16.msra.mxu0 %v16755_v36  ;;  %v16806_v36 = vcombine.high %v12340_v21, %v12344_v39  ;;  %v12256_v10 = vld [vmem:[#allocation30 + $0x1f8] sm:$0xff] }
 0xe48   : > { %14001 = vmatpush1.bf16.msra.mxu1 %v16883_v11  ;;  %13961 = vmatprep.subr.bf16.mxu0 %v16764_v30  ;;  %v12220_v11 = vld [vmem:[#allocation30 + $0xd8] sm:$0xff] }
 0xe49   : > { %14002 = vmatprep.subr.bf16.mxu1 %v16892_v49  ;;  %v12224_v30 = vld [vmem:[#allocation30 + $0xf8] sm:$0xff] }
 0xe4a   : > { %v12348_v49 = vld [vmem:[#allocation30 + $0x4d8] sm:$0xff]  ;;  %v16686_v6 = vcombine.high %v12220_v11, %v12224_v30 }
 0xe4b   : > { %13962 = vmatpush1.bf16.msra.mxu0 %v16763_v42  ;;  %v12228_v42 = vld [vmem:[#allocation30 + $0x118] sm:$0xff]  ;;  %v16813_v14 = vcombine.low %v12348_v49, %v12352_v32 }
 0xe4c   : > { %14003 = vmatpush1.bf16.msra.mxu1 %v16891_v50  ;;  %13963 = vmatprep.subr.bf16.mxu0 %v16772_v58  ;;  %v12232_v50 = vld [vmem:[#allocation30 + $0x138] sm:$0xff] }
 0xe4d   : > { %14004 = vmatprep.subr.bf16.mxu1 %v16900_v43  ;;  %v12356_v58 = vld [vmem:[#allocation30 + $0x518] sm:$0xff]  ;;  %v16694_v13 = vcombine.high %v12228_v42, %v12232_v50 }
 0xe4e   : > { %v12360_v43 = vld [vmem:[#allocation30 + $0x538] sm:$0xff] }
 0xe4f   : > { %13964 = vmatpush1.bf16.msra.mxu0 %v16771_v47  ;;  %v16822_v62 = vcombine.high %v12356_v58, %v12360_v43  ;;  %v12240_v47 = vld [vmem:[#allocation30 + $0x178] sm:$0xff]  ;;  %v16821_v24 = vcombine.low %v12356_v58, %v12360_v43 }
 0xe50   : > { %14005 = vmatpush1.bf16.msra.mxu1 %v16899_v33  ;;  %13965 = vmatprep.subr.bf16.mxu0 %v16780_v63  ;;  %v12364_v33 = vld [vmem:[#allocation30 + $0x558] sm:$0xff]  ;;  %v16702_v27 = vcombine.high %v12236_v37, %v12240_v47 }
 0xe51   : > { %14006 = vmatprep.subr.bf16.mxu1 %v16908_v29  ;;  %v12368_v63 = vld [vmem:[#allocation30 + $0x578] sm:$0xff]  ;;  %v16693_v29 = vcombine.low %v12228_v42, %v12232_v50 }
 0xe52   : > { %v16830_v4 = vcombine.high %v12364_v33, %v12368_v63  ;;  %v16829_v15 = vcombine.low %v12364_v33, %v12368_v63  ;;  %v12260_v39 = vld [vmem:[#allocation30 + $0x218] sm:$0xff] }
 0xe53   : > { %13966 = vmatpush1.bf16.msra.mxu0 %v16779_v5  ;;  %v12248_v5 = vld [vmem:[#allocation30 + $0x1b8] sm:$0xff] }
 0xe54   : > { %14007 = vmatpush1.bf16.msra.mxu1 %v16907_v8  ;;  %14017 = vmatprep.subr.bf16.mxu0 %v16662_v12  ;;  %v12372_v8 = vld [vmem:[#allocation30 + $0x598] sm:$0xff]  ;;  %v16710_v17 = vcombine.high %v12244_v9, %v12248_v5  ;;  %v16709_v44 = vcombine.low %v12244_v9, %v12248_v5 }
 0xe55   : > { %14058 = vmatprep.subr.bf16.mxu1 %v16790_v18  ;;  %v12376_v12 = vld [vmem:[#allocation30 + $0x5b8] sm:$0xff]  ;;  %v16701_v18 = vcombine.low %v12236_v37, %v12240_v47 }
 0xe56   : > { %13968 = vmatmul.mubr.bf16.vlgmr.msra.gmra.mrb[76].mxu0 %v20824_v23  ;;  %v16837_v38 = vcombine.low %v12372_v8, %v12376_v12  ;;  %v12276_v43 = vld [vmem:[#allocation30 + $0x298] sm:$0xff] }
 0xe57   : > { %14009 = vmatmul.mubr.bf16.vlgmr.msra.gmra.mrb[76].mxu1 %v20828_v28  ;;  %14018 = vmatpush1.bf16.msra.mxu0 %v16661_v19  ;;  %v16838_v19 = vcombine.high %v12372_v8, %v12376_v12  ;;  %v12284_v63 = vld [vmem:[#allocation30 + $0x2d8] sm:$0xff] }
 0xe58   : > { %14049 = vmatprep.mubr.bf16.mxu0 %v20822_v54  ;;  %14059 = vmatpush1.bf16.msra.mxu1 %v16789_v20  ;;  %v16814_v54 = vcombine.high %v12348_v49, %v12352_v32  ;;  %v12380_v20 = vld [vmem:[#allocation30 + $0x5d8] sm:$0xff] }
 0xe59   : > { %14090 = vmatprep.mubr.bf16.mxu1 %v20826_v7  ;;  %14019 = vmatprep.subr.bf16.mxu0 %v16670_v22  ;;  %v16685_v7 = vcombine.low %v12220_v11, %v12224_v30  ;;  %v12384_v22 = vld [vmem:[#allocation30 + $0x5f8] sm:$0xff] }
 0xe5a   : > { %14060 = vmatprep.subr.bf16.mxu1 %v16798_v16  ;;  %v16718_v16 = vcombine.high %v12252_v2, %v12256_v10  ;;  %v16846_v21 = vcombine.high %v12380_v20, %v12384_v22  ;;  %v16845_v11 = vcombine.low %v12380_v20, %v12384_v22  ;;  %v12268_v32 = vld [vmem:[#allocation30 + $0x258] sm:$0xff] }
 0xe5b   : > { %14020 = vmatpush1.bf16.msra.mxu0 %v16669_v3  ;;  %v12264_v3 = vld [vmem:[#allocation30 + $0x238] sm:$0xff] }
 0xe5c   : > { %14061 = vmatpush1.bf16.msra.mxu1 %v16797_v57  ;;  %14021 = vmatprep.subr.bf16.mxu0 %v16678_v61  ;;  %v12388_v57 = vld [vmem:[#allocation30 + $0x618] sm:$0xff]  ;;  %v16726_v30 = vcombine.high %v12260_v39, %v12264_v3 }
 0xe5d   : > { %14062 = vmatprep.subr.bf16.mxu1 %v16806_v36  ;;  %v12392_v61 = vld [vmem:[#allocation30 + $0x638] sm:$0xff]  ;;  %v16717_v36 = vcombine.low %v12252_v2, %v12256_v10 }
 0xe5e   : > { %v16854_v49 = vcombine.high %v12388_v57, %v12392_v61  ;;  %v16853_v42 = vcombine.low %v12388_v57, %v12392_v61  ;;  %v12292_v12 = vld [vmem:[#allocation30 + $0x318] sm:$0xff] }
 0xe5f   : > { %14022 = vmatpush1.bf16.msra.mxu0 %v16677_v48  ;;  %v12272_v48 = vld [vmem:[#allocation30 + $0x278] sm:$0xff] }
 0xe60   : > { %14063 = vmatpush1.bf16.msra.mxu1 %v16805_v56  ;;  %14023 = vmatprep.subr.bf16.mxu0 %v16686_v6  ;;  %v12396_v56 = vld [vmem:[#allocation30 + $0x658] sm:$0xff]  ;;  %v16734_v50 = vcombine.high %v12268_v32, %v12272_v48 }
 0xe61   : > { %14064 = vmatprep.subr.bf16.mxu1 %v16814_v54  ;;  %v12400_v6 = vld [vmem:[#allocation30 + $0x678] sm:$0xff]  ;;  %v16725_v54 = vcombine.low %v12260_v39, %v12264_v3 }
 0xe62   : > { %v16862_v58 = vcombine.high %v12396_v56, %v12400_v6  ;;  %v16861_v37 = vcombine.low %v12396_v56, %v12400_v6  ;;  %v12300_v22 = vld [vmem:[#allocation30 + $0x358] sm:$0xff] }
 0xe63   : > { %14024 = vmatpush1.bf16.msra.mxu0 %v16685_v7  ;;  %v12280_v7 = vld [vmem:[#allocation30 + $0x2b8] sm:$0xff] }
 0xe64   : > { %14065 = vmatpush1.bf16.msra.mxu1 %v16813_v14  ;;  %14025 = vmatprep.subr.bf16.mxu0 %v16694_v13  ;;  %v12404_v14 = vld [vmem:[#allocation30 + $0x698] sm:$0xff]  ;;  %v16742_v47 = vcombine.high %v12276_v43, %v12280_v7 }
 0xe65   : > { %14066 = vmatprep.subr.bf16.mxu1 %v16822_v62  ;;  %v12408_v13 = vld [vmem:[#allocation30 + $0x6b8] sm:$0xff]  ;;  %v16733_v62 = vcombine.low %v12268_v32, %v12272_v48 }
 0xe66   : > { %v16870_v33 = vcombine.high %v12404_v14, %v12408_v13  ;;  %v16869_v9 = vcombine.low %v12404_v14, %v12408_v13  ;;  %v12308_v61 = vld [vmem:[#allocation30 + $0x398] sm:$0xff] }
 0xe67   : > { %14026 = vmatpush1.bf16.msra.mxu0 %v16693_v29  ;;  %v12288_v29 = vld [vmem:[#allocation30 + $0x2f8] sm:$0xff] }
 0xe68   : > { %14067 = vmatpush1.bf16.msra.mxu1 %v16821_v24  ;;  %14027 = vmatprep.subr.bf16.mxu0 %v16702_v27  ;;  %v12412_v24 = vld [vmem:[#allocation30 + $0x6d8] sm:$0xff]  ;;  %v16750_v5 = vcombine.high %v12284_v63, %v12288_v29 }
 0xe69   : > { %14068 = vmatprep.subr.bf16.mxu1 %v16830_v4  ;;  %v12416_v27 = vld [vmem:[#allocation30 + $0x6f8] sm:$0xff]  ;;  %v16741_v4 = vcombine.low %v12276_v43, %v12280_v7 }
 0xe6a   : > { %v16878_v8 = vcombine.high %v12412_v24, %v12416_v27  ;;  %v16877_v2 = vcombine.low %v12412_v24, %v12416_v27  ;;  %v12316_v6 = vld [vmem:[#allocation30 + $0x3d8] sm:$0xff] }
 0xe6b   : > { %14028 = vmatpush1.bf16.msra.mxu0 %v16701_v18  ;;  %v12296_v18 = vld [vmem:[#allocation30 + $0x338] sm:$0xff] }
 0xe6c   : > { %14069 = vmatpush1.bf16.msra.mxu1 %v16829_v15  ;;  %14029 = vmatprep.subr.bf16.mxu0 %v16710_v17  ;;  %v12420_v15 = vld [vmem:[#allocation30 + $0x718] sm:$0xff]  ;;  %v16758_v10 = vcombine.high %v12292_v12, %v12296_v18 }
 0xe6d   : > { %14070 = vmatprep.subr.bf16.mxu1 %v16838_v19  ;;  %v12424_v17 = vld [vmem:[#allocation30 + $0x738] sm:$0xff]  ;;  %v16749_v19 = vcombine.low %v12284_v63, %v12288_v29 }
 0xe6e   : > { %v16886_v20 = vcombine.high %v12420_v15, %v12424_v17  ;;  %v16885_v39 = vcombine.low %v12420_v15, %v12424_v17 }
 0xe6f   : > { %14030 = vmatpush1.bf16.msra.mxu0 %v16709_v44  ;;  %v12304_v44 = vld [vmem:[#allocation30 + $0x378] sm:$0xff] }
 0xe70   : > { %14071 = vmatpush1.bf16.msra.mxu1 %v16837_v38  ;;  %14031 = vmatprep.subr.bf16.mxu0 %v16718_v16  ;;  %v12428_v38 = vld [vmem:[#allocation30 + $0x758] sm:$0xff]  ;;  %v16766_v3 = vcombine.high %v12300_v22, %v12304_v44 }
 0xe71   : > { %14072 = vmatprep.subr.bf16.mxu1 %v16846_v21  ;;  %v12432_v16 = vld [vmem:[#allocation30 + $0x778] sm:$0xff]  ;;  %v16757_v21 = vcombine.low %v12292_v12, %v12296_v18 }
 0xe72   : > { %v16894_v57 = vcombine.high %v12428_v38, %v12432_v16  ;;  %v16893_v32 = vcombine.low %v12428_v38, %v12432_v16 }
 0xe73   : > { %14032 = vmatpush1.bf16.msra.mxu0 %v16717_v36  ;;  %v12312_v36 = vld [vmem:[#allocation30 + $0x3b8] sm:$0xff] }
 0xe74   : > { %14073 = vmatpush1.bf16.msra.mxu1 %v16845_v11  ;;  %14033 = vmatprep.subr.bf16.mxu0 %v16726_v30  ;;  %v12436_v11 = vld [vmem:[#allocation30 + $0x798] sm:$0xff]  ;;  %v16774_v48 = vcombine.high %v12308_v61, %v12312_v36 }
 0xe75   : > { %14074 = vmatprep.subr.bf16.mxu1 %v16854_v49  ;;  %v12440_v30 = vld [vmem:[#allocation30 + $0x7b8] sm:$0xff]  ;;  %v16765_v49 = vcombine.low %v12300_v22, %v12304_v44 }
 0xe76   : > { %v16902_v56 = vcombine.high %v12436_v11, %v12440_v30  ;;  %v16901_v43 = vcombine.low %v12436_v11, %v12440_v30 }
 0xe77   : > { %14034 = vmatpush1.bf16.msra.mxu0 %v16725_v54  ;;  %v12320_v54 = vld [vmem:[#allocation30 + $0x3f8] sm:$0xff] }
 0xe78   : > { %14075 = vmatpush1.bf16.msra.mxu1 %v16853_v42  ;;  %14035 = vmatprep.subr.bf16.mxu0 %v16734_v50  ;;  %v12444_v42 = vld [vmem:[#allocation30 + $0x7d8] sm:$0xff]  ;;  %v16782_v7 = vcombine.high %v12316_v6, %v12320_v54  ;;  %v16781_v13 = vcombine.low %v12316_v6, %v12320_v54 }
 0xe79   : > { %14076 = vmatprep.subr.bf16.mxu1 %v16862_v58  ;;  %v12448_v50 = vld [vmem:[#allocation30 + $0x7f8] sm:$0xff]  ;;  %v16773_v58 = vcombine.low %v12308_v61, %v12312_v36 }
 0xe7a   : > { %v16910_v14 = vcombine.high %v12444_v42, %v12448_v50 }
 0xe7b   : > { %14036 = vmatpush1.bf16.msra.mxu0 %v16733_v62  ;;  %v16909_v62 = vcombine.low %v12444_v42, %v12448_v50 }
 0xe7c   : > { %14077 = vmatpush1.bf16.msra.mxu1 %v16861_v37  ;;  %14037 = vmatprep.subr.bf16.mxu0 %v16742_v47  ;;  %v20846_v37 = vld [vmem:[#allocation31] sm:$0xff] }
 0xe7d   : > { %14078 = vmatprep.subr.bf16.mxu1 %v16870_v33  ;;  %v12454_v47 = vrot.slane %v20846_v37, %v19658_v60  ;;  %v12458_v33 = vrot.slane %v20846_v37, %v19635_v55  ;;  %v12462_v15 = vrot.slane %v20846_v37, %v19686_v52  ;;  %v12466_v17 = vrot.slane %v20846_v37, %v19661_v0 }
 0xe7e   : > { %v12470_v61 = vrot.slane %v20846_v37, %v19805_v35  ;;  %v12474_v36 = vrot.slane %v20846_v37, %v19811_v34 }
 0xe7f   : > { %14038 = vmatpush1.bf16.msra.mxu0 %v16741_v4 }
 0xe80   : > { %14079 = vmatpush1.bf16.msra.mxu1 %v16869_v9  ;;  %14039 = vmatprep.subr.bf16.mxu0 %v16750_v5 }
 0xe81   : > { %14080 = vmatprep.subr.bf16.mxu1 %v16878_v8 }
 0xe83   : > { %14040 = vmatpush1.bf16.msra.mxu0 %v16749_v19 }
 0xe84   : > { %14081 = vmatpush1.bf16.msra.mxu1 %v16877_v2  ;;  %14041 = vmatprep.subr.bf16.mxu0 %v16758_v10 }
 0xe85   : > { %14082 = vmatprep.subr.bf16.mxu1 %v16886_v20 }
 0xe87   : > { %14042 = vmatpush1.bf16.msra.mxu0 %v16757_v21 }
 0xe88   : > { %14083 = vmatpush1.bf16.msra.mxu1 %v16885_v39  ;;  %14043 = vmatprep.subr.bf16.mxu0 %v16766_v3 }
 0xe89   : > { %14084 = vmatprep.subr.bf16.mxu1 %v16894_v57 }
 0xe8b   : > { %14044 = vmatpush1.bf16.msra.mxu0 %v16765_v49 }
 0xe8c   : > { %14085 = vmatpush1.bf16.msra.mxu1 %v16893_v32  ;;  %14045 = vmatprep.subr.bf16.mxu0 %v16774_v48 }
 0xe8d   : > { %14086 = vmatprep.subr.bf16.mxu1 %v16902_v56 }
 0xe8f   : > { %14046 = vmatpush1.bf16.msra.mxu0 %v16773_v58 }
 0xe90   : > { %14087 = vmatpush1.bf16.msra.mxu1 %v16901_v43  ;;  %14047 = vmatprep.subr.bf16.mxu0 %v16782_v7 }
 0xe91   : > { %14088 = vmatprep.subr.bf16.mxu1 %v16910_v14 }
 0xe93   : > { %14048 = vmatpush1.bf16.msra.mxu0 %v16781_v13 }
 0xe94   : > { %14089 = vmatpush1.bf16.msra.mxu1 %v16909_v62 }
 0xe96   : > { %14050 = vmatmul.mubr.bf16.vlgmr.msra.gmra.mrb[80].mxu0 %v20824_v23 }
 0xe97   : > { %14091 = vmatmul.mubr.bf16.vlgmr.msra.gmra.mrb[80].mxu1 %v20828_v28 }
 0xea9   : > { %v13805_v63 = vpop.f32.mrb[68].mxu0 }
 0xeaa   : > { %v13806_v29 = vadd.f32 %v13805_v63, %v12454_v47  ;;  %v13846_v24 = vpop.f32.mrb[68].mxu1  ;;  %v13807_v27 = vpop.f32.mrb[69].mxu0 }
 0xeab   : > { %v13808_v4 = vadd.f32 %v13807_v27, %v12458_v33  ;;  %v13848_v9 = vpop.f32.mrb[69].mxu1  ;;  %v13809_v5 = vpop.f32.mrb[70].mxu0 }
 0xeac   : > { %v13847_v8 = vadd.f32 %v13846_v24, %v13806_v29  ;;  %v13850_v12 = vpop.f32.mrb[70].mxu1  ;;  %v13810_v23 = vpop.f32.mrb[71].mxu0 }
 0xead   : > { %v13849_v18 = vadd.f32 %v13848_v9, %v13808_v4  ;;  %v13851_v28 = vpop.f32.mrb[71].mxu1 }
 0xeae   : > { %v14099_v7 = vadd.f32 %v13847_v8, %v20218_v26  ;;  %v12478_v26 = vrot.slane %v20846_v37, %v19808_v31 }
 0xeaf   : > { %v14100_v14 = vadd.f32 %v13849_v18, %v20216_v40  ;;  %v12482_v40 = vrot.slane %v20846_v37, %v19814_v1 }
 0xeb0   : > { %v14107_v62 = vsel %vm1925_vm9, %v14099_v7, 0.0 }
 0xeb1   : > { %v14108_v47 = vsel %vm1925_vm9, %v14100_v14, 0.0 }
 0xeb2   : > { %v14109_v29 = vadd.f32 %v14108_v47, %v14107_v62 }
 0xee9   : > { %v13887_v19 = vpop.f32.mrb[72].mxu0 }
 0xeea   : > { %v13888_v2 = vadd.f32 %v13887_v19, %v12462_v15  ;;  %v13928_v10 = vpop.f32.mrb[72].mxu1  ;;  %v13889_v20 = vpop.f32.mrb[73].mxu0 }
 0xeeb   : > { %v13890_v22 = vadd.f32 %v13889_v20, %v12466_v17  ;;  %v13930_v44 = vpop.f32.mrb[73].mxu1  ;;  %v13891_v38 = vpop.f32.mrb[74].mxu0 }
 0xeec   : > { %v13929_v16 = vadd.f32 %v13928_v10, %v13888_v2  ;;  %v13932_v21 = vpop.f32.mrb[74].mxu1  ;;  %v13892_v39 = vpop.f32.mrb[75].mxu0 }
 0xeed   : > { %v13931_v3 = vadd.f32 %v13930_v44, %v13890_v22  ;;  %v13933_v57 = vpop.f32.mrb[75].mxu1 }
 0xeee   : > { %v14101_v13 = vadd.f32 %v13929_v16, %v20222_v25  ;;  %v17993_v57 = vld [vmem:[%s21335_s0 + $0xc0] sm:$0xff]  }
 0xeef   : > { %v14102_v63 = vadd.f32 %v13931_v3, %v20220_v59  ;;  %v17992_v3 = vld [vmem:[%s21335_s0 + $0x40] sm:$0xff]   ;;  %17042 = vmatprep.subr.bf16.mxu1 %v17993_v57  ;;  %v18015_v57 = vld [vmem:[%s21335_s0 + $0xa8] sm:$0xff]  }
 0xef0   : > { %v14110_v33 = vsel %vm1925_vm9, %v14101_v13, 0.0  ;;  %17020 = vmatprep.subr.bf16.mxu0 %v17992_v3  ;;  %v18014_v3 = vld [vmem:[%s21335_s0 + $0x28] sm:$0xff]  }
 0xef1   : > { %v14111_v27 = vadd.f32 %v14110_v33, %v14109_v29  ;;  %v14112_v4 = vsel %vm1925_vm9, %v14102_v63, 0.0 }
 0xef3   : > { %v14113_v5 = vadd.f32 %v14112_v4, %v14111_v27 }
 0xf29   : > { %v13969_v11 = vpop.f32.mrb[76].mxu0 }
 0xf2a   : > { %v13970_v30 = vadd.f32 %v13969_v11, %v12470_v61  ;;  %v14010_v49 = vpop.f32.mrb[76].mxu1  ;;  %v13971_v32 = vpop.f32.mrb[77].mxu0  ;;  %v17996_v61 = vld [vmem:[%s21335_s0 + $0x48] sm:$0xff]  }
 0xf2b   : > { %v13972_v48 = vadd.f32 %v13971_v32, %v12474_v36  ;;  %v14012_v56 = vpop.f32.mrb[77].mxu1  ;;  %v13973_v6 = vpop.f32.mrb[78].mxu0  ;;  %v17997_v36 = vld [vmem:[%s21335_s0 + $0xc8] sm:$0xff]   ;;  %v18001_v32 = vld [vmem:[%s21335_s0 + $0xd0] sm:$0xff]  }
 0xf2c   : > { %v14011_v54 = vadd.f32 %v14010_v49, %v13970_v30  ;;  %v14014_v42 = vpop.f32.mrb[78].mxu1  ;;  %v13974_v50 = vpop.f32.mrb[79].mxu0  ;;  %v17998_v11 = vld [vmem:[%s21335_s0 + $0x8] sm:$0xff]   ;;  %v18000_v49 = vld [vmem:[%s21335_s0 + $0x50] sm:$0xff]  }
 0xf2d   : > { %v14013_v58 = vadd.f32 %v14012_v56, %v13972_v48  ;;  %v14015_v43 = vpop.f32.mrb[79].mxu1  ;;  %v17999_v30 = vld [vmem:[%s21335_s0 + $0x88] sm:$0xff]  }
 0xf2e   : > { %v14103_v24 = vadd.f32 %v14011_v54, %v20226_v53 }
 0xf2f   : > { %v14104_v9 = vadd.f32 %v14013_v58, %v20224_v46 }
 0xf30   : > { %v14114_v25 = vsel %vm1925_vm9, %v14103_v24, 0.0 }
 0xf31   : > { %v14115_v18 = vadd.f32 %v14114_v25, %v14113_v5  ;;  %v14116_v17 = vsel %vm1925_vm9, %v14104_v9, 0.0 }
 0xf33   : > { %v14117_v44 = vadd.f32 %v14116_v17, %v14115_v18 }
 0xf69   : > { %v14051_v8 = vpop.f32.mrb[80].mxu0 }
 0xf6a   : > { %v14052_v12 = vadd.f32 %v14051_v8, %v12478_v26  ;;  %v14092_v59 = vpop.f32.mrb[80].mxu1  ;;  %v14053_v23 = vpop.f32.mrb[81].mxu0 }
 0xf6b   : > { %v14054_v53 = vadd.f32 %v14053_v23, %v12482_v40  ;;  %v14094_v28 = vpop.f32.mrb[81].mxu1  ;;  %v14055_v15 = vpop.f32.mrb[82].mxu0 }
 0xf6c   : > { %v14093_v19 = vadd.f32 %v14092_v59, %v14052_v12  ;;  %v14096_v2 = vpop.f32.mrb[82].mxu1  ;;  %v14056_v10 = vpop.f32.mrb[83].mxu0 }
 0xf6d   : > { %v14095_v20 = vadd.f32 %v14094_v28, %v14054_v53  ;;  %v14097_v37 = vpop.f32.mrb[83].mxu1  ;;  %v18003_v2 = vld [vmem:[%s21335_s0 + $0x90] sm:$0xff]   ;;  %v18004_v10 = vld [vmem:[%s21335_s0 + $0x58] sm:$0xff]  }
 0xf6e   : > { %v14105_v22 = vadd.f32 %v14093_v19, %v20230_v41  ;;  %v17995_v41 = vld [vmem:[%s21335_s0 + $0x80] sm:$0xff]   ;;  %v18002_v19 = vld [vmem:[%s21335_s0 + $0x10] sm:$0xff]   ;;  %v18006_v37 = vld [vmem:[%s21335_s0 + $0x18] sm:$0xff]  }
 0xf6f   : > { %v14106_v46 = vadd.f32 %v14095_v20, %v20228_v51  ;;  %v17994_v51 = vld [vmem:[%s21335_s0] sm:$0xff]   ;;  %17043 = vmatpush3.bf16.msra.mxu1 %v17995_v41  ;;  %v18005_v20 = vld [vmem:[%s21335_s0 + $0xd8] sm:$0xff]   ;;  %v18017_v41 = vld [vmem:[%s21335_s0 + $0xf0] sm:$0xff]  }
 0xf70   : > { %v14118_v38 = vsel %vm1925_vm9, %v14105_v22, 0.0  ;;  %17021 = vmatpush3.bf16.msra.mxu0 %v17994_v51  ;;  %17044 = vmatprep.subr.bf16.mxu1 %v17997_v36  ;;  %v18016_v51 = vld [vmem:[%s21335_s0 + $0x70] sm:$0xff]  }
 0xf71   : > { %v14119_v16 = vadd.f32 %v14118_v38, %v14117_v44  ;;  %v14120_v21 = vsel %vm1925_vm9, %v14106_v46, 0.0  ;;  %17022 = vmatprep.subr.bf16.mxu0 %v17996_v61  ;;  %v18009_v44 = vld [vmem:[%s21335_s0 + $0xe0] sm:$0xff]   ;;  %v18018_v61 = vld [vmem:[%s21335_s0 + $0x30] sm:$0xff]  }
 0xf72   : > { %v18010_v38 = vld [vmem:[%s21335_s0 + $0x20] sm:$0xff]   ;;  %v18019_v36 = vld [vmem:[%s21335_s0 + $0xb0] sm:$0xff]  }
 0xf73   : > { %v14121_v39 = vadd.f32 %v14120_v21, %v14119_v16  ;;  %17045 = vmatpush3.bf16.msra.mxu1 %v17999_v30  ;;  %v18011_v16 = vld [vmem:[%s21335_s0 + $0xa0] sm:$0xff]   ;;  %v18012_v21 = vld [vmem:[%s21335_s0 + $0x68] sm:$0xff]   ;;  %v18021_v30 = vld [vmem:[%s21335_s0 + $0xf8] sm:$0xff]  }
 0xf74   : > { %17023 = vmatpush3.bf16.msra.mxu0 %v17998_v11  ;;  %17046 = vmatprep.subr.bf16.mxu1 %v18001_v32  ;;  %v18020_v11 = vld [vmem:[%s21335_s0 + $0x78] sm:$0xff]  }
 0xf75   : > { %14122 = vadd.xlane.f32.xlu1 %v14121_v39  ;;  %17024 = vmatprep.subr.bf16.mxu0 %v18000_v49  ;;  %v18013_v39 = vld [vmem:[%s21335_s0 + $0xe8] sm:$0xff]   ;;  %v18022_v49 = vld [vmem:[%s21335_s0 + $0x38] sm:$0xff]  }
 0xf76   : > { %v18023_v32 = vld [vmem:[%s21335_s0 + $0xb8] sm:$0xff]  }
 0xf77   : > { %17047 = vmatpush3.bf16.msra.mxu1 %v18003_v2 }
 0xf78   : > { %17025 = vmatpush3.bf16.msra.mxu0 %v18002_v19  ;;  %17048 = vmatprep.subr.bf16.mxu1 %v18005_v20 }
 0xf79   : > { %17026 = vmatprep.subr.bf16.mxu0 %v18004_v10 }
 0xf7c   : > { %17027 = vmatpush3.bf16.msra.mxu0 %v18006_v37 }
0x1002   : > { %v14123_v48 = vpop.xlane.xlu1 %14122 }
0x1003   : > { %v14124_v56 = vmul.f32 0.0009765625, %v14123_v48  ;;  %v18024_v48 = vld [vmem:[%s21335_s0 + $0x140] sm:$0xff]  }
0x1005   : > { %v20910_v6 = vsub.f32 %v14099_v7, %v14124_v56  ;;  %v20912_v54 = vsub.f32 %v14100_v14, %v14124_v56  ;;  %v20914_v42 = vsub.f32 %v14101_v13, %v14124_v56  ;;  %v20916_v50 = vsub.f32 %v14102_v63, %v14124_v56 }
0x1006   : > { %v20918_v58 = vsub.f32 %v14103_v24, %v14124_v56  ;;  %v20926_v33 = vsub.f32 %v14104_v9, %v14124_v56  ;;  %v20932_v29 = vsub.f32 %v14105_v22, %v14124_v56  ;;  %v20937_v26 = vsub.f32 %v14106_v46, %v14124_v56  ;;  %v18007_v22 = vld [vmem:[%s21335_s0 + $0x98] sm:$0xff]   ;;  %v18008_v46 = vld [vmem:[%s21335_s0 + $0x60] sm:$0xff]  }
0x1007   : > { %v14133_v43 = vmul.f32 %v20910_v6, %v20910_v6  ;;  %v14134_v62 = vmul.f32 %v20912_v54, %v20912_v54  ;;  %v14135_v47 = vmul.f32 %v20914_v42, %v20914_v42  ;;  %v14136_v7 = vmul.f32 %v20916_v50, %v20916_v50  ;;  %17049 = vmatpush3.bf16.msra.mxu1 %v18007_v22  ;;  %v18025_v56 = vld [vmem:[%s21335_s0 + $0x1c0] sm:$0xff]  }
0x1008   : > { %v14137_v24 = vmul.f32 %v20918_v58, %v20918_v58  ;;  %v14138_v40 = vmul.f32 %v20926_v33, %v20926_v33  ;;  %v14139_v5 = vmul.f32 %v20932_v29, %v20932_v29  ;;  %v14140_v59 = vmul.f32 %v20937_v26, %v20937_v26  ;;  %17028 = vmatprep.subr.bf16.mxu0 %v18008_v46 }
0x1009   : > { %v14141_v14 = vsel %vm1925_vm9, %v14133_v43, 0.0  ;;  %v14142_v13 = vsel %vm1925_vm9, %v14134_v62, 0.0  ;;  %v14144_v27 = vsel %vm1925_vm9, %v14135_v47, 0.0  ;;  %v14146_v25 = vsel %vm1925_vm9, %v14136_v7, 0.0  ;;  %17050 = vmatprep.subr.bf16.mxu1 %v18009_v44  ;;  %17029 = vmatpush3.bf16.msra.mxu0 %v18010_v38  ;;  %v21022_v7 = vld [vmem:[#allocation33] sm:$0xff] }
0x100a   : > { %v14143_v63 = vadd.f32 %v14142_v13, %v14141_v14  ;;  %v14148_v8 = vsel %vm1925_vm9, %v14137_v24, 0.0  ;;  %v14150_v23 = vsel %vm1925_vm9, %v14138_v40, 0.0  ;;  %v14152_v53 = vsel %vm1925_vm9, %v14139_v5, 0.0  ;;  %17030 = vmatprep.subr.bf16.mxu0 %v18012_v21  ;;  %v21024_v14 = vld [vmem:[#allocation34] sm:$0xff]  ;;  %v18028_v44 = vld [vmem:[%s21335_s0 + $0x148] sm:$0xff]  }
0x100b   : > { %v14154_v15 = vsel %vm1925_vm9, %v14140_v59, 0.0  ;;  %17051 = vmatpush3.bf16.msra.mxu1 %v18011_v16  ;;  %v14178_v13 = vrot.slane %v21022_v7, %v19635_v55  ;;  %v14228_v24 = vrot.slane %v21024_v14, %v19635_v55  ;;  %v14194_v40 = vrot.slane %v21022_v7, %v19811_v34  ;;  %v18029_v38 = vld [vmem:[%s21335_s0 + $0x1c8] sm:$0xff]  }
0x100c   : > { %v14145_v4 = vadd.f32 %v14144_v27, %v14143_v63  ;;  %17052 = vmatprep.subr.bf16.mxu1 %v18013_v39  ;;  %v14186_v63 = vrot.slane %v21022_v7, %v19661_v0  ;;  %v14174_v27 = vrot.slane %v21022_v7, %v19658_v60  ;;  %v14224_v5 = vrot.slane %v21024_v14, %v19658_v60  ;;  %v18030_v39 = vld [vmem:[%s21335_s0 + $0x108] sm:$0xff]  }
0x100d   : > { %17031 = vmatpush3.bf16.msra.mxu0 %v18014_v3  ;;  %v14232_v55 = vrot.slane %v21024_v14, %v19686_v52  ;;  %v18031_v3 = vld [vmem:[%s21335_s0 + $0x188] sm:$0xff]  }
0x100e   : > { %v14147_v9 = vadd.f32 %v14146_v25, %v14145_v4  ;;  %17032 = vmatprep.subr.bf16.mxu0 %v18016_v51  ;;  %v14182_v4 = vrot.slane %v21022_v7, %v19686_v52  ;;  %v14244_v52 = vrot.slane %v21024_v14, %v19811_v34  ;;  %v18033_v51 = vld [vmem:[%s21335_s0 + $0x1d0] sm:$0xff]  }
0x100f   : > { %17053 = vmatpush3.bf16.msra.mxu1 %v18015_v57  ;;  %v18032_v57 = vld [vmem:[%s21335_s0 + $0x150] sm:$0xff]  }
0x1010   : > { %v14149_v12 = vadd.f32 %v14148_v8, %v14147_v9  ;;  %17054 = vmatprep.subr.bf16.mxu1 %v18017_v41  ;;  %v14236_v9 = vrot.slane %v21024_v14, %v19661_v0  ;;  %v14202_v8 = vrot.slane %v21022_v7, %v19814_v1  ;;  %v18034_v41 = vld [vmem:[%s21335_s0 + $0x110] sm:$0xff]  }
0x1011   : > { %17033 = vmatpush3.bf16.msra.mxu0 %v18018_v61  ;;  %v18035_v61 = vld [vmem:[%s21335_s0 + $0x190] sm:$0xff]  }
0x1012   : > { %v14151_v18 = vadd.f32 %v14150_v23, %v14149_v12  ;;  %17034 = vmatprep.subr.bf16.mxu0 %v18020_v11  ;;  %v18037_v11 = vld [vmem:[%s21335_s0 + $0x1d8] sm:$0xff]  }
0x1013   : > { %17055 = vmatpush3.bf16.msra.mxu1 %v18019_v36  ;;  %v18036_v36 = vld [vmem:[%s21335_s0 + $0x158] sm:$0xff]  }
0x1014   : > { %v14153_v28 = vadd.f32 %v14152_v53, %v14151_v18  ;;  %17056 = vmatprep.subr.bf16.mxu1 %v18021_v30  ;;  %v18038_v30 = vld [vmem:[%s21335_s0 + $0x118] sm:$0xff]  }
0x1015   : > { %17035 = vmatpush3.bf16.msra.mxu0 %v18022_v49  ;;  %v18039_v49 = vld [vmem:[%s21335_s0 + $0x198] sm:$0xff]  }
0x1016   : > { %v14155_v17 = vadd.f32 %v14154_v15, %v14153_v28  ;;  %17064 = vmatprep.subr.bf16.mxu0 %v18024_v48  ;;  %v18041_v48 = vld [vmem:[%s21335_s0 + $0x1e0] sm:$0xff]  }
0x1017   : > { %17057 = vmatpush3.bf16.msra.mxu1 %v18023_v32  ;;  %v18040_v32 = vld [vmem:[%s21335_s0 + $0x160] sm:$0xff]  }
0x1018   : > { %14156 = vadd.xlane.f32.xlu1 %v14155_v17  ;;  %17086 = vmatprep.subr.bf16.mxu1 %v18025_v56  ;;  %v18042_v56 = vld [vmem:[%s21335_s0 + $0x120] sm:$0xff]  }
0x10a5   : > { %v14157_v43 = vpop.xlane.xlu1 %14156 }
0x10a6   : > { %v14158_v62 = vmul.f32 0.0009765625, %v14157_v43  ;;  %v18043_v43 = vld [vmem:[%s21335_s0 + $0x1a0] sm:$0xff]  }
0x10a8   : > { %v14159_v47 = vadd.f32 1e-05, %v14158_v62  ;;  %v18044_v62 = vld [vmem:[%s21335_s0 + $0x168] sm:$0xff]  }
0x10aa   : > { %18058 = vrsqrt.f32 %v14159_v47  ;;  %v18045_v47 = vld [vmem:[%s21335_s0 + $0x1e8] sm:$0xff]  }
0x10b4   : > { %v21038_v25 = vpop.eup %18058 }
0x10b5   : > { %v14162_v12 = vmul.f32 %v21038_v25, %v20912_v54  ;;  %v14164_v59 = vmul.f32 %v21038_v25, %v20916_v50  ;;  %v14161_v23 = vmul.f32 %v21038_v25, %v20910_v6  ;;  %v14163_v0 = vmul.f32 %v21038_v25, %v20914_v42 }
0x10b6   : > { %v14166_v60 = vmul.f32 %v21038_v25, %v20926_v33  ;;  %v14168_v18 = vmul.f32 %v21038_v25, %v20937_v26  ;;  %v14252_v54 = vrot.slane %v21024_v14, %v19814_v1  ;;  %v18026_v1 = vld [vmem:[%s21335_s0 + $0x100] sm:$0xff]  }
0x10b7   : > { %v14212_v53 = vmul.f32 %v14178_v13, %v14162_v12  ;;  %v14214_v50 = vmul.f32 %v14186_v63, %v14164_v59  ;;  %v14211_v28 = vmul.f32 %v14174_v27, %v14161_v23  ;;  %v14213_v15 = vmul.f32 %v14182_v4, %v14163_v0  ;;  %v18027_v26 = vld [vmem:[%s21335_s0 + $0x180] sm:$0xff]   ;;  %v18046_v13 = vld [vmem:[%s21335_s0 + $0x128] sm:$0xff]   ;;  %v18048_v27 = vld [vmem:[%s21335_s0 + $0x170] sm:$0xff]  }
0x10b8   : > { %v14216_v6 = vmul.f32 %v14194_v40, %v14166_v60  ;;  %v14218_v17 = vmul.f32 %v14202_v8, %v14168_v18  ;;  %v18047_v63 = vld [vmem:[%s21335_s0 + $0x1a8] sm:$0xff]   ;;  %v18049_v4 = vld [vmem:[%s21335_s0 + $0x1f0] sm:$0xff]   ;;  %v14165_v40 = vmul.f32 %v21038_v25, %v20918_v58  ;;  %v14240_v12 = vrot.slane %v21024_v14, %v19805_v35  ;;  %v18052_v58 = vld [vmem:[%s21335_s0 + $0x178] sm:$0xff]  }
0x10b9   : > { %v14262_v19 = vadd.f32 %v14228_v24, %v14212_v53  ;;  %v14264_v42 = vadd.f32 %v14236_v9, %v14214_v50  ;;  %v14261_v2 = vadd.f32 %v14224_v5, %v14211_v28  ;;  %v14263_v10 = vadd.f32 %v14232_v55, %v14213_v15  ;;  %v18050_v55 = vld [vmem:[%s21335_s0 + $0x130] sm:$0xff]   ;;  %v18055_v23 = vld [vmem:[%s21335_s0 + $0x1b8] sm:$0xff]  }
0x10ba   : > { %v14266_v33 = vadd.f32 %v14244_v52, %v14216_v6  ;;  %v14268_v20 = vadd.f32 %v14252_v54, %v14218_v17  ;;  %v14190_v24 = vrot.slane %v21022_v7, %v19805_v35  ;;  %v14167_v9 = vmul.f32 %v21038_v25, %v20932_v29  ;;  %v18051_v8 = vld [vmem:[%s21335_s0 + $0x1b0] sm:$0xff]   ;;  %v18053_v29 = vld [vmem:[%s21335_s0 + $0x1f8] sm:$0xff]  }
0x10bb   : > { %v14270_v37 = vpack.c.bf16 %v14262_v19, %v14262_v19  ;;  %v14272_v34 = vpack.c.bf16 %v14264_v42, %v14264_v42  ;;  %v14269_v22 = vpack.c.bf16 %v14261_v2, %v14261_v2  ;;  %v14271_v46 = vpack.c.bf16 %v14263_v10, %v14263_v10  ;;  %v18054_v35 = vld [vmem:[%s21335_s0 + $0x138] sm:$0xff]  }
0x10bc   : > { %v14274_v16 = vpack.c.bf16 %v14266_v33, %v14266_v33  ;;  %v14276_v21 = vpack.c.bf16 %v14268_v20, %v14268_v20  ;;  %v14198_v5 = vrot.slane %v21022_v7, %v19808_v31  ;;  %v14215_v7 = vmul.f32 %v14190_v24, %v14165_v40  ;;  %v16911_v54 = vld [vmem:[#allocation36] ss:$0 sm:$0xff] }
0x10bd   : > { %14828 = vmatprep.mubr.bf16.mxu0 %v14270_v37  ;;  %14868 = vmatprep.mubr.bf16.mxu1 %v14272_v34  ;;  %v14248_v59 = vrot.slane %v21024_v14, %v19808_v31 }
0x10be   : > { %14829 = vmatmul.mubr.bf16.vlgmr.msra.gmra.mrb[84].mxu0 %v14269_v22  ;;  %14869 = vmatmul.mubr.bf16.vlgmr.msra.gmra.mrb[84].mxu1 %v14271_v46  ;;  %v14217_v25 = vmul.f32 %v14198_v5, %v14167_v9  ;;  %v14265_v0 = vadd.f32 %v14240_v12, %v14215_v7 }
0x10bf   : > { %17065 = vmatpush3.bf16.msra.mxu0 %v18026_v1  ;;  %17087 = vmatpush3.bf16.msra.mxu1 %v18027_v26 }
0x10c0   : > { %14908 = vmatprep.mubr.bf16.mxu0 %v14274_v16  ;;  %14948 = vmatprep.mubr.bf16.mxu1 %v14276_v21  ;;  %v14267_v60 = vadd.f32 %v14248_v59, %v14217_v25  ;;  %v14273_v52 = vpack.c.bf16 %v14265_v0, %v14265_v0 }
0x10c1   : > { %17066 = vmatprep.subr.bf16.mxu0 %v18028_v44  ;;  %17088 = vmatprep.subr.bf16.mxu1 %v18029_v38 }
0x10c2   : > { %v14275_v18 = vpack.c.bf16 %v14267_v60, %v14267_v60 }
0x10c3   : > { %17067 = vmatpush3.bf16.msra.mxu0 %v18030_v39  ;;  %17089 = vmatpush3.bf16.msra.mxu1 %v18031_v3  ;;  %v14957_v39 = vand.u32 127, %v1703_v45 }
0x10c4   : > { %17068 = vmatprep.subr.bf16.mxu0 %v18032_v57  ;;  %17090 = vmatprep.subr.bf16.mxu1 %v18033_v51 }
0x10c5   : > { %vm14958_vm12 = vcmp.eq.s32.totalorder %v14957_v39, 2 }
0x10c7   : > { %17069 = vmatpush3.bf16.msra.mxu0 %v18034_v41  ;;  %17091 = vmatpush3.bf16.msra.mxu1 %v18035_v61 }
0x10c8   : > { %17070 = vmatprep.subr.bf16.mxu0 %v18036_v36  ;;  %17092 = vmatprep.subr.bf16.mxu1 %v18037_v11 }
0x10cb   : > { %17071 = vmatpush3.bf16.msra.mxu0 %v18038_v30  ;;  %17093 = vmatpush3.bf16.msra.mxu1 %v18039_v49 }
0x10cc   : > { %17072 = vmatprep.subr.bf16.mxu0 %v18040_v32  ;;  %17094 = vmatprep.subr.bf16.mxu1 %v18041_v48 }
0x10cf   : > { %17073 = vmatpush3.bf16.msra.mxu0 %v18042_v56  ;;  %17095 = vmatpush3.bf16.msra.mxu1 %v18043_v43 }
0x10d0   : > { %17074 = vmatprep.subr.bf16.mxu0 %v18044_v62  ;;  %17096 = vmatprep.subr.bf16.mxu1 %v18045_v47 }
0x10d3   : > { %17075 = vmatpush3.bf16.msra.mxu0 %v18046_v13  ;;  %17097 = vmatpush3.bf16.msra.mxu1 %v18047_v63 }
0x10d4   : > { %17076 = vmatprep.subr.bf16.mxu0 %v18048_v27  ;;  %17098 = vmatprep.subr.bf16.mxu1 %v18049_v4 }
0x10d7   : > { %17077 = vmatpush3.bf16.msra.mxu0 %v18050_v55  ;;  %17099 = vmatpush3.bf16.msra.mxu1 %v18051_v8 }
0x10d8   : > { %17078 = vmatprep.subr.bf16.mxu0 %v18052_v58  ;;  %17100 = vmatprep.subr.bf16.mxu1 %v18053_v29 }
0x10db   : > { %17079 = vmatpush3.bf16.msra.mxu0 %v18054_v35  ;;  %17101 = vmatpush3.bf16.msra.mxu1 %v18055_v23 }
0x10de   : > { %14909 = vmatmul.mubr.bf16.vlgmr.msra.gmra.mrb[88].mxu0 %v14273_v52  ;;  %14949 = vmatmul.mubr.bf16.vlgmr.msra.gmra.mrb[88].mxu1 %v14275_v18 }
0x1191   : > { %v17036_v31 = vpop.f32.mrb[84].mxu0  ;;  %v17058_v14 = vpop.f32.mrb[84].mxu1 }
0x1192   : > { %v17037_v53 = vpop.f32.mrb[85].mxu0  ;;  %v17059_v50 = vpop.f32.mrb[85].mxu1 }
0x1193   : > { %v17038_v28 = vadd.f32 %v17037_v53, %v17036_v31  ;;  %v17060_v15 = vadd.f32 %v17059_v50, %v17058_v14  ;;  %v17039_v6 = vpop.f32.mrb[86].mxu0  ;;  %v17061_v17 = vpop.f32.mrb[86].mxu1 }
0x1194   : > { %v17040_v19 = vpop.f32.mrb[87].mxu0  ;;  %v17062_v42 = vpop.f32.mrb[87].mxu1 }
0x1195   : > { %v14831_v2 = vadd.f32 %v17038_v28, %v16911_v54 }
0x1197   : > { %v14871_v10 = vadd.f32 %v17060_v15, %v14831_v2 }
0x11b1   : > { %v17080_v33 = vpop.f32.mrb[88].mxu0  ;;  %v17102_v20 = vpop.f32.mrb[88].mxu1 }
0x11b2   : > { %v17081_v37 = vpop.f32.mrb[89].mxu0  ;;  %v17103_v34 = vpop.f32.mrb[89].mxu1 }
0x11b3   : > { %v17082_v22 = vadd.f32 %v17081_v37, %v17080_v33  ;;  %v17104_v46 = vadd.f32 %v17103_v34, %v17102_v20  ;;  %v17083_v1 = vpop.f32.mrb[90].mxu0  ;;  %v17105_v26 = vpop.f32.mrb[90].mxu1 }
0x11b4   : > { %v17084_v44 = vpop.f32.mrb[91].mxu0  ;;  %v17106_v38 = vpop.f32.mrb[91].mxu1 }
0x11b5   : > { %v14911_v16 = vadd.f32 %v17082_v22, %v14871_v10 }
0x11b7   : > { %v14951_v21 = vadd.f32 %v17104_v46, %v14911_v16 }
0x11b9   : > { %18060 = vtanh.f32 %v14951_v21  ;;  %v14960_v3 = vmax.f32 %v14951_v21, 0.0 }
0x11c3   : > { %v18061_v57 = vpop.eup %18060 }
0x11c4   : > { %v14961_v51 = vsel %vm14958_vm12, %v18061_v57, %v14960_v3 }
0x11c5   : > { %14963 = vst.msk [vmem:[#allocation37] sm:$0x3] %vm14962_vm13, %v14961_v51 }
0x11c6 PF: > { %s21336_s5 = sld [smem:[#allocation53_spill]]  ;;  %s18780_s2 = smov [#allocation37]  }
0x11c7   : > { %s14971_s27 = sshll.u32 %s18780_s2, 4  ;;  %s14972_s27 = int_to_ptr.vmem [resolvable:$true] %s14971_s27 }
0x11c8   : > { %s18651_s10 = scalar_lea.vmem %s14972_s27, 32  ;;  %p18658_p12 = scmp.lt.s32.totalorder %s14972_s27, %s14972_s27 }
0x11c9   : > { %p18652_p11 = scmp.ne.s32.totalorder %s14972_s27, %s18651_s10  ;;  %p18659_p6 = scmp.lt.s32.totalorder %s18651_s10, %s18651_s10 }
0x11cb   : > { %p18660_p4 = por %p18659_p6, %p18658_p12 }
0x11cc   : > { %p17468_p9 = scmp.eq.s32.totalorder %s21336_s5, 1 }
0x11ce   : > { %p18653_p13 = pnand %p18652_p11, %p17468_p9 }
0x11d0   : > { %p18654_p10 = pneg %p18653_p13 }
0x11d2   : > { %p18661_p7 = pnand %p18660_p4, %p18654_p10 }
0x11d4   : > { %18664 = shalt.err (!%p18661_p7)
}
0x11d5   : > { %s21337_s9 = sld [smem:[#allocation71_spill]] }
0x11db   : > { %s18665_s4 = scalar_lea.hbm %s21337_s9, 32 }
0x11dc   : > { %p18666_p8 = scmp.ne.s32.totalorder %s21337_s9, %s18665_s4  ;;  %p18671_p2 = scmp.lt.u32.totalorder %s18665_s4, %s21337_s9 }
0x11de   : > { %p18667_p0 = pnand %p18666_p8, %p17468_p9 }
0x11e0   : > { %p18668_p1 = pneg %p18667_p0 }
0x11e2   : > { %p18673_p3 = pnand %p18671_p2, %p18668_p1 }
0x11e4   : > { %18676 = shalt.err (!%p18673_p3)
}
0x11e5   : > { %17359 = dma.vmem_to_hbm [thread:$0]  (%p17468_p9), %s14972_s27, 32, %s21337_s9, [#allocation6]  }
0x11e6   : > { %18734 = dma.done.wait (%p17468_p9), [#allocation6], 32  }
0x11e7   : > { %18736 = vsyncadd (%p17468_p9), [#allocation6], 4294967264 }
0x11e8 PF: > { %s21338_s7 = sld [smem:[#allocation54_spill]]  ;;  %s21339_s27 = sld [smem:[#allocation51_spill]] }
0x11e9   : > { %s21340_s3 = sld [smem:[#allocation55_spill]] }
0x11ee   : > { %p45_p5 = scmp.ge.s32.totalorder %s21338_s7, 4  }
0x11f0   :  { %47 = sbr.rel (!%p45_p5) target bundleno = 28 (0x1c), region = 290 }
0x11f7   :  { %14984 = vsyncpa [#allocation5], 1 }
0x11f8   :  { %14986 = vsyncpa [#allocation5 + $0x1], 1 }
0x11f9   :  { %14987 = vsyncpa [#allocation8], 1 }
0x11fa   :  { %14988 = vsyncpa [#allocation11], 1 }
0x11fb   :  { %14989 = vsyncpa [#allocation14], 1 }
0x11fc   :  { %14990 = vsyncpa [#allocation17], 1 }
0x11fd   :  { %14991 = vsyncpa [#allocation20], 1 }
0x11fe   :  { %14992 = vsyncpa [#allocation23], 1 }
0x11ff   :  { %14993 = vsyncpa [#allocation26], 1 }
0x1200   :  { %14994 = vsyncpa [#allocation29], 1 }
0x1201   :  { %14995 = vsyncpa [#allocation32], 1 }
0x1202   :  { %14996 = vsyncpa [#allocation35], 1 }
0x1203   :  { %14997 = vsyncpa [#allocation6], 1 }
0x1204   :  { %14999 = vsyncpa [#allocation6 + $0x1], 1 }

</bundles_post_ra>
